<compile_context>
chip_gen: v5e
topology: v5e:2x2
jax: 0.10.0
libtpu: 0.0.40
codegen_flags: <defaults>
</compile_context>

<pallas_src>
import jax
import jax.numpy as jnp
from jax.experimental import pallas as pl
from jax.experimental.pallas import tpu as pltpu


OUT_PAD = 128  # fc3 output width padded from 10 to one full lane tile


def mlp_kernel(x_ref, w1_ref, b1_ref, w2_ref, b2_ref, w3_ref, b3_ref, o_ref):
    # One batch tile per grid step; weights are VMEM-resident across the whole grid.
    x = x_ref[...].astype(jnp.bfloat16)                             # (TB, 784)

    h1 = jnp.dot(x, w1_ref[...], preferred_element_type=jnp.float32) + b1_ref[...]
    h1 = jnp.maximum(h1, 0.0).astype(jnp.bfloat16)                  # (TB, 1200)

    h2 = jnp.dot(h1, w2_ref[...], preferred_element_type=jnp.float32) + b2_ref[...]
    h2 = jnp.maximum(h2, 0.0).astype(jnp.bfloat16)                  # (TB, 1200)

    out = jnp.dot(h2, w3_ref[...], preferred_element_type=jnp.float32) + b3_ref[...]
    o_ref[...] = out.astype(o_ref.dtype)                            # (TB, 128)


def target_network_mnist(x, params, *, block_b=256):
    """x: (B, 1, 28, 28) or (B, 784) float32. Returns logits (B, 10) float32."""
    w1, b1, w2, b2, w3, b3 = params
    x2d = x.reshape(-1, 28 * 28).astype(jnp.float32)                # x.view(-1, 784)
    B = x2d.shape[0]

    # bf16 weights (halve HBM traffic, bf16 MXU); biases stay f32.
    w1b = w1.astype(jnp.bfloat16)
    w2b = w2.astype(jnp.bfloat16)
    # Pad fc3 to 128 output lanes with zero columns (sliced off after the call).
    w3p = jnp.zeros((w3.shape[0], OUT_PAD), jnp.bfloat16).at[:, :10].set(w3.astype(jnp.bfloat16))
    b3p = jnp.zeros((1, OUT_PAD), jnp.float32).at[:, :10].set(b1.dtype.type(0) + b3)

    # Batch tile: 256 rows when the batch is large, else the whole (sublane-padded) batch.
    TB = block_b if B >= block_b else max(8, ((B + 7) // 8) * 8)
    Bp = pl.cdiv(B, TB) * TB
    if Bp != B:
        x2d = jnp.pad(x2d, ((0, Bp - B), (0, 0)))                   # padded rows -> dropped
    grid = (Bp // TB,)

    flops = 2 * Bp * (784 * 1200 + 1200 * 1200 + 1200 * OUT_PAD)
    bytes_accessed = (x2d.size * 4 + w1b.size * 2 + w2b.size * 2 + w3p.size * 2
                      + b1.size * 4 + b2.size * 4 + b3p.size * 4 + Bp * OUT_PAD * 4)

    out = pl.pallas_call(
        mlp_kernel,
        out_shape=jax.ShapeDtypeStruct((Bp, OUT_PAD), jnp.float32),
        grid_spec=pltpu.PrefetchScalarGridSpec(
            num_scalar_prefetch=0,
            grid=grid,
            in_specs=[
                pl.BlockSpec((TB, 28 * 28), lambda i: (i, 0)),      # x: batch-tiled
                pl.BlockSpec((28 * 28, 1200), lambda i: (0, 0)),    # w1: resident
                pl.BlockSpec((1, 1200), lambda i: (0, 0)),          # b1: resident
                pl.BlockSpec((1200, 1200), lambda i: (0, 0)),       # w2: resident
                pl.BlockSpec((1, 1200), lambda i: (0, 0)),          # b2: resident
                pl.BlockSpec((1200, OUT_PAD), lambda i: (0, 0)),    # w3 (padded): resident
                pl.BlockSpec((1, OUT_PAD), lambda i: (0, 0)),       # b3 (padded): resident
            ],
            out_specs=pl.BlockSpec((TB, OUT_PAD), lambda i: (i, 0)),
        ),
        compiler_params=pltpu.CompilerParams(
            dimension_semantics=("parallel",),
            vmem_limit_bytes=32 << 20,
        ),
        cost_estimate=pl.CostEstimate(
            flops=flops, transcendentals=0, bytes_accessed=bytes_accessed),
    )(x2d, w1b, b1, w2b, b2, w3p, b3p)

    return out[:B, :10]


def init_params(key):
    """PyTorch nn.Linear-style init (uniform +/- 1/sqrt(fan_in)).
    Weights stored transposed as (in_features, out_features); biases as (1, out_features)."""
    def linear(k, fan_in, fan_out):
        kw, kb = jax.random.split(k)
        bound = 1.0 / (fan_in ** 0.5)
        w = jax.random.uniform(kw, (fan_in, fan_out), jnp.float32, -bound, bound)
        b = jax.random.uniform(kb, (1, fan_out), jnp.float32, -bound, bound)
        return w, b

    k1, k2, k3 = jax.random.split(key, 3)
    w1, b1 = linear(k1, 28 * 28, 1200)
    w2, b2 = linear(k2, 1200, 1200)
    w3, b3 = linear(k3, 1200, 10)
    return (w1, b1, w2, b2, w3, b3)


def reference_forward(x, params):
    """Plain-JAX reference mirroring the kernel's bf16-weight / f32-accumulate numerics."""
    w1, b1, w2, b2, w3, b3 = params
    h = x.reshape(-1, 28 * 28).astype(jnp.float32)
    h = jnp.maximum(jnp.dot(h.astype(jnp.bfloat16), w1.astype(jnp.bfloat16),
                            preferred_element_type=jnp.float32) + b1, 0.0)
    h = jnp.maximum(jnp.dot(h.astype(jnp.bfloat16), w2.astype(jnp.bfloat16),
                            preferred_element_type=jnp.float32) + b2, 0.0)
    return jnp.dot(h.astype(jnp.bfloat16), w3.astype(jnp.bfloat16),
                   preferred_element_type=jnp.float32) + b3


if __name__ == "__main__":
    key = jax.random.PRNGKey(0)
    k_params, k_x = jax.random.split(key)

    params = init_params(k_params)
    x = jax.random.normal(k_x, (8, 1, 28, 28), jnp.float32)   # MNIST-shaped NCHW batch

    out = target_network_mnist(x, params)
    out = jax.block_until_ready(out)

    ref = reference_forward(x, params)
    assert out.shape == (8, 10), out.shape
    assert jnp.allclose(out, ref, atol=2e-2, rtol=2e-2), "mismatch vs reference"

    print("KERNEL_OK")
</pallas_src>

<mosaic_0001>
module attributes {stable_mosaic.version = 11 : i64} {
  func.func @mlp_kernel(%arg0: i32, %arg1: memref<8x784xf32, #tpu.memory_space<vmem>>, %arg2: memref<784x1200xbf16, #tpu.memory_space<vmem>>, %arg3: memref<1x1200xf32, #tpu.memory_space<vmem>>, %arg4: memref<1200x1200xbf16, #tpu.memory_space<vmem>>, %arg5: memref<1x1200xf32, #tpu.memory_space<vmem>>, %arg6: memref<1200x128xbf16, #tpu.memory_space<vmem>>, %arg7: memref<1x128xf32, #tpu.memory_space<vmem>>, %arg8: memref<8x128xf32, #tpu.memory_space<vmem>>) attributes {dimension_semantics = [#tpu.dimension_semantics<parallel>], iteration_bounds = array<i64: 1>, scalar_prefetch = 0 : i64, scratch_operands = 0 : i64, tpu.core_type = #tpu.core_type<tc>, window_params = [{transform_indices = @transform_0, window_bounds = array<i64: 8, 784>}, {pipeline_mode = #tpu.pipeline_mode<synchronous>, transform_indices = @transform_1, window_bounds = array<i64: 784, 1200>}, {pipeline_mode = #tpu.pipeline_mode<synchronous>, transform_indices = @transform_2, window_bounds = array<i64: 1, 1200>}, {pipeline_mode = #tpu.pipeline_mode<synchronous>, transform_indices = @transform_3, window_bounds = array<i64: 1200, 1200>}, {pipeline_mode = #tpu.pipeline_mode<synchronous>, transform_indices = @transform_4, window_bounds = array<i64: 1, 1200>}, {pipeline_mode = #tpu.pipeline_mode<synchronous>, transform_indices = @transform_5, window_bounds = array<i64: 1200, 128>}, {pipeline_mode = #tpu.pipeline_mode<synchronous>, transform_indices = @transform_6, window_bounds = array<i64: 1, 128>}, {transform_indices = @transform_7, window_bounds = array<i64: 8, 128>}]} {
    %c0 = arith.constant 0 : index
    %c0_0 = arith.constant 0 : index
    %0 = vector.load %arg1[%c0, %c0_0] : memref<8x784xf32, #tpu.memory_space<vmem>>, vector<8x784xf32>
    %1 = arith.truncf %0 : vector<8x784xf32> to vector<8x784xbf16>
    %c0_1 = arith.constant 0 : index
    %c0_2 = arith.constant 0 : index
    %2 = vector.load %arg2[%c0_1, %c0_2] : memref<784x1200xbf16, #tpu.memory_space<vmem>>, vector<784x1200xbf16>
    %cst = arith.constant dense<0.000000e+00> : vector<8x1200xf32>
    %3 = tpu.matmul %1, %2, %cst {dimension_numbers = #tpu.dot_dimension_numbers<[1], [0], [0], [1], [0, 0, 1, 1], [], []>} : vector<8x784xbf16>, vector<784x1200xbf16>, vector<8x1200xf32> -> vector<8x1200xf32>
    %c0_3 = arith.constant 0 : index
    %c0_4 = arith.constant 0 : index
    %4 = vector.load %arg3[%c0_3, %c0_4] : memref<1x1200xf32, #tpu.memory_space<vmem>>, vector<1x1200xf32>
    %5 = vector.broadcast %4 : vector<1x1200xf32> to vector<8x1200xf32>
    %6 = arith.addf %3, %5 : vector<8x1200xf32>
    %cst_5 = arith.constant 0.000000e+00 : f32
    %7 = vector.broadcast %cst_5 : f32 to vector<8x1200xf32>
    %8 = arith.maximumf %6, %7 : vector<8x1200xf32>
    %9 = arith.truncf %8 : vector<8x1200xf32> to vector<8x1200xbf16>
    %c0_6 = arith.constant 0 : index
    %c0_7 = arith.constant 0 : index
    %10 = vector.load %arg4[%c0_6, %c0_7] : memref<1200x1200xbf16, #tpu.memory_space<vmem>>, vector<1200x1200xbf16>
    %cst_8 = arith.constant dense<0.000000e+00> : vector<8x1200xf32>
    %11 = tpu.matmul %9, %10, %cst_8 {dimension_numbers = #tpu.dot_dimension_numbers<[1], [0], [0], [1], [0, 0, 1, 1], [], []>} : vector<8x1200xbf16>, vector<1200x1200xbf16>, vector<8x1200xf32> -> vector<8x1200xf32>
    %c0_9 = arith.constant 0 : index
    %c0_10 = arith.constant 0 : index
    %12 = vector.load %arg5[%c0_9, %c0_10] : memref<1x1200xf32, #tpu.memory_space<vmem>>, vector<1x1200xf32>
    %13 = vector.broadcast %12 : vector<1x1200xf32> to vector<8x1200xf32>
    %14 = arith.addf %11, %13 : vector<8x1200xf32>
    %cst_11 = arith.constant 0.000000e+00 : f32
    %15 = vector.broadcast %cst_11 : f32 to vector<8x1200xf32>
    %16 = arith.maximumf %14, %15 : vector<8x1200xf32>
    %17 = arith.truncf %16 : vector<8x1200xf32> to vector<8x1200xbf16>
    %c0_12 = arith.constant 0 : index
    %c0_13 = arith.constant 0 : index
    %18 = vector.load %arg6[%c0_12, %c0_13] : memref<1200x128xbf16, #tpu.memory_space<vmem>>, vector<1200x128xbf16>
    %cst_14 = arith.constant dense<0.000000e+00> : vector<8x128xf32>
    %19 = tpu.matmul %17, %18, %cst_14 {dimension_numbers = #tpu.dot_dimension_numbers<[1], [0], [0], [1], [0, 0, 1, 1], [], []>} : vector<8x1200xbf16>, vector<1200x128xbf16>, vector<8x128xf32> -> vector<8x128xf32>
    %c0_15 = arith.constant 0 : index
    %c0_16 = arith.constant 0 : index
    %20 = vector.load %arg7[%c0_15, %c0_16] : memref<1x128xf32, #tpu.memory_space<vmem>>, vector<1x128xf32>
    %21 = vector.broadcast %20 : vector<1x128xf32> to vector<8x128xf32>
    %22 = arith.addf %19, %21 : vector<8x128xf32>
    %c0_17 = arith.constant 0 : index
    %c0_18 = arith.constant 0 : index
    %23 = vector.load %arg8[%c0_17, %c0_18] : memref<8x128xf32, #tpu.memory_space<vmem>>, vector<8x128xf32>
    tpu.vector_store %arg8[%c0_17, %c0_18], %22 {strides = array<i32>} : memref<8x128xf32, #tpu.memory_space<vmem>>, vector<8x128xf32>,
    return
  }
  func.func @transform_0(%arg0: i32) -> (i32, i32) {
    %c0_i32 = arith.constant 0 : i32
    %c0_i32_0 = arith.constant 0 : i32
    return %arg0, %c0_i32 : i32, i32
  }
  func.func @transform_1(%arg0: i32) -> (i32, i32) {
    %c0_i32 = arith.constant 0 : i32
    %c0_i32_0 = arith.constant 0 : i32
    %c0_i32_1 = arith.constant 0 : i32
    return %c0_i32, %c0_i32_0 : i32, i32
  }
  func.func @transform_2(%arg0: i32) -> (i32, i32) {
    %c0_i32 = arith.constant 0 : i32
    %c0_i32_0 = arith.constant 0 : i32
    %c0_i32_1 = arith.constant 0 : i32
    return %c0_i32, %c0_i32_0 : i32, i32
  }
  func.func @transform_3(%arg0: i32) -> (i32, i32) {
    %c0_i32 = arith.constant 0 : i32
    %c0_i32_0 = arith.constant 0 : i32
    %c0_i32_1 = arith.constant 0 : i32
    return %c0_i32, %c0_i32_0 : i32, i32
  }
  func.func @transform_4(%arg0: i32) -> (i32, i32) {
    %c0_i32 = arith.constant 0 : i32
    %c0_i32_0 = arith.constant 0 : i32
    %c0_i32_1 = arith.constant 0 : i32
    return %c0_i32, %c0_i32_0 : i32, i32
  }
  func.func @transform_5(%arg0: i32) -> (i32, i32) {
    %c0_i32 = arith.constant 0 : i32
    %c0_i32_0 = arith.constant 0 : i32
    %c0_i32_1 = arith.constant 0 : i32
    return %c0_i32, %c0_i32_0 : i32, i32
  }
  func.func @transform_6(%arg0: i32) -> (i32, i32) {
    %c0_i32 = arith.constant 0 : i32
    %c0_i32_0 = arith.constant 0 : i32
    %c0_i32_1 = arith.constant 0 : i32
    return %c0_i32, %c0_i32_0 : i32, i32
  }
  func.func @transform_7(%arg0: i32) -> (i32, i32) {
    %c0_i32 = arith.constant 0 : i32
    %c0_i32_0 = arith.constant 0 : i32
    return %arg0, %c0_i32 : i32, i32
  }
}

</mosaic_0001>

<bundles_post_ra>
// kernel: tpu_custom_call.1
= control target key start
LH: loop header
LB: loop body
LE: loop exit
PB: predicated region body
PF: predicated region fallthrough
CT: control target
= control target key end

     0   :  { %12 = vsyncpa [#allocation3], 0  ;;  %s18093_s0 = inlined_call_operand.hbm [shape: f32[8,784], index: 0, kind: input, shape index: {}]   ;;  %s18094_s1 = inlined_call_operand.hbm [shape: bf16[784,1200], index: 1, kind: input, shape index: {}]   ;;  %s18095_s2 = inlined_call_operand.hbm [shape: f32[1,1200], index: 2, kind: input, shape index: {}]   ;;  %s18096_s3 = inlined_call_operand.hbm [shape: bf16[1200,1200], index: 3, kind: input, shape index: {}]   ;;  %s18097_s4 = inlined_call_operand.hbm [shape: f32[1,1200], index: 4, kind: input, shape index: {}]   ;;  %s18098_s5 = inlined_call_operand.hbm [shape: bf16[1200,128], index: 5, kind: input, shape index: {}]   ;;  %s18099_s6 = inlined_call_operand.hbm [shape: f32[1,128], index: 6, kind: input, shape index: {}]   ;;  %s18100_s7 = inlined_call_operand.hbm [shape: f32[8,128], index: 7, kind: output, shape index: {}]  }
   0x1   :  { %13 = vsyncpa [#allocation6], 0 }
   0x2   :  { %14 = vsyncpa [#allocation9], 0 }
   0x3   :  { %15 = vsyncpa [#allocation12], 0  ;;  %s32_s26 = sshll.u32 %s18094_s1, 4  ;;  %s33_s26 = int_to_ptr.hbm [resolvable:$true] %s32_s26 }
   0x4   :  { %16 = vsyncpa [#allocation4], 0  ;;  %s17463_s27 = smov [#allocation5]   ;;  %s56_s8 = sshll.u32 %s18096_s3, 4  ;;  %s57_s8 = int_to_ptr.hbm [resolvable:$true] %s56_s8 }
   0x5   :  { %s34_s28 = sshll.u32 %s17463_s27, 4  ;;  %s17464_s9 = smov 640   ;;  %s35_s28 = int_to_ptr.vmem [resolvable:$true] %s34_s28 }
   0x6   :  { %s17465_s10 = smov 40   ;;  %s17466_s11 = smov [#allocation8]  }
   0x7   :  { %40 = dma.hbm_to_vmem [thread:$0]  %s33_s26, 62720, %s35_s28, [#allocation6], %s17464_s9, %s17464_s9, %s17465_s10  }
   0x8   :  { %s58_s12 = sshll.u32 %s17466_s11, 4  ;;  %s80_s15 = sshll.u32 %s18098_s5, 4  ;;  %s59_s12 = int_to_ptr.vmem [resolvable:$true] %s58_s12  ;;  %s81_s15 = int_to_ptr.hbm [resolvable:$true] %s80_s15 }
   0x9   :  { %64 = dma.hbm_to_vmem [thread:$0]  %s57_s8, 96000, %s59_s12, [#allocation9], %s17464_s9, %s17464_s9, %s17465_s10  }
   0xa   :  { %s17467_s1 = smov [#allocation11]   ;;  %s22_s3 = sshll.u32 %s18093_s0, 4  ;;  %s23_s3 = int_to_ptr.hbm [resolvable:$true] %s22_s3 }
   0xb   :  { %s82_s16 = sshll.u32 %s17467_s1, 4  ;;  %s17468_s19 = smov 64   ;;  %s83_s16 = int_to_ptr.vmem [resolvable:$true] %s82_s16 }
   0xc   :  { %s17469_s20 = smov 4   ;;  %s17470_s21 = smov [#allocation2]  }
   0xd   :  { %88 = dma.hbm_to_vmem [thread:$0]  %s81_s15, 9600, %s83_s16, [#allocation12], %s17468_s19, %s17468_s19, %s17469_s20  }
   0xe   :  { %s24_s22 = sshll.u32 %s17470_s21, 4  ;;  %s46_s5 = sshll.u32 %s18095_s2, 4  ;;  %s25_s22 = int_to_ptr.vmem [resolvable:$true] %s24_s22  ;;  %s47_s5 = int_to_ptr.hbm [resolvable:$true] %s46_s5 }
   0xf   :  { %27 = dma.hbm_to_vmem [thread:$0]  %s23_s3, 896, %s25_s22, [#allocation3]  }
  0x10   :  { %s70_s27 = sshll.u32 %s18097_s4, 4  ;;  %s17471_s28 = smov [#allocation7]   ;;  %s71_s27 = int_to_ptr.hbm [resolvable:$true] %s70_s27 }
  0x11   :  { %s48_s29 = sshll.u32 %s17471_s28, 4  ;;  %s17472_s0 = smov [#allocation10]   ;;  %s49_s29 = int_to_ptr.vmem [resolvable:$true] %s48_s29 }
  0x12   :  { %51 = dma.hbm_to_vmem [thread:$0]  %s47_s5, 160, %s49_s29, [#allocation6]  }
  0x13   :  { %s72_s30 = sshll.u32 %s17472_s0, 4  ;;  %s94_s10 = sshll.u32 %s18099_s6, 4  ;;  %s73_s30 = int_to_ptr.vmem [resolvable:$true] %s72_s30  ;;  %s95_s10 = int_to_ptr.hbm [resolvable:$true] %s94_s10 }
  0x14   :  { %75 = dma.hbm_to_vmem [thread:$0]  %s71_s27, 160, %s73_s30, [#allocation9]  }
  0x15   :  { %s17473_s2 = smov [#allocation13]  }
  0x16   :  { %s96_s11 = sshll.u32 %s17473_s2, 4  ;;  %s97_s11 = int_to_ptr.vmem [resolvable:$true] %s96_s11 }
  0x17   :  { %99 = dma.hbm_to_vmem [thread:$0]  %s95_s10, 16, %s97_s11, [#allocation12]  }
  0x18   :  { %17453 = dma.done.wait [#allocation3], 896  }
  0x19   :  { %17454 = vsyncadd [#allocation3], 4294966400 }
  0x1a   :  { %17455 = dma.done.wait [#allocation6], 62880  }
  0x1b   :  { %17456 = vsyncadd [#allocation6], 4294904416 }
  0x1c   :  { %17457 = dma.done.wait [#allocation9], 96160  }
  0x1d   :  { %17458 = vsyncadd [#allocation9], 4294871136 }
  0x1e   :  { %17459 = dma.done.wait [#allocation12], 9616  }
  0x1f   :  { %17460 = vsyncadd [#allocation12], 4294957680  ;;  %v10929_v0 = vld [vmem:[#allocation5 + $0x230] sm:$0xf]  ;;  %v16003_v1 = vld [vmem:[#allocation5 + $0x254] sm:$0xf0] }
  0x20   :  { %v11249_v2 = vld [vmem:[#allocation5 + $0x4b0] sm:$0xf]  ;;  %v10930_v3 = vor.u32 %v16003_v1, %v10929_v0  ;;  %v16083_v4 = vld [vmem:[#allocation5 + $0x4d4] sm:$0xf0]  ;;  %v10889_v11 = vld [vmem:[#allocation5 + $0x1e0] sm:$0xf] }
  0x21   :  { %v11569_v5 = vld [vmem:[#allocation5 + $0x730] sm:$0xf]  ;;  %v16163_v6 = vld [vmem:[#allocation5 + $0x754] sm:$0xf0]  ;;  %v11250_v7 = vor.u32 %v16083_v4, %v11249_v2  ;;  %v15993_v13 = vld [vmem:[#allocation5 + $0x204] sm:$0xf0] }
  0x22   :  { %v11570_v8 = vor.u32 %v16163_v6, %v11569_v5  ;;  %v11889_v9 = vld [vmem:[#allocation5 + $0x9b0] sm:$0xf]  ;;  %v16243_v10 = vld [vmem:[#allocation5 + $0x9d4] sm:$0xf0]  ;;  %3111 = vmatpush.bf16.msra.mxu0 %v10930_v3  ;;  %v11209_v14 = vld [vmem:[#allocation5 + $0x460] sm:$0xf]  ;;  %v10890_v16 = vor.u32 %v15993_v13, %v10889_v11 }
  0x23   :  { %v11890_v12 = vor.u32 %v16243_v10, %v11889_v9  ;;  %v16073_v15 = vld [vmem:[#allocation5 + $0x484] sm:$0xf0]  ;;  %3124 = vmatpush.bf16.msra.mxu1 %v11250_v7  ;;  %v11529_v18 = vld [vmem:[#allocation5 + $0x6e0] sm:$0xf]  ;;  %v10849_v23 = vld [vmem:[#allocation5 + $0x190] sm:$0xf] }
  0x24   :  { %3137 = vmatpush.bf16.msra.mxu2 %v11570_v8  ;;  %v11210_v17 = vor.u32 %v16073_v15, %v11209_v14  ;;  %v16153_v19 = vld [vmem:[#allocation5 + $0x704] sm:$0xf0]  ;;  %v11849_v20 = vld [vmem:[#allocation5 + $0x960] sm:$0xf]  ;;  %v15983_v24 = vld [vmem:[#allocation5 + $0x1b4] sm:$0xf0] }
  0x25   :  { %3150 = vmatpush.bf16.msra.mxu3 %v11890_v12  ;;  %v11530_v21 = vor.u32 %v16153_v19, %v11529_v18  ;;  %v16233_v22 = vld [vmem:[#allocation5 + $0x984] sm:$0xf0]  ;;  %v11169_v26 = vld [vmem:[#allocation5 + $0x410] sm:$0xf]  ;;  %v16063_v27 = vld [vmem:[#allocation5 + $0x434] sm:$0xf0]  ;;  %v10850_v29 = vor.u32 %v15983_v24, %v10849_v23 }
  0x26   :  { %v11850_v25 = vor.u32 %v16233_v22, %v11849_v20  ;;  %v11489_v28 = vld [vmem:[#allocation5 + $0x690] sm:$0xf]  ;;  %3112 = vmatpush.bf16.msra.mxu0 %v10890_v16  ;;  %v16143_v30 = vld [vmem:[#allocation5 + $0x6b4] sm:$0xf0]  ;;  %v11170_v33 = vor.u32 %v16063_v27, %v11169_v26  ;;  %v10809_v35 = vld [vmem:[#allocation5 + $0x140] sm:$0xf] }
  0x27   :  { %v11809_v31 = vld [vmem:[#allocation5 + $0x910] sm:$0xf]  ;;  %v16223_v32 = vld [vmem:[#allocation5 + $0x934] sm:$0xf0]  ;;  %3125 = vmatpush.bf16.msra.mxu1 %v11210_v17  ;;  %v11490_v34 = vor.u32 %v16143_v30, %v11489_v28  ;;  %v15973_v36 = vld [vmem:[#allocation5 + $0x164] sm:$0xf0] }
  0x28   :  { %3138 = vmatpush.bf16.msra.mxu2 %v11530_v21  ;;  %v11129_v37 = vld [vmem:[#allocation5 + $0x3c0] sm:$0xf]  ;;  %v11810_v38 = vor.u32 %v16223_v32, %v11809_v31  ;;  %v16053_v39 = vld [vmem:[#allocation5 + $0x3e4] sm:$0xf0]  ;;  %v10810_v44 = vor.u32 %v15973_v36, %v10809_v35  ;;  %v10769_v47 = vld [vmem:[#allocation5 + $0xf0] sm:$0xf] }
  0x29   :  { %3151 = vmatpush.bf16.msra.mxu3 %v11850_v25  ;;  %v11449_v40 = vld [vmem:[#allocation5 + $0x640] sm:$0xf]  ;;  %v16133_v41 = vld [vmem:[#allocation5 + $0x664] sm:$0xf0]  ;;  %v11130_v45 = vor.u32 %v16053_v39, %v11129_v37  ;;  %v15963_v48 = vld [vmem:[#allocation5 + $0x114] sm:$0xf0] }
  0x2a   :  { %v11769_v42 = vld [vmem:[#allocation5 + $0x8c0] sm:$0xf]  ;;  %v16213_v43 = vld [vmem:[#allocation5 + $0x8e4] sm:$0xf0]  ;;  %3113 = vmatpush.bf16.msra.mxu0 %v10850_v29  ;;  %v11450_v46 = vor.u32 %v16133_v41, %v11449_v40  ;;  %v11089_v49 = vld [vmem:[#allocation5 + $0x370] sm:$0xf]  ;;  %v10770_v56 = vor.u32 %v15963_v48, %v10769_v47 }
  0x2b   :  { %3126 = vmatpush.bf16.msra.mxu1 %v11170_v33  ;;  %v11770_v50 = vor.u32 %v16213_v43, %v11769_v42  ;;  %v16043_v51 = vld [vmem:[#allocation5 + $0x394] sm:$0xf0]  ;;  %v11409_v52 = vld [vmem:[#allocation5 + $0x5f0] sm:$0xf]  ;;  %v10729_v59 = vld [vmem:[#allocation5 + $0xa0] sm:$0xf] }
  0x2c   :  { %3139 = vmatpush.bf16.msra.mxu2 %v11490_v34  ;;  %v16123_v53 = vld [vmem:[#allocation5 + $0x614] sm:$0xf0]  ;;  %v11729_v54 = vld [vmem:[#allocation5 + $0x870] sm:$0xf]  ;;  %v11090_v57 = vor.u32 %v16043_v51, %v11089_v49  ;;  %v15953_v60 = vld [vmem:[#allocation5 + $0xc4] sm:$0xf0] }
  0x2d   :  { %3152 = vmatpush.bf16.msra.mxu3 %v11810_v38  ;;  %v16203_v55 = vld [vmem:[#allocation5 + $0x894] sm:$0xf0]  ;;  %v11410_v58 = vor.u32 %v16123_v53, %v11409_v52  ;;  %v11049_v61 = vld [vmem:[#allocation5 + $0x320] sm:$0xf]  ;;  %v16033_v63 = vld [vmem:[#allocation5 + $0x344] sm:$0xf0]  ;;  %v10730_v4 = vor.u32 %v15953_v60, %v10729_v59 }
  0x2e   :  { %3114 = vmatpush.bf16.msra.mxu0 %v10810_v44  ;;  %v11730_v62 = vor.u32 %v16203_v55, %v11729_v54  ;;  %v11369_v0 = vld [vmem:[#allocation5 + $0x5a0] sm:$0xf]  ;;  %v16113_v1 = vld [vmem:[#allocation5 + $0x5c4] sm:$0xf0]  ;;  %v11050_v5 = vor.u32 %v16033_v63, %v11049_v61  ;;  %v10689_v7 = vld [vmem:[#allocation5 + $0x50] sm:$0xf] }
  0x2f   :  { %3127 = vmatpush.bf16.msra.mxu1 %v11130_v45  ;;  %v11689_v2 = vld [vmem:[#allocation5 + $0x820] sm:$0xf]  ;;  %v16193_v3 = vld [vmem:[#allocation5 + $0x844] sm:$0xf0]  ;;  %v11370_v6 = vor.u32 %v16113_v1, %v11369_v0  ;;  %v15943_v8 = vld [vmem:[#allocation5 + $0x74] sm:$0xf0] }
  0x30   :  { %3140 = vmatpush.bf16.msra.mxu2 %v11450_v46  ;;  %v11009_v9 = vld [vmem:[#allocation5 + $0x2d0] sm:$0xf]  ;;  %v11690_v10 = vor.u32 %v16193_v3, %v11689_v2  ;;  %v16023_v11 = vld [vmem:[#allocation5 + $0x2f4] sm:$0xf0]  ;;  %v10690_v16 = vor.u32 %v15943_v8, %v10689_v7  ;;  %v10649_v17 = vld [vmem:[#allocation5] sm:$0xf] }
  0x31   :  { %3153 = vmatpush.bf16.msra.mxu3 %v11770_v50  ;;  %v11329_v12 = vld [vmem:[#allocation5 + $0x550] sm:$0xf]  ;;  %v16103_v13 = vld [vmem:[#allocation5 + $0x574] sm:$0xf0]  ;;  %v15933_v18 = vld [vmem:[#allocation5 + $0x24] sm:$0xf0]  ;;  %v11010_v19 = vor.u32 %v16023_v11, %v11009_v9 }
  0x32   :  { %3115 = vmatpush.bf16.msra.mxu0 %v10770_v56  ;;  %v11649_v14 = vld [vmem:[#allocation5 + $0x7d0] sm:$0xf]  ;;  %v16183_v15 = vld [vmem:[#allocation5 + $0x7f4] sm:$0xf0]  ;;  %v11330_v20 = vor.u32 %v16103_v13, %v11329_v12  ;;  %v10969_v21 = vld [vmem:[#allocation5 + $0x280] sm:$0xf]  ;;  %v10650_v31 = vor.u32 %v15933_v18, %v10649_v17 }
  0x33   :  { %3128 = vmatpush.bf16.msra.mxu1 %v11090_v57  ;;  %v16013_v22 = vld [vmem:[#allocation5 + $0x2a4] sm:$0xf0]  ;;  %v11289_v23 = vld [vmem:[#allocation5 + $0x500] sm:$0xf]  ;;  %v11650_v24 = vor.u32 %v16183_v15, %v11649_v14  ;;  %v12209_v28 = vld [vmem:[#allocation5 + $0xc30] sm:$0xf] }
  0x34   :  { %3141 = vmatpush.bf16.msra.mxu2 %v11410_v58  ;;  %v16093_v25 = vld [vmem:[#allocation5 + $0x524] sm:$0xf0]  ;;  %v11609_v26 = vld [vmem:[#allocation5 + $0x780] sm:$0xf]  ;;  %v16323_v29 = vld [vmem:[#allocation5 + $0xc54] sm:$0xf0]  ;;  %v10970_v35 = vor.u32 %v16013_v22, %v10969_v21 }
  0x35   :  { %3154 = vmatpush.bf16.msra.mxu3 %v11730_v62  ;;  %v16173_v27 = vld [vmem:[#allocation5 + $0x7a4] sm:$0xf0]  ;;  %v12529_v30 = vld [vmem:[#allocation5 + $0xeb0] sm:$0xf]  ;;  %v16403_v32 = vld [vmem:[#allocation5 + $0xed4] sm:$0xf0]  ;;  %v11290_v36 = vor.u32 %v16093_v25, %v11289_v23  ;;  %v12210_v40 = vor.u32 %v16323_v29, %v12209_v28 }
  0x36   :  { %3116 = vmatpush.bf16.msra.mxu0 %v10730_v4  ;;  %v15998_v33 = vld [vmem:[#allocation5 + $0x234] sm:$0xf]  ;;  %v10931_v34 = vld [vmem:[#allocation5 + $0x258] sm:$0xf0]  ;;  %v12569_v37 = vld [vmem:[#allocation5 + $0xf00] sm:$0xf]  ;;  %v11610_v39 = vor.u32 %v16173_v27, %v11609_v26  ;;  %v12530_v44 = vor.u32 %v16403_v32, %v12529_v30 }
  0x37   :  { %3129 = vmatpush.bf16.msra.mxu1 %v11050_v5  ;;  %v16413_v38 = vld [vmem:[#allocation5 + $0xf24] sm:$0xf0]  ;;  %v131_v41 = vld [vmem:[#allocation2 + $0x10] sm:$0xff]  ;;  %v16078_v42 = vld [vmem:[#allocation5 + $0x4b4] sm:$0xf]  ;;  %v10934_v45 = vor.u32 %v15998_v33, %v10931_v34  ;;  %vm3107_vm0 = vcmask 130048  }
  0x38   :  { %3142 = vmatpush.bf16.msra.mxu2 %v11370_v6  ;;  %v11251_v43 = vld [vmem:[#allocation5 + $0x4d8] sm:$0xf0]  ;;  %v12169_v46 = vld [vmem:[#allocation5 + $0xbe0] sm:$0xf]  ;;  %v16313_v47 = vld [vmem:[#allocation5 + $0xc04] sm:$0xf0]  ;;  %v12570_v49 = vor.u32 %v16413_v38, %v12569_v37  ;;  %v17536_v53 = vpack.c.bf16 %v131_v41, %v131_v41 }
  0x39   :  { %3155 = vmatpush.bf16.msra.mxu3 %v11690_v10  ;;  %v12489_v48 = vld [vmem:[#allocation5 + $0xe60] sm:$0xf]  ;;  %v16393_v50 = vld [vmem:[#allocation5 + $0xe84] sm:$0xf0]  ;;  %v15988_v51 = vld [vmem:[#allocation5 + $0x1e4] sm:$0xf]  ;;  %v11254_v54 = vor.u32 %v16078_v42, %v11251_v43  ;;  %v12170_v57 = vor.u32 %v16313_v47, %v12169_v46 }
  0x3a   :  { %3117 = vmatpush.bf16.msra.mxu0 %v10690_v16  ;;  %v10891_v52 = vld [vmem:[#allocation5 + $0x208] sm:$0xf0]  ;;  %v132_v56 = vld [vmem:[#allocation2 + $0x18] sm:$0xff]  ;;  %v130_v62 = vld [vmem:[#allocation2 + $0x8] sm:$0xff]  ;;  %v12490_v63 = vor.u32 %v16393_v50, %v12489_v48  ;;  %vm8565_vm1 = vcmask 392192   ;;  %s17474_s4 = smov [#allocation14]  }
  0x3b   :  { %3130 = vmatpush.bf16.msra.mxu1 %v11010_v19  ;;  %v129_v55 = vld [vmem:[#allocation2] sm:$0xff]  ;;  %v16068_v58 = vld [vmem:[#allocation5 + $0x464] sm:$0xf]  ;;  %v17540_v61 = vpack.c.bf16 %v132_v56, %v132_v56  ;;  %v10894_v0 = vor.u32 %v15988_v51, %v10891_v52  ;;  %v12129_v1 = vld [vmem:[#allocation5 + $0xb90] sm:$0xf]  ;;  %v17543_v7 = vpack.c.bf16 %v130_v62, %v130_v62  ;;  %s10632_s6 = sshll.u32 %s17474_s4, 4  ;;  %s10633_s6 = int_to_ptr.vmem [resolvable:$true] %s10632_s6 }
  0x3c   :  { %3143 = vmatpush.bf16.msra.mxu2 %v11330_v20  ;;  %v11211_v59 = vld [vmem:[#allocation5 + $0x488] sm:$0xf0]  ;;  %v17538_v60 = vpack.c.bf16 %v129_v55, %v129_v55  ;;  %v16303_v2 = vld [vmem:[#allocation5 + $0xbb4] sm:$0xf0]  ;;  %v12449_v3 = vld [vmem:[#allocation5 + $0xe10] sm:$0xf] }
  0x3d   :  { %3156 = vmatpush.bf16.msra.mxu3 %v11650_v24  ;;  %v16383_v4 = vld [vmem:[#allocation5 + $0xe34] sm:$0xf0]  ;;  %v15978_v5 = vld [vmem:[#allocation5 + $0x194] sm:$0xf]  ;;  %v10851_v6 = vld [vmem:[#allocation5 + $0x1b8] sm:$0xf0]  ;;  %v11214_v8 = vor.u32 %v16068_v58, %v11211_v59  ;;  %v12130_v9 = vor.u32 %v16303_v2, %v12129_v1 }
  0x3e   :  { %3118 = vmatpush.bf16.msra.mxu0 %v10650_v31  ;;  %v16058_v10 = vld [vmem:[#allocation5 + $0x414] sm:$0xf]  ;;  %v11171_v11 = vld [vmem:[#allocation5 + $0x438] sm:$0xf0]  ;;  %v12450_v12 = vor.u32 %v16383_v4, %v12449_v3  ;;  %v10854_v13 = vor.u32 %v15978_v5, %v10851_v6  ;;  %v12089_v14 = vld [vmem:[#allocation5 + $0xb40] sm:$0xf] }
  0x3f   :  { %3131 = vmatpush.bf16.msra.mxu1 %v10970_v35  ;;  %v16293_v15 = vld [vmem:[#allocation5 + $0xb64] sm:$0xf0]  ;;  %v12409_v16 = vld [vmem:[#allocation5 + $0xdc0] sm:$0xf]  ;;  %v15968_v18 = vld [vmem:[#allocation5 + $0x144] sm:$0xf]  ;;  %v11174_v20 = vor.u32 %v16058_v10, %v11171_v11 }
  0x40   :  { %3144 = vmatpush.bf16.msra.mxu2 %v11290_v36  ;;  %v16373_v17 = vld [vmem:[#allocation5 + $0xde4] sm:$0xf0]  ;;  %v10811_v19 = vld [vmem:[#allocation5 + $0x168] sm:$0xf0]  ;;  %v12090_v21 = vor.u32 %v16293_v15, %v12089_v14  ;;  %v16048_v22 = vld [vmem:[#allocation5 + $0x3c4] sm:$0xf] }
  0x41   :  { %3157 = vmatpush.bf16.msra.mxu3 %v11610_v39  ;;  %3119 = vmatmul.bf16.vlgmr.msra.gmra.mxu0 %v17538_v60  ;;  %v11131_v23 = vld [vmem:[#allocation5 + $0x3e8] sm:$0xf0]  ;;  %v12410_v24 = vor.u32 %v16373_v17, %v12409_v16  ;;  %v10814_v25 = vor.u32 %v15968_v18, %v10811_v19  ;;  %v12049_v26 = vld [vmem:[#allocation5 + $0xaf0] sm:$0xf]  ;;  %v16283_v27 = vld [vmem:[#allocation5 + $0xb14] sm:$0xf0] }
  0x42   :  { %3163 = vmatpush.bf16.msrb.mxu0 %v12210_v40  ;;  %3132 = vmatmul.bf16.vlgmr.msra.gmra.mxu1 %v17543_v7  ;;  %v12369_v28 = vld [vmem:[#allocation5 + $0xd70] sm:$0xf]  ;;  %v16363_v29 = vld [vmem:[#allocation5 + $0xd94] sm:$0xf0]  ;;  %v15958_v30 = vld [vmem:[#allocation5 + $0xf4] sm:$0xf]  ;;  %v11134_v32 = vor.u32 %v16048_v22, %v11131_v23  ;;  %v12050_v33 = vor.u32 %v16283_v27, %v12049_v26 }
  0x43   :  { %3176 = vmatpush.bf16.msrb.mxu1 %v12530_v44  ;;  %3145 = vmatmul.bf16.vlgmr.msra.gmra.mxu2 %v17536_v53  ;;  %v10771_v31 = vld [vmem:[#allocation5 + $0x118] sm:$0xf0]  ;;  %v16038_v34 = vld [vmem:[#allocation5 + $0x374] sm:$0xf]  ;;  %v12370_v37 = vor.u32 %v16363_v29, %v12369_v28  ;;  %v12009_v39 = vld [vmem:[#allocation5 + $0xaa0] sm:$0xf] }
  0x44   :  { %3196 = vmatpush.bf16.msrb.mxu2 %v12570_v49  ;;  %3158 = vmatmul.bf16.vlgmr.msra.gmra.mxu3 %v17540_v61  ;;  %v11091_v35 = vld [vmem:[#allocation5 + $0x398] sm:$0xf0]  ;;  %v10774_v38 = vor.u32 %v15958_v30, %v10771_v31  ;;  %v16273_v40 = vld [vmem:[#allocation5 + $0xac4] sm:$0xf0]  ;;  %v12329_v41 = vld [vmem:[#allocation5 + $0xd20] sm:$0xf] }
  0x45   :  { %3202 = vmatpush.bf16.msrb.mxu3 %v10934_v45  ;;  %v135_v36 = vld [vmem:[#allocation2 + $0x30] sm:$0xff]  ;;  %v16353_v42 = vld [vmem:[#allocation5 + $0xd44] sm:$0xf0]  ;;  %v15948_v43 = vld [vmem:[#allocation5 + $0xa4] sm:$0xf]  ;;  %v11094_v46 = vor.u32 %v16038_v34, %v11091_v35  ;;  %v12010_v47 = vor.u32 %v16273_v40, %v12009_v39  ;;  %s10634_s14 = sshll.u32 %s18100_s7, 4  ;;  %s10635_s14 = int_to_ptr.hbm [resolvable:$true] %s10634_s14 }
  0x46   :  { %3164 = vmatpush.bf16.msrb.mxu0 %v12170_v57  ;;  %v10731_v44 = vld [vmem:[#allocation5 + $0xc8] sm:$0xf0]  ;;  %v17548_v45 = vpack.c.bf16 %v135_v36, %v135_v36  ;;  %v16028_v48 = vld [vmem:[#allocation5 + $0x324] sm:$0xf]  ;;  %v12330_v50 = vor.u32 %v16353_v42, %v12329_v41  ;;  %v11969_v52 = vld [vmem:[#allocation5 + $0xa50] sm:$0xf] }
  0x47   :  { %3177 = vmatpush.bf16.msrb.mxu1 %v12490_v63  ;;  %v11051_v49 = vld [vmem:[#allocation5 + $0x348] sm:$0xf0]  ;;  %v10734_v51 = vor.u32 %v15948_v43, %v10731_v44  ;;  %v12289_v55 = vld [vmem:[#allocation5 + $0xcd0] sm:$0xf]  ;;  %v16343_v56 = vld [vmem:[#allocation5 + $0xcf4] sm:$0xf0] }
  0x48   :  { %3215 = vmatpush.bf16.msra.mxu2 %v11254_v54  ;;  %v16263_v54 = vld [vmem:[#allocation5 + $0xa74] sm:$0xf0]  ;;  %v15938_v57 = vld [vmem:[#allocation5 + $0x54] sm:$0xf]  ;;  %v10691_v58 = vld [vmem:[#allocation5 + $0x78] sm:$0xf0]  ;;  %v11054_v59 = vor.u32 %v16028_v48, %v11051_v49  ;;  %v12290_v2 = vor.u32 %v16343_v56, %v12289_v55 }
  0x49   :  { %3203 = vmatpush.bf16.msrb.mxu3 %v10894_v0  ;;  %v11970_v62 = vor.u32 %v16263_v54, %v11969_v52  ;;  %v16018_v63 = vld [vmem:[#allocation5 + $0x2d4] sm:$0xf]  ;;  %v11011_v0 = vld [vmem:[#allocation5 + $0x2f8] sm:$0xf0]  ;;  %v11929_v1 = vld [vmem:[#allocation5 + $0xa00] sm:$0xf]  ;;  %v10694_v3 = vor.u32 %v15938_v57, %v10691_v58 }
  0x4a   :  { %3165 = vmatpush.bf16.msrb.mxu0 %v12130_v9  ;;  %v16253_v4 = vld [vmem:[#allocation5 + $0xa24] sm:$0xf0]  ;;  %v12249_v5 = vld [vmem:[#allocation5 + $0xc80] sm:$0xf]  ;;  %v10651_v9 = vld [vmem:[#allocation5 + $0x28] sm:$0xf0]  ;;  %v11014_v14 = vor.u32 %v16018_v63, %v11011_v0 }
  0x4b   :  { %3178 = vmatpush.bf16.msrb.mxu1 %v12450_v12  ;;  %v16333_v6 = vld [vmem:[#allocation5 + $0xca4] sm:$0xf0]  ;;  %v16158_v10 = vld [vmem:[#allocation5 + $0x734] sm:$0xf]  ;;  %v11571_v11 = vld [vmem:[#allocation5 + $0x758] sm:$0xf0]  ;;  %v11930_v15 = vor.u32 %v16253_v4, %v11929_v1 }
  0x4c   :  { %3216 = vmatpush.bf16.msra.mxu2 %v11214_v8  ;;  %v15928_v8 = vld [vmem:[#allocation5 + $0x4] sm:$0xf]  ;;  %v16238_v12 = vld [vmem:[#allocation5 + $0x9b4] sm:$0xf]  ;;  %v12211_v17 = vld [vmem:[#allocation5 + $0xc58] sm:$0xf0]  ;;  %v12250_v19 = vor.u32 %v16333_v6, %v12249_v5 }
  0x4d   :  { %3204 = vmatpush.bf16.msrb.mxu3 %v10854_v13  ;;  %v11891_v13 = vld [vmem:[#allocation5 + $0x9d8] sm:$0xf0]  ;;  %v16318_v16 = vld [vmem:[#allocation5 + $0xc34] sm:$0xf]  ;;  %v133_v18 = vld [vmem:[#allocation2 + $0x20] sm:$0xff] }
  0x4e   :  { %3166 = vmatpush.bf16.msrb.mxu0 %v12090_v21  ;;  %v16008_v21 = vld [vmem:[#allocation5 + $0x284] sm:$0xf]  ;;  %v10971_v22 = vld [vmem:[#allocation5 + $0x2a8] sm:$0xf0]  ;;  %v134_v23 = vld [vmem:[#allocation2 + $0x28] sm:$0xff]  ;;  %v12214_v29 = vor.u32 %v16318_v16, %v12211_v17  ;;  %v17552_v30 = vpack.c.bf16 %v133_v18, %v133_v18 }
  0x4f   :  { %3179 = vmatpush.bf16.msrb.mxu1 %v12410_v24  ;;  %v11574_v24 = vor.u32 %v16158_v10, %v11571_v11  ;;  %v16398_v26 = vld [vmem:[#allocation5 + $0xeb4] sm:$0xf]  ;;  %v12531_v27 = vld [vmem:[#allocation5 + $0xed8] sm:$0xf0]  ;;  %v16148_v28 = vld [vmem:[#allocation5 + $0x6e4] sm:$0xf]  ;;  %v10974_v34 = vor.u32 %v16008_v21, %v10971_v22  ;;  %v17554_v35 = vpack.c.bf16 %v134_v23, %v134_v23 }
  0x50   :  { %3217 = vmatpush.bf16.msra.mxu2 %v11174_v20  ;;  %v10654_v20 = vor.u32 %v15928_v8, %v10651_v9  ;;  %v11531_v31 = vld [vmem:[#allocation5 + $0x708] sm:$0xf0]  ;;  %v16308_v36 = vld [vmem:[#allocation5 + $0xbe4] sm:$0xf]  ;;  %v16138_v43 = vld [vmem:[#allocation5 + $0x694] sm:$0xf] }
  0x51   :  { %3205 = vmatpush.bf16.msrb.mxu3 %v10814_v25  ;;  %v11894_v25 = vor.u32 %v16238_v12, %v11891_v13  ;;  %v11534_v39 = vor.u32 %v16148_v28, %v11531_v31  ;;  %v16388_v41 = vld [vmem:[#allocation5 + $0xe64] sm:$0xf]  ;;  %v12491_v42 = vld [vmem:[#allocation5 + $0xe88] sm:$0xf0]  ;;  %v11811_v48 = vld [vmem:[#allocation5 + $0x938] sm:$0xf0] }
  0x52   :  { %3167 = vmatpush.bf16.msrb.mxu0 %v12050_v33  ;;  %v11851_v33 = vld [vmem:[#allocation5 + $0x988] sm:$0xf0]  ;;  %v16298_v49 = vld [vmem:[#allocation5 + $0xb94] sm:$0xf]  ;;  %v12451_v56 = vld [vmem:[#allocation5 + $0xe38] sm:$0xf0] }
  0x53   :  { %3180 = vmatpush.bf16.msrb.mxu1 %v12370_v37  ;;  %12607 = vmatmul.msk.bf16.vlgmr.msrb.gmra.mxu2 %vm3107_vm0, %v17548_v45  ;;  %v12171_v37 = vld [vmem:[#allocation5 + $0xc08] sm:$0xf0]  ;;  %v16378_v55 = vld [vmem:[#allocation5 + $0xe14] sm:$0xf]  ;;  %v16128_v57 = vld [vmem:[#allocation5 + $0x644] sm:$0xf] }
  0x54   :  { %3218 = vmatpush.bf16.msra.mxu2 %v11134_v32  ;;  %v16228_v32 = vld [vmem:[#allocation5 + $0x964] sm:$0xf]  ;;  %v12174_v44 = vor.u32 %v16308_v36, %v12171_v37  ;;  %v11771_v63 = vld [vmem:[#allocation5 + $0x8e8] sm:$0xf0]  ;;  %v16118_v8 = vld [vmem:[#allocation5 + $0x5f4] sm:$0xf] }
  0x55   :  { %3206 = vmatpush.bf16.msrb.mxu3 %v10774_v38  ;;  %v12534_v38 = vor.u32 %v16398_v26, %v12531_v27  ;;  %v11854_v40 = vor.u32 %v16228_v32, %v11851_v33  ;;  %v16288_v0 = vld [vmem:[#allocation5 + $0xb44] sm:$0xf]  ;;  %v12091_v1 = vld [vmem:[#allocation5 + $0xb68] sm:$0xf0]  ;;  %v11411_v10 = vld [vmem:[#allocation5 + $0x618] sm:$0xf0] }
  0x56   :  { %3168 = vmatpush.bf16.msrb.mxu0 %v12010_v47  ;;  %v16218_v47 = vld [vmem:[#allocation5 + $0x914] sm:$0xf]  ;;  %v16368_v5 = vld [vmem:[#allocation5 + $0xdc4] sm:$0xf]  ;;  %v12411_v6 = vld [vmem:[#allocation5 + $0xde8] sm:$0xf0]  ;;  %v12094_v9 = vor.u32 %v16288_v0, %v12091_v1  ;;  %v11414_v16 = vor.u32 %v16118_v8, %v11411_v10 }
  0x57   :  { %3181 = vmatpush.bf16.msrb.mxu1 %v12330_v50  ;;  %v12131_v50 = vld [vmem:[#allocation5 + $0xbb8] sm:$0xf0]  ;;  %v11814_v54 = vor.u32 %v16218_v47, %v11811_v48  ;;  %v16198_v11 = vld [vmem:[#allocation5 + $0x874] sm:$0xf]  ;;  %v11371_v22 = vld [vmem:[#allocation5 + $0x5c8] sm:$0xf0] }
  0x58   :  { %3219 = vmatpush.bf16.msra.mxu2 %v11094_v46  ;;  %v11491_v46 = vld [vmem:[#allocation5 + $0x6b8] sm:$0xf0]  ;;  %v12134_v58 = vor.u32 %v16298_v49, %v12131_v50  ;;  %v16278_v13 = vld [vmem:[#allocation5 + $0xaf4] sm:$0xf]  ;;  %v16188_v23 = vld [vmem:[#allocation5 + $0x824] sm:$0xf] }
  0x59   :  { %3207 = vmatpush.bf16.msrb.mxu3 %v10734_v51  ;;  %v12494_v51 = vor.u32 %v16388_v41, %v12491_v42  ;;  %v11494_v52 = vor.u32 %v16138_v43, %v11491_v46  ;;  %v11731_v12 = vld [vmem:[#allocation5 + $0x898] sm:$0xf0]  ;;  %v16358_v18 = vld [vmem:[#allocation5 + $0xd74] sm:$0xf]  ;;  %v12011_v26 = vld [vmem:[#allocation5 + $0xac8] sm:$0xf0] }
  0x5a   :  { %3169 = vmatpush.bf16.msrb.mxu0 %v11970_v62  ;;  %v16208_v62 = vld [vmem:[#allocation5 + $0x8c4] sm:$0xf]  ;;  %v11734_v17 = vor.u32 %v16198_v11, %v11731_v12  ;;  %v12331_v32 = vld [vmem:[#allocation5 + $0xd48] sm:$0xf0]  ;;  %v16098_v33 = vld [vmem:[#allocation5 + $0x554] sm:$0xf] }
  0x5b   :  { %3182 = vmatpush.bf16.msrb.mxu1 %v12290_v2  ;;  %v12454_v2 = vor.u32 %v16378_v55, %v12451_v56  ;;  %v11774_v4 = vor.u32 %v16208_v62, %v11771_v63  ;;  %v16348_v31 = vld [vmem:[#allocation5 + $0xd24] sm:$0xf]  ;;  %v11331_v36 = vld [vmem:[#allocation5 + $0x578] sm:$0xf0]  ;;  %v16178_v37 = vld [vmem:[#allocation5 + $0x7d4] sm:$0xf] }
  0x5c   :  { %3220 = vmatpush.bf16.msra.mxu2 %v11054_v59  ;;  %v11451_v59 = vld [vmem:[#allocation5 + $0x668] sm:$0xf0]  ;;  %v12334_v41 = vor.u32 %v16348_v31, %v12331_v32  ;;  %v16338_v42 = vld [vmem:[#allocation5 + $0xcd4] sm:$0xf]  ;;  %v12291_v43 = vld [vmem:[#allocation5 + $0xcf8] sm:$0xf0] }
  0x5d   :  { %3208 = vmatpush.bf16.msrb.mxu3 %v10694_v3  ;;  %v11454_v3 = vor.u32 %v16128_v57, %v11451_v59  ;;  %v16088_v47 = vld [vmem:[#allocation5 + $0x504] sm:$0xf]  ;;  %v11291_v48 = vld [vmem:[#allocation5 + $0x528] sm:$0xf0]  ;;  %v10937_v55 = vld [vmem:[#allocation5 + $0x238] sm:$0xf] }
  0x5e   :  { %3170 = vmatpush.bf16.msrb.mxu0 %v11930_v15  ;;  %v12414_v15 = vor.u32 %v16368_v5, %v12411_v6  ;;  %v16168_v49 = vld [vmem:[#allocation5 + $0x784] sm:$0xf]  ;;  %v16004_v56 = vld [vmem:[#allocation5 + $0x25c] sm:$0xf0]  ;;  %v11257_v57 = vld [vmem:[#allocation5 + $0x4b8] sm:$0xf]  ;;  %v11294_v0 = vor.u32 %v16088_v47, %v11291_v48 }
  0x5f   :  { %3183 = vmatpush.bf16.msrb.mxu1 %v12250_v19  ;;  %v12371_v19 = vld [vmem:[#allocation5 + $0xd98] sm:$0xf0]  ;;  %v16084_v59 = vld [vmem:[#allocation5 + $0x4dc] sm:$0xf0]  ;;  %v16408_v62 = vld [vmem:[#allocation5 + $0xf04] sm:$0xf]  ;;  %v10938_v6 = vor.u32 %v16004_v56, %v10937_v55 }
  0x60   :  { %3221 = vmatpush.bf16.msra.mxu2 %v11014_v14  ;;  %v12051_v14 = vld [vmem:[#allocation5 + $0xb18] sm:$0xf0]  ;;  %v12374_v27 = vor.u32 %v16358_v18, %v12371_v19  ;;  %v12571_v63 = vld [vmem:[#allocation5 + $0xf28] sm:$0xf0]  ;;  %v16164_v8 = vld [vmem:[#allocation5 + $0x75c] sm:$0xf0]  ;;  %v11258_v11 = vor.u32 %v16084_v59, %v11257_v57 }
  0x61   :  { %3209 = vmatpush.bf16.msrb.mxu3 %v10654_v20  ;;  %3171 = vmatmul.bf16.vlgmr.msrb.gmra.mxu0 %v17552_v30  ;;  %v16108_v20 = vld [vmem:[#allocation5 + $0x5a4] sm:$0xf]  ;;  %v12054_v21 = vor.u32 %v16278_v13, %v12051_v14  ;;  %v16244_v10 = vld [vmem:[#allocation5 + $0x9dc] sm:$0xf0]  ;;  %v12574_v12 = vor.u32 %v16408_v62, %v12571_v63  ;;  %v10897_v13 = vld [vmem:[#allocation5 + $0x1e8] sm:$0xf] }
  0x62   :  { %3228 = vmatpush.bf16.msra.mxu0 %v11574_v24  ;;  %3184 = vmatmul.bf16.vlgmr.msrb.gmra.mxu1 %v17554_v35  ;;  %v11691_v24 = vld [vmem:[#allocation5 + $0x848] sm:$0xf0]  ;;  %v11374_v28 = vor.u32 %v16108_v20, %v11371_v22  ;;  %v15994_v14 = vld [vmem:[#allocation5 + $0x20c] sm:$0xf0]  ;;  %v11537_v20 = vld [vmem:[#allocation5 + $0x6e8] sm:$0xf] }
  0x63   :  { %3241 = vmatpush.bf16.msra.mxu1 %v11894_v25  ;;  %v16268_v25 = vld [vmem:[#allocation5 + $0xaa4] sm:$0xf]  ;;  %v16154_v22 = vld [vmem:[#allocation5 + $0x70c] sm:$0xf0]  ;;  %v11457_v47 = vld [vmem:[#allocation5 + $0x648] sm:$0xf] }
  0x64   :  { %3222 = vmatpush.bf16.msra.mxu2 %v10974_v34  ;;  %3210 = vmatmul.bf16.vlgmr.msrb.gmra.mxu3 %v17538_v60  ;;  %v12014_v34 = vor.u32 %v16268_v25, %v12011_v26  ;;  %v10857_v26 = vld [vmem:[#allocation5 + $0x198] sm:$0xf]  ;;  %v11538_v31 = vor.u32 %v16154_v22, %v11537_v20  ;;  %v15964_v55 = vld [vmem:[#allocation5 + $0x11c] sm:$0xf0] }
  0x65   :  { %3254 = vmatpush.bf16.msra.mxu3 %v12214_v29  ;;  %v11694_v29 = vor.u32 %v16188_v23, %v11691_v24  ;;  %v11857_v23 = vld [vmem:[#allocation5 + $0x968] sm:$0xf]  ;;  %v16234_v24 = vld [vmem:[#allocation5 + $0x98c] sm:$0xf0]  ;;  %v11097_v56 = vld [vmem:[#allocation5 + $0x378] sm:$0xf] }
  0x66   :  { %3229 = vmatpush.bf16.msra.mxu0 %v11534_v39  ;;  %v16258_v39 = vld [vmem:[#allocation5 + $0xa54] sm:$0xf]  ;;  %v11858_v32 = vor.u32 %v16234_v24, %v11857_v23  ;;  %v16044_v57 = vld [vmem:[#allocation5 + $0x39c] sm:$0xf0]  ;;  %v11417_v62 = vld [vmem:[#allocation5 + $0x5f8] sm:$0xf] }
  0x67   :  { %3242 = vmatpush.bf16.msra.mxu1 %v11854_v40  ;;  %3223 = vmatmul.bf16.vlgmr.msra.gmra.mxu2 %v17543_v7  ;;  %v11971_v40 = vld [vmem:[#allocation5 + $0xa78] sm:$0xf0]  ;;  %v16024_v20 = vld [vmem:[#allocation5 + $0x2fc] sm:$0xf0]  ;;  %v11337_v23 = vld [vmem:[#allocation5 + $0x558] sm:$0xf] }
  0x68   :  { %3267 = vmatpush.bf16.msrb.mxu2 %v12534_v38  ;;  %v11651_v38 = vld [vmem:[#allocation5 + $0x7f8] sm:$0xf0]  ;;  %v11974_v50 = vor.u32 %v16258_v39, %v11971_v40  ;;  %v10817_v40 = vld [vmem:[#allocation5 + $0x148] sm:$0xf]  ;;  %v16104_v24 = vld [vmem:[#allocation5 + $0x57c] sm:$0xf0] }
  0x69   :  { %3255 = vmatpush.bf16.msra.mxu3 %v12174_v44  ;;  %v11334_v44 = vor.u32 %v16098_v33, %v11331_v36  ;;  %v11654_v46 = vor.u32 %v16178_v37, %v11651_v38  ;;  %v11497_v33 = vld [vmem:[#allocation5 + $0x698] sm:$0xf]  ;;  %v16144_v36 = vld [vmem:[#allocation5 + $0x6bc] sm:$0xf0] }
  0x6a   :  { %3230 = vmatpush.bf16.msra.mxu0 %v11494_v52  ;;  %v16248_v52 = vld [vmem:[#allocation5 + $0xa04] sm:$0xf]  ;;  %v11817_v37 = vld [vmem:[#allocation5 + $0x918] sm:$0xf]  ;;  %v16224_v38 = vld [vmem:[#allocation5 + $0x93c] sm:$0xf0] }
  0x6b   :  { %3243 = vmatpush.bf16.msra.mxu1 %v11814_v54  ;;  %v11931_v54 = vld [vmem:[#allocation5 + $0xa28] sm:$0xf0] }
  0x6c   :  { %3268 = vmatpush.bf16.msrb.mxu2 %v12494_v51  ;;  %v11611_v51 = vld [vmem:[#allocation5 + $0x7a8] sm:$0xf0]  ;;  %v11934_v5 = vor.u32 %v16248_v52, %v11931_v54  ;;  %v10777_v54 = vld [vmem:[#allocation5 + $0xf8] sm:$0xf] }
  0x6d   :  { %3256 = vmatpush.bf16.msra.mxu3 %v12134_v58  ;;  %v12294_v58 = vor.u32 %v16338_v42, %v12291_v43  ;;  %v11614_v1 = vor.u32 %v16168_v49, %v11611_v51  ;;  %v11137_v42 = vld [vmem:[#allocation5 + $0x3c8] sm:$0xf]  ;;  %v16054_v43 = vld [vmem:[#allocation5 + $0x3ec] sm:$0xf0]  ;;  %v10778_v63 = vor.u32 %v15964_v55, %v10777_v54 }
  0x6e   :  { %3231 = vmatpush.bf16.msra.mxu0 %v11454_v3  ;;  %v12251_v3 = vld [vmem:[#allocation5 + $0xca8] sm:$0xf0]  ;;  %v16134_v49 = vld [vmem:[#allocation5 + $0x66c] sm:$0xf0]  ;;  %v11138_v52 = vor.u32 %v16054_v43, %v11137_v42  ;;  %v12177_v55 = vld [vmem:[#allocation5 + $0xbe8] sm:$0xf] }
  0x6f   :  { %3244 = vmatpush.bf16.msra.mxu1 %v11774_v4  ;;  %v11577_v4 = vld [vmem:[#allocation5 + $0x738] sm:$0xf]  ;;  %v16214_v51 = vld [vmem:[#allocation5 + $0x8ec] sm:$0xf0] }
  0x70   :  { %3269 = vmatpush.bf16.msrb.mxu2 %v12454_v2  ;;  %v16328_v2 = vld [vmem:[#allocation5 + $0xc84] sm:$0xf]  ;;  %v11578_v18 = vor.u32 %v16164_v8, %v11577_v4  ;;  %v10737_v4 = vld [vmem:[#allocation5 + $0xa8] sm:$0xf]  ;;  %v16034_v8 = vld [vmem:[#allocation5 + $0x34c] sm:$0xf0] }
  0x71   :  { %3257 = vmatpush.bf16.msra.mxu3 %v12094_v9  ;;  %v11897_v9 = vld [vmem:[#allocation5 + $0x9b8] sm:$0xf]  ;;  %v16094_v42 = vld [vmem:[#allocation5 + $0x52c] sm:$0xf0] }
  0x72   :  { %3232 = vmatpush.bf16.msra.mxu0 %v11414_v16  ;;  %v11217_v16 = vld [vmem:[#allocation5 + $0x468] sm:$0xf]  ;;  %v11898_v19 = vor.u32 %v16244_v10, %v11897_v9 }
  0x73   :  { %3245 = vmatpush.bf16.msra.mxu1 %v11734_v17  ;;  %v16074_v17 = vld [vmem:[#allocation5 + $0x48c] sm:$0xf0] }
  0x74   :  { %3270 = vmatpush.bf16.msrb.mxu2 %v12414_v15  ;;  %v12254_v15 = vor.u32 %v16328_v2, %v12251_v3  ;;  %v11218_v25 = vor.u32 %v16074_v17, %v11217_v16  ;;  %v16204_v2 = vld [vmem:[#allocation5 + $0x89c] sm:$0xf0]  ;;  %v11098_v3 = vor.u32 %v16044_v57, %v11097_v56  ;;  %v10697_v17 = vld [vmem:[#allocation5 + $0x58] sm:$0xf]  ;;  %v16314_v56 = vld [vmem:[#allocation5 + $0xc0c] sm:$0xf0] }
  0x75   :  { %3258 = vmatpush.bf16.msra.mxu3 %v12054_v21  ;;  %v10898_v21 = vor.u32 %v15994_v14, %v10897_v13  ;;  %v16114_v13 = vld [vmem:[#allocation5 + $0x5cc] sm:$0xf0]  ;;  %v11697_v14 = vld [vmem:[#allocation5 + $0x828] sm:$0xf] }
  0x76   :  { %3233 = vmatpush.bf16.msra.mxu0 %v11374_v28  ;;  %v11177_v28 = vld [vmem:[#allocation5 + $0x418] sm:$0xf] }
  0x77   :  { %3246 = vmatpush.bf16.msra.mxu1 %v11694_v29  ;;  %v16064_v29 = vld [vmem:[#allocation5 + $0x43c] sm:$0xf0] }
  0x78   :  { %3271 = vmatpush.bf16.msrb.mxu2 %v12374_v27  ;;  %v15984_v27 = vld [vmem:[#allocation5 + $0x1bc] sm:$0xf0]  ;;  %v11178_v39 = vor.u32 %v16064_v29, %v11177_v28  ;;  %v10657_v28 = vld [vmem:[#allocation5 + $0x8] sm:$0xf] }
  0x79   :  { %3259 = vmatpush.bf16.msra.mxu3 %v12014_v34  ;;  %v10858_v34 = vor.u32 %v15984_v27, %v10857_v26  ;;  %v11657_v26 = vld [vmem:[#allocation5 + $0x7d8] sm:$0xf]  ;;  %v16184_v27 = vld [vmem:[#allocation5 + $0x7fc] sm:$0xf0] }
  0x7a   :  { %3234 = vmatpush.bf16.msra.mxu0 %v11334_v44  ;;  %v11498_v44 = vor.u32 %v16144_v36, %v11497_v33  ;;  %v16014_v33 = vld [vmem:[#allocation5 + $0x2ac] sm:$0xf0]  ;;  %v16324_v36 = vld [vmem:[#allocation5 + $0xc5c] sm:$0xf0] }
  0x7b   :  { %3247 = vmatpush.bf16.msra.mxu1 %v11654_v46  ;;  %v11818_v46 = vor.u32 %v16224_v38, %v11817_v37  ;;  %v12537_v37 = vld [vmem:[#allocation5 + $0xeb8] sm:$0xf]  ;;  %v11338_v38 = vor.u32 %v16104_v24, %v11337_v23  ;;  %v12417_v23 = vld [vmem:[#allocation5 + $0xdc8] sm:$0xf]  ;;  %v16374_v24 = vld [vmem:[#allocation5 + $0xdec] sm:$0xf0] }
  0x7c   :  { %3272 = vmatpush.bf16.msrb.mxu2 %v12334_v41  ;;  %v15974_v41 = vld [vmem:[#allocation5 + $0x16c] sm:$0xf0] }
  0x7d   :  { %3260 = vmatpush.bf16.msra.mxu3 %v11974_v50  ;;  %v10818_v48 = vor.u32 %v15974_v41, %v10817_v40  ;;  %v11777_v50 = vld [vmem:[#allocation5 + $0x8c8] sm:$0xf]  ;;  %v16404_v40 = vld [vmem:[#allocation5 + $0xedc] sm:$0xf0] }
  0x7e   :  { %3235 = vmatpush.bf16.msra.mxu0 %v11294_v0  ;;  %v11778_v59 = vor.u32 %v16214_v51, %v11777_v50  ;;  %v16124_v0 = vld [vmem:[#allocation5 + $0x61c] sm:$0xf0]  ;;  %v11297_v41 = vld [vmem:[#allocation5 + $0x508] sm:$0xf]  ;;  %v10939_v50 = vld [vmem:[#allocation5 + $0x260] sm:$0xf0]  ;;  %v12538_v54 = vor.u32 %v16404_v40, %v12537_v37 }
  0x7f   :  { %3248 = vmatpush.bf16.msra.mxu1 %v11614_v1  ;;  %v11737_v1 = vld [vmem:[#allocation5 + $0x878] sm:$0xf]  ;;  %v11418_v9 = vor.u32 %v16124_v0, %v11417_v62  ;;  %v12577_v51 = vld [vmem:[#allocation5 + $0xf08] sm:$0xf]  ;;  %v11298_v57 = vor.u32 %v16094_v42, %v11297_v41  ;;  %v16394_v62 = vld [vmem:[#allocation5 + $0xe8c] sm:$0xf0] }
  0x80   :  { %3273 = vmatpush.bf16.msrb.mxu2 %v12294_v58  ;;  %v11458_v58 = vor.u32 %v16134_v49, %v11457_v47  ;;  %v11738_v10 = vor.u32 %v16204_v2, %v11737_v1  ;;  %v15999_v47 = vld [vmem:[#allocation5 + $0x23c] sm:$0xf]  ;;  %v11259_v2 = vld [vmem:[#allocation5 + $0x4e0] sm:$0xf0]  ;;  %v12377_v37 = vld [vmem:[#allocation5 + $0xd78] sm:$0xf] }
  0x81   :  { %3261 = vmatpush.bf16.msra.mxu3 %v11934_v5  ;;  %3236 = vmatmul.bf16.vlgmr.msra.gmra.mxu0 %v17536_v53  ;;  %v15954_v5 = vld [vmem:[#allocation5 + $0xcc] sm:$0xf0]  ;;  %v16079_v1 = vld [vmem:[#allocation5 + $0x4bc] sm:$0xf]  ;;  %v16049_v40 = vld [vmem:[#allocation5 + $0x3cc] sm:$0xf] }
  0x82   :  { %3287 = vmatpush.bf16.msrb.mxu0 %v12574_v12  ;;  %3249 = vmatmul.bf16.vlgmr.msra.gmra.mxu1 %v17540_v61  ;;  %v10738_v12 = vor.u32 %v15954_v5, %v10737_v4  ;;  %v15989_v4 = vld [vmem:[#allocation5 + $0x1ec] sm:$0xf]  ;;  %v10899_v5 = vld [vmem:[#allocation5 + $0x210] sm:$0xf0] }
  0x83   :  { %3293 = vmatpush.bf16.msrb.mxu1 %v10938_v6  ;;  %v11057_v6 = vld [vmem:[#allocation5 + $0x328] sm:$0xf]  ;;  %v11139_v41 = vld [vmem:[#allocation5 + $0x3f0] sm:$0xf0] }
  0x84   :  { %3274 = vmatpush.bf16.msrb.mxu2 %v12254_v15  ;;  %3262 = vmatmul.bf16.vlgmr.msra.gmra.mxu3 %v17552_v30  ;;  %v16194_v15 = vld [vmem:[#allocation5 + $0x84c] sm:$0xf0]  ;;  %v11058_v16 = vor.u32 %v16034_v8, %v11057_v6  ;;  %v12137_v8 = vld [vmem:[#allocation5 + $0xb98] sm:$0xf] }
  0x85   :  { %3306 = vmatpush.bf16.msrb.mxu3 %v11258_v11  ;;  %v11377_v11 = vld [vmem:[#allocation5 + $0x5a8] sm:$0xf]  ;;  %v11698_v22 = vor.u32 %v16194_v15, %v11697_v14  ;;  %v16069_v14 = vld [vmem:[#allocation5 + $0x46c] sm:$0xf]  ;;  %v11219_v15 = vld [vmem:[#allocation5 + $0x490] sm:$0xf0] }
  0x86   :  { %3319 = vmatpush.bf16.msra.mxu0 %v11578_v18  ;;  %v15944_v18 = vld [vmem:[#allocation5 + $0x7c] sm:$0xf0] }
  0x87   :  { %3294 = vmatpush.bf16.msrb.mxu1 %v10898_v21  ;;  %3275 = vmatmul.bf16.vlgmr.msrb.gmra.mxu2 %v17554_v35  ;;  %v11378_v21 = vor.u32 %v16114_v13, %v11377_v11  ;;  %v12457_v11 = vld [vmem:[#allocation5 + $0xe18] sm:$0xf]  ;;  %v10902_v13 = vor.u32 %v15989_v4, %v10899_v5  ;;  %v16029_v4 = vld [vmem:[#allocation5 + $0x32c] sm:$0xf]  ;;  %v11059_v5 = vld [vmem:[#allocation5 + $0x350] sm:$0xf0] }
  0x88   :  { %3332 = vmatpush.bf16.msra.mxu2 %v11898_v19  ;;  %v11017_v19 = vld [vmem:[#allocation5 + $0x2d8] sm:$0xf] }
  0x89   :  { %3307 = vmatpush.bf16.msrb.mxu3 %v11218_v25  ;;  %v10698_v25 = vor.u32 %v15944_v18, %v10697_v17  ;;  %v11018_v29 = vor.u32 %v16024_v20, %v11017_v19  ;;  %v15979_v17 = vld [vmem:[#allocation5 + $0x19c] sm:$0xf]  ;;  %v10859_v18 = vld [vmem:[#allocation5 + $0x1c0] sm:$0xf0]  ;;  %v12097_v20 = vld [vmem:[#allocation5 + $0xb48] sm:$0xf] }
  0x8a   :  { %3320 = vmatpush.bf16.msra.mxu0 %v11538_v31  ;;  %v15934_v31 = vld [vmem:[#allocation5 + $0x2c] sm:$0xf0] }
  0x8b   :  { %3295 = vmatpush.bf16.msrb.mxu1 %v10858_v34  ;;  %v12217_v34 = vld [vmem:[#allocation5 + $0xc38] sm:$0xf]  ;;  %v10658_v43 = vor.u32 %v15934_v31, %v10657_v28  ;;  %v10819_v31 = vld [vmem:[#allocation5 + $0x170] sm:$0xf0] }
  0x8c   :  { %3333 = vmatpush.bf16.msra.mxu2 %v11858_v32  ;;  %v10977_v32 = vld [vmem:[#allocation5 + $0x288] sm:$0xf]  ;;  %v12218_v49 = vor.u32 %v16324_v36, %v12217_v34  ;;  %v16284_v34 = vld [vmem:[#allocation5 + $0xb1c] sm:$0xf0] }
  0x8d   :  { %3308 = vmatpush.bf16.msrb.mxu3 %v11178_v39  ;;  %v11658_v39 = vor.u32 %v16184_v27, %v11657_v26  ;;  %v16059_v26 = vld [vmem:[#allocation5 + $0x41c] sm:$0xf]  ;;  %v11179_v27 = vld [vmem:[#allocation5 + $0x440] sm:$0xf0] }
  0x8e   :  { %3321 = vmatpush.bf16.msra.mxu0 %v11498_v44  ;;  %v11617_v44 = vld [vmem:[#allocation5 + $0x788] sm:$0xf]  ;;  %v11182_v36 = vor.u32 %v16059_v26, %v11179_v27 }
  0x8f   :  { %3296 = vmatpush.bf16.msrb.mxu1 %v10818_v48  ;;  %v10978_v48 = vor.u32 %v16014_v33, %v10977_v32  ;;  %v12418_v32 = vor.u32 %v16374_v24, %v12417_v23  ;;  %v12057_v33 = vld [vmem:[#allocation5 + $0xaf8] sm:$0xf]  ;;  %v15929_v24 = vld [vmem:[#allocation5 + $0xc] sm:$0xf] }
  0x90   :  { %3334 = vmatpush.bf16.msra.mxu2 %v11818_v46  ;;  %v16174_v46 = vld [vmem:[#allocation5 + $0x7ac] sm:$0xf0]  ;;  %v12058_v42 = vor.u32 %v16284_v34, %v12057_v33  ;;  %v16149_v33 = vld [vmem:[#allocation5 + $0x6ec] sm:$0xf]  ;;  %v11539_v34 = vld [vmem:[#allocation5 + $0x710] sm:$0xf0] }
  0x91   :  { %3309 = vmatpush.bf16.msrb.mxu3 %v11138_v52  ;;  %12608 = vmatmul.msk.bf16.vlgmr.msrb.gmra.mxu0 %vm3107_vm0, %v17548_v45  ;;  %v16414_v52 = vld [vmem:[#allocation5 + $0xf2c] sm:$0xf0] }
  0x92   :  { %3322 = vmatpush.bf16.msra.mxu0 %v11458_v58  ;;  %v11618_v58 = vor.u32 %v16174_v46, %v11617_v44  ;;  %v12578_v0 = vor.u32 %v16414_v52, %v12577_v51  ;;  %v10779_v44 = vld [vmem:[#allocation5 + $0x120] sm:$0xf0]  ;;  %v16354_v51 = vld [vmem:[#allocation5 + $0xd4c] sm:$0xf0] }
  0x93   :  { %3297 = vmatpush.bf16.msrb.mxu1 %v10778_v63  ;;  %v10942_v63 = vor.u32 %v15999_v47, %v10939_v50  ;;  %v12017_v47 = vld [vmem:[#allocation5 + $0xaa8] sm:$0xf] }
  0x94   :  { %3335 = vmatpush.bf16.msra.mxu2 %v11778_v59  ;;  %v12497_v59 = vld [vmem:[#allocation5 + $0xe68] sm:$0xf] }
  0x95   :  { %3310 = vmatpush.bf16.msrb.mxu3 %v11098_v3  ;;  %v12178_v3 = vor.u32 %v16314_v56, %v12177_v55  ;;  %v12498_v6 = vor.u32 %v16394_v62, %v12497_v59  ;;  %v12337_v50 = vld [vmem:[#allocation5 + $0xd28] sm:$0xf]  ;;  %v11099_v55 = vld [vmem:[#allocation5 + $0x3a0] sm:$0xf0]  ;;  %v11977_v62 = vld [vmem:[#allocation5 + $0xa58] sm:$0xf] }
  0x96   :  { %3323 = vmatpush.bf16.msra.mxu0 %v11418_v9  ;;  %v16304_v9 = vld [vmem:[#allocation5 + $0xbbc] sm:$0xf0]  ;;  %v12338_v59 = vor.u32 %v16354_v51, %v12337_v50  ;;  %v16139_v50 = vld [vmem:[#allocation5 + $0x69c] sm:$0xf]  ;;  %v11499_v51 = vld [vmem:[#allocation5 + $0x6c0] sm:$0xf0] }
  0x97   :  { %3298 = vmatpush.bf16.msrb.mxu1 %v10738_v12  ;;  %v16384_v12 = vld [vmem:[#allocation5 + $0xe3c] sm:$0xf0] }
  0x98   :  { %3336 = vmatpush.bf16.msra.mxu2 %v11738_v10  ;;  %v11262_v10 = vor.u32 %v16079_v1, %v11259_v2  ;;  %v12458_v19 = vor.u32 %v16384_v12, %v12457_v11  ;;  %v12297_v1 = vld [vmem:[#allocation5 + $0xcd8] sm:$0xf]  ;;  %v16344_v2 = vld [vmem:[#allocation5 + $0xcfc] sm:$0xf0]  ;;  %v16254_v12 = vld [vmem:[#allocation5 + $0xa2c] sm:$0xf0] }
  0x99   :  { %3311 = vmatpush.bf16.msrb.mxu3 %v11058_v16  ;;  %v12138_v16 = vor.u32 %v16304_v9, %v12137_v8  ;;  %v15939_v8 = vld [vmem:[#allocation5 + $0x5c] sm:$0xf]  ;;  %v10699_v9 = vld [vmem:[#allocation5 + $0x80] sm:$0xf0]  ;;  %v12298_v11 = vor.u32 %v16344_v2, %v12297_v1  ;;  %v16129_v2 = vld [vmem:[#allocation5 + $0x64c] sm:$0xf] }
  0x9a   :  { %3324 = vmatpush.bf16.msra.mxu0 %v11378_v21  ;;  %v16294_v21 = vld [vmem:[#allocation5 + $0xb6c] sm:$0xf0] }
  0x9b   :  { %3299 = vmatpush.bf16.msrb.mxu1 %v10698_v25  ;;  %v10862_v25 = vor.u32 %v15979_v17, %v10859_v18  ;;  %v12098_v28 = vor.u32 %v16294_v21, %v12097_v20  ;;  %v11579_v17 = vld [vmem:[#allocation5 + $0x760] sm:$0xf0]  ;;  %v16239_v18 = vld [vmem:[#allocation5 + $0x9bc] sm:$0xf] }
  0x9c   :  { %3337 = vmatpush.bf16.msra.mxu2 %v11698_v22  ;;  %v11222_v22 = vor.u32 %v16069_v14, %v11219_v15  ;;  %v16334_v14 = vld [vmem:[#allocation5 + $0xcac] sm:$0xf0]  ;;  %v11062_v15 = vor.u32 %v16029_v4, %v11059_v5  ;;  %v11899_v20 = vld [vmem:[#allocation5 + $0x9e0] sm:$0xf0]  ;;  %v16019_v21 = vld [vmem:[#allocation5 + $0x2dc] sm:$0xf] }
  0x9d   :  { %3312 = vmatpush.bf16.msrb.mxu3 %v11018_v29  ;;  %v15969_v29 = vld [vmem:[#allocation5 + $0x14c] sm:$0xf] }
  0x9e   :  { %3325 = vmatpush.bf16.msra.mxu0 %v11338_v38  ;;  %v16364_v38 = vld [vmem:[#allocation5 + $0xd9c] sm:$0xf0]  ;;  %v16209_v5 = vld [vmem:[#allocation5 + $0x8cc] sm:$0xf] }
  0x9f   :  { %3300 = vmatpush.bf16.msrb.mxu1 %v10658_v43  ;;  %v15959_v43 = vld [vmem:[#allocation5 + $0xfc] sm:$0xf]  ;;  %v12378_v46 = vor.u32 %v16364_v38, %v12377_v37  ;;  %v11859_v38 = vld [vmem:[#allocation5 + $0x990] sm:$0xf0] }
  0xa0   :  { %3338 = vmatpush.bf16.msra.mxu2 %v11658_v39  ;;  %v10822_v39 = vor.u32 %v15969_v29, %v10819_v31  ;;  %v10782_v52 = vor.u32 %v15959_v43, %v10779_v44  ;;  %v12219_v29 = vld [vmem:[#allocation5 + $0xc60] sm:$0xf0]  ;;  %v11902_v31 = vor.u32 %v16239_v18, %v11899_v20  ;;  %v11542_v44 = vor.u32 %v16149_v33, %v11539_v34  ;;  %v16189_v34 = vld [vmem:[#allocation5 + $0x82c] sm:$0xf] }
  0xa1   :  { %3313 = vmatpush.bf16.msrb.mxu3 %v10978_v48  ;;  %v16274_v48 = vld [vmem:[#allocation5 + $0xacc] sm:$0xf0]  ;;  %v12539_v43 = vld [vmem:[#allocation5 + $0xee0] sm:$0xf0] }
  0xa2   :  { %3326 = vmatpush.bf16.msra.mxu0 %v11298_v57  ;;  %3301 = vmatmul.bf16.vlgmr.msrb.gmra.mxu1 %v17538_v60  ;;  %v12018_v56 = vor.u32 %v16274_v48, %v12017_v47  ;;  %v15949_v57 = vld [vmem:[#allocation5 + $0xac] sm:$0xf]  ;;  %v12179_v47 = vld [vmem:[#allocation5 + $0xc10] sm:$0xf0]  ;;  %v11739_v20 = vld [vmem:[#allocation5 + $0x8a0] sm:$0xf0] }
  0xa3   :  { %3345 = vmatpush.bf16.msra.mxu1 %v12218_v49  ;;  %v11142_v49 = vor.u32 %v16049_v40, %v11139_v41  ;;  %v10979_v40 = vld [vmem:[#allocation5 + $0x2b0] sm:$0xf0] }
  0xa4   :  { %3339 = vmatpush.bf16.msra.mxu2 %v11618_v58  ;;  %3314 = vmatmul.bf16.vlgmr.msrb.gmra.mxu3 %v17543_v7  ;;  %v10739_v58 = vld [vmem:[#allocation5 + $0xd0] sm:$0xf0] }
  0xa5   :  { %3358 = vmatpush.bf16.msra.mxu3 %v12538_v54  ;;  %3327 = vmatmul.bf16.vlgmr.msra.gmra.mxu0 %v17536_v53  ;;  %v16039_v54 = vld [vmem:[#allocation5 + $0x37c] sm:$0xf] }
  0xa6   :  { %3378 = vmatpush.bf16.msrb.mxu0 %v12578_v0  ;;  %v11102_v0 = vor.u32 %v16039_v54, %v11099_v55  ;;  %v16219_v54 = vld [vmem:[#allocation5 + $0x91c] sm:$0xf]  ;;  %v11819_v55 = vld [vmem:[#allocation5 + $0x940] sm:$0xf0] }
  0xa7   :  { %3346 = vmatpush.bf16.msra.mxu1 %v12178_v3  ;;  %3340 = vmatmul.bf16.vlgmr.msra.gmra.mxu2 %v17540_v61  ;;  %v10742_v3 = vor.u32 %v15949_v57, %v10739_v58  ;;  %v16389_v57 = vld [vmem:[#allocation5 + $0xe6c] sm:$0xf]  ;;  %v12499_v58 = vld [vmem:[#allocation5 + $0xe90] sm:$0xf0]  ;;  %v11822_v1 = vor.u32 %v16219_v54, %v11819_v55  ;;  %v11659_v54 = vld [vmem:[#allocation5 + $0x800] sm:$0xf0] }
  0xa8   :  { %3384 = vmatpush.bf16.msrb.mxu2 %v10942_v63  ;;  %v16264_v63 = vld [vmem:[#allocation5 + $0xa7c] sm:$0xf0]  ;;  %v12502_v4 = vor.u32 %v16389_v57, %v12499_v58  ;;  %v16349_v58 = vld [vmem:[#allocation5 + $0xd2c] sm:$0xf] }
  0xa9   :  { %3359 = vmatpush.bf16.msra.mxu3 %v12498_v6  ;;  %v11978_v6 = vor.u32 %v16264_v63, %v11977_v62  ;;  %v16299_v62 = vld [vmem:[#allocation5 + $0xb9c] sm:$0xf]  ;;  %v12139_v63 = vld [vmem:[#allocation5 + $0xbc0] sm:$0xf0] }
  0xaa   :  { %3397 = vmatpush.bf16.msra.mxu0 %v11262_v10  ;;  %v11937_v10 = vld [vmem:[#allocation5 + $0xa08] sm:$0xf] }
  0xab   :  { %3347 = vmatpush.bf16.msra.mxu1 %v12138_v16  ;;  %v16159_v16 = vld [vmem:[#allocation5 + $0x73c] sm:$0xf]  ;;  %v11938_v23 = vor.u32 %v16254_v12, %v11937_v10  ;;  %v12459_v10 = vld [vmem:[#allocation5 + $0xe40] sm:$0xf0] }
  0xac   :  { %3385 = vmatpush.bf16.msrb.mxu2 %v10902_v13  ;;  %v12257_v13 = vld [vmem:[#allocation5 + $0xc88] sm:$0xf]  ;;  %v11582_v27 = vor.u32 %v16159_v16, %v11579_v17  ;;  %v16119_v16 = vld [vmem:[#allocation5 + $0x5fc] sm:$0xf]  ;;  %v11419_v17 = vld [vmem:[#allocation5 + $0x620] sm:$0xf0] }
  0xad   :  { %3360 = vmatpush.bf16.msra.mxu3 %v12458_v19  ;;  %v10702_v19 = vor.u32 %v15939_v8, %v10699_v9  ;;  %v12258_v26 = vor.u32 %v16334_v14, %v12257_v13  ;;  %v12142_v8 = vor.u32 %v16299_v62, %v12139_v63  ;;  %v16379_v9 = vld [vmem:[#allocation5 + $0xe1c] sm:$0xf]  ;;  %v16289_v13 = vld [vmem:[#allocation5 + $0xb4c] sm:$0xf]  ;;  %v12099_v14 = vld [vmem:[#allocation5 + $0xb70] sm:$0xf0] }
  0xae   :  { %3398 = vmatpush.bf16.msra.mxu0 %v11222_v22  ;;  %v11019_v22 = vld [vmem:[#allocation5 + $0x300] sm:$0xf0]  ;;  %v12462_v18 = vor.u32 %v16379_v9, %v12459_v10  ;;  %v16259_v63 = vld [vmem:[#allocation5 + $0xa5c] sm:$0xf]  ;;  %v10945_v10 = vld [vmem:[#allocation5 + $0x240] sm:$0xf] }
  0xaf   :  { %3348 = vmatpush.bf16.msra.mxu1 %v12098_v28  ;;  %v16319_v28 = vld [vmem:[#allocation5 + $0xc3c] sm:$0xf] }
  0xb0   :  { %3386 = vmatpush.bf16.msrb.mxu2 %v10862_v25  ;;  %v10659_v25 = vld [vmem:[#allocation5 + $0x30] sm:$0xf0]  ;;  %v12222_v41 = vor.u32 %v16319_v28, %v12219_v29  ;;  %v12059_v28 = vld [vmem:[#allocation5 + $0xb20] sm:$0xf0] }
  0xb1   :  { %3361 = vmatpush.bf16.msra.mxu3 %v12418_v32  ;;  %v11022_v32 = vor.u32 %v16019_v21, %v11019_v22  ;;  %v10662_v37 = vor.u32 %v15929_v24, %v10659_v25  ;;  %v12102_v22 = vor.u32 %v16289_v13, %v12099_v14  ;;  %v12419_v24 = vld [vmem:[#allocation5 + $0xdf0] sm:$0xf0] }
  0xb2   :  { %3399 = vmatpush.bf16.msra.mxu0 %v11182_v36  ;;  %v16229_v36 = vld [vmem:[#allocation5 + $0x96c] sm:$0xf] }
  0xb3   :  { %3349 = vmatpush.bf16.msra.mxu1 %v12058_v42  ;;  %v16399_v42 = vld [vmem:[#allocation5 + $0xebc] sm:$0xf]  ;;  %v11862_v48 = vor.u32 %v16229_v36, %v11859_v38  ;;  %v11699_v36 = vld [vmem:[#allocation5 + $0x850] sm:$0xf0] }
  0xb4   :  { %3387 = vmatpush.bf16.msrb.mxu2 %v10822_v39  ;;  %v16009_v39 = vld [vmem:[#allocation5 + $0x28c] sm:$0xf] }
  0xb5   :  { %3362 = vmatpush.bf16.msra.mxu3 %v12378_v46  ;;  %12609 = vmatmul.msk.bf16.vlgmr.msrb.gmra.mxu0 %vm3107_vm0, %v17548_v45  ;;  %v16309_v46 = vld [vmem:[#allocation5 + $0xbec] sm:$0xf] }
  0xb6   :  { %3400 = vmatpush.bf16.msra.mxu0 %v11142_v49  ;;  %v10982_v49 = vor.u32 %v16009_v39, %v10979_v40  ;;  %v16359_v39 = vld [vmem:[#allocation5 + $0xd7c] sm:$0xf]  ;;  %v12379_v40 = vld [vmem:[#allocation5 + $0xda0] sm:$0xf0] }
  0xb7   :  { %3350 = vmatpush.bf16.msra.mxu1 %v12018_v56  ;;  %v12182_v56 = vor.u32 %v16309_v46, %v12179_v47  ;;  %v11702_v47 = vor.u32 %v16189_v34, %v11699_v36  ;;  %v15995_v34 = vld [vmem:[#allocation5 + $0x214] sm:$0xf0]  ;;  %v16329_v36 = vld [vmem:[#allocation5 + $0xc8c] sm:$0xf] }
  0xb8   :  { %3388 = vmatpush.bf16.msrb.mxu2 %v10782_v52  ;;  %v12542_v52 = vor.u32 %v16399_v42, %v12539_v43  ;;  %v16269_v43 = vld [vmem:[#allocation5 + $0xaac] sm:$0xf] }
  0xb9   :  { %3363 = vmatpush.bf16.msra.mxu3 %v12338_v59  ;;  %v11502_v59 = vor.u32 %v16139_v50, %v11499_v51  ;;  %v12382_v51 = vor.u32 %v16359_v39, %v12379_v40  ;;  %v11905_v40 = vld [vmem:[#allocation5 + $0x9c0] sm:$0xf] }
  0xba   :  { %3401 = vmatpush.bf16.msra.mxu0 %v11102_v0  ;;  %v17574_v0 = vld [vmem:[#allocation7] sm:$0xff] }
  0xbb   :  { %3351 = vmatpush.bf16.msra.mxu1 %v11978_v6  ;;  %v11779_v6 = vld [vmem:[#allocation5 + $0x8f0] sm:$0xf0] }
  0xbc   :  { %3389 = vmatpush.bf16.msrb.mxu2 %v10742_v3  ;;  %v11459_v3 = vld [vmem:[#allocation5 + $0x670] sm:$0xf0] }
  0xbd   :  { %3364 = vmatpush.bf16.msra.mxu3 %v12298_v11  ;;  %v637_v11 = vperm.slane %v17574_v0, 0  ;;  %v11462_v12 = vor.u32 %v16129_v2, %v11459_v3  ;;  %v16089_v3 = vld [vmem:[#allocation5 + $0x50c] sm:$0xf] }
  0xbe   :  { %3402 = vmatpush.bf16.msra.mxu0 %v11062_v15  ;;  %v11782_v15 = vor.u32 %v16209_v5, %v11779_v6  ;;  %v3120_v21 = vpop.f32.mrf.mxu0  ;;  %v11299_v5 = vld [vmem:[#allocation5 + $0x530] sm:$0xf0]  ;;  %v16169_v6 = vld [vmem:[#allocation5 + $0x78c] sm:$0xf] }
  0xbf   :  { %3352 = vmatpush.bf16.msra.mxu1 %v11938_v23  ;;  %v16369_v23 = vld [vmem:[#allocation5 + $0xdcc] sm:$0xf]  ;;  %v3121_v25 = vadd.f32 %v3120_v21, %v637_v11  ;;  %v11265_v21 = vld [vmem:[#allocation5 + $0x4c0] sm:$0xf] }
  0xc0   :  { %3390 = vmatpush.bf16.msrb.mxu2 %v10702_v19  ;;  %v16199_v19 = vld [vmem:[#allocation5 + $0x87c] sm:$0xf]  ;;  %v12422_v33 = vor.u32 %v16369_v23, %v12419_v24  ;;  %v16409_v11 = vld [vmem:[#allocation5 + $0xf0c] sm:$0xf] }
  0xc1   :  { %3365 = vmatpush.bf16.msra.mxu3 %v12258_v26  ;;  %v11422_v26 = vor.u32 %v16119_v16, %v11419_v17  ;;  %v11742_v29 = vor.u32 %v16199_v19, %v11739_v20  ;;  %v16339_v16 = vld [vmem:[#allocation5 + $0xcdc] sm:$0xf]  ;;  %v12299_v17 = vld [vmem:[#allocation5 + $0xd00] sm:$0xf0]  ;;  %v16249_v19 = vld [vmem:[#allocation5 + $0xa0c] sm:$0xf] }
  0xc2   :  { %3403 = vmatpush.bf16.msra.mxu0 %v11022_v32  ;;  %3353 = vmatmul.bf16.vlgmr.msra.gmra.mxu1 %v17552_v30  ;;  %v11379_v32 = vld [vmem:[#allocation5 + $0x5d0] sm:$0xf0] }
  0xc3   :  { %3410 = vmatpush.bf16.msrb.mxu1 %v11582_v27  ;;  %v16279_v27 = vld [vmem:[#allocation5 + $0xafc] sm:$0xf]  ;;  %v11939_v20 = vld [vmem:[#allocation5 + $0xa30] sm:$0xf0] }
  0xc4   :  { %3391 = vmatpush.bf16.msrb.mxu2 %v10662_v37  ;;  %3366 = vmatmul.bf16.vlgmr.msra.gmra.mxu3 %v17554_v35  ;;  %v3133_v37 = vpop.f32.mrf.mxu1  ;;  %v12062_v38 = vor.u32 %v16279_v27, %v12059_v28  ;;  %v16165_v27 = vld [vmem:[#allocation5 + $0x764] sm:$0xf0] }
  0xc5   :  { %3423 = vmatpush.bf16.msrb.mxu3 %v11902_v31  ;;  %v16109_v31 = vld [vmem:[#allocation5 + $0x5ac] sm:$0xf] }
  0xc6   :  { %3404 = vmatpush.bf16.msra.mxu0 %v10982_v49  ;;  %v11382_v42 = vor.u32 %v16109_v31, %v11379_v32  ;;  %v3146_v46 = vpop.f32.mrf.mxu2  ;;  %v11339_v49 = vld [vmem:[#allocation5 + $0x580] sm:$0xf0]  ;;  %v12302_v31 = vor.u32 %v16339_v16, %v12299_v17  ;;  %v10905_v32 = vld [vmem:[#allocation5 + $0x1f0] sm:$0xf] }
  0xc7   :  { %3411 = vmatpush.bf16.msrb.mxu1 %v11542_v44  ;;  %3392 = vmatmul.bf16.vlgmr.msrb.gmra.mxu2 %v17538_v60  ;;  %v12019_v44 = vld [vmem:[#allocation5 + $0xad0] sm:$0xf0]  ;;  %v3159_v50 = vpop.f32.mrf.mxu3 }
  0xc8   :  { %3436 = vmatpush.bf16.msra.mxu2 %v12222_v41  ;;  %v3134_v41 = vadd.f32 %v3133_v37, %v3121_v25  ;;  %v12022_v57 = vor.u32 %v16269_v43, %v12019_v44  ;;  %v16085_v25 = vld [vmem:[#allocation5 + $0x4e4] sm:$0xf0]  ;;  %v12259_v37 = vld [vmem:[#allocation5 + $0xcb0] sm:$0xf0]  ;;  %v16075_v43 = vld [vmem:[#allocation5 + $0x494] sm:$0xf0] }
  0xc9   :  { %3424 = vmatpush.bf16.msrb.mxu3 %v11862_v48  ;;  %3405 = vmatmul.bf16.vlgmr.msra.gmra.mxu0 %v17543_v7  ;;  %v16099_v48 = vld [vmem:[#allocation5 + $0x55c] sm:$0xf]  ;;  %v11545_v44 = vld [vmem:[#allocation5 + $0x6f0] sm:$0xf] }
  0xca   :  { %3449 = vmatpush.bf16.msrb.mxu0 %v12542_v52  ;;  %v16179_v52 = vld [vmem:[#allocation5 + $0x7dc] sm:$0xf]  ;;  %v3147_v55 = vadd.f32 %v3146_v46, %v3134_v41  ;;  %v11342_v62 = vor.u32 %v16099_v48, %v11339_v49  ;;  %v16245_v41 = vld [vmem:[#allocation5 + $0x9e4] sm:$0xf0]  ;;  %v16155_v46 = vld [vmem:[#allocation5 + $0x714] sm:$0xf0]  ;;  %v12262_v48 = vor.u32 %v16329_v36, %v12259_v37 }
  0xcb   :  { %3412 = vmatpush.bf16.msrb.mxu1 %v11502_v59  ;;  %v12339_v59 = vld [vmem:[#allocation5 + $0xd50] sm:$0xf0]  ;;  %v11906_v49 = vor.u32 %v16245_v41, %v11905_v40  ;;  %v10745_v36 = vld [vmem:[#allocation5 + $0xb0] sm:$0xf]  ;;  %v15955_v37 = vld [vmem:[#allocation5 + $0xd4] sm:$0xf0] }
  0xcc   :  { %3437 = vmatpush.bf16.msra.mxu2 %v12182_v56  ;;  %v3122_v56 = vpop.f32.mrf.mxu0  ;;  %v17579_v2 = vadd.f32 %v3159_v50, %v3147_v55  ;;  %v12342_v9 = vor.u32 %v16349_v58, %v12339_v59  ;;  %v3135_v13 = vpop.f32.mrf.mxu1  ;;  %v10865_v50 = vld [vmem:[#allocation5 + $0x1a0] sm:$0xf]  ;;  %v11865_v55 = vld [vmem:[#allocation5 + $0x970] sm:$0xf]  ;;  %v16065_v58 = vld [vmem:[#allocation5 + $0x444] sm:$0xf0] }
  0xcd   :  { %3425 = vmatpush.bf16.msrb.mxu3 %v11822_v1  ;;  %v11979_v1 = vld [vmem:[#allocation5 + $0xa80] sm:$0xf0]  ;;  %v16235_v56 = vld [vmem:[#allocation5 + $0x994] sm:$0xf0]  ;;  %v11505_v59 = vld [vmem:[#allocation5 + $0x6a0] sm:$0xf] }
  0xce   :  { %3450 = vmatpush.bf16.msrb.mxu0 %v12502_v4  ;;  %v11662_v4 = vor.u32 %v16179_v52, %v11659_v54  ;;  %v11982_v14 = vor.u32 %v16259_v63, %v11979_v1  ;;  %v11546_v54 = vor.u32 %v16155_v46, %v11545_v44  ;;  %v11465_v13 = vld [vmem:[#allocation5 + $0x650] sm:$0xf]  ;;  %v16205_v41 = vld [vmem:[#allocation5 + $0x8a4] sm:$0xf0]  ;;  %v16035_v44 = vld [vmem:[#allocation5 + $0x354] sm:$0xf0] }
  0xcf   :  { %3413 = vmatpush.bf16.msrb.mxu1 %v11462_v12  ;;  %v12579_v12 = vld [vmem:[#allocation5 + $0xf30] sm:$0xf0]  ;;  %v3161_v28 = vpop.f32.mrf.mxu3  ;;  %v11385_v46 = vld [vmem:[#allocation5 + $0x5b0] sm:$0xf] }
  0xd0   :  { %3438 = vmatpush.bf16.msra.mxu2 %v12142_v8  ;;  %v11619_v8 = vld [vmem:[#allocation5 + $0x7b0] sm:$0xf0]  ;;  %v12582_v24 = vor.u32 %v16409_v11, %v12579_v12  ;;  %v11145_v11 = vld [vmem:[#allocation5 + $0x3d0] sm:$0xf]  ;;  %v16055_v12 = vld [vmem:[#allocation5 + $0x3f4] sm:$0xf0] }
  0xd1   :  { %3426 = vmatpush.bf16.msrb.mxu3 %v11782_v15  ;;  %v16005_v15 = vld [vmem:[#allocation5 + $0x264] sm:$0xf0]  ;;  %v11622_v23 = vor.u32 %v16169_v6, %v11619_v8  ;;  %v11425_v28 = vld [vmem:[#allocation5 + $0x600] sm:$0xf] }
  0xd2   :  { %3451 = vmatpush.bf16.msrb.mxu0 %v12462_v18  ;;  %v11302_v18 = vor.u32 %v16089_v3, %v11299_v5  ;;  %v11866_v3 = vor.u32 %v16235_v56, %v11865_v55  ;;  %v15975_v5 = vld [vmem:[#allocation5 + $0x174] sm:$0xf0] }
  0xd3   :  { %3414 = vmatpush.bf16.msrb.mxu1 %v11422_v26  ;;  %v11585_v26 = vld [vmem:[#allocation5 + $0x740] sm:$0xf] }
  0xd4   :  { %3439 = vmatpush.bf16.msra.mxu2 %v12102_v22  ;;  %v3148_v22 = vpop.f32.mrf.mxu2  ;;  %v11586_v39 = vor.u32 %v16165_v27, %v11585_v26  ;;  %v11105_v26 = vld [vmem:[#allocation5 + $0x380] sm:$0xf]  ;;  %v16045_v27 = vld [vmem:[#allocation5 + $0x3a4] sm:$0xf0] }
  0xd5   :  { %3427 = vmatpush.bf16.msrb.mxu3 %v11742_v29  ;;  %v10946_v29 = vor.u32 %v16005_v15, %v10945_v10  ;;  %v16225_v10 = vld [vmem:[#allocation5 + $0x944] sm:$0xf0]  ;;  %v11146_v22 = vor.u32 %v16055_v12, %v11145_v11  ;;  %v12225_v12 = vld [vmem:[#allocation5 + $0xc40] sm:$0xf] }
  0xd6   :  { %3452 = vmatpush.bf16.msrb.mxu0 %v12422_v33  ;;  %v11942_v33 = vor.u32 %v16249_v19, %v11939_v20  ;;  %v15965_v19 = vld [vmem:[#allocation5 + $0x124] sm:$0xf0] }
  0xd7   :  { %3415 = vmatpush.bf16.msrb.mxu1 %v11382_v42  ;;  %v11225_v42 = vld [vmem:[#allocation5 + $0x470] sm:$0xf] }
  0xd8   :  { %3440 = vmatpush.bf16.msra.mxu2 %v12062_v38  ;;  %v11266_v38 = vor.u32 %v16085_v25, %v11265_v21  ;;  %v11226_v52 = vor.u32 %v16075_v43, %v11225_v42  ;;  %v16215_v25 = vld [vmem:[#allocation5 + $0x8f4] sm:$0xf0]  ;;  %v11065_v42 = vld [vmem:[#allocation5 + $0x330] sm:$0xf]  ;;  %v638_v43 = vperm.slane %v17574_v0, 1 }
  0xd9   :  { %3428 = vmatpush.bf16.msrb.mxu3 %v11702_v47  ;;  %v10906_v47 = vor.u32 %v15995_v34, %v10905_v32  ;;  %v11066_v55 = vor.u32 %v16035_v44, %v11065_v42  ;;  %v16080_v42 = vld [vmem:[#allocation5 + $0x4c4] sm:$0xf]  ;;  %v11267_v44 = vld [vmem:[#allocation5 + $0x4e8] sm:$0xf0] }
  0xda   :  { %3453 = vmatpush.bf16.msrb.mxu0 %v12382_v51  ;;  %v15985_v51 = vld [vmem:[#allocation5 + $0x1c4] sm:$0xf0] }
  0xdb   :  { %3416 = vmatpush.bf16.msrb.mxu1 %v11342_v62  ;;  %v16145_v62 = vld [vmem:[#allocation5 + $0x6c4] sm:$0xf0]  ;;  %v10866_v1 = vor.u32 %v15985_v51, %v10865_v50  ;;  %v10705_v50 = vld [vmem:[#allocation5 + $0x60] sm:$0xf] }
  0xdc   :  { %3441 = vmatpush.bf16.msra.mxu2 %v12022_v57  ;;  %v11185_v57 = vld [vmem:[#allocation5 + $0x420] sm:$0xf]  ;;  %v3198_v63 = vpop.f32.mrf.mxu2  ;;  %v11506_v8 = vor.u32 %v16145_v62, %v11505_v59  ;;  %v15945_v51 = vld [vmem:[#allocation5 + $0x84] sm:$0xf0] }
  0xdd   :  { %3429 = vmatpush.bf16.msrb.mxu3 %v11662_v4  ;;  %v10825_v4 = vld [vmem:[#allocation5 + $0x150] sm:$0xf]  ;;  %v11186_v6 = vor.u32 %v16065_v58, %v11185_v57  ;;  %v16195_v58 = vld [vmem:[#allocation5 + $0x854] sm:$0xf0]  ;;  %v11025_v59 = vld [vmem:[#allocation5 + $0x2e0] sm:$0xf] }
  0xde   :  { %3454 = vmatpush.bf16.msrb.mxu0 %v12342_v9  ;;  %v11825_v9 = vld [vmem:[#allocation5 + $0x920] sm:$0xf]  ;;  %v10826_v15 = vor.u32 %v15975_v5, %v10825_v4  ;;  %v3172_v16 = vpop.f32.mrf.mxu0  ;;  %v11705_v57 = vld [vmem:[#allocation5 + $0x830] sm:$0xf]  ;;  %v16105_v4 = vld [vmem:[#allocation5 + $0x584] sm:$0xf0] }
  0xdf   :  { %3417 = vmatpush.bf16.msrb.mxu1 %v11302_v18  ;;  %v11826_v17 = vor.u32 %v16225_v10, %v11825_v9  ;;  %v10785_v18 = vld [vmem:[#allocation5 + $0x100] sm:$0xf]  ;;  %v3173_v20 = vadd.f32 %v3172_v16, %v17579_v2  ;;  %v3185_v21 = vpop.f32.mrf.mxu1  ;;  %v15935_v9 = vld [vmem:[#allocation5 + $0x34] sm:$0xf0]  ;;  %v11706_v11 = vor.u32 %v16195_v58, %v11705_v57  ;;  %v10907_v57 = vld [vmem:[#allocation5 + $0x218] sm:$0xf0] }
  0xe0   :  { %3442 = vmatpush.bf16.msra.mxu2 %v11982_v14  ;;  %v16135_v14 = vld [vmem:[#allocation5 + $0x674] sm:$0xf0]  ;;  %v11745_v2 = vld [vmem:[#allocation5 + $0x880] sm:$0xf]  ;;  %v16070_v58 = vld [vmem:[#allocation5 + $0x474] sm:$0xf] }
  0xe1   :  { %3430 = vmatpush.bf16.msrb.mxu3 %v11622_v23  ;;  %v11466_v23 = vor.u32 %v16135_v14, %v11465_v13  ;;  %v3186_v32 = vadd.f32 %v3185_v21, %v3173_v20  ;;  %v16325_v13 = vld [vmem:[#allocation5 + $0xc64] sm:$0xf0]  ;;  %v11665_v14 = vld [vmem:[#allocation5 + $0x7e0] sm:$0xf]  ;;  %v11305_v20 = vld [vmem:[#allocation5 + $0x510] sm:$0xf] }
  0xe2   :  { %3455 = vmatpush.bf16.msrb.mxu0 %v12302_v31  ;;  %3418 = vmatmul.bf16.vlgmr.msrb.gmra.mxu1 %v17536_v53  ;;  %v16095_v21 = vld [vmem:[#allocation5 + $0x534] sm:$0xf0] }
  0xe3   :  { %3469 = vmatpush.bf16.msra.mxu1 %v12582_v24  ;;  %v11785_v24 = vld [vmem:[#allocation5 + $0x8d0] sm:$0xf] }
  0xe4   :  { %3443 = vmatpush.bf16.msra.mxu2 %v11942_v33  ;;  %3431 = vmatmul.bf16.vlgmr.msrb.gmra.mxu3 %v17540_v61  ;;  %v3200_v31 = vpop.f32.mrf.mxu2  ;;  %v10786_v33 = vor.u32 %v15965_v19, %v10785_v18  ;;  %v11786_v34 = vor.u32 %v16215_v25, %v11785_v24  ;;  %v10985_v18 = vld [vmem:[#allocation5 + $0x290] sm:$0xf]  ;;  %v16015_v19 = vld [vmem:[#allocation5 + $0x2b4] sm:$0xf0]  ;;  %v16405_v24 = vld [vmem:[#allocation5 + $0xee4] sm:$0xf0] }
  0xe5   :  { %3475 = vmatpush.bf16.msra.mxu3 %v10946_v29  ;;  %v16125_v29 = vld [vmem:[#allocation5 + $0x624] sm:$0xf0]  ;;  %v12585_v25 = vld [vmem:[#allocation5 + $0xf10] sm:$0xf] }
  0xe6   :  { %3456 = vmatpush.bf16.msrb.mxu0 %v12262_v48  ;;  %v11426_v40 = vor.u32 %v16125_v29, %v11425_v28  ;;  %v10746_v48 = vor.u32 %v15955_v37, %v10745_v36  ;;  %v12185_v29 = vld [vmem:[#allocation5 + $0xbf0] sm:$0xf]  ;;  %v16175_v37 = vld [vmem:[#allocation5 + $0x7b4] sm:$0xf0] }
  0xe7   :  { %3488 = vmatpush.bf16.msrb.mxu1 %v11266_v38  ;;  %3444 = vmatmul.bf16.vlgmr.msra.gmra.mxu2 %v17552_v30  ;;  %v17586_v38 = vadd.f32 %v3198_v63, %v3186_v32  ;;  %v3187_v63 = vpop.f32.mrf.mxu1  ;;  %v10986_v32 = vor.u32 %v16015_v19, %v10985_v18  ;;  %v11625_v36 = vld [vmem:[#allocation5 + $0x790] sm:$0xf]  ;;  %v12065_v18 = vld [vmem:[#allocation5 + $0xb00] sm:$0xf]  ;;  %v16285_v19 = vld [vmem:[#allocation5 + $0xb24] sm:$0xf0] }
  0xe8   :  { %3501 = vmatpush.bf16.msrb.mxu2 %v11586_v39  ;;  %v11106_v39 = vor.u32 %v16045_v27, %v11105_v26  ;;  %v16415_v26 = vld [vmem:[#allocation5 + $0xf34] sm:$0xf0]  ;;  %v12226_v27 = vor.u32 %v16325_v13, %v12225_v12  ;;  %v16385_v63 = vld [vmem:[#allocation5 + $0xe44] sm:$0xf0]  ;;  %v16060_v12 = vld [vmem:[#allocation5 + $0x424] sm:$0xf] }
  0xe9   :  { %3476 = vmatpush.bf16.msra.mxu3 %v10906_v47  ;;  %3457 = vmatmul.bf16.vlgmr.msrb.gmra.mxu0 %v17554_v35  ;;  %v16115_v47 = vld [vmem:[#allocation5 + $0x5d4] sm:$0xf0]  ;;  %v11187_v13 = vld [vmem:[#allocation5 + $0x448] sm:$0xf0] }
  0xea   :  { %3514 = vmatpush.bf16.msra.mxu0 %v11906_v49  ;;  %v11746_v49 = vor.u32 %v16205_v41, %v11745_v2  ;;  %v11386_v56 = vor.u32 %v16115_v47, %v11385_v46  ;;  %v10947_v41 = vld [vmem:[#allocation5 + $0x268] sm:$0xf0]  ;;  %v12505_v46 = vld [vmem:[#allocation5 + $0xe70] sm:$0xf]  ;;  %v16395_v47 = vld [vmem:[#allocation5 + $0xe94] sm:$0xf0] }
  0xeb   :  { %3489 = vmatpush.bf16.msrb.mxu1 %v11226_v52  ;;  %v3174_v52 = vpop.f32.mrf.mxu0 }
  0xec   :  { %3502 = vmatpush.bf16.msrb.mxu2 %v11546_v54  ;;  %v3211_v54 = vpop.f32.mrf.mxu3  ;;  %v3224_v5 = vpop.f32.mrf.mxu2  ;;  %v16305_v52 = vld [vmem:[#allocation5 + $0xbc4] sm:$0xf0] }
  0xed   :  { %3477 = vmatpush.bf16.msra.mxu3 %v10866_v1  ;;  %v3212_v62 = vadd.f32 %v3211_v54, %v638_v43  ;;  %v16025_v1 = vld [vmem:[#allocation5 + $0x304] sm:$0xf0]  ;;  %v11270_v54 = vor.u32 %v16080_v42, %v11267_v44  ;;  %v16355_v44 = vld [vmem:[#allocation5 + $0xd54] sm:$0xf0] }
  0xee   :  { %3515 = vmatpush.bf16.msra.mxu0 %v11866_v3  ;;  %v11345_v3 = vld [vmem:[#allocation5 + $0x560] sm:$0xf] }
  0xef   :  { %3490 = vmatpush.bf16.msrb.mxu1 %v11186_v6  ;;  %v10706_v6 = vor.u32 %v15945_v51, %v10705_v50  ;;  %v17591_v10 = vadd.f32 %v3224_v5, %v3212_v62  ;;  %v11346_v16 = vor.u32 %v16105_v4, %v11345_v3  ;;  %v12145_v51 = vld [vmem:[#allocation5 + $0xba0] sm:$0xf]  ;;  %v12105_v4 = vld [vmem:[#allocation5 + $0xb50] sm:$0xf]  ;;  %v16295_v5 = vld [vmem:[#allocation5 + $0xb74] sm:$0xf0] }
  0xf0   :  { %3503 = vmatpush.bf16.msrb.mxu2 %v11506_v8  ;;  %v10665_v8 = vld [vmem:[#allocation5 + $0x10] sm:$0xf]  ;;  %v12465_v62 = vld [vmem:[#allocation5 + $0xe20] sm:$0xf] }
  0xf1   :  { %3478 = vmatpush.bf16.msra.mxu3 %v10826_v15  ;;  %v11026_v15 = vor.u32 %v16025_v1, %v11025_v59  ;;  %v11227_v59 = vld [vmem:[#allocation5 + $0x498] sm:$0xf0]  ;;  %v12146_v1 = vor.u32 %v16305_v52, %v12145_v51 }
  0xf2   :  { %3516 = vmatpush.bf16.msra.mxu0 %v11826_v17  ;;  %12610 = vmatmul.msk.bf16.vlgmr.msra.gmra.mxu1 %vm3107_vm0, %v17548_v45  ;;  %v16185_v17 = vld [vmem:[#allocation5 + $0x804] sm:$0xf0] }
  0xf3   :  { %3491 = vmatpush.bf16.msrb.mxu1 %v11146_v22  ;;  %v12545_v22 = vld [vmem:[#allocation5 + $0xec0] sm:$0xf]  ;;  %v11666_v28 = vor.u32 %v16185_v17, %v11665_v14  ;;  %v12425_v14 = vld [vmem:[#allocation5 + $0xdd0] sm:$0xf] }
  0xf4   :  { %3504 = vmatpush.bf16.msrb.mxu2 %v11466_v23  ;;  %v10666_v23 = vor.u32 %v15935_v9, %v10665_v8  ;;  %v3213_v31 = vpop.f32.mrf.mxu3  ;;  %v12546_v2 = vor.u32 %v16405_v24, %v12545_v22  ;;  %v3226_v43 = vpop.f32.mrf.mxu2  ;;  %v12466_v8 = vor.u32 %v16385_v63, %v12465_v62  ;;  %v15980_v9 = vld [vmem:[#allocation5 + $0x1a4] sm:$0xf]  ;;  %v10827_v24 = vld [vmem:[#allocation5 + $0x178] sm:$0xf0]  ;;  %v12305_v63 = vld [vmem:[#allocation5 + $0xce0] sm:$0xf] }
  0xf5   :  { %3479 = vmatpush.bf16.msra.mxu3 %v10786_v33  ;;  %v11306_v33 = vor.u32 %v16095_v21, %v11305_v20  ;;  %v11190_v21 = vor.u32 %v16060_v12, %v11187_v13  ;;  %v12066_v31 = vor.u32 %v16285_v19, %v12065_v18  ;;  %v11107_v43 = vld [vmem:[#allocation5 + $0x3a8] sm:$0xf0]  ;;  %v11067_v62 = vld [vmem:[#allocation5 + $0x358] sm:$0xf0]  ;;  %v12265_v19 = vld [vmem:[#allocation5 + $0xc90] sm:$0xf] }
  0xf6   :  { %3517 = vmatpush.bf16.msra.mxu0 %v11786_v34  ;;  %v16315_v34 = vld [vmem:[#allocation5 + $0xc14] sm:$0xf0]  ;;  %v11027_v18 = vld [vmem:[#allocation5 + $0x308] sm:$0xf0] }
  0xf7   :  { %3492 = vmatpush.bf16.msrb.mxu1 %v11106_v39  ;;  %v12586_v39 = vor.u32 %v16415_v26, %v12585_v25  ;;  %v16050_v25 = vld [vmem:[#allocation5 + $0x3d4] sm:$0xf] }
  0xf8   :  { %3505 = vmatpush.bf16.msrb.mxu2 %v11426_v40  ;;  %v16000_v40 = vld [vmem:[#allocation5 + $0x244] sm:$0xf] }
  0xf9   :  { %3480 = vmatpush.bf16.msra.mxu3 %v10746_v48  ;;  %v12186_v48 = vor.u32 %v16315_v34, %v12185_v29  ;;  %v10950_v50 = vor.u32 %v16000_v40, %v10947_v41  ;;  %v16365_v29 = vld [vmem:[#allocation5 + $0xda4] sm:$0xf0]  ;;  %v16275_v34 = vld [vmem:[#allocation5 + $0xad4] sm:$0xf0]  ;;  %v10787_v40 = vld [vmem:[#allocation5 + $0x128] sm:$0xf0] }
  0xfa   :  { %3518 = vmatpush.bf16.msra.mxu0 %v11746_v49  ;;  %v11626_v49 = vor.u32 %v16175_v37, %v11625_v36  ;;  %v16040_v41 = vld [vmem:[#allocation5 + $0x384] sm:$0xf] }
  0xfb   :  { %3493 = vmatpush.bf16.msrb.mxu1 %v11066_v55  ;;  %v12506_v55 = vor.u32 %v16395_v47, %v12505_v46  ;;  %v11110_v51 = vor.u32 %v16040_v41, %v11107_v43  ;;  %v12227_v41 = vld [vmem:[#allocation5 + $0xc68] sm:$0xf0] }
  0xfc   :  { %3506 = vmatpush.bf16.msrb.mxu2 %v11386_v56  ;;  %v15990_v56 = vld [vmem:[#allocation5 + $0x1f4] sm:$0xf] }
  0xfd   :  { %3481 = vmatpush.bf16.msra.mxu3 %v10706_v6  ;;  %v10910_v3 = vor.u32 %v15990_v56, %v10907_v57  ;;  %v11230_v6 = vor.u32 %v16070_v58, %v11227_v59  ;;  %v10747_v56 = vld [vmem:[#allocation5 + $0xd8] sm:$0xf0]  ;;  %v16030_v57 = vld [vmem:[#allocation5 + $0x334] sm:$0xf] }
  0xfe   :  { %3519 = vmatpush.bf16.msra.mxu0 %v11706_v11  ;;  %v10867_v11 = vld [vmem:[#allocation5 + $0x1c8] sm:$0xf0]  ;;  %v3237_v20 = vpop.f32.mrf.mxu0  ;;  %v11070_v12 = vor.u32 %v16030_v57, %v11067_v62  ;;  %v12187_v57 = vld [vmem:[#allocation5 + $0xc18] sm:$0xf0]  ;;  %v16220_v62 = vld [vmem:[#allocation5 + $0x924] sm:$0xf] }
  0xff   :  { %3494 = vmatpush.bf16.msrb.mxu1 %v11026_v15  ;;  %v16375_v15 = vld [vmem:[#allocation5 + $0xdf4] sm:$0xf0]  ;;  %v10870_v17 = vor.u32 %v15980_v9, %v10867_v11  ;;  %v3238_v26 = vadd.f32 %v3237_v20, %v17591_v10  ;;  %v12345_v10 = vld [vmem:[#allocation5 + $0xd30] sm:$0xf]  ;;  %v16160_v9 = vld [vmem:[#allocation5 + $0x744] sm:$0xf] }
 0x100   :  { %3507 = vmatpush.bf16.msrb.mxu2 %v11346_v16  ;;  %v12106_v16 = vor.u32 %v16295_v5, %v12105_v4  ;;  %v12426_v22 = vor.u32 %v16375_v15, %v12425_v14  ;;  %v11945_v4 = vld [vmem:[#allocation5 + $0xa10] sm:$0xf]  ;;  %v11587_v11 = vld [vmem:[#allocation5 + $0x768] sm:$0xf0]  ;;  %v15940_v14 = vld [vmem:[#allocation5 + $0x64] sm:$0xf] }
 0x101   :  { %3482 = vmatpush.bf16.msra.mxu3 %v10666_v23  ;;  %v15970_v23 = vld [vmem:[#allocation5 + $0x154] sm:$0xf]  ;;  %v10707_v15 = vld [vmem:[#allocation5 + $0x88] sm:$0xf0]  ;;  %v16335_v20 = vld [vmem:[#allocation5 + $0xcb4] sm:$0xf0] }
 0x102   :  { %3520 = vmatpush.bf16.msra.mxu0 %v11666_v28  ;;  %v12385_v28 = vld [vmem:[#allocation5 + $0xd80] sm:$0xf] }
 0x103   :  { %3495 = vmatpush.bf16.msrb.mxu1 %v10986_v32  ;;  %v10830_v32 = vor.u32 %v15970_v23, %v10827_v24  ;;  %v12386_v37 = vor.u32 %v16365_v29, %v12385_v28  ;;  %v11907_v23 = vld [vmem:[#allocation5 + $0x9e8] sm:$0xf0]  ;;  %v11590_v24 = vor.u32 %v16160_v9, %v11587_v11  ;;  %v15930_v28 = vld [vmem:[#allocation5 + $0x14] sm:$0xf]  ;;  %v16300_v11 = vld [vmem:[#allocation5 + $0xba4] sm:$0xf] }
 0x104   :  { %3508 = vmatpush.bf16.msrb.mxu2 %v11306_v33  ;;  %3483 = vmatmul.bf16.vlgmr.msra.gmra.mxu3 %v17538_v60  ;;  %v12025_v33 = vld [vmem:[#allocation5 + $0xab0] sm:$0xf] }
 0x105   :  { %3527 = vmatpush.bf16.msrb.mxu3 %v12226_v27  ;;  %v11147_v27 = vld [vmem:[#allocation5 + $0x3f8] sm:$0xf0]  ;;  %v12026_v46 = vor.u32 %v16275_v34, %v12025_v33  ;;  %v16010_v34 = vld [vmem:[#allocation5 + $0x294] sm:$0xf] }
 0x106   :  { %3521 = vmatpush.bf16.msra.mxu0 %v11626_v49  ;;  %3496 = vmatmul.bf16.vlgmr.msrb.gmra.mxu1 %v17543_v7  ;;  %v11150_v36 = vor.u32 %v16050_v25, %v11147_v27  ;;  %v16265_v49 = vld [vmem:[#allocation5 + $0xa84] sm:$0xf0]  ;;  %v10710_v25 = vor.u32 %v15940_v14, %v10707_v15  ;;  %v11547_v27 = vld [vmem:[#allocation5 + $0x718] sm:$0xf0]  ;;  %v12467_v14 = vld [vmem:[#allocation5 + $0xe48] sm:$0xf0] }
 0x107   :  { %3540 = vmatpush.bf16.msra.mxu1 %v12546_v2  ;;  %3509 = vmatmul.bf16.vlgmr.msrb.gmra.mxu2 %v17536_v53  ;;  %v3250_v2 = vpop.f32.mrf.mxu1  ;;  %v3263_v52 = vpop.f32.mrf.mxu3  ;;  %v10667_v33 = vld [vmem:[#allocation5 + $0x38] sm:$0xf0]  ;;  %v16210_v15 = vld [vmem:[#allocation5 + $0x8d4] sm:$0xf] }
 0x108   :  { %3560 = vmatpush.bf16.msra.mxu2 %v12586_v39  ;;  %v15960_v39 = vld [vmem:[#allocation5 + $0x104] sm:$0xf]  ;;  %v3251_v42 = vadd.f32 %v3250_v2, %v3238_v26  ;;  %v16150_v26 = vld [vmem:[#allocation5 + $0x6f4] sm:$0xf] }
 0x109   :  { %3528 = vmatpush.bf16.msrb.mxu3 %v12186_v48  ;;  %3522 = vmatmul.bf16.vlgmr.msra.gmra.mxu0 %v17540_v61  ;;  %v10790_v47 = vor.u32 %v15960_v39, %v10787_v40  ;;  %v11985_v48 = vld [vmem:[#allocation5 + $0xa60] sm:$0xf]  ;;  %v16320_v40 = vld [vmem:[#allocation5 + $0xc44] sm:$0xf] }
 0x10a   :  { %3566 = vmatpush.bf16.msrb.mxu0 %v10950_v50  ;;  %v3239_v50 = vpop.f32.mrf.mxu0  ;;  %v3264_v58 = vadd.f32 %v3263_v52, %v3251_v42  ;;  %v3276_v59 = vpop.f32.mrf.mxu2  ;;  %v16400_v42 = vld [vmem:[#allocation5 + $0xec4] sm:$0xf]  ;;  %v11507_v52 = vld [vmem:[#allocation5 + $0x6c8] sm:$0xf0] }
 0x10b   :  { %3541 = vmatpush.bf16.msra.mxu1 %v12506_v55  ;;  %v15950_v55 = vld [vmem:[#allocation5 + $0xb4] sm:$0xf]  ;;  %v12230_v50 = vor.u32 %v16320_v40, %v12227_v41  ;;  %v16280_v40 = vld [vmem:[#allocation5 + $0xb04] sm:$0xf]  ;;  %v12067_v41 = vld [vmem:[#allocation5 + $0xb28] sm:$0xf0] }
 0x10c   :  { %3579 = vmatpush.bf16.msrb.mxu2 %v11270_v54  ;;  %v12346_v54 = vor.u32 %v16355_v44, %v12345_v10  ;;  %v3277_v5 = vadd.f32 %v3276_v59, %v3264_v58  ;;  %v12547_v10 = vld [vmem:[#allocation5 + $0xee8] sm:$0xf0]  ;;  %v16230_v44 = vld [vmem:[#allocation5 + $0x974] sm:$0xf]  ;;  %v12507_v59 = vld [vmem:[#allocation5 + $0xe98] sm:$0xf0] }
 0x10d   :  { %3529 = vmatpush.bf16.msrb.mxu3 %v12146_v1  ;;  %v16345_v1 = vld [vmem:[#allocation5 + $0xd04] sm:$0xf0]  ;;  %v16390_v58 = vld [vmem:[#allocation5 + $0xe74] sm:$0xf] }
 0x10e   :  { %3567 = vmatpush.bf16.msrb.mxu0 %v10910_v3  ;;  %v11986_v3 = vor.u32 %v16265_v49, %v11985_v48  ;;  %v12306_v13 = vor.u32 %v16345_v1, %v12305_v63  ;;  %v10670_v48 = vor.u32 %v15930_v28, %v10667_v33  ;;  %v11827_v63 = vld [vmem:[#allocation5 + $0x948] sm:$0xf0] }
 0x10f   :  { %3542 = vmatpush.bf16.msra.mxu1 %v12466_v8  ;;  %v16255_v8 = vld [vmem:[#allocation5 + $0xa34] sm:$0xf0]  ;;  %v11830_v9 = vor.u32 %v16220_v62, %v11827_v63  ;;  %v11747_v28 = vld [vmem:[#allocation5 + $0x8a8] sm:$0xf0]  ;;  %v16180_v62 = vld [vmem:[#allocation5 + $0x7e4] sm:$0xf] }
 0x110   :  { %3580 = vmatpush.bf16.msrb.mxu2 %v11230_v6  ;;  %v10750_v6 = vor.u32 %v15950_v55, %v10747_v56  ;;  %v16310_v56 = vld [vmem:[#allocation5 + $0xbf4] sm:$0xf]  ;;  %v11667_v63 = vld [vmem:[#allocation5 + $0x808] sm:$0xf0] }
 0x111   :  { %3530 = vmatpush.bf16.msrb.mxu3 %v12106_v16  ;;  %v16020_v16 = vld [vmem:[#allocation5 + $0x2e4] sm:$0xf] }
 0x112   :  { %3568 = vmatpush.bf16.msrb.mxu0 %v10870_v17  ;;  %v3252_v17 = vpop.f32.mrf.mxu1  ;;  %v3289_v29 = vpop.f32.mrf.mxu0 }
 0x113   :  { %3543 = vmatpush.bf16.msra.mxu1 %v12426_v22  ;;  %v16240_v22 = vld [vmem:[#allocation5 + $0x9c4] sm:$0xf]  ;;  %v17600_v2 = vadd.f32 %v3289_v29, %v3277_v5  ;;  %v3278_v43 = vpop.f32.mrf.mxu2  ;;  %v16130_v5 = vld [vmem:[#allocation5 + $0x654] sm:$0xf]  ;;  %v639_v29 = vperm.slane %v17574_v0, 2 }
 0x114   :  { %3581 = vmatpush.bf16.msrb.mxu2 %v11190_v21  ;;  %v11946_v21 = vor.u32 %v16255_v8, %v11945_v4  ;;  %v11910_v39 = vor.u32 %v16240_v22, %v11907_v23  ;;  %v12510_v8 = vor.u32 %v16390_v58, %v12507_v59  ;;  %v12347_v59 = vld [vmem:[#allocation5 + $0xd58] sm:$0xf0] }
 0x115   :  { %3531 = vmatpush.bf16.msrb.mxu3 %v12066_v31  ;;  %v11030_v31 = vor.u32 %v16020_v16, %v11027_v18  ;;  %v11787_v16 = vld [vmem:[#allocation5 + $0x8f8] sm:$0xf0] }
 0x116   :  { %3569 = vmatpush.bf16.msrb.mxu0 %v10830_v32  ;;  %v12266_v32 = vor.u32 %v16335_v20, %v12265_v19  ;;  %v16120_v19 = vld [vmem:[#allocation5 + $0x604] sm:$0xf]  ;;  %v11427_v20 = vld [vmem:[#allocation5 + $0x628] sm:$0xf0]  ;;  %v11790_v23 = vor.u32 %v16210_v15, %v11787_v16  ;;  %v16410_v16 = vld [vmem:[#allocation5 + $0xf14] sm:$0xf] }
 0x117   :  { %3544 = vmatpush.bf16.msra.mxu1 %v12386_v37  ;;  %12611 = vmatmul.msk.bf16.vlgmr.msra.gmra.mxu2 %vm3107_vm0, %v17548_v45  ;;  %v3265_v37 = vpop.f32.mrf.mxu3  ;;  %v16340_v15 = vld [vmem:[#allocation5 + $0xce4] sm:$0xf] }
 0x118   :  { %3582 = vmatpush.bf16.msrb.mxu2 %v11150_v36  ;;  %v10987_v36 = vld [vmem:[#allocation5 + $0x2b8] sm:$0xf0] }
 0x119   :  { %3532 = vmatpush.bf16.msrb.mxu3 %v12026_v46  ;;  %v11867_v46 = vld [vmem:[#allocation5 + $0x998] sm:$0xf0]  ;;  %v10990_v49 = vor.u32 %v16010_v34, %v10987_v36  ;;  %v16110_v34 = vld [vmem:[#allocation5 + $0x5b4] sm:$0xf] }
 0x11a   :  { %3570 = vmatpush.bf16.msrb.mxu0 %v10790_v47  ;;  %v11550_v47 = vor.u32 %v16150_v26, %v11547_v27  ;;  %v11870_v55 = vor.u32 %v16230_v44, %v11867_v46  ;;  %v3291_v4 = vpop.f32.mrf.mxu0  ;;  %v12427_v26 = vld [vmem:[#allocation5 + $0xdf8] sm:$0xf0]  ;;  %v16200_v27 = vld [vmem:[#allocation5 + $0x884] sm:$0xf]  ;;  %v16190_v46 = vld [vmem:[#allocation5 + $0x834] sm:$0xf] }
 0x11b   :  { %3545 = vmatpush.bf16.msra.mxu1 %v12346_v54  ;;  %v12550_v54 = vor.u32 %v16400_v42, %v12547_v10  ;;  %v11387_v36 = vld [vmem:[#allocation5 + $0x5d8] sm:$0xf0]  ;;  %v16360_v42 = vld [vmem:[#allocation5 + $0xd84] sm:$0xf]  ;;  %v12387_v10 = vld [vmem:[#allocation5 + $0xda8] sm:$0xf0] }
 0x11c   :  { %3583 = vmatpush.bf16.msrb.mxu2 %v11110_v51  ;;  %v16140_v51 = vld [vmem:[#allocation5 + $0x6a4] sm:$0xf]  ;;  %v11390_v0 = vor.u32 %v16110_v34, %v11387_v36  ;;  %v11947_v34 = vld [vmem:[#allocation5 + $0xa38] sm:$0xf0]  ;;  %v16330_v36 = vld [vmem:[#allocation5 + $0xc94] sm:$0xf] }
 0x11d   :  { %3533 = vmatpush.bf16.msrb.mxu3 %v11986_v3  ;;  %v11510_v1 = vor.u32 %v16140_v51, %v11507_v52  ;;  %v12190_v3 = vor.u32 %v16310_v56, %v12187_v57  ;;  %v12390_v51 = vor.u32 %v16360_v42, %v12387_v10  ;;  %v12027_v56 = vld [vmem:[#allocation5 + $0xad8] sm:$0xf0]  ;;  %v16350_v57 = vld [vmem:[#allocation5 + $0xd34] sm:$0xf]  ;;  %v16166_v42 = vld [vmem:[#allocation5 + $0x76c] sm:$0xf0] }
 0x11e   :  { %3571 = vmatpush.bf16.msrb.mxu0 %v10750_v6  ;;  %v11467_v6 = vld [vmem:[#allocation5 + $0x678] sm:$0xf0] }
 0x11f   :  { %3546 = vmatpush.bf16.msra.mxu1 %v12306_v13  ;;  %v16380_v13 = vld [vmem:[#allocation5 + $0xe24] sm:$0xf]  ;;  %v11470_v17 = vor.u32 %v16130_v5, %v11467_v6  ;;  %v3302_v43 = vpop.f32.mrf.mxu1  ;;  %v11307_v6 = vld [vmem:[#allocation5 + $0x538] sm:$0xf0] }
 0x120   :  { %3584 = vmatpush.bf16.msrb.mxu2 %v11070_v12  ;;  %v12147_v12 = vld [vmem:[#allocation5 + $0xbc8] sm:$0xf0]  ;;  %v12470_v22 = vor.u32 %v16380_v13, %v12467_v14  ;;  %v3303_v44 = vadd.f32 %v3302_v43, %v639_v29  ;;  %v11670_v13 = vor.u32 %v16180_v62, %v11667_v63  ;;  %v16086_v29 = vld [vmem:[#allocation5 + $0x4ec] sm:$0xf0]  ;;  %v11913_v43 = vld [vmem:[#allocation5 + $0x9c8] sm:$0xf] }
 0x121   :  { %3534 = vmatpush.bf16.msrb.mxu3 %v11946_v21  ;;  %v12150_v18 = vor.u32 %v16300_v11, %v12147_v12  ;;  %v16290_v21 = vld [vmem:[#allocation5 + $0xb54] sm:$0xf]  ;;  %v11987_v11 = vld [vmem:[#allocation5 + $0xa88] sm:$0xf0]  ;;  %v12350_v12 = vor.u32 %v16350_v57, %v12347_v59  ;;  %v11553_v57 = vld [vmem:[#allocation5 + $0x6f8] sm:$0xf] }
 0x122   :  { %3572 = vmatpush.bf16.msrb.mxu0 %v10710_v25  ;;  %v16370_v25 = vld [vmem:[#allocation5 + $0xdd4] sm:$0xf]  ;;  %v3328_v33 = vpop.f32.mrf.mxu0  ;;  %v11873_v59 = vld [vmem:[#allocation5 + $0x978] sm:$0xf]  ;;  %v16236_v63 = vld [vmem:[#allocation5 + $0x99c] sm:$0xf0] }
 0x123   :  { %3547 = vmatpush.bf16.msra.mxu1 %v12266_v32  ;;  %v12430_v37 = vor.u32 %v16370_v25, %v12427_v26  ;;  %v16006_v25 = vld [vmem:[#allocation5 + $0x26c] sm:$0xf0] }
 0x124   :  { %3585 = vmatpush.bf16.msrb.mxu2 %v11030_v31  ;;  %3535 = vmatmul.bf16.vlgmr.msrb.gmra.mxu3 %v17552_v30  ;;  %v11430_v31 = vor.u32 %v16120_v19, %v11427_v20  ;;  %v12307_v20 = vld [vmem:[#allocation5 + $0xd08] sm:$0xf0] }
 0x125   :  { %3592 = vmatpush.bf16.msra.mxu3 %v11590_v24  ;;  %v12107_v24 = vld [vmem:[#allocation5 + $0xb78] sm:$0xf0] }
 0x126   :  { %3573 = vmatpush.bf16.msrb.mxu0 %v10670_v48  ;;  %3548 = vmatmul.bf16.vlgmr.msra.gmra.mxu1 %v17554_v35  ;;  %v12110_v32 = vor.u32 %v16290_v21, %v12107_v24  ;;  %v12070_v48 = vor.u32 %v16280_v40, %v12067_v41  ;;  %v16170_v21 = vld [vmem:[#allocation5 + $0x794] sm:$0xf]  ;;  %v10953_v24 = vld [vmem:[#allocation5 + $0x248] sm:$0xf] }
 0x127   :  { %3605 = vmatpush.bf16.msrb.mxu1 %v11910_v39  ;;  %v11750_v39 = vor.u32 %v16200_v27, %v11747_v28  ;;  %v11273_v28 = vld [vmem:[#allocation5 + $0x4c8] sm:$0xf]  ;;  %v10954_v40 = vor.u32 %v16006_v25, %v10953_v24 }
 0x128   :  { %3586 = vmatpush.bf16.msrb.mxu2 %v10990_v49  ;;  %v16100_v49 = vld [vmem:[#allocation5 + $0x564] sm:$0xf]  ;;  %v11593_v41 = vld [vmem:[#allocation5 + $0x748] sm:$0xf]  ;;  %v11274_v10 = vor.u32 %v16086_v29, %v11273_v28 }
 0x129   :  { %3593 = vmatpush.bf16.msra.mxu3 %v11550_v47  ;;  %3574 = vmatmul.bf16.vlgmr.msrb.gmra.mxu0 %v17538_v60  ;;  %v11707_v47 = vld [vmem:[#allocation5 + $0x858] sm:$0xf0] }
 0x12a   :  { %3618 = vmatpush.bf16.msra.mxu0 %v12230_v50  ;;  %v11347_v50 = vld [vmem:[#allocation5 + $0x588] sm:$0xf0]  ;;  %v11710_v52 = vor.u32 %v16190_v46, %v11707_v47  ;;  %v3330_v5 = vpop.f32.mrf.mxu0  ;;  %v3341_v14 = vpop.f32.mrf.mxu2  ;;  %v10913_v46 = vld [vmem:[#allocation5 + $0x1f8] sm:$0xf]  ;;  %v15996_v47 = vld [vmem:[#allocation5 + $0x21c] sm:$0xf0] }
 0x12b   :  { %3606 = vmatpush.bf16.msrb.mxu1 %v11870_v55  ;;  %3587 = vmatmul.bf16.vlgmr.msrb.gmra.mxu2 %v17543_v7  ;;  %v16270_v55 = vld [vmem:[#allocation5 + $0xab4] sm:$0xf]  ;;  %v16066_v5 = vld [vmem:[#allocation5 + $0x44c] sm:$0xf0] }
 0x12c   :  { %3631 = vmatpush.bf16.msra.mxu2 %v12550_v54  ;;  %v3315_v54 = vpop.f32.mrf.mxu3  ;;  %v12030_v4 = vor.u32 %v16270_v55, %v12027_v56  ;;  %v10914_v56 = vor.u32 %v15996_v47, %v10913_v46  ;;  %v10753_v46 = vld [vmem:[#allocation5 + $0xb8] sm:$0xf]  ;;  %v15956_v47 = vld [vmem:[#allocation5 + $0xdc] sm:$0xf0] }
 0x12d   :  { %3594 = vmatpush.bf16.msra.mxu3 %v11510_v1  ;;  %v3316_v58 = vadd.f32 %v3315_v54, %v3303_v44  ;;  %v11350_v1 = vor.u32 %v16100_v49, %v11347_v50  ;;  %v16246_v44 = vld [vmem:[#allocation5 + $0x9ec] sm:$0xf0]  ;;  %v16076_v49 = vld [vmem:[#allocation5 + $0x49c] sm:$0xf0] }
 0x12e   :  { %3619 = vmatpush.bf16.msra.mxu0 %v12190_v3  ;;  %v16090_v3 = vld [vmem:[#allocation5 + $0x514] sm:$0xf]  ;;  %v11914_v55 = vor.u32 %v16246_v44, %v11913_v43  ;;  %v11753_v44 = vld [vmem:[#allocation5 + $0x888] sm:$0xf] }
 0x12f   :  { %3607 = vmatpush.bf16.msrb.mxu1 %v11830_v9  ;;  %v16260_v9 = vld [vmem:[#allocation5 + $0xa64] sm:$0xf] }
 0x130   :  { %3632 = vmatpush.bf16.msra.mxu2 %v12510_v8  ;;  %v3329_v8 = vadd.f32 %v3328_v33, %v3316_v58  ;;  %v11990_v26 = vor.u32 %v16260_v9, %v11987_v11  ;;  %v16156_v58 = vld [vmem:[#allocation5 + $0x71c] sm:$0xf0]  ;;  %v11513_v11 = vld [vmem:[#allocation5 + $0x6a8] sm:$0xf] }
 0x131   :  { %3595 = vmatpush.bf16.msra.mxu3 %v11470_v17  ;;  %v12587_v17 = vld [vmem:[#allocation5 + $0xf38] sm:$0xf0] }
 0x132   :  { %3620 = vmatpush.bf16.msra.mxu0 %v12150_v18  ;;  %v3304_v18 = vpop.f32.mrf.mxu1  ;;  %v17607_v19 = vadd.f32 %v3341_v14, %v3329_v8  ;;  %v12590_v27 = vor.u32 %v16410_v16, %v12587_v17  ;;  %v17609_v50 = vpop.f32.mrf.mxu0  ;;  %v11874_v8 = vor.u32 %v16236_v63, %v11873_v59  ;;  %v10833_v16 = vld [vmem:[#allocation5 + $0x158] sm:$0xf]  ;;  %v15976_v17 = vld [vmem:[#allocation5 + $0x17c] sm:$0xf0]  ;;  %v10754_v63 = vor.u32 %v15956_v47, %v10753_v46  ;;  %v16001_v47 = vld [vmem:[#allocation5 + $0x24c] sm:$0xf] }
 0x133   :  { %3608 = vmatpush.bf16.msrb.mxu1 %v11790_v23  ;;  %v11310_v23 = vor.u32 %v16090_v3, %v11307_v6  ;;  %v3343_v54 = vpop.f32.mrf.mxu2  ;;  %v15986_v3 = vld [vmem:[#allocation5 + $0x1cc] sm:$0xf0]  ;;  %v11554_v6 = vor.u32 %v16156_v58, %v11553_v57  ;;  %v11153_v18 = vld [vmem:[#allocation5 + $0x3d8] sm:$0xf]  ;;  %v10834_v25 = vor.u32 %v15976_v17, %v10833_v16  ;;  %v16116_v59 = vld [vmem:[#allocation5 + $0x5dc] sm:$0xf0] }
 0x134   :  { %3633 = vmatpush.bf16.msra.mxu2 %v12470_v22  ;;  %v11627_v22 = vld [vmem:[#allocation5 + $0x7b8] sm:$0xf0]  ;;  %v17616_v54 = vld [vmem:[#allocation7] sm:$0xff]  ;;  %v11393_v58 = vld [vmem:[#allocation5 + $0x5b8] sm:$0xf] }
 0x135   :  { %3596 = vmatpush.bf16.msra.mxu3 %v11430_v31  ;;  %v16250_v31 = vld [vmem:[#allocation5 + $0xa14] sm:$0xf]  ;;  %v11630_v33 = vor.u32 %v16170_v21, %v11627_v22  ;;  %v11353_v16 = vld [vmem:[#allocation5 + $0x568] sm:$0xf]  ;;  %v16106_v17 = vld [vmem:[#allocation5 + $0x58c] sm:$0xf0] }
 0x136   :  { %3621 = vmatpush.bf16.msra.mxu0 %v12110_v32  ;;  %v12310_v32 = vor.u32 %v16340_v15, %v12307_v20  ;;  %v16226_v15 = vld [vmem:[#allocation5 + $0x94c] sm:$0xf0]  ;;  %v16056_v20 = vld [vmem:[#allocation5 + $0x3fc] sm:$0xf0] }
 0x137   :  { %3609 = vmatpush.bf16.msrb.mxu1 %v11750_v39  ;;  %v3317_v39 = vpop.f32.mrf.mxu3  ;;  %v11154_v29 = vor.u32 %v16056_v20, %v11153_v18  ;;  %v11673_v18 = vld [vmem:[#allocation5 + $0x7e8] sm:$0xf] }
 0x138   :  { %3634 = vmatpush.bf16.msra.mxu2 %v12430_v37  ;;  %v12267_v37 = vld [vmem:[#allocation5 + $0xcb8] sm:$0xf0] }
 0x139   :  { %3597 = vmatpush.bf16.msra.mxu3 %v11390_v0  ;;  %v11950_v0 = vor.u32 %v16250_v31, %v11947_v34  ;;  %v11793_v31 = vld [vmem:[#allocation5 + $0x8d8] sm:$0xf]  ;;  %v15966_v34 = vld [vmem:[#allocation5 + $0x12c] sm:$0xf0] }
 0x13a   :  { %3622 = vmatpush.bf16.msra.mxu0 %v12070_v48  ;;  %v11233_v48 = vld [vmem:[#allocation5 + $0x478] sm:$0xf]  ;;  %v3382_v21 = vpop.f32.mrf.mxu0 }
 0x13b   :  { %3610 = vmatpush.bf16.msrb.mxu1 %v11710_v52  ;;  %v11594_v52 = vor.u32 %v16166_v42, %v11593_v41  ;;  %v11234_v62 = vor.u32 %v16076_v49, %v11233_v48  ;;  %v11433_v41 = vld [vmem:[#allocation5 + $0x608] sm:$0xf]  ;;  %v16126_v42 = vld [vmem:[#allocation5 + $0x62c] sm:$0xf0]  ;;  %v16036_v48 = vld [vmem:[#allocation5 + $0x35c] sm:$0xf0] }
 0x13c   :  { %3635 = vmatpush.bf16.msra.mxu2 %v12390_v51  ;;  %v12270_v51 = vor.u32 %v16330_v36, %v12267_v37  ;;  %v11113_v36 = vld [vmem:[#allocation5 + $0x388] sm:$0xf]  ;;  %v16046_v37 = vld [vmem:[#allocation5 + $0x3ac] sm:$0xf0] }
 0x13d   :  { %3598 = vmatpush.bf16.msra.mxu3 %v11350_v1  ;;  %v10873_v1 = vld [vmem:[#allocation5 + $0x1a8] sm:$0xf] }
 0x13e   :  { %3623 = vmatpush.bf16.msra.mxu0 %v12030_v4  ;;  %v11193_v4 = vld [vmem:[#allocation5 + $0x428] sm:$0xf]  ;;  %v10874_v9 = vor.u32 %v15986_v3, %v10873_v1  ;;  %v11713_v3 = vld [vmem:[#allocation5 + $0x838] sm:$0xf] }
 0x13f   :  { %3611 = vmatpush.bf16.msrb.mxu1 %v11670_v13  ;;  %v11833_v13 = vld [vmem:[#allocation5 + $0x928] sm:$0xf]  ;;  %v11194_v14 = vor.u32 %v16066_v5, %v11193_v4  ;;  %v16196_v4 = vld [vmem:[#allocation5 + $0x85c] sm:$0xf0] }
 0x140   :  { %3636 = vmatpush.bf16.msra.mxu2 %v12350_v12  ;;  %v16146_v12 = vld [vmem:[#allocation5 + $0x6cc] sm:$0xf0]  ;;  %v11834_v24 = vor.u32 %v16226_v15, %v11833_v13  ;;  %v10713_v5 = vld [vmem:[#allocation5 + $0x68] sm:$0xf]  ;;  %v11394_v13 = vor.u32 %v16116_v59, %v11393_v58  ;;  %v11714_v15 = vor.u32 %v16196_v4, %v11713_v3  ;;  %v15991_v4 = vld [vmem:[#allocation5 + $0x1fc] sm:$0xf] }
 0x141   :  { %3599 = vmatpush.bf16.msra.mxu3 %v11310_v23  ;;  %v11514_v22 = vor.u32 %v16146_v12, %v11513_v11  ;;  %v3354_v23 = vpop.f32.mrf.mxu1  ;;  %v16026_v11 = vld [vmem:[#allocation5 + $0x30c] sm:$0xf0] }
 0x142   :  { %3624 = vmatpush.bf16.msra.mxu0 %v11990_v26  ;;  %v11473_v26 = vld [vmem:[#allocation5 + $0x658] sm:$0xf]  ;;  %v3355_v28 = vadd.f32 %v3354_v23, %v17607_v19  ;;  %v16206_v19 = vld [vmem:[#allocation5 + $0x8ac] sm:$0xf0] }
 0x143   :  { %3612 = vmatpush.bf16.msrb.mxu1 %v11630_v33  ;;  %v10793_v33 = vld [vmem:[#allocation5 + $0x108] sm:$0xf]  ;;  %v11754_v57 = vor.u32 %v16206_v19, %v11753_v44  ;;  %v10673_v23 = vld [vmem:[#allocation5 + $0x18] sm:$0xf]  ;;  %v16416_v44 = vld [vmem:[#allocation5 + $0xf3c] sm:$0xf0] }
 0x144   :  { %3637 = vmatpush.bf16.msra.mxu2 %v12310_v32  ;;  %3600 = vmatmul.bf16.vlgmr.msra.gmra.mxu3 %v17536_v53  ;;  %v16216_v32 = vld [vmem:[#allocation5 + $0x8fc] sm:$0xf0]  ;;  %v10794_v43 = vor.u32 %v15966_v34, %v10793_v33  ;;  %v16406_v33 = vld [vmem:[#allocation5 + $0xeec] sm:$0xf0] }
 0x145   :  { %3651 = vmatpush.bf16.msrb.mxu3 %v12590_v27  ;;  %v16136_v27 = vld [vmem:[#allocation5 + $0x67c] sm:$0xf0] }
 0x146   :  { %3625 = vmatpush.bf16.msra.mxu0 %v11950_v0  ;;  %3613 = vmatmul.bf16.vlgmr.msrb.gmra.mxu1 %v17540_v61  ;;  %v11474_v39 = vor.u32 %v16136_v27, %v11473_v26  ;;  %v11073_v0 = vld [vmem:[#allocation5 + $0x338] sm:$0xf]  ;;  %v3406_v49 = vpop.f32.mrf.mxu0  ;;  %v16016_v26 = vld [vmem:[#allocation5 + $0x2bc] sm:$0xf0]  ;;  %v12233_v27 = vld [vmem:[#allocation5 + $0xc48] sm:$0xf] }
 0x147   :  { %3657 = vmatpush.bf16.msra.mxu1 %v10954_v40  ;;  %v11794_v40 = vor.u32 %v16216_v32, %v11793_v31  ;;  %v11074_v1 = vor.u32 %v16036_v48, %v11073_v0  ;;  %v16326_v31 = vld [vmem:[#allocation5 + $0xc6c] sm:$0xf0]  ;;  %v12553_v32 = vld [vmem:[#allocation5 + $0xec8] sm:$0xf]  ;;  %v10955_v0 = vld [vmem:[#allocation5 + $0x270] sm:$0xf0] }
 0x148   :  { %3638 = vmatpush.bf16.msra.mxu2 %v12270_v51  ;;  %v3367_v51 = vpop.f32.mrf.mxu3  ;;  %v12234_v19 = vor.u32 %v16326_v31, %v12233_v27  ;;  %v12554_v46 = vor.u32 %v16406_v33, %v12553_v32  ;;  %v12193_v48 = vld [vmem:[#allocation5 + $0xbf8] sm:$0xf]  ;;  %v10958_v59 = vor.u32 %v16001_v47, %v10955_v0  ;;  %v11195_v31 = vld [vmem:[#allocation5 + $0x450] sm:$0xf0]  ;;  %v15961_v0 = vld [vmem:[#allocation5 + $0x10c] sm:$0xf] }
 0x149   :  { %3670 = vmatpush.bf16.msra.mxu3 %v11274_v10  ;;  %3626 = vmatmul.bf16.vlgmr.msra.gmra.mxu0 %v17552_v30  ;;  %v11114_v10 = vor.u32 %v16046_v37, %v11113_v36  ;;  %v11313_v37 = vld [vmem:[#allocation5 + $0x518] sm:$0xf] }
 0x14a   :  { %3683 = vmatpush.bf16.msrb.mxu0 %v11594_v52  ;;  %v11434_v52 = vor.u32 %v16126_v42, %v11433_v41  ;;  %v3393_v12 = vpop.f32.mrf.mxu2 }
 0x14b   :  { %3658 = vmatpush.bf16.msra.mxu1 %v10914_v56  ;;  %3639 = vmatmul.bf16.vlgmr.msra.gmra.mxu2 %v17554_v35  ;;  %v3368_v56 = vadd.f32 %v3367_v51, %v3355_v28 }
 0x14c   :  { %3696 = vmatpush.bf16.msrb.mxu2 %v11914_v55  ;;  %v640_v55 = vperm.slane %v17616_v54, 3 }
 0x14d   :  { %3671 = vmatpush.bf16.msra.mxu3 %v11234_v62  ;;  %v3356_v62 = vpop.f32.mrf.mxu1 }
 0x14e   :  { %3684 = vmatpush.bf16.msrb.mxu0 %v11554_v6  ;;  %v17622_v6 = vadd.f32 %v17609_v50, %v3368_v56  ;;  %v15936_v50 = vld [vmem:[#allocation5 + $0x3c] sm:$0xf0]  ;;  %v3408_v28 = vpop.f32.mrf.mxu0  ;;  %v16081_v62 = vld [vmem:[#allocation5 + $0x4cc] sm:$0xf] }
 0x14f   :  { %3659 = vmatpush.bf16.msra.mxu1 %v10874_v9  ;;  %v11033_v9 = vld [vmem:[#allocation5 + $0x2e8] sm:$0xf]  ;;  %v10674_v41 = vor.u32 %v15936_v50, %v10673_v23  ;;  %v16396_v56 = vld [vmem:[#allocation5 + $0xe9c] sm:$0xf0]  ;;  %v12433_v50 = vld [vmem:[#allocation5 + $0xdd8] sm:$0xf] }
 0x150   :  { %3697 = vmatpush.bf16.msrb.mxu2 %v11874_v8  ;;  %v15946_v8 = vld [vmem:[#allocation5 + $0x8c] sm:$0xf0]  ;;  %v11034_v21 = vor.u32 %v16026_v11, %v11033_v9  ;;  %v3369_v34 = vpop.f32.mrf.mxu3  ;;  %v12473_v11 = vld [vmem:[#allocation5 + $0xe28] sm:$0xf]  ;;  %v16296_v23 = vld [vmem:[#allocation5 + $0xb7c] sm:$0xf0] }
 0x151   :  { %3672 = vmatpush.bf16.msra.mxu3 %v11194_v14  ;;  %v3394_v14 = vadd.f32 %v3393_v12, %v640_v55  ;;  %v10714_v20 = vor.u32 %v15946_v8, %v10713_v5  ;;  %v12513_v55 = vld [vmem:[#allocation5 + $0xe78] sm:$0xf]  ;;  %v10915_v5 = vld [vmem:[#allocation5 + $0x220] sm:$0xf0]  ;;  %v12153_v8 = vld [vmem:[#allocation5 + $0xba8] sm:$0xf] }
 0x152   :  { %3685 = vmatpush.bf16.msrb.mxu0 %v11514_v22  ;;  %v16186_v22 = vld [vmem:[#allocation5 + $0x80c] sm:$0xf0]  ;;  %v12514_v3 = vor.u32 %v16396_v56, %v12513_v55 }
 0x153   :  { %3660 = vmatpush.bf16.msra.mxu1 %v10834_v25  ;;  %v10993_v25 = vld [vmem:[#allocation5 + $0x298] sm:$0xf]  ;;  %v11674_v36 = vor.u32 %v16186_v22, %v11673_v18  ;;  %v16306_v9 = vld [vmem:[#allocation5 + $0xbcc] sm:$0xf0] }
 0x154   :  { %3698 = vmatpush.bf16.msrb.mxu2 %v11834_v24  ;;  %12612 = vmatmul.msk.bf16.vlgmr.msrb.gmra.mxu3 %vm3107_vm0, %v17548_v45  ;;  %v17624_v24 = vadd.f32 %v3406_v49, %v3394_v14  ;;  %v10994_v42 = vor.u32 %v16016_v26, %v10993_v25  ;;  %v3395_v49 = vpop.f32.mrf.mxu2  ;;  %v16386_v12 = vld [vmem:[#allocation5 + $0xe4c] sm:$0xf0]  ;;  %v10918_v14 = vor.u32 %v15991_v4, %v10915_v5  ;;  %v12113_v22 = vld [vmem:[#allocation5 + $0xb58] sm:$0xf]  ;;  %v16376_v25 = vld [vmem:[#allocation5 + $0xdfc] sm:$0xf0] }
 0x155   :  { %3673 = vmatpush.bf16.msra.mxu3 %v11154_v29  ;;  %v11354_v29 = vor.u32 %v16106_v17, %v11353_v16  ;;  %v11235_v16 = vld [vmem:[#allocation5 + $0x4a0] sm:$0xf0]  ;;  %v12154_v17 = vor.u32 %v16306_v9, %v12153_v8  ;;  %v12474_v18 = vor.u32 %v16386_v12, %v12473_v11  ;;  %v12114_v32 = vor.u32 %v16296_v23, %v12113_v22  ;;  %v12033_v49 = vld [vmem:[#allocation5 + $0xab8] sm:$0xf]  ;;  %v15951_v4 = vld [vmem:[#allocation5 + $0xbc] sm:$0xf] }
 0x156   :  { %3686 = vmatpush.bf16.msrb.mxu0 %v11474_v39  ;;  %v16096_v39 = vld [vmem:[#allocation5 + $0x53c] sm:$0xf0]  ;;  %v12434_v33 = vor.u32 %v16376_v25, %v12433_v50  ;;  %v10755_v5 = vld [vmem:[#allocation5 + $0xe0] sm:$0xf0]  ;;  %v11993_v9 = vld [vmem:[#allocation5 + $0xa68] sm:$0xf] }
 0x157   :  { %3661 = vmatpush.bf16.msra.mxu1 %v10794_v43  ;;  %v16176_v43 = vld [vmem:[#allocation5 + $0x7bc] sm:$0xf0]  ;;  %v11314_v51 = vor.u32 %v16096_v39, %v11313_v37  ;;  %v10835_v37 = vld [vmem:[#allocation5 + $0x180] sm:$0xf0]  ;;  %v12073_v39 = vld [vmem:[#allocation5 + $0xb08] sm:$0xf] }
 0x158   :  { %3699 = vmatpush.bf16.msrb.mxu2 %v11794_v40  ;;  %v11633_v40 = vld [vmem:[#allocation5 + $0x798] sm:$0xf]  ;;  %v16266_v11 = vld [vmem:[#allocation5 + $0xa8c] sm:$0xf0]  ;;  %v12313_v12 = vld [vmem:[#allocation5 + $0xce8] sm:$0xf] }
 0x159   :  { %3674 = vmatpush.bf16.msra.mxu3 %v11114_v10  ;;  %v12593_v10 = vld [vmem:[#allocation5 + $0xf18] sm:$0xf]  ;;  %v11994_v22 = vor.u32 %v16266_v11, %v11993_v9  ;;  %v10715_v50 = vld [vmem:[#allocation5 + $0x90] sm:$0xf0] }
 0x15a   :  { %3687 = vmatpush.bf16.msrb.mxu0 %v11434_v52  ;;  %v16316_v52 = vld [vmem:[#allocation5 + $0xc1c] sm:$0xf0]  ;;  %v12594_v58 = vor.u32 %v16416_v44, %v12593_v10  ;;  %v16051_v44 = vld [vmem:[#allocation5 + $0x3dc] sm:$0xf] }
 0x15b   :  { %3662 = vmatpush.bf16.msra.mxu1 %v10754_v63  ;;  %v11275_v63 = vld [vmem:[#allocation5 + $0x4f0] sm:$0xf0] }
 0x15c   :  { %3700 = vmatpush.bf16.msrb.mxu2 %v11754_v57  ;;  %v11634_v57 = vor.u32 %v16176_v43, %v11633_v40  ;;  %v16286_v40 = vld [vmem:[#allocation5 + $0xb2c] sm:$0xf0] }
 0x15d   :  { %3675 = vmatpush.bf16.msra.mxu3 %v11074_v1  ;;  %v12194_v1 = vor.u32 %v16316_v52, %v12193_v48  ;;  %v10795_v48 = vld [vmem:[#allocation5 + $0x130] sm:$0xf0]  ;;  %v16356_v52 = vld [vmem:[#allocation5 + $0xd5c] sm:$0xf0] }
 0x15e   :  { %3688 = vmatpush.bf16.msrb.mxu0 %v11394_v13  ;;  %v11278_v13 = vor.u32 %v16081_v62, %v11275_v63  ;;  %v11115_v62 = vld [vmem:[#allocation5 + $0x3b0] sm:$0xf0] }
 0x15f   :  { %3663 = vmatpush.bf16.msra.mxu1 %v10714_v20  ;;  %v15981_v20 = vld [vmem:[#allocation5 + $0x1ac] sm:$0xf]  ;;  %v3419_v28 = vpop.f32.mrf.mxu1 }
 0x160   :  { %3701 = vmatpush.bf16.msrb.mxu2 %v11714_v15  ;;  %v16071_v15 = vld [vmem:[#allocation5 + $0x47c] sm:$0xf]  ;;  %v3420_v34 = vadd.f32 %v3419_v28, %v17624_v24  ;;  %v16276_v24 = vld [vmem:[#allocation5 + $0xadc] sm:$0xf0]  ;;  %v12273_v28 = vld [vmem:[#allocation5 + $0xc98] sm:$0xf] }
 0x161   :  { %3676 = vmatpush.bf16.msra.mxu3 %v11034_v21  ;;  %v10875_v21 = vld [vmem:[#allocation5 + $0x1d0] sm:$0xf0]  ;;  %v11238_v26 = vor.u32 %v16071_v15, %v11235_v16 }
 0x162   :  { %3689 = vmatpush.bf16.msrb.mxu0 %v11354_v29  ;;  %v10878_v27 = vor.u32 %v15981_v20, %v10875_v21  ;;  %v16061_v29 = vld [vmem:[#allocation5 + $0x42c] sm:$0xf]  ;;  %v11075_v20 = vld [vmem:[#allocation5 + $0x360] sm:$0xf0] }
 0x163   :  { %3664 = vmatpush.bf16.msra.mxu1 %v10674_v41  ;;  %v12393_v41 = vld [vmem:[#allocation5 + $0xd88] sm:$0xf]  ;;  %v11198_v43 = vor.u32 %v16061_v29, %v11195_v31  ;;  %v15941_v21 = vld [vmem:[#allocation5 + $0x6c] sm:$0xf]  ;;  %v16336_v29 = vld [vmem:[#allocation5 + $0xcbc] sm:$0xf0] }
 0x164   :  { %3702 = vmatpush.bf16.msrb.mxu2 %v11674_v36  ;;  %v15971_v36 = vld [vmem:[#allocation5 + $0x15c] sm:$0xf]  ;;  %v16161_v31 = vld [vmem:[#allocation5 + $0x74c] sm:$0xf] }
 0x165   :  { %3677 = vmatpush.bf16.msra.mxu3 %v10994_v42  ;;  %v16366_v42 = vld [vmem:[#allocation5 + $0xdac] sm:$0xf0]  ;;  %v10838_v10 = vor.u32 %v15971_v36, %v10835_v37  ;;  %v16241_v36 = vld [vmem:[#allocation5 + $0x9cc] sm:$0xf]  ;;  %v11915_v37 = vld [vmem:[#allocation5 + $0x9f0] sm:$0xf0] }
 0x166   :  { %3690 = vmatpush.bf16.msrb.mxu0 %v11314_v51  ;;  %3665 = vmatmul.bf16.vlgmr.msra.gmra.mxu1 %v17538_v60  ;;  %v12394_v47 = vor.u32 %v16366_v42, %v12393_v41  ;;  %v12353_v51 = vld [vmem:[#allocation5 + $0xd38] sm:$0xf]  ;;  %v3458_v55 = vpop.f32.mrf.mxu0  ;;  %v16021_v41 = vld [vmem:[#allocation5 + $0x2ec] sm:$0xf]  ;;  %v11035_v42 = vld [vmem:[#allocation5 + $0x310] sm:$0xf0] }
 0x167   :  { %3709 = vmatpush.bf16.msrb.mxu1 %v12234_v19  ;;  %v11155_v19 = vld [vmem:[#allocation5 + $0x400] sm:$0xf0]  ;;  %v3432_v63 = vpop.f32.mrf.mxu3 }
 0x168   :  { %3703 = vmatpush.bf16.msrb.mxu2 %v11634_v57  ;;  %3678 = vmatmul.bf16.vlgmr.msra.gmra.mxu3 %v17543_v7  ;;  %v11158_v56 = vor.u32 %v16051_v44, %v11155_v19  ;;  %v10798_v57 = vor.u32 %v15961_v0, %v10795_v48  ;;  %v3433_v8 = vadd.f32 %v3432_v63, %v3420_v34  ;;  %v11595_v34 = vld [vmem:[#allocation5 + $0x770] sm:$0xf0]  ;;  %v10675_v48 = vld [vmem:[#allocation5 + $0x40] sm:$0xf0] }
 0x169   :  { %3722 = vmatpush.bf16.msrb.mxu3 %v12554_v46  ;;  %3691 = vmatmul.bf16.vlgmr.msrb.gmra.mxu0 %v17536_v53  ;;  %v12074_v46 = vor.u32 %v16286_v40, %v12073_v39  ;;  %v10718_v39 = vor.u32 %v15941_v21, %v10715_v50  ;;  %v12274_v44 = vor.u32 %v16336_v29, %v12273_v28  ;;  %v12515_v21 = vld [vmem:[#allocation5 + $0xea0] sm:$0xf0]  ;;  %v16301_v50 = vld [vmem:[#allocation5 + $0xbac] sm:$0xf] }
 0x16a   :  { %3742 = vmatpush.bf16.msra.mxu0 %v12594_v58  ;;  %v3421_v58 = vpop.f32.mrf.mxu1  ;;  %v11918_v0 = vor.u32 %v16241_v36, %v11915_v37  ;;  %v11475_v28 = vld [vmem:[#allocation5 + $0x680] sm:$0xf0] }
 0x16b   :  { %3710 = vmatpush.bf16.msrb.mxu1 %v12194_v1  ;;  %3704 = vmatmul.bf16.vlgmr.msrb.gmra.mxu2 %v17540_v61  ;;  %v12034_v1 = vor.u32 %v16276_v24, %v12033_v49  ;;  %v16321_v49 = vld [vmem:[#allocation5 + $0xc4c] sm:$0xf]  ;;  %v12235_v24 = vld [vmem:[#allocation5 + $0xc70] sm:$0xf0]  ;;  %v11875_v58 = vld [vmem:[#allocation5 + $0x9a0] sm:$0xf0] }
 0x16c   :  { %3748 = vmatpush.bf16.msra.mxu2 %v10958_v59  ;;  %v16041_v59 = vld [vmem:[#allocation5 + $0x38c] sm:$0xf] }
 0x16d   :  { %3723 = vmatpush.bf16.msrb.mxu3 %v12514_v3  ;;  %v12354_v3 = vor.u32 %v16356_v52, %v12353_v51  ;;  %v11118_v15 = vor.u32 %v16041_v59, %v11115_v62  ;;  %v11038_v52 = vor.u32 %v16021_v41, %v11035_v42  ;;  %v16011_v59 = vld [vmem:[#allocation5 + $0x29c] sm:$0xf]  ;;  %v10995_v62 = vld [vmem:[#allocation5 + $0x2c0] sm:$0xf0]  ;;  %v16121_v42 = vld [vmem:[#allocation5 + $0x60c] sm:$0xf] }
 0x16e   :  { %3761 = vmatpush.bf16.msrb.mxu0 %v11278_v13  ;;  %v16346_v13 = vld [vmem:[#allocation5 + $0xd0c] sm:$0xf0]  ;;  %v10998_v11 = vor.u32 %v16011_v59, %v10995_v62  ;;  %v12115_v41 = vld [vmem:[#allocation5 + $0xb80] sm:$0xf0] }
 0x16f   :  { %3711 = vmatpush.bf16.msrb.mxu1 %v12154_v17  ;;  %v10758_v17 = vor.u32 %v15951_v4, %v10755_v5  ;;  %v12314_v23 = vor.u32 %v16346_v13, %v12313_v12  ;;  %v12238_v4 = vor.u32 %v16321_v49, %v12235_v24  ;;  %v12195_v12 = vld [vmem:[#allocation5 + $0xc20] sm:$0xf0]  ;;  %v16141_v13 = vld [vmem:[#allocation5 + $0x6ac] sm:$0xf] }
 0x170   :  { %3749 = vmatpush.bf16.msra.mxu2 %v10918_v14  ;;  %v3445_v14 = vpop.f32.mrf.mxu2  ;;  %v16281_v24 = vld [vmem:[#allocation5 + $0xb0c] sm:$0xf] }
 0x171   :  { %3724 = vmatpush.bf16.msrb.mxu3 %v12474_v18  ;;  %v3446_v16 = vadd.f32 %v3445_v14, %v3433_v8  ;;  %v16031_v18 = vld [vmem:[#allocation5 + $0x33c] sm:$0xf]  ;;  %v11515_v14 = vld [vmem:[#allocation5 + $0x6d0] sm:$0xf0] }
 0x172   :  { %3762 = vmatpush.bf16.msrb.mxu0 %v11238_v26  ;;  %v11953_v26 = vld [vmem:[#allocation5 + $0xa18] sm:$0xf]  ;;  %v3471_v40 = vpop.f32.mrf.mxu1  ;;  %v16311_v8 = vld [vmem:[#allocation5 + $0xbfc] sm:$0xf] }
 0x173   :  { %3712 = vmatpush.bf16.msrb.mxu1 %v12114_v32  ;;  %v3459_v25 = vadd.f32 %v3458_v55, %v3446_v16  ;;  %v3460_v32 = vpop.f32.mrf.mxu0  ;;  %v16151_v55 = vld [vmem:[#allocation5 + $0x6fc] sm:$0xf]  ;;  %v16221_v16 = vld [vmem:[#allocation5 + $0x92c] sm:$0xf] }
 0x174   :  { %3750 = vmatpush.bf16.msra.mxu2 %v10878_v27  ;;  %v16256_v27 = vld [vmem:[#allocation5 + $0xa3c] sm:$0xf0]  ;;  %v11795_v32 = vld [vmem:[#allocation5 + $0x900] sm:$0xf0] }
 0x175   :  { %3725 = vmatpush.bf16.msrb.mxu3 %v12434_v33  ;;  %v11078_v33 = vor.u32 %v16031_v18, %v11075_v20  ;;  %v17633_v19 = vadd.f32 %v3471_v40, %v3459_v25  ;;  %v16391_v20 = vld [vmem:[#allocation5 + $0xe7c] sm:$0xf] }
 0x176   :  { %3763 = vmatpush.bf16.msrb.mxu0 %v11198_v43  ;;  %v3434_v43 = vpop.f32.mrf.mxu3  ;;  %v12518_v29 = vor.u32 %v16391_v20, %v12515_v21  ;;  %v16181_v21 = vld [vmem:[#allocation5 + $0x7ec] sm:$0xf] }
 0x177   :  { %3713 = vmatpush.bf16.msrb.mxu1 %v12074_v46  ;;  %v15931_v46 = vld [vmem:[#allocation5 + $0x1c] sm:$0xf]  ;;  %v11435_v43 = vld [vmem:[#allocation5 + $0x630] sm:$0xf0] }
 0x178   :  { %3751 = vmatpush.bf16.msra.mxu2 %v10838_v10  ;;  %v11954_v10 = vor.u32 %v16256_v27, %v11953_v26  ;;  %v3447_v51 = vpop.f32.mrf.mxu2  ;;  %v10678_v63 = vor.u32 %v15931_v46, %v10675_v48  ;;  %v12155_v26 = vld [vmem:[#allocation5 + $0xbd0] sm:$0xf0]  ;;  %v16131_v27 = vld [vmem:[#allocation5 + $0x65c] sm:$0xf]  ;;  %v11438_v49 = vor.u32 %v16121_v42, %v11435_v43  ;;  %v10961_v42 = vld [vmem:[#allocation5 + $0x250] sm:$0xf] }
 0x179   :  { %3726 = vmatpush.bf16.msrb.mxu3 %v12394_v47  ;;  %12613 = vmatmul.msk.bf16.vlgmr.msra.gmra.mxu0 %vm3107_vm0, %v17548_v45  ;;  %v11598_v47 = vor.u32 %v16161_v31, %v11595_v34  ;;  %v16211_v31 = vld [vmem:[#allocation5 + $0x8dc] sm:$0xf]  ;;  %v12475_v34 = vld [vmem:[#allocation5 + $0xe50] sm:$0xf0]  ;;  %v12158_v36 = vor.u32 %v16301_v50, %v12155_v26  ;;  %v11478_v37 = vor.u32 %v16131_v27, %v11475_v28  ;;  %v641_v51 = vperm.slane %v17616_v54, 4 }
 0x17a   :  { %3764 = vmatpush.bf16.msrb.mxu0 %v11158_v56  ;;  %v11555_v56 = vld [vmem:[#allocation5 + $0x720] sm:$0xf0]  ;;  %v3473_v18 = vpop.f32.mrf.mxu1  ;;  %v11798_v40 = vor.u32 %v16211_v31, %v11795_v32  ;;  %v11755_v46 = vld [vmem:[#allocation5 + $0x8b0] sm:$0xf0]  ;;  %v16261_v27 = vld [vmem:[#allocation5 + $0xa6c] sm:$0xf] }
 0x17b   :  { %3714 = vmatpush.bf16.msrb.mxu1 %v12034_v1  ;;  %v16401_v1 = vld [vmem:[#allocation5 + $0xecc] sm:$0xf]  ;;  %v11558_v5 = vor.u32 %v16151_v55, %v11555_v56  ;;  %v12075_v55 = vld [vmem:[#allocation5 + $0xb30] sm:$0xf0]  ;;  %v16111_v56 = vld [vmem:[#allocation5 + $0x5bc] sm:$0xf] }
 0x17c   :  { %3752 = vmatpush.bf16.msra.mxu2 %v10798_v57  ;;  %v16231_v57 = vld [vmem:[#allocation5 + $0x97c] sm:$0xf]  ;;  %v12355_v50 = vld [vmem:[#allocation5 + $0xd60] sm:$0xf0]  ;;  %v11995_v28 = vld [vmem:[#allocation5 + $0xa90] sm:$0xf0] }
 0x17d   :  { %3727 = vmatpush.bf16.msrb.mxu3 %v12354_v3  ;;  %v12555_v3 = vld [vmem:[#allocation5 + $0xef0] sm:$0xf0]  ;;  %v11878_v9 = vor.u32 %v16231_v57, %v11875_v58  ;;  %v11395_v57 = vld [vmem:[#allocation5 + $0x5e0] sm:$0xf0]  ;;  %v16091_v31 = vld [vmem:[#allocation5 + $0x51c] sm:$0xf] }
 0x17e   :  { %3765 = vmatpush.bf16.msrb.mxu0 %v11118_v15  ;;  %v12558_v15 = vor.u32 %v16401_v1, %v12555_v3  ;;  %v11715_v1 = vld [vmem:[#allocation5 + $0x860] sm:$0xf0]  ;;  %v16411_v43 = vld [vmem:[#allocation5 + $0xf1c] sm:$0xf] }
 0x17f   :  { %3715 = vmatpush.bf16.msrb.mxu1 %v11994_v22  ;;  %v12198_v22 = vor.u32 %v16311_v8, %v12195_v12  ;;  %v12078_v8 = vor.u32 %v16281_v24, %v12075_v55  ;;  %v16271_v12 = vld [vmem:[#allocation5 + $0xabc] sm:$0xf]  ;;  %v11955_v55 = vld [vmem:[#allocation5 + $0xa40] sm:$0xf0] }
 0x180   :  { %3753 = vmatpush.bf16.msra.mxu2 %v10758_v17  ;;  %v11835_v17 = vld [vmem:[#allocation5 + $0x950] sm:$0xf0]  ;;  %v16251_v24 = vld [vmem:[#allocation5 + $0xa1c] sm:$0xf] }
 0x181   :  { %3728 = vmatpush.bf16.msrb.mxu3 %v12314_v23  ;;  %v11518_v23 = vor.u32 %v16141_v13, %v11515_v14  ;;  %v11838_v25 = vor.u32 %v16221_v16, %v11835_v17  ;;  %v16101_v16 = vld [vmem:[#allocation5 + $0x56c] sm:$0xf]  ;;  %v11355_v17 = vld [vmem:[#allocation5 + $0x590] sm:$0xf0] }
 0x182   :  { %3766 = vmatpush.bf16.msrb.mxu0 %v11078_v33  ;;  %v16381_v33 = vld [vmem:[#allocation5 + $0xe2c] sm:$0xf]  ;;  %v11358_v26 = vor.u32 %v16101_v16, %v11355_v17  ;;  %v16077_v16 = vld [vmem:[#allocation5 + $0x4a4] sm:$0xf0] }
 0x183   :  { %3716 = vmatpush.bf16.msrb.mxu1 %v11954_v10  ;;  %v12478_v10 = vor.u32 %v16381_v33, %v12475_v34  ;;  %v3497_v58 = vpop.f32.mrf.mxu1  ;;  %v11315_v33 = vld [vmem:[#allocation5 + $0x540] sm:$0xf0]  ;;  %v16171_v34 = vld [vmem:[#allocation5 + $0x79c] sm:$0xf] }
 0x184   :  { %3754 = vmatpush.bf16.msra.mxu2 %v10718_v39  ;;  %v16291_v39 = vld [vmem:[#allocation5 + $0xb5c] sm:$0xf] }
 0x185   :  { %3729 = vmatpush.bf16.msrb.mxu3 %v12274_v44  ;;  %v16201_v44 = vld [vmem:[#allocation5 + $0x88c] sm:$0xf]  ;;  %v12118_v48 = vor.u32 %v16291_v39, %v12115_v41 }
 0x186   :  { %3767 = vmatpush.bf16.msrb.mxu0 %v11038_v52  ;;  %3717 = vmatmul.bf16.vlgmr.msrb.gmra.mxu1 %v17552_v30  ;;  %v11758_v52 = vor.u32 %v16201_v44, %v11755_v46  ;;  %v3523_v59 = vpop.f32.mrf.mxu0  ;;  %v16007_v44 = vld [vmem:[#allocation5 + $0x274] sm:$0xf0]  ;;  %v16341_v46 = vld [vmem:[#allocation5 + $0xcec] sm:$0xf] }
 0x187   :  { %3774 = vmatpush.bf16.msra.mxu1 %v11598_v47  ;;  %v16371_v47 = vld [vmem:[#allocation5 + $0xddc] sm:$0xf]  ;;  %v3484_v3 = vpop.f32.mrf.mxu3 }
 0x188   :  { %3730 = vmatmul.bf16.vlgmr.msrb.gmra.mxu3 %v17554_v35  ;;  %3755 = vmatpush.bf16.msra.mxu2 %v10678_v63  ;;  %v16191_v63 = vld [vmem:[#allocation5 + $0x83c] sm:$0xf] }
 0x189   :  { %3787 = vmatpush.bf16.msra.mxu3 %v11918_v0  ;;  %v12435_v0 = vld [vmem:[#allocation5 + $0xe00] sm:$0xf0]  ;;  %v11718_v14 = vor.u32 %v16191_v63, %v11715_v1  ;;  %v11601_v63 = vld [vmem:[#allocation5 + $0x750] sm:$0xf]  ;;  %v16167_v1 = vld [vmem:[#allocation5 + $0x774] sm:$0xf0] }
 0x18a   :  { %3768 = vmatpush.bf16.msrb.mxu0 %v10998_v11  ;;  %v12438_v62 = vor.u32 %v16371_v47, %v12435_v0  ;;  %v3485_v11 = vadd.f32 %v3484_v3, %v641_v51  ;;  %v3510_v13 = vpop.f32.mrf.mxu2  ;;  %v12315_v47 = vld [vmem:[#allocation5 + $0xd10] sm:$0xf0]  ;;  %v10921_v3 = vld [vmem:[#allocation5 + $0x200] sm:$0xf] }
 0x18b   :  { %3775 = vmatpush.bf16.msra.mxu1 %v11558_v5  ;;  %3756 = vmatmul.bf16.vlgmr.msra.gmra.mxu2 %v17538_v60  ;;  %v12395_v5 = vld [vmem:[#allocation5 + $0xdb0] sm:$0xf0] }
 0x18c   :  { %3800 = vmatpush.bf16.msrb.mxu2 %v12238_v4  ;;  %v16361_v4 = vld [vmem:[#allocation5 + $0xd8c] sm:$0xf]  ;;  %v3498_v20 = vadd.f32 %v3497_v58, %v3485_v11  ;;  %v16087_v58 = vld [vmem:[#allocation5 + $0x4f4] sm:$0xf0] }
 0x18d   :  { %3788 = vmatpush.bf16.msra.mxu3 %v11878_v9  ;;  %3769 = vmatmul.bf16.vlgmr.msrb.gmra.mxu0 %v17543_v7  ;;  %v11398_v9 = vor.u32 %v16111_v56, %v11395_v57  ;;  %v12398_v18 = vor.u32 %v16361_v4, %v12395_v5  ;;  %v11281_v57 = vld [vmem:[#allocation5 + $0x4d0] sm:$0xf]  ;;  %v15997_v4 = vld [vmem:[#allocation5 + $0x224] sm:$0xf0]  ;;  %v16331_v5 = vld [vmem:[#allocation5 + $0xc9c] sm:$0xf] }
 0x18e   :  { %3813 = vmatpush.bf16.msra.mxu0 %v12558_v15  ;;  %v12035_v15 = vld [vmem:[#allocation5 + $0xae0] sm:$0xf0]  ;;  %v3525_v39 = vpop.f32.mrf.mxu0  ;;  %v11282_v11 = vor.u32 %v16087_v58, %v11281_v57  ;;  %v10922_v17 = vor.u32 %v15997_v4, %v10921_v3  ;;  %v16217_v57 = vld [vmem:[#allocation5 + $0x904] sm:$0xf0]  ;;  %v11441_v4 = vld [vmem:[#allocation5 + $0x610] sm:$0xf] }
 0x18f   :  { %3776 = vmatpush.bf16.msra.mxu1 %v11518_v23  ;;  %v16351_v23 = vld [vmem:[#allocation5 + $0xd3c] sm:$0xf]  ;;  %v3486_v0 = vpop.f32.mrf.mxu3  ;;  %v10841_v39 = vld [vmem:[#allocation5 + $0x160] sm:$0xf] }
 0x190   :  { %3801 = vmatpush.bf16.msrb.mxu2 %v12198_v22  ;;  %v11675_v22 = vld [vmem:[#allocation5 + $0x810] sm:$0xf0] }
 0x191   :  { %3789 = vmatpush.bf16.msra.mxu3 %v11838_v25  ;;  %v12038_v25 = vor.u32 %v16271_v12, %v12035_v15  ;;  %v11678_v32 = vor.u32 %v16181_v21, %v11675_v22  ;;  %v11921_v12 = vld [vmem:[#allocation5 + $0x9d0] sm:$0xf]  ;;  %v11241_v15 = vld [vmem:[#allocation5 + $0x480] sm:$0xf]  ;;  %v16157_v21 = vld [vmem:[#allocation5 + $0x724] sm:$0xf0] }
 0x192   :  { %3814 = vmatpush.bf16.msra.mxu0 %v12518_v29  ;;  %v3511_v29 = vadd.f32 %v3510_v13, %v3498_v20  ;;  %v3512_v51 = vpop.f32.mrf.mxu2  ;;  %v16247_v13 = vld [vmem:[#allocation5 + $0x9f4] sm:$0xf0]  ;;  %v11561_v20 = vld [vmem:[#allocation5 + $0x700] sm:$0xf] }
 0x193   :  { %3777 = vmatpush.bf16.msra.mxu1 %v11478_v37  ;;  %v3499_v37 = vpop.f32.mrf.mxu1  ;;  %v11922_v22 = vor.u32 %v16247_v13, %v11921_v12  ;;  %v10801_v51 = vld [vmem:[#allocation5 + $0x110] sm:$0xf]  ;;  %v10761_v13 = vld [vmem:[#allocation5 + $0xc0] sm:$0xf] }
 0x194   :  { %3802 = vmatpush.bf16.msrb.mxu2 %v12158_v36  ;;  %v11635_v36 = vld [vmem:[#allocation5 + $0x7c0] sm:$0xf0]  ;;  %v17640_v41 = vadd.f32 %v3523_v59, %v3511_v29  ;;  %v10962_v59 = vor.u32 %v16007_v44, %v10961_v42  ;;  %v11201_v29 = vld [vmem:[#allocation5 + $0x430] sm:$0xf] }
 0x195   :  { %3790 = vmatpush.bf16.msra.mxu3 %v11798_v40  ;;  %v12358_v40 = vor.u32 %v16351_v23, %v12355_v50  ;;  %v10881_v23 = vld [vmem:[#allocation5 + $0x1b0] sm:$0xf]  ;;  %v15987_v50 = vld [vmem:[#allocation5 + $0x1d4] sm:$0xf0] }
 0x196   :  { %3815 = vmatpush.bf16.msra.mxu0 %v12478_v10  ;;  %v12595_v10 = vld [vmem:[#allocation5 + $0xf40] sm:$0xf0] }
 0x197   :  { %3778 = vmatpush.bf16.msra.mxu1 %v11438_v49  ;;  %v11318_v49 = vor.u32 %v16091_v31, %v11315_v33  ;;  %v12598_v56 = vor.u32 %v16411_v43, %v12595_v10  ;;  %v16067_v31 = vld [vmem:[#allocation5 + $0x454] sm:$0xf0]  ;;  %v10882_v33 = vor.u32 %v15987_v50, %v10881_v23  ;;  %v11841_v43 = vld [vmem:[#allocation5 + $0x930] sm:$0xf] }
 0x198   :  { %3803 = vmatpush.bf16.msrb.mxu2 %v12118_v48  ;;  %v11998_v48 = vor.u32 %v16261_v27, %v11995_v28  ;;  %v16237_v27 = vld [vmem:[#allocation5 + $0x9a4] sm:$0xf0]  ;;  %v11562_v28 = vor.u32 %v16157_v21, %v11561_v20  ;;  %v11202_v42 = vor.u32 %v16067_v31, %v11201_v29  ;;  %v16227_v10 = vld [vmem:[#allocation5 + $0x954] sm:$0xf0]  ;;  %v11081_v21 = vld [vmem:[#allocation5 + $0x340] sm:$0xf] }
 0x199   :  { %3791 = vmatpush.bf16.msra.mxu3 %v11758_v52  ;;  %v11638_v52 = vor.u32 %v16171_v34, %v11635_v36  ;;  %v11521_v34 = vld [vmem:[#allocation5 + $0x6b0] sm:$0xf]  ;;  %v16147_v36 = vld [vmem:[#allocation5 + $0x6d4] sm:$0xf0] }
 0x19a   :  { %3816 = vmatpush.bf16.msra.mxu0 %v12438_v62  ;;  %v12318_v62 = vor.u32 %v16341_v46, %v12315_v47  ;;  %v11522_v44 = vor.u32 %v16147_v36, %v11521_v34  ;;  %v11161_v46 = vld [vmem:[#allocation5 + $0x3e0] sm:$0xf]  ;;  %v16057_v47 = vld [vmem:[#allocation5 + $0x404] sm:$0xf0] }
 0x19b   :  { %3779 = vmatpush.bf16.msra.mxu1 %v11398_v9  ;;  %v11958_v9 = vor.u32 %v16251_v24, %v11955_v55  ;;  %v11842_v24 = vor.u32 %v16227_v10, %v11841_v43  ;;  %v11162_v55 = vor.u32 %v16057_v47, %v11161_v46  ;;  %v16197_v34 = vld [vmem:[#allocation5 + $0x864] sm:$0xf0]  ;;  %v11361_v43 = vld [vmem:[#allocation5 + $0x570] sm:$0xf]  ;;  %v16107_v10 = vld [vmem:[#allocation5 + $0x594] sm:$0xf0] }
 0x19c   :  { %3804 = vmatpush.bf16.msrb.mxu2 %v12078_v8  ;;  %v12275_v8 = vld [vmem:[#allocation5 + $0xcc0] sm:$0xf0] }
 0x19d   :  { %3792 = vmatpush.bf16.msra.mxu3 %v11718_v14  ;;  %v11602_v14 = vor.u32 %v16167_v1, %v11601_v63 }
 0x19e   :  { %3817 = vmatpush.bf16.msra.mxu0 %v12398_v18  ;;  %v12278_v18 = vor.u32 %v16331_v5, %v12275_v8  ;;  %v16127_v5 = vld [vmem:[#allocation5 + $0x634] sm:$0xf0]  ;;  %v642_v8 = vperm.slane %v17616_v54, 5  ;;  %v11401_v54 = vld [vmem:[#allocation5 + $0x5c0] sm:$0xf] }
 0x19f   :  { %3780 = vmatpush.bf16.msra.mxu1 %v11358_v26  ;;  %v11881_v26 = vld [vmem:[#allocation5 + $0x980] sm:$0xf]  ;;  %v11442_v20 = vor.u32 %v16127_v5, %v11441_v4  ;;  %v16407_v4 = vld [vmem:[#allocation5 + $0xef4] sm:$0xf0] }
 0x1a0   :  { %3805 = vmatpush.bf16.msrb.mxu2 %v12038_v25  ;;  %v11242_v25 = vor.u32 %v16077_v16, %v11241_v15  ;;  %v11882_v37 = vor.u32 %v16237_v27, %v11881_v26 }
 0x1a1   :  { %3793 = vmatpush.bf16.msra.mxu3 %v11678_v32  ;;  %v17644_v32 = vpop.f32.mrf.mxu2 }
 0x1a2   :  { %3818 = vmatpush.bf16.msra.mxu0 %v12358_v40  ;;  %v15977_v40 = vld [vmem:[#allocation5 + $0x184] sm:$0xf0] }
 0x1a3   :  { %3781 = vmatpush.bf16.msra.mxu1 %v11318_v49  ;;  %v10842_v0 = vor.u32 %v15977_v40, %v10841_v39  ;;  %v16137_v49 = vld [vmem:[#allocation5 + $0x684] sm:$0xf0]  ;;  %v3549_v1 = vpop.f32.mrf.mxu1  ;;  %v16027_v39 = vld [vmem:[#allocation5 + $0x314] sm:$0xf0] }
 0x1a4   :  { %3806 = vmatpush.bf16.msrb.mxu2 %v11998_v48  ;;  %v11481_v48 = vld [vmem:[#allocation5 + $0x660] sm:$0xf] }
 0x1a5   :  { %3794 = vmatpush.bf16.msra.mxu3 %v11638_v52  ;;  %v15967_v52 = vld [vmem:[#allocation5 + $0x134] sm:$0xf0]  ;;  %v11482_v58 = vor.u32 %v16137_v49, %v11481_v48  ;;  %v10681_v48 = vld [vmem:[#allocation5 + $0x20] sm:$0xf]  ;;  %v15937_v49 = vld [vmem:[#allocation5 + $0x44] sm:$0xf0] }
 0x1a6   :  { %3819 = vmatpush.bf16.msra.mxu0 %v12318_v62  ;;  %3782 = vmatmul.bf16.vlgmr.msra.gmra.mxu1 %v17536_v53  ;;  %v16047_v62 = vld [vmem:[#allocation5 + $0x3b4] sm:$0xf0]  ;;  %v10802_v3 = vor.u32 %v15967_v52, %v10801_v51 }
 0x1a7   :  { %3833 = vmatpush.bf16.msrb.mxu1 %v12598_v56  ;;  %v11801_v56 = vld [vmem:[#allocation5 + $0x8e0] sm:$0xf]  ;;  %v16327_v52 = vld [vmem:[#allocation5 + $0xc74] sm:$0xf0] }
 0x1a8   :  { %3807 = vmatpush.bf16.msrb.mxu2 %v11958_v9  ;;  %3795 = vmatmul.bf16.vlgmr.msra.gmra.mxu3 %v17540_v61  ;;  %v3575_v9 = vpop.f32.mrf.mxu0  ;;  %v11802_v12 = vor.u32 %v16217_v57, %v11801_v56  ;;  %v16187_v56 = vld [vmem:[#allocation5 + $0x814] sm:$0xf0]  ;;  %v11362_v57 = vor.u32 %v16107_v10, %v11361_v43  ;;  %v12481_v43 = vld [vmem:[#allocation5 + $0xe30] sm:$0xf] }
 0x1a9   :  { %3839 = vmatpush.bf16.msrb.mxu3 %v10962_v59  ;;  %v11121_v59 = vld [vmem:[#allocation5 + $0x390] sm:$0xf]  ;;  %v3564_v63 = vpop.f32.mrf.mxu2  ;;  %v3576_v26 = vadd.f32 %v3575_v9, %v642_v8  ;;  %v12201_v9 = vld [vmem:[#allocation5 + $0xc00] sm:$0xf]  ;;  %v16387_v10 = vld [vmem:[#allocation5 + $0xe54] sm:$0xf0] }
 0x1aa   :  { %3820 = vmatpush.bf16.msra.mxu0 %v12278_v18  ;;  %v11122_v16 = vor.u32 %v16047_v62, %v11121_v59  ;;  %v16207_v18 = vld [vmem:[#allocation5 + $0x8b4] sm:$0xf0]  ;;  %v16017_v59 = vld [vmem:[#allocation5 + $0x2c4] sm:$0xf0]  ;;  %v11321_v62 = vld [vmem:[#allocation5 + $0x520] sm:$0xf]  ;;  %v10682_v63 = vor.u32 %v15937_v49, %v10681_v48  ;;  %v12482_v49 = vor.u32 %v16387_v10, %v12481_v43 }
 0x1ab   :  { %3852 = vmatpush.bf16.msra.mxu1 %v11282_v11  ;;  %3808 = vmatmul.bf16.vlgmr.msrb.gmra.mxu2 %v17552_v30  ;;  %v3536_v11 = vpop.f32.mrf.mxu3  ;;  %v3551_v46 = vpop.f32.mrf.mxu1  ;;  %v10763_v43 = vld [vmem:[#allocation5 + $0xe8] sm:$0xf0]  ;;  %v16032_v10 = vld [vmem:[#allocation5 + $0x344] sm:$0xf] }
 0x1ac   :  { %3865 = vmatpush.bf16.msra.mxu2 %v11602_v14  ;;  %v15957_v14 = vld [vmem:[#allocation5 + $0xe4] sm:$0xf0]  ;;  %v3537_v15 = vadd.f32 %v3536_v11, %v17640_v41  ;;  %v10721_v41 = vld [vmem:[#allocation5 + $0x70] sm:$0xf]  ;;  %v12601_v11 = vld [vmem:[#allocation5 + $0xf20] sm:$0xf] }
 0x1ad   :  { %3840 = vmatpush.bf16.msrb.mxu3 %v10922_v17  ;;  %3821 = vmatmul.bf16.vlgmr.msra.gmra.mxu0 %v17554_v35  ;;  %v11761_v17 = vld [vmem:[#allocation5 + $0x890] sm:$0xf]  ;;  %v10762_v50 = vor.u32 %v15957_v14, %v10761_v13  ;;  %v16317_v14 = vld [vmem:[#allocation5 + $0xc24] sm:$0xf0] }
 0x1ae   :  { %3878 = vmatpush.bf16.msrb.mxu0 %v11922_v22  ;;  %v16037_v22 = vld [vmem:[#allocation5 + $0x364] sm:$0xf0]  ;;  %v3550_v23 = vadd.f32 %v3549_v1, %v3537_v15  ;;  %v11762_v27 = vor.u32 %v16207_v18, %v11761_v17  ;;  %v11641_v15 = vld [vmem:[#allocation5 + $0x7a0] sm:$0xf] }
 0x1af   :  { %3853 = vmatpush.bf16.msra.mxu1 %v11242_v25  ;;  %v16117_v25 = vld [vmem:[#allocation5 + $0x5e4] sm:$0xf0]  ;;  %v11082_v31 = vor.u32 %v16037_v22, %v11081_v21  ;;  %v10963_v21 = vld [vmem:[#allocation5 + $0x278] sm:$0xf0]  ;;  %v16082_v22 = vld [vmem:[#allocation5 + $0x4d4] sm:$0xf] }
 0x1b0   :  { %3866 = vmatpush.bf16.msra.mxu2 %v11562_v28  ;;  %v15947_v28 = vld [vmem:[#allocation5 + $0x94] sm:$0xf0]  ;;  %v17653_v29 = vadd.f32 %v17644_v32, %v3550_v23  ;;  %v11402_v36 = vor.u32 %v16117_v25, %v11401_v54  ;;  %v3577_v47 = vpop.f32.mrf.mxu0  ;;  %v16097_v1 = vld [vmem:[#allocation5 + $0x544] sm:$0xf0]  ;;  %v11283_v54 = vld [vmem:[#allocation5 + $0x4f8] sm:$0xf0] }
 0x1b1   :  { %3841 = vmatpush.bf16.msrb.mxu3 %v10882_v33  ;;  %v11721_v33 = vld [vmem:[#allocation5 + $0x840] sm:$0xf]  ;;  %v3588_v40 = vpop.f32.mrf.mxu2  ;;  %v11322_v17 = vor.u32 %v16097_v1, %v11321_v62  ;;  %v12081_v62 = vld [vmem:[#allocation5 + $0xb10] sm:$0xf] }
 0x1b2   :  { %3879 = vmatpush.bf16.msrb.mxu0 %v11882_v37  ;;  %v11041_v37 = vld [vmem:[#allocation5 + $0x2f0] sm:$0xf]  ;;  %v11722_v32 = vor.u32 %v16197_v34, %v11721_v33  ;;  %v12521_v25 = vld [vmem:[#allocation5 + $0xe80] sm:$0xf]  ;;  %v16307_v33 = vld [vmem:[#allocation5 + $0xbd4] sm:$0xf0]  ;;  %v11286_v34 = vor.u32 %v16082_v22, %v11283_v54 }
 0x1b3   :  { %3854 = vmatpush.bf16.msra.mxu1 %v11202_v42  ;;  %v10722_v42 = vor.u32 %v15947_v28, %v10721_v41  ;;  %v11042_v51 = vor.u32 %v16027_v39, %v11041_v37  ;;  %v15992_v37 = vld [vmem:[#allocation5 + $0x204] sm:$0xf]  ;;  %v10923_v39 = vld [vmem:[#allocation5 + $0x228] sm:$0xf0]  ;;  %v10803_v54 = vld [vmem:[#allocation5 + $0x138] sm:$0xf0] }
 0x1b4   :  { %3867 = vmatpush.bf16.msra.mxu2 %v11522_v44  ;;  %v17655_v44 = vadd.f32 %v3588_v40, %v3576_v26  ;;  %v16397_v26 = vld [vmem:[#allocation5 + $0xea4] sm:$0xf0]  ;;  %v16072_v40 = vld [vmem:[#allocation5 + $0x484] sm:$0xf]  ;;  %v10926_v47 = vor.u32 %v15992_v37, %v10923_v39 }
 0x1b5   :  { %3842 = vmatpush.bf16.msrb.mxu3 %v10842_v0  ;;  %v3538_v0 = vpop.f32.mrf.mxu3 }
 0x1b6   :  { %3880 = vmatpush.bf16.msrb.mxu0 %v11842_v24  ;;  %12614 = vmatmul.msk.bf16.vlgmr.msrb.gmra.mxu1 %vm3107_vm0, %v17548_v45  ;;  %v12241_v24 = vld [vmem:[#allocation5 + $0xc50] sm:$0xf]  ;;  %v16297_v0 = vld [vmem:[#allocation5 + $0xb84] sm:$0xf0] }
 0x1b7   :  { %3855 = vmatpush.bf16.msra.mxu1 %v11162_v55  ;;  %v11681_v55 = vld [vmem:[#allocation5 + $0x7f0] sm:$0xf]  ;;  %v12242_v5 = vor.u32 %v16327_v52, %v12241_v24  ;;  %v15982_v24 = vld [vmem:[#allocation5 + $0x1b4] sm:$0xf] }
 0x1b8   :  { %3868 = vmatpush.bf16.msra.mxu2 %v11482_v58  ;;  %v11001_v58 = vld [vmem:[#allocation5 + $0x2a0] sm:$0xf]  ;;  %v11682_v8 = vor.u32 %v16187_v56, %v11681_v55  ;;  %v16062_v52 = vld [vmem:[#allocation5 + $0x434] sm:$0xf]  ;;  %v11203_v55 = vld [vmem:[#allocation5 + $0x458] sm:$0xf0] }
 0x1b9   :  { %3843 = vmatpush.bf16.msrb.mxu3 %v10802_v3  ;;  %v12561_v3 = vld [vmem:[#allocation5 + $0xed0] sm:$0xf]  ;;  %v11002_v13 = vor.u32 %v16017_v59, %v11001_v58  ;;  %v3590_v23 = vpop.f32.mrf.mxu2  ;;  %v12441_v56 = vld [vmem:[#allocation5 + $0xde0] sm:$0xf] }
 0x1ba   :  { %3881 = vmatpush.bf16.msrb.mxu0 %v11802_v12  ;;  %v16417_v12 = vld [vmem:[#allocation5 + $0xf44] sm:$0xf0]  ;;  %v12562_v18 = vor.u32 %v16407_v4, %v12561_v3  ;;  %v11206_v3 = vor.u32 %v16062_v52, %v11203_v55 }
 0x1bb   :  { %3856 = vmatpush.bf16.msra.mxu1 %v11122_v16  ;;  %v16177_v16 = vld [vmem:[#allocation5 + $0x7c4] sm:$0xf0] }
 0x1bc   :  { %3869 = vmatpush.bf16.msra.mxu2 %v11442_v20  ;;  %v16002_v20 = vld [vmem:[#allocation5 + $0x254] sm:$0xf]  ;;  %v11642_v41 = vor.u32 %v16177_v16, %v11641_v15 }
 0x1bd   :  { %3844 = vmatpush.bf16.msrb.mxu3 %v10762_v50  ;;  %v12602_v50 = vor.u32 %v16417_v12, %v12601_v11  ;;  %v10966_v28 = vor.u32 %v16002_v20, %v10963_v21  ;;  %v11163_v11 = vld [vmem:[#allocation5 + $0x408] sm:$0xf0]  ;;  %v12401_v12 = vld [vmem:[#allocation5 + $0xd90] sm:$0xf]  ;;  %v16277_v20 = vld [vmem:[#allocation5 + $0xae4] sm:$0xf0] }
 0x1be   :  { %3882 = vmatpush.bf16.msrb.mxu0 %v11762_v27  ;;  %v12202_v27 = vor.u32 %v16317_v14, %v12201_v9  ;;  %v16052_v9 = vld [vmem:[#allocation5 + $0x3e4] sm:$0xf] }
 0x1bf   :  { %3857 = vmatpush.bf16.msra.mxu1 %v11082_v31  ;;  %v12161_v31 = vld [vmem:[#allocation5 + $0xbb0] sm:$0xf]  ;;  %v11166_v22 = vor.u32 %v16052_v9, %v11163_v11  ;;  %v16242_v11 = vld [vmem:[#allocation5 + $0x9d4] sm:$0xf] }
 0x1c0   :  { %3870 = vmatpush.bf16.msra.mxu2 %v11402_v36  ;;  %v12522_v36 = vor.u32 %v16397_v26, %v12521_v25  ;;  %v12162_v46 = vor.u32 %v16307_v33, %v12161_v31  ;;  %v16042_v25 = vld [vmem:[#allocation5 + $0x394] sm:$0xf]  ;;  %v11123_v26 = vld [vmem:[#allocation5 + $0x3b8] sm:$0xf0] }
 0x1c1   :  { %3845 = vmatpush.bf16.msrb.mxu3 %v10722_v42  ;;  %v11243_v42 = vld [vmem:[#allocation5 + $0x4a8] sm:$0xf0]  ;;  %v11126_v39 = vor.u32 %v16042_v25, %v11123_v26  ;;  %v12243_v25 = vld [vmem:[#allocation5 + $0xc78] sm:$0xf0]  ;;  %v16402_v26 = vld [vmem:[#allocation5 + $0xed4] sm:$0xf] }
 0x1c2   :  { %3883 = vmatpush.bf16.msrb.mxu0 %v11722_v32  ;;  %v12121_v32 = vld [vmem:[#allocation5 + $0xb60] sm:$0xf]  ;;  %v11246_v48 = vor.u32 %v16072_v40, %v11243_v42  ;;  %v15952_v42 = vld [vmem:[#allocation5 + $0xc4] sm:$0xf] }
 0x1c3   :  { %3858 = vmatpush.bf16.msra.mxu1 %v11042_v51  ;;  %v10883_v51 = vld [vmem:[#allocation5 + $0x1d8] sm:$0xf0]  ;;  %v12122_v58 = vor.u32 %v16297_v0, %v12121_v32  ;;  %v3614_v1 = vpop.f32.mrf.mxu1  ;;  %v12321_v32 = vld [vmem:[#allocation5 + $0xcf0] sm:$0xf]  ;;  %v16347_v0 = vld [vmem:[#allocation5 + $0xd14] sm:$0xf0]  ;;  %v10766_v55 = vor.u32 %v15952_v42, %v10763_v43 }
 0x1c4   :  { %3871 = vmatpush.bf16.msra.mxu2 %v11362_v57  ;;  %v16377_v57 = vld [vmem:[#allocation5 + $0xe04] sm:$0xf0]  ;;  %v10886_v59 = vor.u32 %v15982_v24, %v10883_v51  ;;  %v11961_v24 = vld [vmem:[#allocation5 + $0xa20] sm:$0xf]  ;;  %v11523_v42 = vld [vmem:[#allocation5 + $0x6d8] sm:$0xf0] }
 0x1c5   :  { %3846 = vmatpush.bf16.msrb.mxu3 %v10682_v63  ;;  %v16287_v63 = vld [vmem:[#allocation5 + $0xb34] sm:$0xf0]  ;;  %v12442_v4 = vor.u32 %v16377_v57, %v12441_v56  ;;  %v16257_v56 = vld [vmem:[#allocation5 + $0xa44] sm:$0xf0]  ;;  %v16162_v57 = vld [vmem:[#allocation5 + $0x754] sm:$0xf] }
 0x1c6   :  { %3884 = vmatpush.bf16.msrb.mxu0 %v11682_v8  ;;  %v10843_v8 = vld [vmem:[#allocation5 + $0x188] sm:$0xf0]  ;;  %v12082_v14 = vor.u32 %v16287_v63, %v12081_v62  ;;  %v3627_v15 = vpop.f32.mrf.mxu0  ;;  %v12322_v62 = vor.u32 %v16347_v0, %v12321_v32  ;;  %v15942_v63 = vld [vmem:[#allocation5 + $0x74] sm:$0xf]  ;;  %v11962_v9 = vor.u32 %v16257_v56, %v11961_v24  ;;  %v16392_v32 = vld [vmem:[#allocation5 + $0xe84] sm:$0xf] }
 0x1c7   :  { %3859 = vmatpush.bf16.msra.mxu1 %v11002_v13  ;;  %v16367_v13 = vld [vmem:[#allocation5 + $0xdb4] sm:$0xf0]  ;;  %v3601_v16 = vpop.f32.mrf.mxu3  ;;  %v12523_v0 = vld [vmem:[#allocation5 + $0xea8] sm:$0xf0]  ;;  %v11843_v24 = vld [vmem:[#allocation5 + $0x958] sm:$0xf0] }
 0x1c8   :  { %3872 = vmatpush.bf16.msra.mxu2 %v11322_v17  ;;  %3847 = vmatmul.bf16.vlgmr.msrb.gmra.mxu3 %v17538_v60  ;;  %v3602_v21 = vadd.f32 %v3601_v16, %v17655_v44  ;;  %v12402_v23 = vor.u32 %v16367_v13, %v12401_v12  ;;  %v11923_v12 = vld [vmem:[#allocation5 + $0x9f8] sm:$0xf0]  ;;  %v11563_v16 = vld [vmem:[#allocation5 + $0x728] sm:$0xf0]  ;;  %v12526_v56 = vor.u32 %v16392_v32, %v12523_v0  ;;  %v16182_v0 = vld [vmem:[#allocation5 + $0x7f4] sm:$0xf] }
 0x1c9   :  { %3891 = vmatpush.bf16.msra.mxu3 %v12242_v5  ;;  %v15972_v5 = vld [vmem:[#allocation5 + $0x164] sm:$0xf]  ;;  %v12363_v32 = vld [vmem:[#allocation5 + $0xd68] sm:$0xf0] }
 0x1ca   :  { %3885 = vmatpush.bf16.msrb.mxu0 %v11642_v41  ;;  %3860 = vmatmul.bf16.vlgmr.msra.gmra.mxu1 %v17543_v7  ;;  %v10846_v17 = vor.u32 %v15972_v5, %v10843_v8  ;;  %v16357_v41 = vld [vmem:[#allocation5 + $0xd64] sm:$0xf0]  ;;  %v12281_v5 = vld [vmem:[#allocation5 + $0xca0] sm:$0xf] }
 0x1cb   :  { %3904 = vmatpush.bf16.msrb.mxu1 %v12562_v18  ;;  %3873 = vmatmul.bf16.vlgmr.msra.gmra.mxu2 %v17536_v53  ;;  %v12041_v18 = vld [vmem:[#allocation5 + $0xac0] sm:$0xf]  ;;  %v3616_v37 = vpop.f32.mrf.mxu1  ;;  %v16337_v8 = vld [vmem:[#allocation5 + $0xcc4] sm:$0xf0] }
 0x1cc   :  { %3924 = vmatpush.bf16.msrb.mxu2 %v12602_v50  ;;  %v15962_v50 = vld [vmem:[#allocation5 + $0x114] sm:$0xf]  ;;  %v12042_v31 = vor.u32 %v16277_v20, %v12041_v18  ;;  %v12282_v20 = vor.u32 %v16337_v8, %v12281_v5 }
 0x1cd   :  { %3892 = vmatpush.bf16.msra.mxu3 %v12202_v27  ;;  %3886 = vmatmul.bf16.vlgmr.msrb.gmra.mxu0 %v17540_v61  ;;  %v12361_v27 = vld [vmem:[#allocation5 + $0xd40] sm:$0xf]  ;;  %v10806_v33 = vor.u32 %v15962_v50, %v10803_v54  ;;  %v11926_v50 = vor.u32 %v16242_v11, %v11923_v12  ;;  %v16322_v54 = vld [vmem:[#allocation5 + $0xc54] sm:$0xf]  ;;  %v11443_v11 = vld [vmem:[#allocation5 + $0x638] sm:$0xf0] }
 0x1ce   :  { %3930 = vmatpush.bf16.msra.mxu0 %v10966_v28  ;;  %v3615_v28 = vadd.f32 %v3614_v1, %v3602_v21  ;;  %v12362_v40 = vor.u32 %v16357_v41, %v12361_v27  ;;  %v3629_v51 = vpop.f32.mrf.mxu0  ;;  %v10723_v1 = vld [vmem:[#allocation5 + $0x98] sm:$0xf0]  ;;  %v10683_v21 = vld [vmem:[#allocation5 + $0x48] sm:$0xf0] }
 0x1cf   :  { %3905 = vmatpush.bf16.msrb.mxu1 %v12522_v36  ;;  %v16267_v36 = vld [vmem:[#allocation5 + $0xa94] sm:$0xf0]  ;;  %v3603_v52 = vpop.f32.mrf.mxu3  ;;  %v12563_v41 = vld [vmem:[#allocation5 + $0xef8] sm:$0xf0] }
 0x1d0   :  { %3943 = vmatpush.bf16.msra.mxu2 %v11286_v34  ;;  %v12001_v34 = vld [vmem:[#allocation5 + $0xa70] sm:$0xf]  ;;  %v3628_v44 = vadd.f32 %v3627_v15, %v3615_v28  ;;  %v16152_v15 = vld [vmem:[#allocation5 + $0x704] sm:$0xf]  ;;  %v12566_v43 = vor.u32 %v16402_v26, %v12563_v41  ;;  %v16282_v26 = vld [vmem:[#allocation5 + $0xb14] sm:$0xf] }
 0x1d1   :  { %3893 = vmatpush.bf16.msra.mxu3 %v12162_v46  ;;  %v3640_v46 = vpop.f32.mrf.mxu2  ;;  %v16232_v28 = vld [vmem:[#allocation5 + $0x984] sm:$0xf]  ;;  %v16362_v41 = vld [vmem:[#allocation5 + $0xd94] sm:$0xf] }
 0x1d2   :  { %3931 = vmatpush.bf16.msra.mxu0 %v10926_v47  ;;  %v11083_v47 = vld [vmem:[#allocation5 + $0x368] sm:$0xf0]  ;;  %v16132_v52 = vld [vmem:[#allocation5 + $0x664] sm:$0xf] }
 0x1d3   :  { %3906 = vmatpush.bf16.msrb.mxu1 %v12482_v49  ;;  %v12002_v49 = vor.u32 %v16267_v36, %v12001_v34  ;;  %v11566_v34 = vor.u32 %v16152_v15, %v11563_v16  ;;  %v12123_v15 = vld [vmem:[#allocation5 + $0xb88] sm:$0xf0]  ;;  %v16372_v16 = vld [vmem:[#allocation5 + $0xde4] sm:$0xf] }
 0x1d4   :  { %3944 = vmatpush.bf16.msra.mxu2 %v11246_v48  ;;  %v3641_v48 = vadd.f32 %v3640_v46, %v3628_v44  ;;  %v16312_v46 = vld [vmem:[#allocation5 + $0xc04] sm:$0xf] }
 0x1d5   :  { %3894 = vmatpush.bf16.msra.mxu3 %v12122_v58  ;;  %v11603_v58 = vld [vmem:[#allocation5 + $0x778] sm:$0xf0] }
 0x1d6   :  { %3932 = vmatpush.bf16.msra.mxu0 %v10886_v59  ;;  %v11086_v59 = vor.u32 %v16032_v10, %v11083_v47  ;;  %v11606_v13 = vor.u32 %v16162_v57, %v11603_v58  ;;  %v12203_v47 = vld [vmem:[#allocation5 + $0xc28] sm:$0xf0]  ;;  %v16302_v58 = vld [vmem:[#allocation5 + $0xbb4] sm:$0xf] }
 0x1d7   :  { %3907 = vmatpush.bf16.msrb.mxu1 %v12442_v4  ;;  %v11043_v4 = vld [vmem:[#allocation5 + $0x318] sm:$0xf0]  ;;  %v12206_v51 = vor.u32 %v16312_v46, %v12203_v47  ;;  %v12043_v46 = vld [vmem:[#allocation5 + $0xae8] sm:$0xf0]  ;;  %v16352_v47 = vld [vmem:[#allocation5 + $0xd44] sm:$0xf] }
 0x1d8   :  { %3945 = vmatpush.bf16.msra.mxu2 %v11206_v3  ;;  %v16022_v3 = vld [vmem:[#allocation5 + $0x2f4] sm:$0xf] }
 0x1d9   :  { %3895 = vmatpush.bf16.msra.mxu3 %v12082_v14  ;;  %v10726_v14 = vor.u32 %v15942_v63, %v10723_v1  ;;  %v11046_v18 = vor.u32 %v16022_v3, %v11043_v4  ;;  %v3642_v27 = vpop.f32.mrf.mxu2  ;;  %v12483_v63 = vld [vmem:[#allocation5 + $0xe58] sm:$0xf0]  ;;  %v16212_v1 = vld [vmem:[#allocation5 + $0x8e4] sm:$0xf]  ;;  %v11803_v3 = vld [vmem:[#allocation5 + $0x908] sm:$0xf0] }
 0x1da   :  { %3933 = vmatpush.bf16.msra.mxu0 %v10846_v17  ;;  %v15932_v17 = vld [vmem:[#allocation5 + $0x24] sm:$0xf]  ;;  %v12083_v27 = vld [vmem:[#allocation5 + $0xb38] sm:$0xf0] }
 0x1db   :  { %3908 = vmatpush.bf16.msrb.mxu1 %v12402_v23  ;;  %12615 = vmatmul.msk.bf16.vlgmr.msrb.gmra.mxu2 %vm3107_vm0, %v17548_v45  ;;  %v11003_v23 = vld [vmem:[#allocation5 + $0x2c8] sm:$0xf0]  ;;  %v10686_v36 = vor.u32 %v15932_v17, %v10683_v21 }
 0x1dc   :  { %3946 = vmatpush.bf16.msra.mxu2 %v11166_v22  ;;  %v16012_v22 = vld [vmem:[#allocation5 + $0x2a4] sm:$0xf]  ;;  %v12443_v17 = vld [vmem:[#allocation5 + $0xe08] sm:$0xf0] }
 0x1dd   :  { %3896 = vmatpush.bf16.msra.mxu3 %v12042_v31  ;;  %v11883_v31 = vld [vmem:[#allocation5 + $0x9a8] sm:$0xf0]  ;;  %v11006_v44 = vor.u32 %v16012_v22, %v11003_v23 }
 0x1de   :  { %3934 = vmatpush.bf16.msra.mxu0 %v10806_v33  ;;  %v3653_v33 = vpop.f32.mrf.mxu3  ;;  %v11886_v10 = vor.u32 %v16232_v28, %v11883_v31  ;;  %v11403_v23 = vld [vmem:[#allocation5 + $0x5e8] sm:$0xf0]  ;;  %v12403_v28 = vld [vmem:[#allocation5 + $0xdb8] sm:$0xf0]  ;;  %v16192_v31 = vld [vmem:[#allocation5 + $0x844] sm:$0xf] }
 0x1df   :  { %3909 = vmatpush.bf16.msrb.mxu1 %v12362_v40  ;;  %v17664_v37 = vadd.f32 %v3653_v33, %v3641_v48  ;;  %v16142_v40 = vld [vmem:[#allocation5 + $0x6b4] sm:$0xf]  ;;  %v11723_v33 = vld [vmem:[#allocation5 + $0x868] sm:$0xf0] }
 0x1e0   :  { %3947 = vmatpush.bf16.msra.mxu2 %v11126_v39  ;;  %v12246_v39 = vor.u32 %v16322_v54, %v12243_v25  ;;  %v11526_v48 = vor.u32 %v16142_v40, %v11523_v42  ;;  %v12446_v54 = vor.u32 %v16372_v16, %v12443_v17  ;;  %v12406_v42 = vor.u32 %v16362_v41, %v12403_v28  ;;  %v13219_v16 = vld [vmem:[#allocation8 + $0x4b0] sm:$0xf]  ;;  %v16573_v17 = vld [vmem:[#allocation8 + $0x4d4] sm:$0xf0] }
 0x1e1   :  { %3897 = vmatpush.bf16.msra.mxu3 %v12002_v49  ;;  %v16222_v49 = vld [vmem:[#allocation5 + $0x934] sm:$0xf]  ;;  %v13859_v41 = vld [vmem:[#allocation8 + $0x9b0] sm:$0xf]  ;;  %v13220_v28 = vor.u32 %v16573_v17, %v13219_v16  ;;  %v13419_v17 = vld [vmem:[#allocation8 + $0x640] sm:$0xf] }
 0x1e2   :  { %3935 = vmatpush.bf16.msra.mxu0 %v10766_v55  ;;  %v11483_v55 = vld [vmem:[#allocation5 + $0x688] sm:$0xf0]  ;;  %v11846_v57 = vor.u32 %v16222_v49, %v11843_v24  ;;  %v11683_v49 = vld [vmem:[#allocation5 + $0x818] sm:$0xf0] }
 0x1e3   :  { %3910 = vmatpush.bf16.msrb.mxu1 %v12322_v62  ;;  %v16382_v62 = vld [vmem:[#allocation5 + $0xe34] sm:$0xf]  ;;  %v11486_v4 = vor.u32 %v16132_v52, %v11483_v55 }
 0x1e4   :  { %3948 = vmatpush.bf16.msra.mxu2 %v11086_v59  ;;  %v12163_v59 = vld [vmem:[#allocation5 + $0xbd8] sm:$0xf0]  ;;  %v12486_v12 = vor.u32 %v16382_v62, %v12483_v63  ;;  %v12366_v62 = vor.u32 %v16352_v47, %v12363_v32  ;;  %v11686_v63 = vor.u32 %v16182_v0, %v11683_v49  ;;  %v16643_v49 = vld [vmem:[#allocation8 + $0x704] sm:$0xf0] }
 0x1e5   :  { %3898 = vmatpush.bf16.msra.mxu3 %v11962_v9  ;;  %v12166_v8 = vor.u32 %v16302_v58, %v12163_v59  ;;  %v16122_v9 = vld [vmem:[#allocation5 + $0x614] sm:$0xf]  ;;  %v12003_v58 = vld [vmem:[#allocation5 + $0xa98] sm:$0xf0] }
 0x1e6   :  { %3936 = vmatpush.bf16.msra.mxu0 %v10726_v14  ;;  %v3655_v5 = vpop.f32.mrf.mxu3  ;;  %v16292_v14 = vld [vmem:[#allocation5 + $0xb64] sm:$0xf]  ;;  %v17670_v22 = vpop.f32.mrf.mxu0  ;;  %v13499_v0 = vld [vmem:[#allocation8 + $0x6e0] sm:$0xf] }
 0x1e7   :  { %3911 = vmatpush.bf16.msrb.mxu1 %v12282_v20  ;;  %v11763_v20 = vld [vmem:[#allocation5 + $0x8b8] sm:$0xf0]  ;;  %v12126_v21 = vor.u32 %v16292_v14, %v12123_v15 }
 0x1e8   :  { %3949 = vmatpush.bf16.msra.mxu2 %v11046_v18  ;;  %3899 = vmatmul.bf16.vlgmr.msra.gmra.mxu3 %v17552_v30  ;;  %v16202_v18 = vld [vmem:[#allocation5 + $0x894] sm:$0xf]  ;;  %v12323_v5 = vld [vmem:[#allocation5 + $0xd18] sm:$0xf0] }
 0x1e9   :  { %3956 = vmatpush.bf16.msrb.mxu3 %v11606_v13  ;;  %v11806_v13 = vor.u32 %v16212_v1, %v11803_v3  ;;  %v11766_v25 = vor.u32 %v16202_v18, %v11763_v20  ;;  %v16342_v1 = vld [vmem:[#allocation5 + $0xcf4] sm:$0xf]  ;;  %v16412_v3 = vld [vmem:[#allocation5 + $0xf24] sm:$0xf] }
 0x1ea   :  { %3937 = vmatpush.bf16.msra.mxu0 %v10686_v36  ;;  %3912 = vmatmul.bf16.vlgmr.msrb.gmra.mxu1 %v17554_v35  ;;  %v12086_v36 = vor.u32 %v16282_v26, %v12083_v27  ;;  %v16252_v18 = vld [vmem:[#allocation5 + $0xa24] sm:$0xf]  ;;  %v13539_v26 = vld [vmem:[#allocation8 + $0x730] sm:$0xf]  ;;  %v16653_v27 = vld [vmem:[#allocation8 + $0x754] sm:$0xf0] }
 0x1eb   :  { %3969 = vmatpush.bf16.msra.mxu1 %v11926_v50  ;;  %v17672_v50 = vpop.f32.mrf.mxu1 }
 0x1ec   :  { %3950 = vmatpush.bf16.msra.mxu2 %v11006_v44  ;;  %v16102_v44 = vld [vmem:[#allocation5 + $0x574] sm:$0xf] }
 0x1ed   :  { %3957 = vmatpush.bf16.msrb.mxu3 %v11566_v34  ;;  %3938 = vmatmul.bf16.vlgmr.msra.gmra.mxu0 %v17538_v60  ;;  %v11446_v60 = vor.u32 %v16122_v9, %v11443_v11  ;;  %v11643_v9 = vld [vmem:[#allocation5 + $0x7c8] sm:$0xf0] }
 0x1ee   :  { %3982 = vmatpush.bf16.msrb.mxu0 %v12246_v39  ;;  %v11363_v39 = vld [vmem:[#allocation5 + $0x598] sm:$0xf0]  ;;  %v17674_v40 = vpop.f32.mrf.mxu3  ;;  %v3694_v55 = vpop.f32.mrf.mxu0 }
 0x1ef   :  { %3970 = vmatpush.bf16.msra.mxu1 %v11886_v10  ;;  %3951 = vmatmul.bf16.vlgmr.msra.gmra.mxu2 %v17543_v7  ;;  %v16112_v7 = vld [vmem:[#allocation5 + $0x5c4] sm:$0xf]  ;;  %v11366_v24 = vor.u32 %v16102_v44, %v11363_v39  ;;  %v13179_v39 = vld [vmem:[#allocation8 + $0x460] sm:$0xf]  ;;  %v12819_v55 = vld [vmem:[#allocation8 + $0x190] sm:$0xf] }
 0x1f0   :  { %3995 = vmatpush.bf16.msrb.mxu2 %v12566_v43  ;;  %v11406_v34 = vor.u32 %v16112_v7, %v11403_v23  ;;  %v11726_v43 = vor.u32 %v16192_v31, %v11723_v33  ;;  %v16272_v10 = vld [vmem:[#allocation5 + $0xac4] sm:$0xf]  ;;  %v11963_v7 = vld [vmem:[#allocation5 + $0xa48] sm:$0xf0]  ;;  %v16733_v31 = vld [vmem:[#allocation8 + $0x9d4] sm:$0xf0] }
 0x1f1   :  { %3958 = vmatpush.bf16.msrb.mxu3 %v11526_v48  ;;  %v16092_v48 = vld [vmem:[#allocation5 + $0x524] sm:$0xf]  ;;  %v12046_v52 = vor.u32 %v16272_v10, %v12043_v46  ;;  %v12859_v33 = vld [vmem:[#allocation8 + $0x1e0] sm:$0xf]  ;;  %v11966_v44 = vor.u32 %v16252_v18, %v11963_v7  ;;  %v13540_v46 = vor.u32 %v16653_v27, %v13539_v26  ;;  %v13860_v47 = vor.u32 %v16733_v31, %v13859_v41  ;;  %v16453_v7 = vld [vmem:[#allocation8 + $0x114] sm:$0xf0] }
 0x1f2   :  { %3983 = vmatpush.bf16.msrb.mxu0 %v12206_v51  ;;  %v17676_v51 = vpop.f32.mrf.mxu2  ;;  %v16332_v23 = vld [vmem:[#allocation5 + $0xca4] sm:$0xf]  ;;  %v13379_v26 = vld [vmem:[#allocation8 + $0x5f0] sm:$0xf]  ;;  %v16613_v27 = vld [vmem:[#allocation8 + $0x614] sm:$0xf0] }
 0x1f3   :  { %3971 = vmatpush.bf16.msra.mxu1 %v11846_v57  ;;  %v16262_v57 = vld [vmem:[#allocation5 + $0xa74] sm:$0xf]  ;;  %v3668_v59 = vpop.f32.mrf.mxu1  ;;  %v16623_v18 = vld [vmem:[#allocation8 + $0x664] sm:$0xf0]  ;;  %v13699_v31 = vld [vmem:[#allocation8 + $0x870] sm:$0xf] }
 0x1f4   :  { %3996 = vmatpush.bf16.msrb.mxu2 %v12526_v56  ;;  %v11323_v56 = vld [vmem:[#allocation5 + $0x548] sm:$0xf0]  ;;  %v12006_v14 = vor.u32 %v16262_v57, %v12003_v58  ;;  %v16553_v58 = vld [vmem:[#allocation8 + $0x434] sm:$0xf0]  ;;  %v13500_v59 = vor.u32 %v16643_v49, %v13499_v0  ;;  %v16603_v0 = vld [vmem:[#allocation8 + $0x5c4] sm:$0xf0] }
 0x1f5   :  { %3959 = vmatpush.bf16.msrb.mxu3 %v11486_v4  ;;  %v12603_v4 = vld [vmem:[#allocation5 + $0xf48] sm:$0xf0]  ;;  %v11326_v11 = vor.u32 %v16092_v48, %v11323_v56  ;;  %v16473_v56 = vld [vmem:[#allocation8 + $0x1b4] sm:$0xf0] }
 0x1f6   :  { %3984 = vmatpush.bf16.msrb.mxu0 %v12166_v8  ;;  %v16172_v8 = vld [vmem:[#allocation5 + $0x7a4] sm:$0xf]  ;;  %v12606_v15 = vor.u32 %v16412_v3, %v12603_v4  ;;  %v3681_v20 = vpop.f32.mrf.mxu3  ;;  %v13139_v57 = vld [vmem:[#allocation8 + $0x410] sm:$0xf] }
 0x1f7   :  { %3972 = vmatpush.bf16.msra.mxu1 %v11806_v13  ;;  %v16493_v13 = vld [vmem:[#allocation8 + $0x254] sm:$0xf0]  ;;  %v13779_v3 = vld [vmem:[#allocation8 + $0x910] sm:$0xf]  ;;  %v13140_v4 = vor.u32 %v16553_v58, %v13139_v57  ;;  %v13739_v20 = vld [vmem:[#allocation8 + $0x8c0] sm:$0xf] }
 0x1f8   :  { %3997 = vmatpush.bf16.msrb.mxu2 %v12486_v12  ;;  %v12899_v12 = vld [vmem:[#allocation8 + $0x230] sm:$0xf]  ;;  %v16433_v57 = vld [vmem:[#allocation8 + $0x74] sm:$0xf0] }
 0x1f9   :  { %3960 = vmatpush.bf16.msrb.mxu3 %v11446_v60  ;;  %v12326_v60 = vor.u32 %v16342_v1, %v12323_v5  ;;  %v16633_v1 = vld [vmem:[#allocation8 + $0x6b4] sm:$0xf0]  ;;  %v12979_v58 = vld [vmem:[#allocation8 + $0x2d0] sm:$0xf] }
 0x1fa   :  { %3985 = vmatpush.bf16.msrb.mxu0 %v12126_v21  ;;  %v11646_v21 = vor.u32 %v16172_v8, %v11643_v9  ;;  %v16713_v5 = vld [vmem:[#allocation8 + $0x934] sm:$0xf0]  ;;  %v12779_v8 = vld [vmem:[#allocation8 + $0x140] sm:$0xf]  ;;  %v16463_v9 = vld [vmem:[#allocation8 + $0x164] sm:$0xf0] }
 0x1fb   :  { %3973 = vmatpush.bf16.msra.mxu1 %v11766_v25  ;;  %v12900_v25 = vor.u32 %v16493_v13, %v12899_v12  ;;  %v12780_v16 = vor.u32 %v16463_v9, %v12779_v8  ;;  %v16673_v8 = vld [vmem:[#allocation8 + $0x7f4] sm:$0xf0]  ;;  %v12619_v9 = vld [vmem:[#allocation8] sm:$0xf] }
 0x1fc   :  { %3998 = vmatpush.bf16.msrb.mxu2 %v12446_v54  ;;  %v12283_v54 = vld [vmem:[#allocation5 + $0xcc8] sm:$0xf0] }
 0x1fd   :  { %3961 = vmatpush.bf16.msrb.mxu3 %v11406_v34  ;;  %v16483_v34 = vld [vmem:[#allocation8 + $0x204] sm:$0xf0]  ;;  %v12286_v10 = vor.u32 %v16332_v23, %v12283_v54  ;;  %v16533_v23 = vld [vmem:[#allocation8 + $0x394] sm:$0xf0]  ;;  %v13420_v54 = vor.u32 %v16623_v18, %v13419_v17  ;;  %v14499_v18 = vld [vmem:[#allocation8 + $0xeb0] sm:$0xf] }
 0x1fe   :  { %3986 = vmatpush.bf16.msrb.mxu0 %v12086_v36  ;;  %v3707_v36 = vpop.f32.mrf.mxu2  ;;  %v12860_v32 = vor.u32 %v16483_v34, %v12859_v33  ;;  %v16693_v33 = vld [vmem:[#allocation8 + $0x894] sm:$0xf0]  ;;  %v12699_v34 = vld [vmem:[#allocation8 + $0xa0] sm:$0xf] }
 0x1ff   :  { %3974 = vmatpush.bf16.msra.mxu1 %v11726_v43  ;;  %v17678_v43 = vpop.f32.mrf.mxu0  ;;  %v16813_v17 = vld [vmem:[#allocation8 + $0xc54] sm:$0xf0] }
 0x200   :  { %3999 = vmatpush.bf16.msrb.mxu2 %v12406_v42  ;;  %v16563_v42 = vld [vmem:[#allocation8 + $0x484] sm:$0xf0] }
 0x201   :  { %3962 = vmatpush.bf16.msrb.mxu3 %v11366_v24  ;;  %v13819_v24 = vld [vmem:[#allocation8 + $0x960] sm:$0xf]  ;;  %v13180_v48 = vor.u32 %v16563_v42, %v13179_v39  ;;  %v16523_v42 = vld [vmem:[#allocation8 + $0x344] sm:$0xf0] }
 0x202   :  { %3987 = vmatpush.bf16.msrb.mxu0 %v12046_v52  ;;  %v16723_v52 = vld [vmem:[#allocation8 + $0x984] sm:$0xf0]  ;;  %v13019_v39 = vld [vmem:[#allocation8 + $0x320] sm:$0xf] }
 0x203   :  { %3975 = vmatpush.bf16.msra.mxu1 %v11686_v63  ;;  %v13459_v63 = vld [vmem:[#allocation8 + $0x690] sm:$0xf] }
 0x204   :  { %4000 = vmatpush.bf16.msrb.mxu2 %v12366_v62  ;;  %v12820_v62 = vor.u32 %v16473_v56, %v12819_v55  ;;  %v13460_v13 = vor.u32 %v16633_v1, %v13459_v63  ;;  %v16683_v55 = vld [vmem:[#allocation8 + $0x844] sm:$0xf0]  ;;  %v12659_v56 = vld [vmem:[#allocation8 + $0x50] sm:$0xf]  ;;  %v16593_v1 = vld [vmem:[#allocation8 + $0x574] sm:$0xf0] }
 0x205   :  { %3963 = vmatpush.bf16.msrb.mxu3 %v11326_v11  ;;  %v16543_v11 = vld [vmem:[#allocation8 + $0x3e4] sm:$0xf0]  ;;  %v13299_v63 = vld [vmem:[#allocation8 + $0x550] sm:$0xf] }
 0x206   :  { %3988 = vmatpush.bf16.msrb.mxu0 %v12006_v14  ;;  %v17684_v14 = vpop.f32.mrf.mxu1 }
 0x207   :  { %3976 = vmatpush.bf16.msra.mxu1 %v11646_v21  ;;  %v3746_v12 = vpop.f32.mrf.mxu0  ;;  %v12739_v21 = vld [vmem:[#allocation8 + $0xf0] sm:$0xf] }
 0x208   :  { %4001 = vmatpush.bf16.msrb.mxu2 %v12326_v60  ;;  %3964 = vmatmul.bf16.vlgmr.msrb.gmra.mxu3 %v17536_v53  ;;  %v13820_v53 = vor.u32 %v16723_v52, %v13819_v24  ;;  %v16703_v60 = vld [vmem:[#allocation8 + $0x8e4] sm:$0xf0]  ;;  %v12740_v41 = vor.u32 %v16453_v7, %v12739_v21  ;;  %v13659_v52 = vld [vmem:[#allocation8 + $0x820] sm:$0xf] }
 0x209   :  { %4015 = vmatpush.bf16.msra.mxu3 %v12606_v15  ;;  %v13780_v15 = vor.u32 %v16713_v5, %v13779_v3  ;;  %v13619_v3 = vld [vmem:[#allocation8 + $0x7d0] sm:$0xf]  ;;  %v16503_v12 = vld [vmem:[#allocation8 + $0x2a4] sm:$0xf0]  ;;  %v13259_v7 = vld [vmem:[#allocation8 + $0x500] sm:$0xf] }
 0x20a   :  { %3989 = vmatpush.bf16.msrb.mxu0 %v11966_v44  ;;  %3977 = vmatmul.bf16.vlgmr.msra.gmra.mxu1 %v17540_v61  ;;  %v13099_v61 = vld [vmem:[#allocation8 + $0x3c0] sm:$0xf]  ;;  %v16443_v44 = vld [vmem:[#allocation8 + $0xc4] sm:$0xf0]  ;;  %v13620_v21 = vor.u32 %v16673_v8, %v13619_v3  ;;  %v16793_v3 = vld [vmem:[#allocation8 + $0xbb4] sm:$0xf0] }
 0x20b   :  { %8569 = vmatpush.bf16.msrb.mxu1 %v12900_v25  ;;  %v13740_v25 = vor.u32 %v16703_v60, %v13739_v20  ;;  %v17686_v36 = vpop.f32.mrf.mxu3  ;;  %v12700_v24 = vor.u32 %v16443_v44, %v12699_v34  ;;  %v4021_v60 = vmax.f32 %v17586_v38, 0.0  ;;  %v15139_v34 = vld [vmem:[#allocation8 + $0x13b0] sm:$0xf]  ;;  %v16873_v8 = vld [vmem:[#allocation8 + $0xe34] sm:$0xf0] }
 0x20c   :  { %4002 = vmatpush.bf16.msrb.mxu2 %v12286_v10  ;;  %v13380_v10 = vor.u32 %v16613_v27, %v13379_v26  ;;  %v13579_v26 = vld [vmem:[#allocation8 + $0x780] sm:$0xf]  ;;  %v16663_v27 = vld [vmem:[#allocation8 + $0x7a4] sm:$0xf0] }
 0x20d   :  { %8582 = vmatpush.bf16.msrb.mxu3 %v13220_v28  ;;  %3990 = vmatmul.bf16.vlgmr.msrb.gmra.mxu0 %v17552_v30  ;;  %v13100_v30 = vor.u32 %v16543_v11, %v13099_v61  ;;  %v16423_v61 = vld [vmem:[#allocation8 + $0x24] sm:$0xf0]  ;;  %v12939_v11 = vld [vmem:[#allocation8 + $0x280] sm:$0xf] }
 0x20e   :  { %8595 = vmatpush.bf16.msra.mxu0 %v13540_v46  ;;  %v3720_v49 = vpop.f32.mrf.mxu1 }
 0x20f   :  { %8570 = vmatpush.bf16.msrb.mxu1 %v12860_v32  ;;  %4003 = vmatmul.bf16.vlgmr.msrb.gmra.mxu2 %v17554_v35  ;;  %v13059_v35 = vld [vmem:[#allocation8 + $0x370] sm:$0xf]  ;;  %v17688_v46 = vpop.f32.mrf.mxu0  ;;  %v13339_v32 = vld [vmem:[#allocation8 + $0x5a0] sm:$0xf]  ;;  %v4024_v49 = vmax.f32 %v17633_v19, 0.0 }
 0x210   :  { %8608 = vmatpush.bf16.msra.mxu2 %v13860_v47  ;;  %v13060_v28 = vor.u32 %v16533_v23, %v13059_v35  ;;  %v13700_v47 = vor.u32 %v16693_v33, %v13699_v31  ;;  %v16583_v35 = vld [vmem:[#allocation8 + $0x524] sm:$0xf0]  ;;  %v4022_v23 = vmax.f32 %v17600_v2, 0.0  ;;  %v14819_v31 = vld [vmem:[#allocation8 + $0x1130] sm:$0xf]  ;;  %v4023_v2 = vmax.f32 %v17622_v6, 0.0 }
 0x211   :  { %8583 = vmatpush.bf16.msrb.mxu3 %v13180_v48  ;;  %v13020_v48 = vor.u32 %v16523_v42, %v13019_v39  ;;  %v16973_v33 = vld [vmem:[#allocation8 + $0x1154] sm:$0xf0]  ;;  %v13260_v38 = vor.u32 %v16583_v35, %v13259_v7  ;;  %v14139_v42 = vld [vmem:[#allocation8 + $0xbe0] sm:$0xf]  ;;  %v16963_v6 = vld [vmem:[#allocation8 + $0x1104] sm:$0xf0] }
 0x212   :  { %8596 = vmatpush.bf16.msra.mxu0 %v13500_v59  ;;  %v16513_v59 = vld [vmem:[#allocation8 + $0x2f4] sm:$0xf0]  ;;  %v14099_v19 = vld [vmem:[#allocation8 + $0xb90] sm:$0xf]  ;;  %v16863_v7 = vld [vmem:[#allocation8 + $0xde4] sm:$0xf0] }
 0x213   :  { %8571 = vmatpush.bf16.msrb.mxu1 %v12820_v62  ;;  %v13340_v62 = vor.u32 %v16603_v0, %v13339_v32  ;;  %v12980_v5 = vor.u32 %v16513_v59, %v12979_v58  ;;  %v17053_v39 = vld [vmem:[#allocation8 + $0x13d4] sm:$0xf0]  ;;  %v14459_v32 = vld [vmem:[#allocation8 + $0xe60] sm:$0xf]  ;;  %v16883_v0 = vld [vmem:[#allocation8 + $0xe84] sm:$0xf0] }
 0x214   :  { %8609 = vmatpush.bf16.msra.mxu2 %v13820_v53  ;;  %v17692_v53 = vpop.f32.mrf.mxu2  ;;  %v15140_v58 = vor.u32 %v17053_v39, %v15139_v34  ;;  %v14019_v34 = vld [vmem:[#allocation8 + $0xaf0] sm:$0xf]  ;;  %v16853_v39 = vld [vmem:[#allocation8 + $0xd94] sm:$0xf0] }
 0x215   :  { %8584 = vmatpush.bf16.msrb.mxu3 %v13140_v4  ;;  %v12660_v4 = vor.u32 %v16433_v57, %v12659_v56  ;;  %v14779_v56 = vld [vmem:[#allocation8 + $0x10e0] sm:$0xf]  ;;  %v17700_v57 = vpack.c.bf16 %v4022_v23, %v4022_v23 }
 0x216   :  { %8597 = vmatpush.bf16.msra.mxu0 %v13460_v13  ;;  %v14179_v13 = vld [vmem:[#allocation8 + $0xc30] sm:$0xf] }
 0x217   :  { %8572 = vmatpush.bf16.msrb.mxu1 %v12780_v16  ;;  %v13300_v16 = vor.u32 %v16593_v1, %v13299_v63  ;;  %v3772_v20 = vpop.f32.mrf.mxu0  ;;  %v14460_v63 = vor.u32 %v16883_v0, %v14459_v32  ;;  %v17043_v1 = vld [vmem:[#allocation8 + $0x1384] sm:$0xf0]  ;;  %v14659_v32 = vld [vmem:[#allocation8 + $0xff0] sm:$0xf]  ;;  %v16933_v0 = vld [vmem:[#allocation8 + $0x1014] sm:$0xf0] }
 0x218   :  { %8610 = vmatpush.bf16.msra.mxu2 %v13780_v15  ;;  %12616 = vmatmul.msk.bf16.vlgmr.msra.gmra.mxu3 %vm3107_vm0, %v17548_v45  ;;  %v13660_v45 = vor.u32 %v16683_v55, %v13659_v52  ;;  %v3733_v15 = vpop.f32.mrf.mxu3  ;;  %v13580_v52 = vor.u32 %v16663_v27, %v13579_v26  ;;  %v14820_v55 = vor.u32 %v16973_v33, %v14819_v31  ;;  %v17033_v20 = vld [vmem:[#allocation8 + $0x1334] sm:$0xf0]  ;;  %v14699_v27 = vld [vmem:[#allocation8 + $0x1040] sm:$0xf]  ;;  %v17023_v33 = vld [vmem:[#allocation8 + $0x12e4] sm:$0xf0] }
 0x219   :  { %8585 = vmatpush.bf16.msrb.mxu3 %v13100_v30  ;;  %v16893_v30 = vld [vmem:[#allocation8 + $0xed4] sm:$0xf0]  ;;  %v14100_v15 = vor.u32 %v16793_v3, %v14099_v19  ;;  %v14619_v3 = vld [vmem:[#allocation8 + $0xfa0] sm:$0xf] }
 0x21a   :  { %8598 = vmatpush.bf16.msra.mxu0 %v13420_v54  ;;  %v12620_v54 = vor.u32 %v16423_v61, %v12619_v9  ;;  %v17706_v9 = vpack.c.bf16 %v4024_v49, %v4024_v49  ;;  %v14979_v49 = vld [vmem:[#allocation8 + $0x1270] sm:$0xf] }
 0x21b   :  { %8573 = vmatpush.bf16.msrb.mxu1 %v12740_v41  ;;  %v14180_v41 = vor.u32 %v16813_v17, %v14179_v13  ;;  %v16953_v17 = vld [vmem:[#allocation8 + $0x10b4] sm:$0xf0] }
 0x21c   :  { %8611 = vmatpush.bf16.msra.mxu2 %v13740_v25  ;;  %v12940_v25 = vor.u32 %v16503_v12, %v12939_v11  ;;  %v3759_v44 = vpop.f32.mrf.mxu2  ;;  %v14780_v11 = vor.u32 %v16963_v6, %v14779_v56  ;;  %v14660_v6 = vor.u32 %v16933_v0, %v14659_v32 }
 0x21d   :  { %8586 = vmatpush.bf16.msrb.mxu3 %v13060_v28  ;;  %v14500_v28 = vor.u32 %v16893_v30, %v14499_v18  ;;  %v15059_v18 = vld [vmem:[#allocation8 + $0x1310] sm:$0xf]  ;;  %v16773_v44 = vld [vmem:[#allocation8 + $0xb14] sm:$0xf0] }
 0x21e   :  { %8599 = vmatpush.bf16.msra.mxu0 %v13380_v10  ;;  %v16803_v10 = vld [vmem:[#allocation8 + $0xc04] sm:$0xf0] }
 0x21f   :  { %8574 = vmatpush.bf16.msrb.mxu1 %v12700_v24  ;;  %v17257_v24 = vld [vmem:[#allocation7] sm:$0xff]  ;;  %v14140_v59 = vor.u32 %v16803_v10, %v14139_v42 }
 0x220   :  { %8612 = vmatpush.bf16.msra.mxu2 %v13700_v47  ;;  %v17696_v47 = vpack.c.bf16 %v4021_v60, %v4021_v60  ;;  %v14059_v60 = vld [vmem:[#allocation8 + $0xb40] sm:$0xf] }
 0x221   :  { %8587 = vmatpush.bf16.msrb.mxu3 %v13020_v48  ;;  %v643_v48 = vperm.slane %v17257_v24, 6 }
 0x222   :  { %8600 = vmatpush.bf16.msra.mxu0 %v13340_v62  ;;  %v644_v62 = vperm.slane %v17257_v24, 7 }
 0x223   :  { %8575 = vmatpush.bf16.msrb.mxu1 %v12660_v4  ;;  %v17702_v4 = vpack.c.bf16 %v4023_v2, %v4023_v2  ;;  %v3667_v61 = vadd.f32 %v17672_v50, %v643_v48  ;;  %v14379_v50 = vld [vmem:[#allocation8 + $0xdc0] sm:$0xf]  ;;  %v14020_v2 = vor.u32 %v16773_v44, %v14019_v34  ;;  %v17013_v48 = vld [vmem:[#allocation8 + $0x1294] sm:$0xf0] }
 0x224   :  { %8613 = vmatpush.bf16.msra.mxu2 %v13660_v45  ;;  %v15099_v45 = vld [vmem:[#allocation8 + $0x1360] sm:$0xf]  ;;  %v3758_v12 = vadd.f32 %v17692_v53, %v644_v62  ;;  %v3783_v53 = vpop.f32.mrf.mxu1  ;;  %v14380_v31 = vor.u32 %v16863_v7, %v14379_v50 }
 0x225   :  { %8588 = vmatpush.bf16.msrb.mxu3 %v12980_v5  ;;  %v14419_v5 = vld [vmem:[#allocation8 + $0xe10] sm:$0xf]  ;;  %v15100_v13 = vor.u32 %v17043_v1, %v15099_v45  ;;  %v3680_v35 = vadd.f32 %v17674_v40, %v3667_v61 }
 0x226   :  { %8601 = vmatpush.bf16.msra.mxu0 %v13300_v16  ;;  %v14739_v16 = vld [vmem:[#allocation8 + $0x1090] sm:$0xf]  ;;  %v14420_v30 = vor.u32 %v16873_v8, %v14419_v5  ;;  %v16923_v5 = vld [vmem:[#allocation8 + $0xfc4] sm:$0xf0]  ;;  %v14939_v8 = vld [vmem:[#allocation8 + $0x1220] sm:$0xf] }
 0x227   :  { %8576 = vmatpush.bf16.msrb.mxu1 %v12620_v54  ;;  %v14740_v23 = vor.u32 %v16953_v17, %v14739_v16  ;;  %v3771_v54 = vadd.f32 %v17688_v46, %v3758_v12  ;;  %v3693_v40 = vadd.f32 %v17670_v22, %v3680_v35  ;;  %v14259_v17 = vld [vmem:[#allocation8 + $0xcd0] sm:$0xf] }
 0x228   :  { %8614 = vmatpush.bf16.msra.mxu2 %v13620_v21  ;;  %v16783_v21 = vld [vmem:[#allocation8 + $0xb64] sm:$0xf0]  ;;  %v14899_v35 = vld [vmem:[#allocation8 + $0x11d0] sm:$0xf] }
 0x229   :  { %8589 = vmatpush.bf16.msrb.mxu3 %v12940_v25  ;;  %v15060_v25 = vor.u32 %v17033_v20, %v15059_v18  ;;  %v14060_v26 = vor.u32 %v16783_v21, %v14059_v60  ;;  %v3784_v10 = vadd.f32 %v3783_v53, %v3771_v54  ;;  %v3706_v22 = vadd.f32 %v17676_v51, %v3693_v40  ;;  %v16753_v51 = vld [vmem:[#allocation8 + $0xa74] sm:$0xf0]  ;;  %v14579_v60 = vld [vmem:[#allocation8 + $0xf50] sm:$0xf]  ;;  %v13899_v54 = vld [vmem:[#allocation8 + $0xa00] sm:$0xf] }
 0x22a   :  { %8602 = vmatpush.bf16.msra.mxu0 %v13260_v38  ;;  %8577 = vmatmul.bf16.vlgmr.msrb.gmra.mxu1 %v17696_v47  ;;  %v14339_v38 = vld [vmem:[#allocation8 + $0xd70] sm:$0xf]  ;;  %v3822_v56 = vpop.f32.mrf.mxu0  ;;  %v16833_v18 = vld [vmem:[#allocation8 + $0xcf4] sm:$0xf0]  ;;  %v14620_v20 = vor.u32 %v16923_v5, %v14619_v3  ;;  %v12861_v5 = vld [vmem:[#allocation8 + $0x208] sm:$0xf0] }
 0x22b   :  { %8621 = vmatpush.bf16.msra.mxu1 %v14180_v41  ;;  %v16943_v41 = vld [vmem:[#allocation8 + $0x1064] sm:$0xf0]  ;;  %v14340_v24 = vor.u32 %v16853_v39, %v14339_v38  ;;  %v3796_v45 = vpop.f32.mrf.mxu3  ;;  %v3719_v61 = vadd.f32 %v17684_v14, %v3706_v22  ;;  %v16913_v14 = vld [vmem:[#allocation8 + $0xf74] sm:$0xf0]  ;;  %v4026_v39 = vmax.f32 %v17664_v37, 0.0 }
 0x22c   :  { %8590 = vmatmul.bf16.vlgmr.msrb.gmra.mxu3 %v17700_v57  ;;  %8615 = vmatpush.bf16.msra.mxu2 %v13580_v52  ;;  %v14700_v42 = vor.u32 %v16943_v41, %v14699_v27  ;;  %v13979_v52 = vld [vmem:[#allocation8 + $0xaa0] sm:$0xf]  ;;  %v3785_v62 = vpop.f32.mrf.mxu1  ;;  %v3797_v19 = vadd.f32 %v3796_v45, %v3784_v10  ;;  %v16993_v53 = vld [vmem:[#allocation8 + $0x11f4] sm:$0xf0]  ;;  %v16823_v41 = vld [vmem:[#allocation8 + $0xca4] sm:$0xf0]  ;;  %v14580_v44 = vor.u32 %v16913_v14, %v14579_v60 }
 0x22d   :  { %8634 = vmatpush.bf16.msra.mxu3 %v14500_v28  ;;  %8603 = vmatmul.bf16.vlgmr.msra.gmra.mxu0 %v17702_v4  ;;  %v15019_v28 = vld [vmem:[#allocation8 + $0x12c0] sm:$0xf]  ;;  %v16548_v60 = vld [vmem:[#allocation8 + $0x414] sm:$0xf] }
 0x22e   :  { %8647 = vmatpush.bf16.msrb.mxu0 %v14820_v55  ;;  %v15020_v46 = vor.u32 %v17023_v33, %v15019_v28  ;;  %v16763_v55 = vld [vmem:[#allocation8 + $0xac4] sm:$0xf0]  ;;  %v3809_v12 = vpop.f32.mrf.mxu2  ;;  %v15459_v28 = vld [vmem:[#allocation8 + $0x1630] sm:$0xf] }
 0x22f   :  { %8622 = vmatpush.bf16.msra.mxu1 %v14140_v59  ;;  %8616 = vmatmul.bf16.vlgmr.msra.gmra.mxu2 %v17706_v9  ;;  %v16843_v59 = vld [vmem:[#allocation8 + $0xd44] sm:$0xf0]  ;;  %v13980_v1 = vor.u32 %v16763_v55, %v13979_v52  ;;  %v3810_v16 = vadd.f32 %v3809_v12, %v3797_v19  ;;  %v16568_v52 = vld [vmem:[#allocation8 + $0x4b4] sm:$0xf]  ;;  %v13221_v55 = vld [vmem:[#allocation8 + $0x4d8] sm:$0xf0]  ;;  %v17723_v19 = vpack.c.bf16 %v4026_v39, %v4026_v39 }
 0x230   :  { %8660 = vmatpush.bf16.msrb.mxu2 %v15140_v58  ;;  %v14299_v58 = vld [vmem:[#allocation8 + $0xd20] sm:$0xf]  ;;  %v15379_v12 = vld [vmem:[#allocation8 + $0x1590] sm:$0xf] }
 0x231   :  { %8635 = vmatpush.bf16.msra.mxu3 %v14460_v63  ;;  %v14980_v63 = vor.u32 %v17013_v48, %v14979_v49  ;;  %v3823_v7 = vadd.f32 %v3822_v56, %v3810_v16  ;;  %v14859_v49 = vld [vmem:[#allocation8 + $0x1180] sm:$0xf]  ;;  %v12901_v48 = vld [vmem:[#allocation8 + $0x258] sm:$0xf0] }
 0x232   :  { %8648 = vmatpush.bf16.msrb.mxu0 %v14780_v11  ;;  %v14300_v11 = vor.u32 %v16843_v59, %v14299_v58  ;;  %v3824_v27 = vpop.f32.mrf.mxu0  ;;  %v15419_v58 = vld [vmem:[#allocation8 + $0x15e0] sm:$0xf]  ;;  %v17123_v59 = vld [vmem:[#allocation8 + $0x1604] sm:$0xf0] }
 0x233   :  { %8623 = vmatpush.bf16.msra.mxu1 %v14100_v15  ;;  %v13939_v15 = vld [vmem:[#allocation8 + $0xa50] sm:$0xf]  ;;  %v3798_v38 = vpop.f32.mrf.mxu3  ;;  %v15420_v3 = vor.u32 %v17123_v59, %v15419_v58  ;;  %v16428_v59 = vld [vmem:[#allocation8 + $0x54] sm:$0xf] }
 0x234   :  { %8661 = vmatpush.bf16.msrb.mxu2 %v15100_v13  ;;  %v17003_v13 = vld [vmem:[#allocation8 + $0x1244] sm:$0xf0]  ;;  %v13940_v50 = vor.u32 %v16753_v51, %v13939_v15  ;;  %v3835_v34 = vpop.f32.mrf.mxu1  ;;  %v15299_v27 = vld [vmem:[#allocation8 + $0x14f0] sm:$0xf]  ;;  %v13061_v38 = vld [vmem:[#allocation8 + $0x398] sm:$0xf0] }
 0x235   :  { %8636 = vmatpush.bf16.msra.mxu3 %v14420_v30  ;;  %v3732_v30 = vadd.f32 %v17686_v36, %v3719_v61  ;;  %v14940_v21 = vor.u32 %v17003_v13, %v14939_v8  ;;  %v17133_v36 = vld [vmem:[#allocation8 + $0x1654] sm:$0xf0]  ;;  %v3836_v40 = vadd.f32 %v3835_v34, %v3823_v7  ;;  %v16558_v8 = vld [vmem:[#allocation8 + $0x464] sm:$0xf]  ;;  %v13181_v61 = vld [vmem:[#allocation8 + $0x488] sm:$0xf0] }
 0x236   :  { %8649 = vmatpush.bf16.msrb.mxu0 %v14740_v23  ;;  %v14260_v23 = vor.u32 %v16833_v18, %v14259_v17  ;;  %v15460_v0 = vor.u32 %v17133_v36, %v15459_v28  ;;  %v17113_v13 = vld [vmem:[#allocation8 + $0x15b4] sm:$0xf0]  ;;  %v13184_v17 = vor.u32 %v16558_v8, %v13181_v61  ;;  %v16468_v18 = vld [vmem:[#allocation8 + $0x194] sm:$0xf]  ;;  %v17103_v7 = vld [vmem:[#allocation8 + $0x1564] sm:$0xf0] }
 0x237   :  { %8624 = vmatpush.bf16.msra.mxu1 %v14060_v26  ;;  %v14219_v26 = vld [vmem:[#allocation8 + $0xc80] sm:$0xf]  ;;  %v3745_v33 = vadd.f32 %v17678_v43, %v3732_v30  ;;  %v3811_v43 = vpop.f32.mrf.mxu2  ;;  %v4028_v56 = vmax.f32 %v3836_v40, 0.0  ;;  %v15380_v30 = vor.u32 %v17113_v13, %v15379_v12  ;;  %v12741_v34 = vld [vmem:[#allocation8 + $0x118] sm:$0xf0] }
 0x238   :  { %8662 = vmatpush.bf16.msrb.mxu2 %v15060_v25  ;;  %v16743_v25 = vld [vmem:[#allocation8 + $0xa24] sm:$0xf0]  ;;  %v14220_v32 = vor.u32 %v16823_v41, %v14219_v26  ;;  %v13101_v26 = vld [vmem:[#allocation8 + $0x3e8] sm:$0xf0]  ;;  %v17093_v41 = vld [vmem:[#allocation8 + $0x1514] sm:$0xf0] }
 0x239   :  { %8637 = vmatpush.bf16.msra.mxu3 %v14380_v31  ;;  %v4025_v31 = vmax.f32 %v17653_v29, 0.0  ;;  %v13900_v10 = vor.u32 %v16743_v25, %v13899_v54  ;;  %v16983_v29 = vld [vmem:[#allocation8 + $0x11a4] sm:$0xf0]  ;;  %v4027_v22 = vmax.f32 %v3745_v33, 0.0  ;;  %v12781_v54 = vld [vmem:[#allocation8 + $0x168] sm:$0xf0]  ;;  %v15300_v33 = vor.u32 %v17093_v41, %v15299_v27 }
 0x23a   :  { %8650 = vmatpush.bf16.msrb.mxu0 %v14700_v42  ;;  %v14900_v42 = vor.u32 %v16993_v53, %v14899_v35  ;;  %v14860_v62 = vor.u32 %v16983_v29, %v14859_v49  ;;  %v16458_v53 = vld [vmem:[#allocation8 + $0x144] sm:$0xf]  ;;  %v17063_v8 = vld [vmem:[#allocation8 + $0x1424] sm:$0xf0]  ;;  %v16728_v61 = vld [vmem:[#allocation8 + $0x9b4] sm:$0xf] }
 0x23b   :  { %8625 = vmatpush.bf16.msra.mxu1 %v14020_v2  ;;  %v16903_v2 = vld [vmem:[#allocation8 + $0xf24] sm:$0xf0]  ;;  %v17728_v51 = vpack.c.bf16 %v4027_v22, %v4027_v22  ;;  %v16538_v25 = vld [vmem:[#allocation8 + $0x3c4] sm:$0xf]  ;;  %v12784_v28 = vor.u32 %v16458_v53, %v12781_v54  ;;  %v13861_v12 = vld [vmem:[#allocation8 + $0x9d8] sm:$0xf0] }
 0x23c   :  { %8663 = vmatpush.bf16.msrb.mxu2 %v15020_v46  ;;  %v14539_v46 = vld [vmem:[#allocation8 + $0xf00] sm:$0xf]  ;;  %v3837_v15 = vpop.f32.mrf.mxu1  ;;  %v13104_v36 = vor.u32 %v16538_v25, %v13101_v26  ;;  %v16518_v43 = vld [vmem:[#allocation8 + $0x324] sm:$0xf]  ;;  %v16808_v53 = vld [vmem:[#allocation8 + $0xc34] sm:$0xf] }
 0x23d   :  { %8638 = vmatpush.bf16.msra.mxu3 %v14340_v24  ;;  %v16488_v24 = vld [vmem:[#allocation8 + $0x234] sm:$0xf]  ;;  %v14540_v37 = vor.u32 %v16903_v2, %v14539_v46  ;;  %v15579_v15 = vld [vmem:[#allocation8 + $0x1720] sm:$0xf]  ;;  %v14181_v54 = vld [vmem:[#allocation8 + $0xc58] sm:$0xf0] }
 0x23e   :  { %8651 = vmatpush.bf16.msrb.mxu0 %v14660_v6  ;;  %v17721_v6 = vpack.c.bf16 %v4025_v31, %v4025_v31  ;;  %v12904_v45 = vor.u32 %v16488_v24, %v12901_v48  ;;  %v16448_v31 = vld [vmem:[#allocation8 + $0xf4] sm:$0xf]  ;;  %v12701_v24 = vld [vmem:[#allocation8 + $0xc8] sm:$0xf0]  ;;  %v14501_v26 = vld [vmem:[#allocation8 + $0xed8] sm:$0xf0] }
 0x23f   :  { %8626 = vmatpush.bf16.msra.mxu1 %v13980_v1  ;;  %v16478_v1 = vld [vmem:[#allocation8 + $0x1e4] sm:$0xf]  ;;  %v12744_v2 = vor.u32 %v16448_v31, %v12741_v34  ;;  %v13021_v48 = vld [vmem:[#allocation8 + $0x348] sm:$0xf0]  ;;  %v16888_v25 = vld [vmem:[#allocation8 + $0xeb4] sm:$0xf]  ;;  %v14184_v34 = vor.u32 %v16808_v53, %v14181_v54 }
 0x240   :  { %8664 = vmatpush.bf16.msrb.mxu2 %v14980_v63  ;;  %v13224_v63 = vor.u32 %v16568_v52, %v13221_v55  ;;  %v12864_v16 = vor.u32 %v16478_v1, %v12861_v5  ;;  %v15219_v52 = vld [vmem:[#allocation8 + $0x1450] sm:$0xf]  ;;  %v17073_v55 = vld [vmem:[#allocation8 + $0x1474] sm:$0xf0]  ;;  %v13024_v58 = vor.u32 %v16518_v43, %v13021_v48  ;;  %v15179_v5 = vld [vmem:[#allocation8 + $0x1400] sm:$0xf] }
 0x241   :  { %8639 = vmatpush.bf16.msra.mxu3 %v14300_v11  ;;  %v17725_v11 = vpack.c.bf16 %v4028_v56, %v4028_v56  ;;  %v17741_v56 = vld [vmem:[#allocation7 + $0x8] sm:$0x3]  ;;  %v15220_v22 = vor.u32 %v17073_v55, %v15219_v52  ;;  %v16718_v27 = vld [vmem:[#allocation8 + $0x964] sm:$0xf]  ;;  %v13821_v41 = vld [vmem:[#allocation8 + $0x988] sm:$0xf0] }
 0x242   :  { %8652 = vmatpush.bf16.msrb.mxu0 %v14620_v20  ;;  %v12821_v20 = vld [vmem:[#allocation8 + $0x1b8] sm:$0xf0]  ;;  %v15499_v48 = vld [vmem:[#allocation8 + $0x1680] sm:$0xf]  ;;  %v17143_v52 = vld [vmem:[#allocation8 + $0x16a4] sm:$0xf0] }
 0x243   :  { %8627 = vmatpush.bf16.msra.mxu1 %v13940_v50  ;;  %v15339_v50 = vld [vmem:[#allocation8 + $0x1540] sm:$0xf]  ;;  %v12824_v14 = vor.u32 %v16468_v18, %v12821_v20  ;;  %v16418_v20 = vld [vmem:[#allocation8 + $0x4] sm:$0xf]  ;;  %v13781_v43 = vld [vmem:[#allocation8 + $0x938] sm:$0xf0]  ;;  %v15500_v55 = vor.u32 %v17143_v52, %v15499_v48 }
 0x244   :  { %8665 = vmatpush.bf16.msrb.mxu2 %v14940_v21  ;;  %v13141_v21 = vld [vmem:[#allocation8 + $0x438] sm:$0xf0]  ;;  %v13981_v48 = vld [vmem:[#allocation8 + $0xac8] sm:$0xf0]  ;;  %v16838_v52 = vld [vmem:[#allocation8 + $0xd24] sm:$0xf] }
 0x245   :  { %8640 = vmatpush.bf16.msra.mxu3 %v14260_v23  ;;  %v13144_v35 = vor.u32 %v16548_v60, %v13141_v21  ;;  %v15340_v23 = vor.u32 %v17103_v7, %v15339_v50  ;;  %v12621_v60 = vld [vmem:[#allocation8 + $0x28] sm:$0xf0]  ;;  %v15180_v7 = vor.u32 %v17063_v8, %v15179_v5  ;;  %v14421_v5 = vld [vmem:[#allocation8 + $0xe38] sm:$0xf0] }
 0x246   :  { %8653 = vmatpush.bf16.msrb.mxu0 %v14580_v44  ;;  %v16528_v44 = vld [vmem:[#allocation8 + $0x374] sm:$0xf] }
 0x247   :  { %8628 = vmatpush.bf16.msra.mxu1 %v13900_v10  ;;  %v17733_v39 = vpop.f32.mrf.mxu1  ;;  %v17083_v10 = vld [vmem:[#allocation8 + $0x14c4] sm:$0xf0] }
 0x248   :  { %8666 = vmatpush.bf16.msrb.mxu2 %v14900_v42  ;;  %v15259_v42 = vld [vmem:[#allocation8 + $0x14a0] sm:$0xf] }
 0x249   :  { %8641 = vmatpush.bf16.msra.mxu3 %v14220_v32  ;;  %v13064_v32 = vor.u32 %v16528_v44, %v13061_v38  ;;  %v15260_v29 = vor.u32 %v17083_v10, %v15259_v42  ;;  %v14504_v44 = vor.u32 %v16888_v25, %v14501_v26  ;;  %v16798_v38 = vld [vmem:[#allocation8 + $0xbe4] sm:$0xf]  ;;  %v14141_v42 = vld [vmem:[#allocation8 + $0xc08] sm:$0xf0]  ;;  %v16628_v25 = vld [vmem:[#allocation8 + $0x694] sm:$0xf] }
 0x24a   :  { %8629 = vmatmul.bf16.vlgmr.msra.gmra.mxu1 %v17721_v6  ;;  %8654 = vmatpush.bf16.msrb.mxu0 %v14540_v37  ;;  %v17735_v40 = vpop.f32.mrf.mxu0  ;;  %v13461_v26 = vld [vmem:[#allocation8 + $0x6b8] sm:$0xf0] }
 0x24b   :  { %8673 = vmatpush.bf16.msrb.mxu1 %v15460_v0  ;;  %v17737_v46 = vpop.f32.mrf.mxu3  ;;  %v16438_v0 = vld [vmem:[#allocation8 + $0xa4] sm:$0xf] }
 0x24c   :  { %8642 = vmatmul.bf16.vlgmr.msra.gmra.mxu3 %v17723_v19  ;;  %8667 = vmatpush.bf16.msrb.mxu2 %v14860_v62  ;;  %v12704_v37 = vor.u32 %v16438_v0, %v12701_v24  ;;  %v12661_v62 = vld [vmem:[#allocation8 + $0x78] sm:$0xf0]  ;;  %v16878_v0 = vld [vmem:[#allocation8 + $0xe64] sm:$0xf]  ;;  %v16708_v24 = vld [vmem:[#allocation8 + $0x914] sm:$0xf] }
 0x24d   :  { %8655 = vmatmul.bf16.vlgmr.msrb.gmra.mxu0 %v17728_v51  ;;  %v12664_v18 = vor.u32 %v16428_v59, %v12661_v62  ;;  %v16788_v59 = vld [vmem:[#allocation8 + $0xb94] sm:$0xf]  ;;  %v13541_v62 = vld [vmem:[#allocation8 + $0x758] sm:$0xf0] }
 0x24e   :  { %8699 = vmatpush.bf16.msra.mxu0 %v12904_v45  ;;  %v17739_v49 = vpop.f32.mrf.mxu2  ;;  %v16508_v45 = vld [vmem:[#allocation8 + $0x2d4] sm:$0xf] }
 0x24f   :  { %8674 = vmatpush.bf16.msrb.mxu1 %v15420_v3  ;;  %8668 = vmatmul.bf16.vlgmr.msrb.gmra.mxu2 %v17725_v11  ;;  %v3863_v1 = vpop.f32.mrf.mxu1 }
 0x250   :  { %8712 = vmatpush.bf16.msra.mxu2 %v13224_v63  ;;  %v12981_v63 = vld [vmem:[#allocation8 + $0x2f8] sm:$0xf0] }
 0x251   :  { %v14101_v1 = vld [vmem:[#allocation8 + $0xbb8] sm:$0xf0] }
 0x252   :  { %8700 = vmatpush.bf16.msra.mxu0 %v12864_v16  ;;  %v3889_v3 = vpop.f32.mrf.mxu0  ;;  %v17163_v16 = vld [vmem:[#allocation8 + $0x1744] sm:$0xf0] }
 0x253   :  { %8675 = vmatpush.bf16.msrb.mxu1 %v15380_v30  ;;  %v3850_v13 = vpop.f32.mrf.mxu3  ;;  %v12984_v30 = vor.u32 %v16508_v45, %v12981_v63  ;;  %v15580_v21 = vor.u32 %v17163_v16, %v15579_v15  ;;  %v13784_v63 = vor.u32 %v16708_v24, %v13781_v43  ;;  %v16868_v3 = vld [vmem:[#allocation8 + $0xe14] sm:$0xf]  ;;  %v13501_v15 = vld [vmem:[#allocation8 + $0x708] sm:$0xf0]  ;;  %v14104_v16 = vor.u32 %v16788_v59, %v14101_v1  ;;  %v13621_v59 = vld [vmem:[#allocation8 + $0x7f8] sm:$0xf0] }
 0x254   :  { %8713 = vmatpush.bf16.msra.mxu2 %v13184_v17  ;;  %v645_v17 = vperm.slane %v17741_v56, 0  ;;  %v16638_v13 = vld [vmem:[#allocation8 + $0x6e4] sm:$0xf]  ;;  %v13941_v1 = vld [vmem:[#allocation8 + $0xa78] sm:$0xf0] }
 0x255   :  { %8691 = vmatpush.bf16.msrb.mxu3 %v15580_v21  ;;  %v14381_v21 = vld [vmem:[#allocation8 + $0xde8] sm:$0xf0] }
 0x256   :  { %8701 = vmatpush.bf16.msra.mxu0 %v12824_v14  ;;  %v3876_v50 = vpop.f32.mrf.mxu2  ;;  %v16498_v14 = vld [vmem:[#allocation8 + $0x284] sm:$0xf] }
 0x257   :  { %8676 = vmatpush.bf16.msrb.mxu1 %v15340_v23  ;;  %v13864_v23 = vor.u32 %v16728_v61, %v13861_v12  ;;  %v16698_v61 = vld [vmem:[#allocation8 + $0x8c4] sm:$0xf]  ;;  %v13741_v12 = vld [vmem:[#allocation8 + $0x8e8] sm:$0xf0]  ;;  %v13504_v50 = vor.u32 %v16638_v13, %v13501_v15  ;;  %v16828_v13 = vld [vmem:[#allocation8 + $0xcd4] sm:$0xf] }
 0x258   :  { %8714 = vmatpush.bf16.msra.mxu2 %v13144_v35  ;;  %v12941_v35 = vld [vmem:[#allocation8 + $0x2a8] sm:$0xf0]  ;;  %v14261_v15 = vld [vmem:[#allocation8 + $0xcf8] sm:$0xf0] }
 0x259   :  { %v12944_v31 = vor.u32 %v16498_v14, %v12941_v35  ;;  %v13701_v14 = vld [vmem:[#allocation8 + $0x898] sm:$0xf0] }
 0x25a   :  { %8702 = vmatpush.bf16.msra.mxu0 %v12784_v28  ;;  %v15539_v28 = vld [vmem:[#allocation8 + $0x16d0] sm:$0xf] }
 0x25b   :  { %8677 = vmatpush.bf16.msrb.mxu1 %v15300_v33  ;;  %v17153_v33 = vld [vmem:[#allocation8 + $0x16f4] sm:$0xf0] }
 0x25c   :  { %8715 = vmatpush.bf16.msra.mxu2 %v13104_v36  ;;  %v12624_v36 = vor.u32 %v16418_v20, %v12621_v60  ;;  %v15540_v10 = vor.u32 %v17153_v33, %v15539_v28  ;;  %v14061_v20 = vld [vmem:[#allocation8 + $0xb68] sm:$0xf0]  ;;  %v16858_v60 = vld [vmem:[#allocation8 + $0xdc4] sm:$0xf]  ;;  %v14021_v28 = vld [vmem:[#allocation8 + $0xb18] sm:$0xf0] }
 0x25d   :  { %v14384_v53 = vor.u32 %v16858_v60, %v14381_v21  ;;  %v17048_v60 = vld [vmem:[#allocation8 + $0x13b4] sm:$0xf]  ;;  %v15141_v21 = vld [vmem:[#allocation8 + $0x13d8] sm:$0xf0] }
 0x25e   :  { %8703 = vmatpush.bf16.msra.mxu0 %v12744_v2  ;;  %v3849_v2 = vadd.f32 %v17737_v46, %v645_v17  ;;  %8692 = vmatpush.bf16.msrb.mxu3 %v15540_v10  ;;  %v16648_v46 = vld [vmem:[#allocation8 + $0x734] sm:$0xf]  ;;  %v14424_v17 = vor.u32 %v16868_v3, %v14421_v5 }
 0x25f   :  { %8678 = vmatpush.bf16.msrb.mxu1 %v15260_v29  ;;  %v14461_v29 = vld [vmem:[#allocation8 + $0xe88] sm:$0xf0]  ;;  %v13544_v8 = vor.u32 %v16648_v46, %v13541_v62  ;;  %v16748_v62 = vld [vmem:[#allocation8 + $0xa54] sm:$0xf] }
 0x260   :  { %8716 = vmatpush.bf16.msra.mxu2 %v13064_v32  ;;  %v13824_v32 = vor.u32 %v16718_v27, %v13821_v41  ;;  %v3862_v45 = vadd.f32 %v17733_v39, %v3849_v2  ;;  %v16778_v39 = vld [vmem:[#allocation8 + $0xb44] sm:$0xf]  ;;  %v16608_v5 = vld [vmem:[#allocation8 + $0x5f4] sm:$0xf] }
 0x261   :  { %v14064_v35 = vor.u32 %v16778_v39, %v14061_v20 }
 0x262   :  { %8704 = vmatpush.bf16.msra.mxu0 %v12704_v37  ;;  %v14144_v37 = vor.u32 %v16798_v38, %v14141_v42  ;;  %8693 = vmatpush.bf16.msrb.mxu3 %v15500_v55  ;;  %v16678_v38 = vld [vmem:[#allocation8 + $0x824] sm:$0xf]  ;;  %v13661_v42 = vld [vmem:[#allocation8 + $0x848] sm:$0xf0] }
 0x263   :  { %8679 = vmatpush.bf16.msrb.mxu1 %v15220_v22  ;;  %v17745_v22 = vpop.f32.mrf.mxu2  ;;  %v13664_v43 = vor.u32 %v16678_v38, %v13661_v42  ;;  %v14301_v55 = vld [vmem:[#allocation8 + $0xd48] sm:$0xf0] }
 0x264   :  { %8717 = vmatpush.bf16.msra.mxu2 %v13024_v58  ;;  %v14464_v58 = vor.u32 %v16878_v0, %v14461_v29  ;;  %v16758_v0 = vld [vmem:[#allocation8 + $0xaa4] sm:$0xf]  ;;  %v13421_v29 = vld [vmem:[#allocation8 + $0x668] sm:$0xf0] }
 0x266   :  { %8705 = vmatpush.bf16.msra.mxu0 %v12664_v18  ;;  %v3875_v18 = vadd.f32 %v17739_v49, %v3862_v45  ;;  %8725 = vmatpush.bf16.msra.mxu3 %v13544_v8  ;;  %v13984_v45 = vor.u32 %v16758_v0, %v13981_v48  ;;  %v13381_v8 = vld [vmem:[#allocation8 + $0x618] sm:$0xf0]  ;;  %v17148_v48 = vld [vmem:[#allocation8 + $0x16d4] sm:$0xf] }
 0x267   :  { %8680 = vmatpush.bf16.msrb.mxu1 %v15180_v7  ;;  %v16688_v7 = vld [vmem:[#allocation8 + $0x874] sm:$0xf]  ;;  %v3913_v49 = vpop.f32.mrf.mxu1  ;;  %v13384_v39 = vor.u32 %v16608_v5, %v13381_v8  ;;  %v15381_v8 = vld [vmem:[#allocation8 + $0x15b8] sm:$0xf0] }
 0x268   :  { %8718 = vmatpush.bf16.msra.mxu2 %v12984_v30  ;;  %v13744_v30 = vor.u32 %v16698_v61, %v13741_v12  ;;  %v3888_v27 = vadd.f32 %v17735_v40, %v3875_v18  ;;  %v13704_v41 = vor.u32 %v16688_v7, %v13701_v14  ;;  %v16618_v40 = vld [vmem:[#allocation8 + $0x644] sm:$0xf]  ;;  %v13944_v7 = vor.u32 %v16748_v62, %v13941_v1  ;;  %v17108_v1 = vld [vmem:[#allocation8 + $0x1594] sm:$0xf] }
 0x269   :  { %v16658_v18 = vld [vmem:[#allocation8 + $0x784] sm:$0xf]  ;;  %v14264_v14 = vor.u32 %v16828_v13, %v14261_v15  ;;  %v646_v62 = vperm.slane %v17741_v56, 1  ;;  %v13547_v15 = vld [vmem:[#allocation8 + $0x738] sm:$0xf] }
 0x26a   :  { %8706 = vmatpush.bf16.msra.mxu0 %v12624_v36  ;;  %v16848_v36 = vld [vmem:[#allocation8 + $0xd74] sm:$0xf]  ;;  %v17752_v33 = vpop.f32.mrf.mxu0  ;;  %8726 = vmatpush.bf16.msra.mxu3 %v13504_v50  ;;  %v16738_v50 = vld [vmem:[#allocation8 + $0xa04] sm:$0xf]  ;;  %v15021_v56 = vld [vmem:[#allocation8 + $0x12e8] sm:$0xf0] }
 0x26b   :  { %8738 = vmatpush.bf16.msra.mxu1 %v13864_v23  ;;  %v16768_v23 = vld [vmem:[#allocation8 + $0xaf4] sm:$0xf]  ;;  %v3928_v54 = vpop.f32.mrf.mxu2 }
 0x26c   :  { %8719 = vmatpush.bf16.msra.mxu2 %v12944_v31  ;;  %v14341_v31 = vld [vmem:[#allocation8 + $0xd98] sm:$0xf0]  ;;  %v14024_v2 = vor.u32 %v16768_v23, %v14021_v28  ;;  %v13341_v23 = vld [vmem:[#allocation8 + $0x5c8] sm:$0xf0] }
 0x26d   :  { %8707 = vmatmul.bf16.vlgmr.msra.gmra.mxu0 %v17696_v47  ;;  %v15461_v28 = vld [vmem:[#allocation8 + $0x1658] sm:$0xf0] }
 0x26e   :  { %8751 = vmatpush.bf16.msrb.mxu0 %v14184_v34  ;;  %v13464_v34 = vor.u32 %v16628_v25, %v13461_v26  ;;  %v16818_v25 = vld [vmem:[#allocation8 + $0xc84] sm:$0xf]  ;;  %v14221_v26 = vld [vmem:[#allocation8 + $0xca8] sm:$0xf0] }
 0x26f   :  { %8739 = vmatpush.bf16.msra.mxu1 %v13824_v32  ;;  %8720 = vmatmul.bf16.vlgmr.msra.gmra.mxu2 %v17700_v57  ;;  %v14344_v32 = vor.u32 %v16848_v36, %v14341_v31  ;;  %v17158_v36 = vld [vmem:[#allocation8 + $0x1724] sm:$0xf]  ;;  %v15581_v31 = vld [vmem:[#allocation8 + $0x1748] sm:$0xf0]  ;;  %v14224_v42 = vor.u32 %v16818_v25, %v14221_v26 }
 0x270   :  { %8764 = vmatpush.bf16.msrb.mxu2 %v14504_v44  ;;  %v3900_v44 = vpop.f32.mrf.mxu3  ;;  %8727 = vmatpush.bf16.msra.mxu3 %v13464_v34  ;;  %v17038_v34 = vld [vmem:[#allocation8 + $0x1364] sm:$0xf] }
 0x271   :  { %v3901_v10 = vadd.f32 %v3900_v44, %v3888_v27  ;;  %v17128_v27 = vld [vmem:[#allocation8 + $0x1634] sm:$0xf]  ;;  %v15101_v44 = vld [vmem:[#allocation8 + $0x1388] sm:$0xf0] }
 0x272   :  { %8752 = vmatpush.bf16.msrb.mxu0 %v14144_v37  ;;  %v13424_v37 = vor.u32 %v16618_v40, %v13421_v29  ;;  %v15464_v0 = vor.u32 %v17128_v27, %v15461_v28  ;;  %v15584_v40 = vor.u32 %v17158_v36, %v15581_v31  ;;  %v17118_v29 = vld [vmem:[#allocation8 + $0x15e4] sm:$0xf]  ;;  %v17088_v27 = vld [vmem:[#allocation8 + $0x14f4] sm:$0xf]  ;;  %v13467_v36 = vld [vmem:[#allocation8 + $0x698] sm:$0xf] }
 0x273   :  { %8740 = vmatpush.bf16.msra.mxu1 %v13784_v63  ;;  %v3914_v24 = vadd.f32 %v3913_v49, %v3901_v10  ;;  %v14304_v63 = vor.u32 %v16838_v52, %v14301_v55  ;;  %v17755_v3 = vpop.f32.mrf.mxu2  ;;  %v15541_v52 = vld [vmem:[#allocation8 + $0x16f8] sm:$0xf0]  ;;  %v16634_v31 = vld [vmem:[#allocation8 + $0x6bc] sm:$0xf0] }
 0x274   :  { %8765 = vmatpush.bf16.msrb.mxu2 %v14464_v58  ;;  %v16668_v58 = vld [vmem:[#allocation8 + $0x7d4] sm:$0xf]  ;;  %8728 = vmatpush.bf16.msra.mxu3 %v13424_v37 }
 0x275   :  { %v3927_v46 = vadd.f32 %v17745_v22, %v3914_v24  ;;  %v13624_v12 = vor.u32 %v16668_v58, %v13621_v59  ;;  %v15104_v24 = vor.u32 %v17038_v34, %v15101_v44  ;;  %v17028_v37 = vld [vmem:[#allocation8 + $0x1314] sm:$0xf]  ;;  %v15061_v58 = vld [vmem:[#allocation8 + $0x1338] sm:$0xf0]  ;;  %v16578_v59 = vld [vmem:[#allocation8 + $0x504] sm:$0xf] }
 0x276   :  { %8753 = vmatpush.bf16.msrb.mxu0 %v14104_v16  ;;  %v3915_v16 = vpop.f32.mrf.mxu1  ;;  %v15064_v5 = vor.u32 %v17028_v37, %v15061_v58  ;;  %v16998_v34 = vld [vmem:[#allocation8 + $0x1224] sm:$0xf]  ;;  %v14941_v44 = vld [vmem:[#allocation8 + $0x1248] sm:$0xf0] }
 0x277   :  { %8741 = vmatpush.bf16.msra.mxu1 %v13744_v30  ;;  %v4029_v61 = vmax.f32 %v3927_v46, 0.0  ;;  %v13581_v30 = vld [vmem:[#allocation8 + $0x7a8] sm:$0xf0]  ;;  %v16654_v16 = vld [vmem:[#allocation8 + $0x75c] sm:$0xf0] }
 0x278   :  { %8766 = vmatpush.bf16.msrb.mxu2 %v14424_v17  ;;  %v3941_v17 = vpop.f32.mrf.mxu0  ;;  %v3902_v22 = vpop.f32.mrf.mxu3  ;;  %v13584_v54 = vor.u32 %v16658_v18, %v13581_v30  ;;  %8729 = vmatpush.bf16.msra.mxu3 %v13384_v39  ;;  %v13261_v46 = vld [vmem:[#allocation8 + $0x528] sm:$0xf0]  ;;  %v15384_v39 = vor.u32 %v17108_v1, %v15381_v8  ;;  %v3940_v18 = vadd.f32 %v17752_v33, %v646_v62  ;;  %v16614_v1 = vld [vmem:[#allocation8 + $0x61c] sm:$0xf0] }
 0x279   :  { %v17757_v20 = vpack.c.bf16 %v4029_v61, %v4029_v61  ;;  %v17138_v61 = vld [vmem:[#allocation8 + $0x1684] sm:$0xf]  ;;  %v13264_v13 = vor.u32 %v16578_v59, %v13261_v46  ;;  %v13548_v30 = vor.u32 %v16654_v16, %v13547_v15  ;;  %v17068_v59 = vld [vmem:[#allocation8 + $0x1454] sm:$0xf]  ;;  %v15221_v46 = vld [vmem:[#allocation8 + $0x1478] sm:$0xf0] }
 0x27a   :  { %8754 = vmatpush.bf16.msrb.mxu0 %v14064_v35  ;;  %v13901_v35 = vld [vmem:[#allocation8 + $0xa28] sm:$0xf0]  ;;  %v17018_v17 = vld [vmem:[#allocation8 + $0x12c4] sm:$0xf]  ;;  %v3953_v25 = vadd.f32 %v17755_v3, %v3940_v18  ;;  %v16604_v18 = vld [vmem:[#allocation8 + $0x5cc] sm:$0xf0] }
 0x27b   :  { %8742 = vmatpush.bf16.msra.mxu1 %v13704_v41  ;;  %v15144_v41 = vor.u32 %v17048_v60, %v15141_v21  ;;  %v13904_v38 = vor.u32 %v16738_v50, %v13901_v35  ;;  %v3954_v10 = vpop.f32.mrf.mxu2  ;;  %v17098_v60 = vld [vmem:[#allocation8 + $0x1544] sm:$0xf]  ;;  %v15341_v21 = vld [vmem:[#allocation8 + $0x1568] sm:$0xf0]  ;;  %v15024_v50 = vor.u32 %v17018_v17, %v15021_v56  ;;  %v16644_v35 = vld [vmem:[#allocation8 + $0x70c] sm:$0xf0] }
 0x27c   :  { %8767 = vmatpush.bf16.msrb.mxu2 %v14384_v53  ;;  %v16598_v53 = vld [vmem:[#allocation8 + $0x5a4] sm:$0xf]  ;;  %8681 = vmatmul.bf16.vlgmr.msrb.gmra.mxu1 %v17757_v20  ;;  %v13468_v10 = vor.u32 %v16634_v31, %v13467_v36  ;;  %v14861_v8 = vld [vmem:[#allocation8 + $0x11a8] sm:$0xf0]  ;;  %v16968_v36 = vld [vmem:[#allocation8 + $0x1134] sm:$0xf] }
 0x27d   :  { %v13344_v49 = vor.u32 %v16598_v53, %v13341_v23  ;;  %v17008_v53 = vld [vmem:[#allocation8 + $0x1274] sm:$0xf]  ;;  %v14981_v23 = vld [vmem:[#allocation8 + $0x1298] sm:$0xf0]  ;;  %v17078_v3 = vld [vmem:[#allocation8 + $0x14a4] sm:$0xf] }
 0x27e   :  { %8755 = vmatpush.bf16.msrb.mxu0 %v14024_v2  ;;  %v16588_v2 = vld [vmem:[#allocation8 + $0x554] sm:$0xf]  ;;  %v14984_v28 = vor.u32 %v17008_v53, %v14981_v23  ;;  %v17058_v17 = vld [vmem:[#allocation8 + $0x1404] sm:$0xf]  ;;  %v15181_v56 = vld [vmem:[#allocation8 + $0x1428] sm:$0xf0] }
 0x27f   :  { %8743 = vmatpush.bf16.msra.mxu1 %v13664_v43  ;;  %8730 = vmatpush.bf16.msra.mxu3 %v13344_v49  ;;  %v15421_v43 = vld [vmem:[#allocation8 + $0x1608] sm:$0xf0]  ;;  %v15301_v49 = vld [vmem:[#allocation8 + $0x1518] sm:$0xf0] }
 0x280   :  { %8768 = vmatpush.bf16.msrb.mxu2 %v14344_v32  ;;  %v13301_v32 = vld [vmem:[#allocation8 + $0x578] sm:$0xf0] }
 0x281   :  { %v13304_v55 = vor.u32 %v16588_v2, %v13301_v32  ;;  %v15261_v2 = vld [vmem:[#allocation8 + $0x14c8] sm:$0xf0]  ;;  %v14944_v32 = vor.u32 %v16998_v34, %v14941_v44  ;;  %v14821_v31 = vld [vmem:[#allocation8 + $0x1158] sm:$0xf0]  ;;  %v13147_v34 = vld [vmem:[#allocation8 + $0x418] sm:$0xf] }
 0x282   :  { %8756 = vmatpush.bf16.msrb.mxu0 %v13984_v45  ;;  %v15424_v45 = vor.u32 %v17118_v29, %v15421_v43  ;;  %v16624_v29 = vld [vmem:[#allocation8 + $0x66c] sm:$0xf0]  ;;  %v14901_v43 = vld [vmem:[#allocation8 + $0x11f8] sm:$0xf0]  ;;  %v16554_v44 = vld [vmem:[#allocation8 + $0x43c] sm:$0xf0] }
 0x283   :  { %8744 = vmatpush.bf16.msra.mxu1 %v13624_v12  ;;  %v15501_v12 = vld [vmem:[#allocation8 + $0x16a8] sm:$0xf0]  ;;  %8731 = vmatpush.bf16.msra.mxu3 %v13304_v55 }
 0x284   :  { %8769 = vmatpush.bf16.msrb.mxu2 %v14304_v63  ;;  %v15544_v63 = vor.u32 %v17148_v48, %v15541_v52  ;;  %v15504_v22 = vor.u32 %v17138_v61, %v15501_v12  ;;  %v15264_v52 = vor.u32 %v17078_v3, %v15261_v2  ;;  %v15224_v61 = vor.u32 %v17068_v59, %v15221_v46  ;;  %v13227_v12 = vld [vmem:[#allocation8 + $0x4b8] sm:$0xf] }
 0x285   :  { %v14824_v2 = vor.u32 %v16968_v36, %v14821_v31 }
 0x286   :  { %8757 = vmatpush.bf16.msrb.mxu0 %v13944_v7 }
 0x287   :  { %8745 = vmatpush.bf16.msra.mxu1 %v13584_v54  ;;  %8732 = vmatpush.bf16.msra.mxu3 %v13264_v13  ;;  %v3978_v7 = vpop.f32.mrf.mxu1  ;;  %v15344_v54 = vor.u32 %v17098_v60, %v15341_v21  ;;  %v16574_v13 = vld [vmem:[#allocation8 + $0x4dc] sm:$0xf0]  ;;  %v13867_v60 = vld [vmem:[#allocation8 + $0x9b8] sm:$0xf] }
 0x288   :  { %8770 = vmatpush.bf16.msrb.mxu2 %v14264_v14  ;;  %v13507_v14 = vld [vmem:[#allocation8 + $0x6e8] sm:$0xf]  ;;  %v16734_v21 = vld [vmem:[#allocation8 + $0x9dc] sm:$0xf0] }
 0x289   :  { %v13508_v33 = vor.u32 %v16644_v35, %v13507_v14  ;;  %v13187_v14 = vld [vmem:[#allocation8 + $0x468] sm:$0xf]  ;;  %v16564_v35 = vld [vmem:[#allocation8 + $0x48c] sm:$0xf0] }
 0x28a   :  { %8758 = vmatpush.bf16.msrb.mxu0 %v13904_v38  ;;  %v3991_v26 = vpop.f32.mrf.mxu0  ;;  %v15304_v38 = vor.u32 %v17088_v27, %v15301_v49  ;;  %v13827_v27 = vld [vmem:[#allocation8 + $0x968] sm:$0xf] }
 0x28b   :  { %8790 = vmatpush.bf16.msrb.mxu1 %v15144_v41  ;;  %v3965_v41 = vpop.f32.mrf.mxu3 }
 0x28c   :  { %8771 = vmatpush.bf16.msrb.mxu2 %v14224_v42  ;;  %8746 = vmatmul.bf16.vlgmr.msra.gmra.mxu1 %v17706_v9  ;;  %v3966_v42 = vadd.f32 %v3965_v41, %v3953_v25  ;;  %v13868_v25 = vor.u32 %v16734_v21, %v13867_v60  ;;  %v13188_v41 = vor.u32 %v16564_v35, %v13187_v14  ;;  %v13707_v60 = vld [vmem:[#allocation8 + $0x878] sm:$0xf]  ;;  %v16694_v21 = vld [vmem:[#allocation8 + $0x89c] sm:$0xf0]  ;;  %v16938_v35 = vld [vmem:[#allocation8 + $0x1044] sm:$0xf] }
 0x28d   :  { %8759 = vmatmul.bf16.vlgmr.msrb.gmra.mxu0 %v17721_v6 }
 0x28e   :  { %8803 = vmatpush.bf16.msra.mxu0 %v15464_v0  ;;  %v3979_v55 = vadd.f32 %v3978_v7, %v3966_v42  ;;  %v15184_v7 = vor.u32 %v17058_v17, %v15181_v56  ;;  %v16534_v17 = vld [vmem:[#allocation8 + $0x39c] sm:$0xf0]  ;;  %v14787_v56 = vld [vmem:[#allocation8 + $0x10e8] sm:$0xf] }
 0x28f   :  { %8791 = vmatpush.bf16.msrb.mxu1 %v15104_v24  ;;  %8772 = vmatmul.bf16.vlgmr.msrb.gmra.mxu2 %v17723_v19  ;;  %v3980_v0 = vpop.f32.mrf.mxu1  ;;  %v16988_v24 = vld [vmem:[#allocation8 + $0x11d4] sm:$0xf] }
 0x290   :  { %8821 = vmatpush.bf16.msra.mxu2 %v15584_v40  ;;  %v13427_v40 = vld [vmem:[#allocation8 + $0x648] sm:$0xf]  ;;  %v3992_v15 = vadd.f32 %v3991_v26, %v3979_v55  ;;  %v16594_v26 = vld [vmem:[#allocation8 + $0x57c] sm:$0xf0]  ;;  %v13787_v0 = vld [vmem:[#allocation8 + $0x918] sm:$0xf] }
 0x291   :  { %v13428_v37 = vor.u32 %v16624_v29, %v13427_v40  ;;  %v16714_v40 = vld [vmem:[#allocation8 + $0x93c] sm:$0xf0]  ;;  %v16544_v55 = vld [vmem:[#allocation8 + $0x3ec] sm:$0xf0] }
 0x292   :  { %8804 = vmatpush.bf16.msra.mxu0 %v15424_v45  ;;  %v4004_v48 = vpop.f32.mrf.mxu2  ;;  %v3993_v58 = vpop.f32.mrf.mxu0  ;;  %v14904_v45 = vor.u32 %v16988_v24, %v14901_v43  ;;  %v13148_v24 = vor.u32 %v16554_v44, %v13147_v34  ;;  %v16958_v43 = vld [vmem:[#allocation8 + $0x10e4] sm:$0xf]  ;;  %v16684_v44 = vld [vmem:[#allocation8 + $0x84c] sm:$0xf0] }
 0x293   :  { %8792 = vmatpush.bf16.msrb.mxu1 %v15064_v5  ;;  %v3967_v62 = vpop.f32.mrf.mxu3  ;;  %v16978_v5 = vld [vmem:[#allocation8 + $0x1184] sm:$0xf]  ;;  %v4005_v53 = vadd.f32 %v4004_v48, %v3992_v15  ;;  %v14781_v48 = vld [vmem:[#allocation8 + $0x1108] sm:$0xf0]  ;;  %v16974_v58 = vld [vmem:[#allocation8 + $0x115c] sm:$0xf0] }
 0x294   :  { %8822 = vmatpush.bf16.msra.mxu2 %v15544_v63  ;;  %v13387_v63 = vld [vmem:[#allocation8 + $0x5f8] sm:$0xf]  ;;  %v17772_v62 = vld [vmem:[#allocation10] sm:$0xff] }
 0x295   :  { %v13388_v16 = vor.u32 %v16614_v1, %v13387_v63  ;;  %v14784_v63 = vor.u32 %v16958_v43, %v14781_v48  ;;  %v13747_v1 = vld [vmem:[#allocation8 + $0x8c8] sm:$0xf]  ;;  %v13067_v15 = vld [vmem:[#allocation8 + $0x378] sm:$0xf] }
 0x296   :  { %8805 = vmatpush.bf16.msra.mxu0 %v15384_v39  ;;  %v14864_v39 = vor.u32 %v16978_v5, %v14861_v8  ;;  %v16704_v5 = vld [vmem:[#allocation8 + $0x8ec] sm:$0xf0] }
 0x297   :  { %8793 = vmatpush.bf16.msrb.mxu1 %v15024_v50 }
 0x298   :  { %8823 = vmatpush.bf16.msra.mxu2 %v15504_v22  ;;  %v13347_v22 = vld [vmem:[#allocation8 + $0x5a8] sm:$0xf] }
 0x299   :  { %v13348_v23 = vor.u32 %v16604_v18, %v13347_v22  ;;  %v4795_v22 = vperm.slane %v17772_v62, 0  ;;  %v13748_v18 = vor.u32 %v16704_v5, %v13747_v1  ;;  %v12947_v1 = vld [vmem:[#allocation8 + $0x288] sm:$0xf]  ;;  %v16504_v5 = vld [vmem:[#allocation8 + $0x2ac] sm:$0xf0] }
 0x29a   :  { %8806 = vmatpush.bf16.msra.mxu0 %v15344_v54  ;;  %v4006_v50 = vpop.f32.mrf.mxu2 }
 0x29b   :  { %8794 = vmatpush.bf16.msrb.mxu1 %v14984_v28  ;;  %v4017_v54 = vpop.f32.mrf.mxu3  ;;  %v16724_v28 = vld [vmem:[#allocation8 + $0x98c] sm:$0xf0] }
 0x29c   :  { %8855 = vmatpush.bf16.msrb.mxu2 %v13548_v30  ;;  %v13228_v30 = vor.u32 %v16574_v13, %v13227_v12  ;;  %v4018_v49 = vadd.f32 %v4017_v54, %v4005_v53  ;;  %v13828_v3 = vor.u32 %v16724_v28, %v13827_v27  ;;  %v16948_v12 = vld [vmem:[#allocation8 + $0x1094] sm:$0xf]  ;;  %v14741_v13 = vld [vmem:[#allocation8 + $0x10b8] sm:$0xf0]  ;;  %v14701_v53 = vld [vmem:[#allocation8 + $0x1068] sm:$0xf0] }
 0x29d   :  { %v16524_v54 = vld [vmem:[#allocation8 + $0x34c] sm:$0xf0]  ;;  %v13667_v28 = vld [vmem:[#allocation8 + $0x828] sm:$0xf] }
 0x29e   :  { %8807 = vmatpush.bf16.msra.mxu0 %v15304_v38  ;;  %v4030_v38 = vmax.f32 %v4018_v49, 0.0  ;;  %v13708_v49 = vor.u32 %v16694_v21, %v13707_v60  ;;  %v13668_v43 = vor.u32 %v16684_v44, %v13667_v28  ;;  %v16914_v44 = vld [vmem:[#allocation8 + $0xf7c] sm:$0xf0] }
 0x29f   :  { %8795 = vmatpush.bf16.msrb.mxu1 %v14944_v32  ;;  %v16584_v32 = vld [vmem:[#allocation8 + $0x52c] sm:$0xf0] }
 0x2a0   :  { %8856 = vmatpush.bf16.msrb.mxu2 %v13508_v33  ;;  %v13307_v33 = vld [vmem:[#allocation8 + $0x558] sm:$0xf]  ;;  %v17767_v29 = vpack.c.bf16 %v4030_v38, %v4030_v38  ;;  %v16928_v38 = vld [vmem:[#allocation8 + $0xff4] sm:$0xf] }
 0x2a1   :  { %v13308_v42 = vor.u32 %v16594_v26, %v13307_v33  ;;  %v16954_v33 = vld [vmem:[#allocation8 + $0x10bc] sm:$0xf0] }
 0x2a2   :  { %8808 = vmatpush.bf16.msra.mxu0 %v15264_v52  ;;  %v13107_v52 = vld [vmem:[#allocation8 + $0x3c8] sm:$0xf]  ;;  %15617 = vmatmul.msk.bf16.vlgmr.msrb.gmra.mxu3 %vm8565_vm1, %v17767_v29 }
 0x2a3   :  { %8796 = vmatpush.bf16.msrb.mxu1 %v14904_v45  ;;  %8777 = vmatpush.bf16.msrb.mxu3 %v14824_v2  ;;  %v4019_v46 = vpop.f32.mrf.mxu3  ;;  %v13788_v45 = vor.u32 %v16714_v40, %v13787_v0  ;;  %v13108_v8 = vor.u32 %v16544_v55, %v13107_v52  ;;  %v16514_v2 = vld [vmem:[#allocation8 + $0x2fc] sm:$0xf0]  ;;  %v14707_v0 = vld [vmem:[#allocation8 + $0x1048] sm:$0xf]  ;;  %v16944_v40 = vld [vmem:[#allocation8 + $0x106c] sm:$0xf0] }
 0x2a4   :  { %8857 = vmatpush.bf16.msrb.mxu2 %v13468_v10  ;;  %v13267_v10 = vld [vmem:[#allocation8 + $0x508] sm:$0xf]  ;;  %v13627_v52 = vld [vmem:[#allocation8 + $0x7d8] sm:$0xf]  ;;  %v16918_v46 = vld [vmem:[#allocation8 + $0xfa4] sm:$0xf] }
 0x2a5   :  { %v13268_v59 = vor.u32 %v16584_v32, %v13267_v10  ;;  %15618 = vmatmul.msk.bf16.vlgmr.msra.gmra.mxu2 %vm8565_vm1, %v17767_v29 }
 0x2a6   :  { %8809 = vmatpush.bf16.msra.mxu0 %v15224_v61 }
 0x2a7   :  { %8797 = vmatpush.bf16.msrb.mxu1 %v14864_v39  ;;  %v16964_v39 = vld [vmem:[#allocation8 + $0x110c] sm:$0xf0]  ;;  %8778 = vmatpush.bf16.msrb.mxu3 %v14784_v63  ;;  %v14708_v63 = vor.u32 %v16944_v40, %v14707_v0  ;;  %v14547_v0 = vld [vmem:[#allocation8 + $0xf08] sm:$0xf] }
 0x2a8   :  { %8858 = vmatpush.bf16.msrb.mxu2 %v13428_v37  ;;  %v14827_v37 = vld [vmem:[#allocation8 + $0x1138] sm:$0xf]  ;;  %v14788_v14 = vor.u32 %v16964_v39, %v14787_v56  ;;  %v13587_v56 = vld [vmem:[#allocation8 + $0x788] sm:$0xf]  ;;  %v12948_v39 = vor.u32 %v16504_v5, %v12947_v1  ;;  %v12909_v1 = vld [vmem:[#allocation8 + $0x260] sm:$0xf0] }
 0x2a9   :  { %v14828_v61 = vor.u32 %v16974_v58, %v14827_v37 }
 0x2aa   :  { %8810 = vmatpush.bf16.msra.mxu0 %v15184_v7  ;;  %8798 = vmatmul.bf16.vlgmr.msrb.gmra.mxu1 %v17725_v11  ;;  %v8604_v50 = vpop.f32.mrf.mxu0  ;;  %v13068_v7 = vor.u32 %v16534_v17, %v13067_v15 }
 0x2ab   :  { %8842 = vmatpush.bf16.msra.mxu1 %v13228_v30  ;;  %v14744_v30 = vor.u32 %v16948_v12, %v14741_v13  ;;  %v14507_v12 = vld [vmem:[#allocation8 + $0xeb8] sm:$0xf]  ;;  %v16894_v13 = vld [vmem:[#allocation8 + $0xedc] sm:$0xf0] }
 0x2ac   :  { %8859 = vmatpush.bf16.msrb.mxu2 %v13388_v16  ;;  %v8578_v16 = vpop.f32.mrf.mxu1  ;;  %v14508_v21 = vor.u32 %v16894_v13, %v14507_v12  ;;  %v15027_v12 = vld [vmem:[#allocation8 + $0x12c8] sm:$0xf]  ;;  %v17024_v13 = vld [vmem:[#allocation8 + $0x12ec] sm:$0xf0] }
 0x2ad   :  { %8811 = vmatmul.bf16.vlgmr.msra.gmra.mxu0 %v17757_v20  ;;  %v8579_v26 = vadd.f32 %v8578_v16, %v4795_v22  ;;  %8779 = vmatpush.bf16.msrb.mxu3 %v14744_v30  ;;  %v16664_v22 = vld [vmem:[#allocation8 + $0x7ac] sm:$0xf0]  ;;  %v14581_v30 = vld [vmem:[#allocation8 + $0xf78] sm:$0xf0] }
 0x2ae   :  { %8868 = vmatpush.bf16.msrb.mxu0 %v13868_v25  ;;  %v14747_v25 = vld [vmem:[#allocation8 + $0x1098] sm:$0xf] }
 0x2af   :  { %8843 = vmatpush.bf16.msra.mxu1 %v13188_v41  ;;  %v8591_v27 = vpop.f32.mrf.mxu3  ;;  %v14704_v41 = vor.u32 %v16938_v35, %v14701_v53  ;;  %v14748_v34 = vor.u32 %v16954_v33, %v14747_v25  ;;  %v16924_v35 = vld [vmem:[#allocation8 + $0xfcc] sm:$0xf0]  ;;  %v14467_v53 = vld [vmem:[#allocation8 + $0xe68] sm:$0xf]  ;;  %v13588_v25 = vor.u32 %v16664_v22, %v13587_v56  ;;  %v12827_v56 = vld [vmem:[#allocation8 + $0x198] sm:$0xf] }
 0x2b0   :  { %8860 = vmatpush.bf16.msrb.mxu2 %v13348_v23  ;;  %v13027_v23 = vld [vmem:[#allocation8 + $0x328] sm:$0xf]  ;;  %v8592_v36 = vadd.f32 %v8591_v27, %v8579_v26  ;;  %v16898_v27 = vld [vmem:[#allocation8 + $0xf04] sm:$0xf]  ;;  %v14347_v22 = vld [vmem:[#allocation8 + $0xd78] sm:$0xf] }
 0x2b1   :  { %v13028_v31 = vor.u32 %v16524_v54, %v13027_v23  ;;  %8780 = vmatpush.bf16.msrb.mxu3 %v14704_v41  ;;  %v16884_v23 = vld [vmem:[#allocation8 + $0xe8c] sm:$0xf0] }
 0x2b2   :  { %8869 = vmatpush.bf16.msrb.mxu0 %v13828_v3  ;;  %v12987_v3 = vld [vmem:[#allocation8 + $0x2d8] sm:$0xf]  ;;  %v8605_v32 = vadd.f32 %v8604_v50, %v8592_v36  ;;  %v8606_v37 = vpop.f32.mrf.mxu0  ;;  %8733 = vmatmul.bf16.vlgmr.msra.gmra.mxu3 %v17702_v4  ;;  %v14627_v50 = vld [vmem:[#allocation8 + $0xfa8] sm:$0xf]  ;;  %v14468_v28 = vor.u32 %v16884_v23, %v14467_v53  ;;  %v17014_v53 = vld [vmem:[#allocation8 + $0x129c] sm:$0xf0] }
 0x2b3   :  { %8844 = vmatpush.bf16.msra.mxu1 %v13148_v24  ;;  %v8617_v24 = vpop.f32.mrf.mxu2  ;;  %v12988_v58 = vor.u32 %v16514_v2, %v12987_v3  ;;  %v14628_v41 = vor.u32 %v16924_v35, %v14627_v50  ;;  %v14587_v36 = vld [vmem:[#allocation8 + $0xf58] sm:$0xf]  ;;  %v16874_v3 = vld [vmem:[#allocation8 + $0xe3c] sm:$0xf0]  ;;  %v15028_v50 = vor.u32 %v17024_v13, %v15027_v12  ;;  %v16824_v12 = vld [vmem:[#allocation8 + $0xcac] sm:$0xf0] }
 0x2b4   :  { %8861 = vmatpush.bf16.msrb.mxu2 %v13308_v42  ;;  %v14661_v42 = vld [vmem:[#allocation8 + $0x1018] sm:$0xf0]  ;;  %v8580_v10 = vpop.f32.mrf.mxu1  ;;  %v17777_v55 = vadd.f32 %v8617_v24, %v8605_v32  ;;  %v14588_v40 = vor.u32 %v16914_v44, %v14587_v36  ;;  %v14987_v35 = vld [vmem:[#allocation8 + $0x1278] sm:$0xf] }
 0x2b5   :  { %v14664_v48 = vor.u32 %v16928_v38, %v14661_v42  ;;  %v12907_v38 = vld [vmem:[#allocation8 + $0x238] sm:$0xf]  ;;  %v16494_v42 = vld [vmem:[#allocation8 + $0x25c] sm:$0xf0]  ;;  %v16449_v13 = vld [vmem:[#allocation8 + $0xfc] sm:$0xf] }
 0x2b6   :  { %8870 = vmatpush.bf16.msrb.mxu0 %v13788_v45  ;;  %v14621_v45 = vld [vmem:[#allocation8 + $0xfc8] sm:$0xf0]  ;;  %v14427_v10 = vld [vmem:[#allocation8 + $0xe18] sm:$0xf]  ;;  %v12908_v24 = vor.u32 %v16494_v42, %v12907_v38 }
 0x2b7   :  { %8845 = vmatpush.bf16.msra.mxu1 %v13108_v8  ;;  %v14667_v8 = vld [vmem:[#allocation8 + $0xff8] sm:$0xf]  ;;  %8781 = vmatpush.bf16.msrb.mxu3 %v14664_v48  ;;  %v8593_v15 = vpop.f32.mrf.mxu3  ;;  %v14624_v17 = vor.u32 %v16918_v46, %v14621_v45  ;;  %v14428_v37 = vor.u32 %v16874_v3, %v14427_v10  ;;  %v14387_v46 = vld [vmem:[#allocation8 + $0xdc8] sm:$0xf]  ;;  %v16864_v45 = vld [vmem:[#allocation8 + $0xdec] sm:$0xf0] }
 0x2b8   :  { %8862 = vmatpush.bf16.msrb.mxu2 %v13268_v59  ;;  %v16674_v59 = vld [vmem:[#allocation8 + $0x7fc] sm:$0xf0]  ;;  %v15067_v48 = vld [vmem:[#allocation8 + $0x1318] sm:$0xf] }
 0x2b9   :  { %v13628_v16 = vor.u32 %v16674_v59, %v13627_v52  ;;  %v17034_v52 = vld [vmem:[#allocation8 + $0x133c] sm:$0xf0]  ;;  %v16484_v59 = vld [vmem:[#allocation8 + $0x20c] sm:$0xf0]  ;;  %v12747_v3 = vld [vmem:[#allocation8 + $0xf8] sm:$0xf] }
 0x2ba   :  { %8871 = vmatpush.bf16.msrb.mxu0 %v13748_v18  ;;  %v16908_v18 = vld [vmem:[#allocation8 + $0xf54] sm:$0xf]  ;;  %v15068_v5 = vor.u32 %v17034_v52, %v15067_v48 }
 0x2bb   :  { %8846 = vmatpush.bf16.msra.mxu1 %v13068_v7  ;;  %8863 = vmatmul.bf16.vlgmr.msrb.gmra.mxu2 %v17702_v4  ;;  %v15147_v7 = vld [vmem:[#allocation8 + $0x13b8] sm:$0xf]  ;;  %v8619_v54 = vpop.f32.mrf.mxu2  ;;  %v14584_v33 = vor.u32 %v16908_v18, %v14581_v30  ;;  %v16854_v30 = vld [vmem:[#allocation8 + $0xd9c] sm:$0xf0] }
 0x2bc   :  { %8907 = vmatpush.bf16.msra.mxu2 %v14828_v61  ;;  %v16934_v61 = vld [vmem:[#allocation8 + $0x101c] sm:$0xf0]  ;;  %8782 = vmatpush.bf16.msrb.mxu3 %v14624_v17  ;;  %v14348_v23 = vor.u32 %v16854_v30, %v14347_v22  ;;  %v16984_v30 = vld [vmem:[#allocation8 + $0x11ac] sm:$0xf0] }
 0x2bd   :  { %v14668_v60 = vor.u32 %v16934_v61, %v14667_v8 }
 0x2be   :  { %8872 = vmatpush.bf16.msrb.mxu0 %v13708_v49  ;;  %v14541_v49 = vld [vmem:[#allocation8 + $0xf28] sm:$0xf0] }
 0x2bf   :  { %8847 = vmatpush.bf16.msra.mxu1 %v13028_v31  ;;  %v15107_v31 = vld [vmem:[#allocation8 + $0x1368] sm:$0xf]  ;;  %v14544_v2 = vor.u32 %v16898_v27, %v14541_v49  ;;  %v16469_v27 = vld [vmem:[#allocation8 + $0x19c] sm:$0xf]  ;;  %v12829_v49 = vld [vmem:[#allocation8 + $0x1c0] sm:$0xf0] }
 0x2c0   :  { %8908 = vmatpush.bf16.msra.mxu2 %v14788_v14  ;;  %v17054_v14 = vld [vmem:[#allocation8 + $0x13dc] sm:$0xf0]  ;;  %8783 = vmatpush.bf16.msrb.mxu3 %v14584_v33  ;;  %v16464_v33 = vld [vmem:[#allocation8 + $0x16c] sm:$0xf0]  ;;  %v12832_v10 = vor.u32 %v16469_v27, %v12829_v49  ;;  %v12627_v49 = vld [vmem:[#allocation8 + $0x8] sm:$0xf] }
 0x2c1   :  { %v15148_v26 = vor.u32 %v17054_v14, %v15147_v7 }
 0x2c2   :  { %8873 = vmatpush.bf16.msrb.mxu0 %v13668_v43  ;;  %v16904_v43 = vld [vmem:[#allocation8 + $0xf2c] sm:$0xf0] }
 0x2c3   :  { %8848 = vmatpush.bf16.msra.mxu1 %v12988_v58  ;;  %v12867_v58 = vld [vmem:[#allocation8 + $0x1e8] sm:$0xf]  ;;  %v14548_v8 = vor.u32 %v16904_v43, %v14547_v0  ;;  %v16834_v0 = vld [vmem:[#allocation8 + $0xcfc] sm:$0xf0] }
 0x2c4   :  { %8909 = vmatpush.bf16.msra.mxu2 %v14748_v34  ;;  %v17044_v34 = vld [vmem:[#allocation8 + $0x138c] sm:$0xf0]  ;;  %8784 = vmatpush.bf16.msrb.mxu3 %v14544_v2  ;;  %v12868_v61 = vor.u32 %v16484_v59, %v12867_v58  ;;  %v16454_v2 = vld [vmem:[#allocation8 + $0x11c] sm:$0xf0]  ;;  %v14907_v59 = vld [vmem:[#allocation8 + $0x11d8] sm:$0xf] }
 0x2c5   :  { %v15108_v32 = vor.u32 %v17044_v34, %v15107_v31  ;;  %v14947_v31 = vld [vmem:[#allocation8 + $0x1228] sm:$0xf]  ;;  %v17004_v34 = vld [vmem:[#allocation8 + $0x124c] sm:$0xf0]  ;;  %v12748_v58 = vor.u32 %v16454_v2, %v12747_v3  ;;  %v16814_v3 = vld [vmem:[#allocation8 + $0xc5c] sm:$0xf0] }
 0x2c6   :  { %8874 = vmatpush.bf16.msrb.mxu0 %v13628_v16  ;;  %v14388_v16 = vor.u32 %v16864_v45, %v14387_v46  ;;  %v14948_v52 = vor.u32 %v17004_v34, %v14947_v31  ;;  %v16994_v46 = vld [vmem:[#allocation8 + $0x11fc] sm:$0xf0]  ;;  %v16429_v31 = vld [vmem:[#allocation8 + $0x5c] sm:$0xf]  ;;  %v12669_v34 = vld [vmem:[#allocation8 + $0x80] sm:$0xf0] }
 0x2c7   :  { %8849 = vmatpush.bf16.msra.mxu1 %v12948_v39  ;;  %v8630_v15 = vpop.f32.mrf.mxu1  ;;  %v16474_v39 = vld [vmem:[#allocation8 + $0x1bc] sm:$0xf0]  ;;  %8785 = vmatmul.bf16.vlgmr.msrb.gmra.mxu3 %v17728_v51  ;;  %v15507_v2 = vld [vmem:[#allocation8 + $0x1688] sm:$0xf] }
 0x2c8   :  { %8910 = vmatpush.bf16.msra.mxu2 %v14708_v63  ;;  %v16489_v63 = vld [vmem:[#allocation8 + $0x23c] sm:$0xf]  ;;  %8829 = vmatpush.bf16.msra.mxu3 %v12908_v24  ;;  %v8631_v18 = vadd.f32 %v8630_v15, %v17777_v55  ;;  %v12828_v14 = vor.u32 %v16474_v39, %v12827_v56  ;;  %v14307_v55 = vld [vmem:[#allocation8 + $0xd28] sm:$0xf]  ;;  %v12789_v24 = vld [vmem:[#allocation8 + $0x170] sm:$0xf0] }
 0x2c9   :  { %v12912_v17 = vor.u32 %v16489_v63, %v12909_v1  ;;  %v12749_v15 = vld [vmem:[#allocation8 + $0x120] sm:$0xf0]  ;;  %v17164_v56 = vld [vmem:[#allocation8 + $0x174c] sm:$0xf0] }
 0x2ca   :  { %8850 = vmatmul.bf16.vlgmr.msra.gmra.mxu1 %v17700_v57  ;;  %8875 = vmatpush.bf16.msrb.mxu0 %v13588_v25  ;;  %v8656_v7 = vpop.f32.mrf.mxu0  ;;  %v12787_v25 = vld [vmem:[#allocation8 + $0x148] sm:$0xf] }
 0x2cb   :  { %8894 = vmatpush.bf16.msrb.mxu1 %v14508_v21  ;;  %v12869_v21 = vld [vmem:[#allocation8 + $0x210] sm:$0xf0]  ;;  %v12788_v36 = vor.u32 %v16464_v33, %v12787_v25 }
 0x2cc   :  { %8911 = vmatpush.bf16.msra.mxu2 %v14668_v60  ;;  %v16479_v60 = vld [vmem:[#allocation8 + $0x1ec] sm:$0xf]  ;;  %8830 = vmatpush.bf16.msra.mxu3 %v12868_v61  ;;  %v14227_v61 = vld [vmem:[#allocation8 + $0xc88] sm:$0xf] }
 0x2cd   :  { %8876 = vmatmul.bf16.vlgmr.msrb.gmra.mxu0 %v17706_v9  ;;  %v12872_v54 = vor.u32 %v16479_v60, %v12869_v21  ;;  %v14228_v60 = vor.u32 %v16824_v12, %v14227_v61  ;;  %v12752_v21 = vor.u32 %v16449_v13, %v12749_v15  ;;  %v16809_v61 = vld [vmem:[#allocation8 + $0xc3c] sm:$0xf]  ;;  %v14189_v12 = vld [vmem:[#allocation8 + $0xc60] sm:$0xf0]  ;;  %v16639_v13 = vld [vmem:[#allocation8 + $0x6ec] sm:$0xf] }
 0x2ce   :  { %8920 = vmatpush.bf16.msra.mxu0 %v15148_v26  ;;  %v16844_v26 = vld [vmem:[#allocation8 + $0xd4c] sm:$0xf0]  ;;  %v13509_v15 = vld [vmem:[#allocation8 + $0x710] sm:$0xf0] }
 0x2cf   :  { %8895 = vmatpush.bf16.msrb.mxu1 %v14468_v28  ;;  %v8643_v28 = vpop.f32.mrf.mxu3  ;;  %v8632_v38 = vpop.f32.mrf.mxu1  ;;  %v14308_v42 = vor.u32 %v16844_v26, %v14307_v55  ;;  %v15547_v55 = vld [vmem:[#allocation8 + $0x16d8] sm:$0xf]  ;;  %v17154_v26 = vld [vmem:[#allocation8 + $0x16fc] sm:$0xf0] }
 0x2d0   :  { %8912 = vmatpush.bf16.msra.mxu2 %v14628_v41  ;;  %v14988_v41 = vor.u32 %v17014_v53, %v14987_v35  ;;  %8831 = vmatpush.bf16.msra.mxu3 %v12828_v14  ;;  %v8644_v44 = vadd.f32 %v8643_v28, %v8631_v18  ;;  %v14867_v18 = vld [vmem:[#allocation8 + $0x1188] sm:$0xf]  ;;  %v16439_v14 = vld [vmem:[#allocation8 + $0xac] sm:$0xf]  ;;  %v12709_v53 = vld [vmem:[#allocation8 + $0xd0] sm:$0xf0] }
 0x2d1   :  { %v14868_v33 = vor.u32 %v16984_v30, %v14867_v18  ;;  %v16559_v38 = vld [vmem:[#allocation8 + $0x46c] sm:$0xf]  ;;  %v13109_v18 = vld [vmem:[#allocation8 + $0x3f0] sm:$0xf0]  ;;  %v14107_v30 = vld [vmem:[#allocation8 + $0xb98] sm:$0xf] }
 0x2d2   :  { %8921 = vmatpush.bf16.msra.mxu0 %v15108_v32  ;;  %v14267_v32 = vld [vmem:[#allocation8 + $0xcd8] sm:$0xf]  ;;  %v8657_v43 = vadd.f32 %v8656_v7, %v8644_v44  ;;  %v8669_v48 = vpop.f32.mrf.mxu2  ;;  %v16434_v7 = vld [vmem:[#allocation8 + $0x7c] sm:$0xf0]  ;;  %v15548_v44 = vor.u32 %v17154_v26, %v15547_v55  ;;  %v16529_v55 = vld [vmem:[#allocation8 + $0x37c] sm:$0xf] }
 0x2d3   :  { %8896 = vmatpush.bf16.msrb.mxu1 %v14428_v37  ;;  %v8658_v37 = vpop.f32.mrf.mxu0  ;;  %v14268_v63 = vor.u32 %v16834_v0, %v14267_v32  ;;  %v17144_v32 = vld [vmem:[#allocation8 + $0x16ac] sm:$0xf0]  ;;  %v13069_v26 = vld [vmem:[#allocation8 + $0x3a0] sm:$0xf0] }
 0x2d4   :  { %8913 = vmatpush.bf16.msra.mxu2 %v14588_v40  ;;  %v16459_v40 = vld [vmem:[#allocation8 + $0x14c] sm:$0xf]  ;;  %8832 = vmatpush.bf16.msra.mxu3 %v12788_v36  ;;  %v17786_v45 = vadd.f32 %v8669_v48, %v8657_v43  ;;  %v16424_v36 = vld [vmem:[#allocation8 + $0x2c] sm:$0xf0]  ;;  %v12672_v43 = vor.u32 %v16429_v31, %v12669_v34  ;;  %v12629_v37 = vld [vmem:[#allocation8 + $0x30] sm:$0xf0] }
 0x2d5   :  { %v12792_v1 = vor.u32 %v16459_v40, %v12789_v24  ;;  %v12628_v0 = vor.u32 %v16424_v36, %v12627_v49  ;;  %v16649_v40 = vld [vmem:[#allocation8 + $0x73c] sm:$0xf]  ;;  %v13549_v24 = vld [vmem:[#allocation8 + $0x760] sm:$0xf0]  ;;  %v16619_v31 = vld [vmem:[#allocation8 + $0x64c] sm:$0xf] }
 0x2d6   :  { %8922 = vmatpush.bf16.msra.mxu0 %v15068_v5  ;;  %v12707_v5 = vld [vmem:[#allocation8 + $0xa8] sm:$0xf]  ;;  %v14109_v36 = vld [vmem:[#allocation8 + $0xbc0] sm:$0xf0]  ;;  %v13429_v34 = vld [vmem:[#allocation8 + $0x670] sm:$0xf0] }
 0x2d7   :  { %8897 = vmatpush.bf16.msrb.mxu1 %v14388_v16  ;;  %v14908_v16 = vor.u32 %v16994_v46, %v14907_v59  ;;  %v8645_v39 = vpop.f32.mrf.mxu3  ;;  %v15508_v59 = vor.u32 %v17144_v32, %v15507_v2  ;;  %v16549_v46 = vld [vmem:[#allocation8 + $0x41c] sm:$0xf]  ;;  %v13432_v32 = vor.u32 %v16619_v31, %v13429_v34  ;;  %v13949_v31 = vld [vmem:[#allocation8 + $0xa80] sm:$0xf0]  ;;  %v16879_v34 = vld [vmem:[#allocation8 + $0xe6c] sm:$0xf] }
 0x2d8   :  { %8914 = vmatpush.bf16.msra.mxu2 %v14548_v8  ;;  %v16444_v8 = vld [vmem:[#allocation8 + $0xcc] sm:$0xf0]  ;;  %8833 = vmatpush.bf16.msra.mxu3 %v12748_v58  ;;  %v14192_v39 = vor.u32 %v16809_v61, %v14189_v12 }
 0x2d9   :  { %v12708_v22 = vor.u32 %v16444_v8, %v12707_v5  ;;  %v13552_v5 = vor.u32 %v16649_v40, %v13549_v24  ;;  %v16804_v8 = vld [vmem:[#allocation8 + $0xc0c] sm:$0xf0]  ;;  %v16779_v40 = vld [vmem:[#allocation8 + $0xb4c] sm:$0xf]  ;;  %v14069_v24 = vld [vmem:[#allocation8 + $0xb70] sm:$0xf0] }
 0x2da   :  { %8923 = vmatpush.bf16.msra.mxu0 %v15028_v50  ;;  %v12667_v50 = vld [vmem:[#allocation8 + $0x58] sm:$0xf]  ;;  %v8671_v25 = vpop.f32.mrf.mxu2  ;;  %v16764_v12 = vld [vmem:[#allocation8 + $0xacc] sm:$0xf0] }
 0x2db   :  { %8915 = vmatmul.bf16.vlgmr.msra.gmra.mxu2 %v17728_v51  ;;  %8898 = vmatpush.bf16.msrb.mxu1 %v14348_v23  ;;  %v16569_v23 = vld [vmem:[#allocation8 + $0x4bc] sm:$0xf]  ;;  %v12668_v27 = vor.u32 %v16434_v7, %v12667_v50  ;;  %v16799_v50 = vld [vmem:[#allocation8 + $0xbec] sm:$0xf]  ;;  %v14149_v7 = vld [vmem:[#allocation8 + $0xc10] sm:$0xf0] }
 0x2dc   :  { %8959 = vmatpush.bf16.msrb.mxu2 %v12912_v17  ;;  %v15587_v17 = vld [vmem:[#allocation8 + $0x1728] sm:$0xf]  ;;  %8834 = vmatpush.bf16.msra.mxu3 %v12708_v22  ;;  %v16539_v22 = vld [vmem:[#allocation8 + $0x3cc] sm:$0xf] }
 0x2dd   :  { %v15588_v35 = vor.u32 %v17164_v56, %v15587_v17 }
 0x2de   :  { %8924 = vmatpush.bf16.msra.mxu0 %v14988_v41  ;;  %v12712_v41 = vor.u32 %v16439_v14, %v12709_v53  ;;  %v16629_v14 = vld [vmem:[#allocation8 + $0x69c] sm:$0xf]  ;;  %v4796_v53 = vperm.slane %v17772_v62, 1  ;;  %v13072_v62 = vor.u32 %v16529_v55, %v13069_v26 }
 0x2df   :  { %8899 = vmatpush.bf16.msrb.mxu1 %v14308_v42  ;;  %v13189_v42 = vld [vmem:[#allocation8 + $0x490] sm:$0xf0] }
 0x2e0   :  { %8960 = vmatpush.bf16.msrb.mxu2 %v12872_v54  ;;  %v13229_v54 = vld [vmem:[#allocation8 + $0x4e0] sm:$0xf0]  ;;  %8835 = vmatpush.bf16.msra.mxu3 %v12668_v27  ;;  %v13192_v48 = vor.u32 %v16559_v38, %v13189_v42  ;;  %v14067_v27 = vld [vmem:[#allocation8 + $0xb48] sm:$0xf]  ;;  %v16519_v42 = vld [vmem:[#allocation8 + $0x32c] sm:$0xf] }
 0x2e1   :  { %v13232_v28 = vor.u32 %v16569_v23, %v13229_v54  ;;  %v13112_v23 = vor.u32 %v16539_v22, %v13109_v18 }
 0x2e2   :  { %8925 = vmatpush.bf16.msra.mxu0 %v14948_v52  ;;  %v16419_v52 = vld [vmem:[#allocation8 + $0xc] sm:$0xf] }
 0x2e3   :  { %8900 = vmatpush.bf16.msrb.mxu1 %v14268_v63  ;;  %v13149_v63 = vld [vmem:[#allocation8 + $0x440] sm:$0xf0] }
 0x2e4   :  { %8961 = vmatpush.bf16.msrb.mxu2 %v12832_v10  ;;  %v14187_v10 = vld [vmem:[#allocation8 + $0xc38] sm:$0xf]  ;;  %8836 = vmatpush.bf16.msra.mxu3 %v12628_v0  ;;  %v13152_v17 = vor.u32 %v16549_v46, %v13149_v63  ;;  %v16774_v0 = vld [vmem:[#allocation8 + $0xb1c] sm:$0xf0]  ;;  %v14072_v63 = vor.u32 %v16779_v40, %v14069_v24  ;;  %v14829_v40 = vld [vmem:[#allocation8 + $0x1160] sm:$0xf0] }
 0x2e5   :  { %v14188_v58 = vor.u32 %v16814_v3, %v14187_v10  ;;  %v13029_v10 = vld [vmem:[#allocation8 + $0x350] sm:$0xf0]  ;;  %v14027_v3 = vld [vmem:[#allocation8 + $0xaf8] sm:$0xf] }
 0x2e6   :  { %8926 = vmatpush.bf16.msra.mxu0 %v14908_v16  ;;  %v12632_v16 = vor.u32 %v16419_v52, %v12629_v37  ;;  %v13389_v52 = vld [vmem:[#allocation8 + $0x620] sm:$0xf0]  ;;  %v14028_v46 = vor.u32 %v16774_v0, %v14027_v3  ;;  %v16969_v0 = vld [vmem:[#allocation8 + $0x113c] sm:$0xf] }
 0x2e7   :  { %8901 = vmatpush.bf16.msrb.mxu1 %v14228_v60  ;;  %8837 = vmatmul.bf16.vlgmr.msra.gmra.mxu3 %v17696_v47  ;;  %v13512_v60 = vor.u32 %v16639_v13, %v13509_v15  ;;  %v16769_v13 = vld [vmem:[#allocation8 + $0xafc] sm:$0xf]  ;;  %v14029_v15 = vld [vmem:[#allocation8 + $0xb20] sm:$0xf0] }
 0x2e8   :  { %8962 = vmatpush.bf16.msrb.mxu2 %v12792_v1  ;;  %v14147_v1 = vld [vmem:[#allocation8 + $0xbe8] sm:$0xf]  ;;  %8881 = vmatpush.bf16.msrb.mxu3 %v14188_v58  ;;  %v13032_v58 = vor.u32 %v16519_v42, %v13029_v10  ;;  %v14032_v18 = vor.u32 %v16769_v13, %v14029_v15  ;;  %v16579_v42 = vld [vmem:[#allocation8 + $0x50c] sm:$0xf]  ;;  %v13269_v10 = vld [vmem:[#allocation8 + $0x530] sm:$0xf0] }
 0x2e9   :  { %v14148_v56 = vor.u32 %v16804_v8, %v14147_v1  ;;  %v16509_v1 = vld [vmem:[#allocation8 + $0x2dc] sm:$0xf]  ;;  %v13987_v8 = vld [vmem:[#allocation8 + $0xaa8] sm:$0xf]  ;;  %v16959_v15 = vld [vmem:[#allocation8 + $0x10ec] sm:$0xf] }
 0x2ea   :  { %8927 = vmatpush.bf16.msra.mxu0 %v14868_v33  ;;  %8902 = vmatmul.bf16.vlgmr.msrb.gmra.mxu1 %v17723_v19  ;;  %v8708_v54 = vpop.f32.mrf.mxu0  ;;  %v14152_v33 = vor.u32 %v16799_v50, %v14149_v7  ;;  %v13988_v22 = vor.u32 %v16764_v12, %v13987_v8  ;;  %v16759_v7 = vld [vmem:[#allocation8 + $0xaac] sm:$0xf]  ;;  %v17124_v8 = vld [vmem:[#allocation8 + $0x160c] sm:$0xf0]  ;;  %v15469_v12 = vld [vmem:[#allocation8 + $0x1660] sm:$0xf0] }
 0x2eb   :  { %8951 = vmatpush.bf16.msra.mxu1 %v15588_v35  ;;  %v13469_v35 = vld [vmem:[#allocation8 + $0x6c0] sm:$0xf0]  ;;  %v8709_v2 = vadd.f32 %v8708_v54, %v4796_v53  ;;  %v16589_v54 = vld [vmem:[#allocation8 + $0x55c] sm:$0xf] }
 0x2ec   :  { %8963 = vmatpush.bf16.msrb.mxu2 %v12752_v21  ;;  %v16794_v21 = vld [vmem:[#allocation8 + $0xbbc] sm:$0xf0]  ;;  %8882 = vmatpush.bf16.msrb.mxu3 %v14148_v56  ;;  %v13472_v49 = vor.u32 %v16629_v14, %v13469_v35  ;;  %v13989_v14 = vld [vmem:[#allocation8 + $0xad0] sm:$0xf0]  ;;  %v16889_v35 = vld [vmem:[#allocation8 + $0xebc] sm:$0xf] }
 0x2ed   :  { %8928 = vmatmul.bf16.vlgmr.msra.gmra.mxu0 %v17725_v11  ;;  %v14108_v25 = vor.u32 %v16794_v21, %v14107_v30  ;;  %v12949_v30 = vld [vmem:[#allocation8 + $0x2b0] sm:$0xf0]  ;;  %v16754_v21 = vld [vmem:[#allocation8 + $0xa7c] sm:$0xf0]  ;;  %v13992_v26 = vor.u32 %v16759_v7, %v13989_v14  ;;  %v16949_v14 = vld [vmem:[#allocation8 + $0x109c] sm:$0xf] }
 0x2ee   :  { %8972 = vmatpush.bf16.msrb.mxu0 %v13232_v28  ;;  %v16789_v28 = vld [vmem:[#allocation8 + $0xb9c] sm:$0xf] }
 0x2ef   :  { %8952 = vmatpush.bf16.msra.mxu1 %v15548_v44  ;;  %v14112_v38 = vor.u32 %v16789_v28, %v14109_v36  ;;  %v16749_v36 = vld [vmem:[#allocation8 + $0xa5c] sm:$0xf] }
 0x2f0   :  { %8964 = vmatpush.bf16.msrb.mxu2 %v12712_v41  ;;  %v16784_v41 = vld [vmem:[#allocation8 + $0xb6c] sm:$0xf0]  ;;  %8883 = vmatpush.bf16.msrb.mxu3 %v14108_v25  ;;  %v13309_v25 = vld [vmem:[#allocation8 + $0x580] sm:$0xf0] }
 0x2f1   :  { %v14068_v44 = vor.u32 %v16784_v41, %v14067_v27  ;;  %v13907_v27 = vld [vmem:[#allocation8 + $0xa08] sm:$0xf]  ;;  %v13312_v28 = vor.u32 %v16589_v54, %v13309_v25 }
 0x2f2   :  { %8973 = vmatpush.bf16.msrb.mxu0 %v13192_v48  ;;  %v16609_v48 = vld [vmem:[#allocation8 + $0x5fc] sm:$0xf] }
 0x2f3   :  { %8953 = vmatpush.bf16.msra.mxu1 %v15508_v59  ;;  %v8710_v59 = vpop.f32.mrf.mxu0  ;;  %v13392_v61 = vor.u32 %v16609_v48, %v13389_v52  ;;  %v16739_v52 = vld [vmem:[#allocation8 + $0xa0c] sm:$0xf] }
 0x2f4   :  { %8965 = vmatpush.bf16.msrb.mxu2 %v12672_v43  ;;  %v8721_v43 = vpop.f32.mrf.mxu2  ;;  %8884 = vmatpush.bf16.msrb.mxu3 %v14068_v44  ;;  %v15467_v44 = vld [vmem:[#allocation8 + $0x1638] sm:$0xf]  ;;  %v13272_v59 = vor.u32 %v16579_v42, %v13269_v10  ;;  %v14309_v42 = vld [vmem:[#allocation8 + $0xd50] sm:$0xf0] }
 0x2f5   :  { %v17795_v37 = vadd.f32 %v8721_v43, %v8709_v2  ;;  %v15307_v10 = vld [vmem:[#allocation8 + $0x14f8] sm:$0xf] }
 0x2f6   :  { %8974 = vmatpush.bf16.msrb.mxu0 %v13152_v17  ;;  %v13349_v17 = vld [vmem:[#allocation8 + $0x5d0] sm:$0xf0] }
 0x2f7   :  { %8985 = vmatpush.bf16.msrb.mxu1 %v13552_v5  ;;  %v12989_v5 = vld [vmem:[#allocation8 + $0x300] sm:$0xf0] }
 0x2f8   :  { %8966 = vmatpush.bf16.msrb.mxu2 %v12632_v16  ;;  %v16599_v16 = vld [vmem:[#allocation8 + $0x5ac] sm:$0xf]  ;;  %v12992_v56 = vor.u32 %v16509_v1, %v12989_v5  ;;  %8885 = vmatpush.bf16.msrb.mxu3 %v14028_v46  ;;  %v16869_v46 = vld [vmem:[#allocation8 + $0xe1c] sm:$0xf]  ;;  %v15427_v1 = vld [vmem:[#allocation8 + $0x15e8] sm:$0xf]  ;;  %v14832_v5 = vor.u32 %v16969_v0, %v14829_v40 }
 0x2f9   :  { %v13352_v50 = vor.u32 %v16599_v16, %v13349_v17  ;;  %v8682_v3 = vpop.f32.mrf.mxu1  ;;  %v15428_v17 = vor.u32 %v17124_v8, %v15427_v1  ;;  %v17099_v0 = vld [vmem:[#allocation8 + $0x154c] sm:$0xf]  ;;  %v15349_v40 = vld [vmem:[#allocation8 + $0x1570] sm:$0xf0]  ;;  %v16829_v1 = vld [vmem:[#allocation8 + $0xcdc] sm:$0xf] }
 0x2fa   :  { %8975 = vmatpush.bf16.msrb.mxu0 %v13112_v23  ;;  %15619 = vmatmul.msk.bf16.vlgmr.msra.gmra.mxu1 %vm8565_vm1, %v17767_v29  ;;  %v14509_v23 = vld [vmem:[#allocation8 + $0xee0] sm:$0xf0]  ;;  %v17798_v24 = vadd.f32 %v8682_v3, %v17786_v45  ;;  %v14789_v45 = vld [vmem:[#allocation8 + $0x1110] sm:$0xf0]  ;;  %v15267_v8 = vld [vmem:[#allocation8 + $0x14a8] sm:$0xf] }
 0x2fb   :  { %8986 = vmatpush.bf16.msrb.mxu1 %v13512_v60  ;;  %8967 = vmatmul.bf16.vlgmr.msrb.gmra.mxu2 %v17696_v47  ;;  %v13947_v60 = vld [vmem:[#allocation8 + $0xa58] sm:$0xf]  ;;  %v14512_v41 = vor.u32 %v16889_v35, %v14509_v23  ;;  %v14749_v35 = vld [vmem:[#allocation8 + $0x10c0] sm:$0xf0] }
 0x2fc   :  { %9011 = vmatpush.bf16.msra.mxu2 %v14192_v39  ;;  %v16499_v39 = vld [vmem:[#allocation8 + $0x28c] sm:$0xf]  ;;  %v8723_v53 = vpop.f32.mrf.mxu2  ;;  %8886 = vmatpush.bf16.msrb.mxu3 %v13988_v22  ;;  %v13948_v55 = vor.u32 %v16754_v21, %v13947_v60  ;;  %v14389_v22 = vld [vmem:[#allocation8 + $0xdf0] sm:$0xf0]  ;;  %v17114_v60 = vld [vmem:[#allocation8 + $0x15bc] sm:$0xf0] }
 0x2fd   :  { %v17119_v21 = vld [vmem:[#allocation8 + $0x15ec] sm:$0xf] }
 0x2fe   :  { %8976 = vmatpush.bf16.msrb.mxu0 %v13072_v62  ;;  %v14469_v62 = vld [vmem:[#allocation8 + $0xe90] sm:$0xf0] }
 0x2ff   :  { %8987 = vmatpush.bf16.msrb.mxu1 %v13472_v49  ;;  %v16744_v49 = vld [vmem:[#allocation8 + $0xa2c] sm:$0xf0]  ;;  %v14472_v43 = vor.u32 %v16879_v34, %v14469_v62 }
 0x300   :  { %9012 = vmatpush.bf16.msra.mxu2 %v14152_v33  ;;  %v12952_v33 = vor.u32 %v16499_v39, %v12949_v30  ;;  %8887 = vmatpush.bf16.msrb.mxu3 %v13948_v55  ;;  %v13908_v2 = vor.u32 %v16744_v49, %v13907_v27  ;;  %v16859_v39 = vld [vmem:[#allocation8 + $0xdcc] sm:$0xf]  ;;  %v14792_v30 = vor.u32 %v16959_v15, %v14789_v45  ;;  %v14349_v55 = vld [vmem:[#allocation8 + $0xda0] sm:$0xf0]  ;;  %v17104_v49 = vld [vmem:[#allocation8 + $0x156c] sm:$0xf0] }
 0x301   :  { %v8684_v7 = vpop.f32.mrf.mxu1  ;;  %v14392_v23 = vor.u32 %v16859_v39, %v14389_v22  ;;  %v14752_v27 = vor.u32 %v16949_v14, %v14749_v35  ;;  %v15309_v15 = vld [vmem:[#allocation8 + $0x1520] sm:$0xf0]  ;;  %v16919_v45 = vld [vmem:[#allocation8 + $0xfac] sm:$0xf]  ;;  %v15269_v14 = vld [vmem:[#allocation8 + $0x14d0] sm:$0xf0] }
 0x302   :  { %8977 = vmatpush.bf16.msrb.mxu0 %v13032_v58  ;;  %v13909_v58 = vld [vmem:[#allocation8 + $0xa30] sm:$0xf0]  ;;  %v17079_v7 = vld [vmem:[#allocation8 + $0x14ac] sm:$0xf] }
 0x303   :  { %8988 = vmatpush.bf16.msrb.mxu1 %v13432_v32  ;;  %v13952_v32 = vor.u32 %v16749_v36, %v13949_v31  ;;  %v13912_v13 = vor.u32 %v16739_v52, %v13909_v58  ;;  %v16939_v36 = vld [vmem:[#allocation8 + $0x104c] sm:$0xf]  ;;  %v14709_v31 = vld [vmem:[#allocation8 + $0x1070] sm:$0xf0]  ;;  %v14669_v52 = vld [vmem:[#allocation8 + $0x1020] sm:$0xf0] }
 0x304   :  { %9013 = vmatpush.bf16.msra.mxu2 %v14112_v38  ;;  %v17134_v38 = vld [vmem:[#allocation8 + $0x165c] sm:$0xf0]  ;;  %8888 = vmatpush.bf16.msrb.mxu3 %v13908_v2  ;;  %v14712_v2 = vor.u32 %v16939_v36, %v14709_v31  ;;  %v17159_v35 = vld [vmem:[#allocation8 + $0x172c] sm:$0xf]  ;;  %v17069_v31 = vld [vmem:[#allocation8 + $0x145c] sm:$0xf] }
 0x305   :  { %v15468_v48 = vor.u32 %v17134_v38, %v15467_v44  ;;  %v16839_v38 = vld [vmem:[#allocation8 + $0xd2c] sm:$0xf] }
 0x306   :  { %8978 = vmatpush.bf16.msrb.mxu0 %v12992_v56 }
 0x307   :  { %8989 = vmatpush.bf16.msrb.mxu1 %v13392_v61  ;;  %v17129_v61 = vld [vmem:[#allocation8 + $0x163c] sm:$0xf]  ;;  %8889 = vmatmul.bf16.vlgmr.msrb.gmra.mxu3 %v17721_v6 }
 0x308   :  { %9014 = vmatpush.bf16.msra.mxu2 %v14072_v63  ;;  %v14429_v63 = vld [vmem:[#allocation8 + $0xe40] sm:$0xf0]  ;;  %8933 = vmatpush.bf16.msra.mxu3 %v15468_v48  ;;  %v15472_v56 = vor.u32 %v17129_v61, %v15469_v12  ;;  %v16929_v48 = vld [vmem:[#allocation8 + $0xffc] sm:$0xf]  ;;  %v17084_v12 = vld [vmem:[#allocation8 + $0x14cc] sm:$0xf0] }
 0x309   :  { %v14432_v16 = vor.u32 %v16869_v46, %v14429_v63  ;;  %v15352_v63 = vor.u32 %v17099_v0, %v15349_v40  ;;  %v14672_v61 = vor.u32 %v16929_v48, %v14669_v52  ;;  %v15268_v39 = vor.u32 %v17084_v12, %v15267_v8  ;;  %v12915_v40 = vld [vmem:[#allocation8 + $0x240] sm:$0xf]  ;;  %v16495_v48 = vld [vmem:[#allocation8 + $0x264] sm:$0xf0]  ;;  %v16719_v8 = vld [vmem:[#allocation8 + $0x96c] sm:$0xf] }
 0x30a   :  { %8979 = vmatpush.bf16.msrb.mxu0 %v12952_v33  ;;  %v17803_v53 = vpop.f32.mrf.mxu0  ;;  %v16849_v33 = vld [vmem:[#allocation8 + $0xd7c] sm:$0xf]  ;;  %v12916_v12 = vor.u32 %v16495_v48, %v12915_v40 }
 0x30b   :  { %8990 = vmatpush.bf16.msrb.mxu1 %v13352_v50  ;;  %v15429_v50 = vld [vmem:[#allocation8 + $0x1610] sm:$0xf0]  ;;  %v14352_v34 = vor.u32 %v16849_v33, %v14349_v55  ;;  %v14589_v33 = vld [vmem:[#allocation8 + $0xf80] sm:$0xf0]  ;;  %v16689_v40 = vld [vmem:[#allocation8 + $0x87c] sm:$0xf] }
 0x30c   :  { %9015 = vmatpush.bf16.msra.mxu2 %v14032_v18  ;;  %v15387_v18 = vld [vmem:[#allocation8 + $0x1598] sm:$0xf]  ;;  %8934 = vmatpush.bf16.msra.mxu3 %v15428_v17  ;;  %v15432_v25 = vor.u32 %v17119_v21, %v15429_v50 }
 0x30d   :  { %8980 = vmatmul.bf16.vlgmr.msrb.gmra.mxu0 %v17700_v57  ;;  %v15388_v54 = vor.u32 %v17114_v60, %v15387_v18  ;;  %v14229_v18 = vld [vmem:[#allocation8 + $0xcb0] sm:$0xf0]  ;;  %v17074_v60 = vld [vmem:[#allocation8 + $0x147c] sm:$0xf0] }
 0x30e   :  { %9024 = vmatpush.bf16.msra.mxu0 %v14512_v41  ;;  %v17109_v41 = vld [vmem:[#allocation8 + $0x159c] sm:$0xf] }
 0x30f   :  { %8991 = vmatpush.bf16.msrb.mxu1 %v13312_v28  ;;  %v15389_v28 = vld [vmem:[#allocation8 + $0x15c0] sm:$0xf0] }
 0x310   :  { %9016 = vmatpush.bf16.msra.mxu2 %v13992_v26  ;;  %v15347_v26 = vld [vmem:[#allocation8 + $0x1548] sm:$0xf]  ;;  %8935 = vmatpush.bf16.msra.mxu3 %v15388_v54  ;;  %v15392_v44 = vor.u32 %v17109_v41, %v15389_v28  ;;  %v15589_v54 = vld [vmem:[#allocation8 + $0x1750] sm:$0xf0]  ;;  %v17064_v41 = vld [vmem:[#allocation8 + $0x142c] sm:$0xf0] }
 0x311   :  { %v15348_v62 = vor.u32 %v17104_v49, %v15347_v26  ;;  %v15187_v49 = vld [vmem:[#allocation8 + $0x1408] sm:$0xf]  ;;  %v15592_v28 = vor.u32 %v17159_v35, %v15589_v54  ;;  %v13515_v35 = vld [vmem:[#allocation8 + $0x6f0] sm:$0xf] }
 0x312   :  { %9025 = vmatpush.bf16.msra.mxu0 %v14472_v43  ;;  %v17806_v3 = vpop.f32.mrf.mxu2  ;;  %v17808_v43 = vpop.f32.mrf.mxu1  ;;  %v13835_v54 = vld [vmem:[#allocation8 + $0x970] sm:$0xf] }
 0x313   :  { %8992 = vmatpush.bf16.msrb.mxu1 %v13272_v59  ;;  %v8762_v58 = vpop.f32.mrf.mxu0  ;;  %v14312_v59 = vor.u32 %v16839_v38, %v14309_v42  ;;  %v16729_v38 = vld [vmem:[#allocation8 + $0x9bc] sm:$0xf]  ;;  %v13869_v42 = vld [vmem:[#allocation8 + $0x9e0] sm:$0xf0] }
 0x314   :  { %9017 = vmatpush.bf16.msra.mxu2 %v13952_v32  ;;  %v17094_v32 = vld [vmem:[#allocation8 + $0x151c] sm:$0xf0]  ;;  %8936 = vmatpush.bf16.msra.mxu3 %v15348_v62  ;;  %v17149_v62 = vld [vmem:[#allocation8 + $0x16dc] sm:$0xf]  ;;  %v13872_v58 = vor.u32 %v16729_v38, %v13869_v42  ;;  %v16715_v38 = vld [vmem:[#allocation8 + $0x944] sm:$0xf0] }
 0x315   :  { %v15308_v46 = vor.u32 %v17094_v32, %v15307_v10  ;;  %v16899_v10 = vld [vmem:[#allocation8 + $0xf0c] sm:$0xf]  ;;  %v15188_v32 = vor.u32 %v17064_v41, %v15187_v49  ;;  %v12795_v42 = vld [vmem:[#allocation8 + $0x150] sm:$0xf] }
 0x316   :  { %8993 = vmatmul.bf16.vlgmr.msrb.gmra.mxu1 %v17702_v4  ;;  %9026 = vmatpush.bf16.msra.mxu0 %v14432_v16  ;;  %v14629_v16 = vld [vmem:[#allocation8 + $0xfd0] sm:$0xf0]  ;;  %v16699_v41 = vld [vmem:[#allocation8 + $0x8cc] sm:$0xf] }
 0x317   :  { %9037 = vmatpush.bf16.msra.mxu1 %v14832_v5  ;;  %v14269_v5 = vld [vmem:[#allocation8 + $0xd00] sm:$0xf0]  ;;  %v14632_v50 = vor.u32 %v16919_v45, %v14629_v16  ;;  %v13875_v45 = vld [vmem:[#allocation8 + $0x9c0] sm:$0xf] }
 0x318   :  { %9018 = vmatpush.bf16.msra.mxu2 %v13912_v13  ;;  %v17089_v13 = vld [vmem:[#allocation8 + $0x14fc] sm:$0xf]  ;;  %v14272_v17 = vor.u32 %v16829_v1, %v14269_v5  ;;  %8937 = vmatpush.bf16.msra.mxu3 %v15308_v46  ;;  %v15189_v46 = vld [vmem:[#allocation8 + $0x1430] sm:$0xf0] }
 0x319   :  { %v15312_v22 = vor.u32 %v17089_v13, %v15309_v15  ;;  %v15509_v5 = vld [vmem:[#allocation8 + $0x16b0] sm:$0xf0]  ;;  %v13555_v13 = vld [vmem:[#allocation8 + $0x740] sm:$0xf]  ;;  %v16655_v15 = vld [vmem:[#allocation8 + $0x764] sm:$0xf0] }
 0x31a   :  { %9027 = vmatpush.bf16.msra.mxu0 %v14392_v23  ;;  %v8775_v21 = vpop.f32.mrf.mxu2  ;;  %v8749_v23 = vpop.f32.mrf.mxu1 }
 0x31b   :  { %9038 = vmatpush.bf16.msra.mxu1 %v14792_v30  ;;  %9019 = vmatmul.bf16.vlgmr.msra.gmra.mxu2 %v17721_v6  ;;  %v15227_v30 = vld [vmem:[#allocation8 + $0x1458] sm:$0xf]  ;;  %v16709_v21 = vld [vmem:[#allocation8 + $0x91c] sm:$0xf] }
 0x31c   :  { %9063 = vmatpush.bf16.msrb.mxu2 %v15472_v56  ;;  %v16819_v56 = vld [vmem:[#allocation8 + $0xc8c] sm:$0xf]  ;;  %8938 = vmatpush.bf16.msra.mxu3 %v15268_v39  ;;  %v15228_v26 = vor.u32 %v17074_v60, %v15227_v30  ;;  %v16485_v39 = vld [vmem:[#allocation8 + $0x214] sm:$0xf0]  ;;  %v13556_v60 = vor.u32 %v16655_v15, %v13555_v13  ;;  %v16455_v13 = vld [vmem:[#allocation8 + $0x124] sm:$0xf0] }
 0x31d   :  { %v14232_v55 = vor.u32 %v16819_v56, %v14229_v18  ;;  %v12875_v56 = vld [vmem:[#allocation8 + $0x1f0] sm:$0xf]  ;;  %v16645_v23 = vld [vmem:[#allocation8 + $0x714] sm:$0xf0] }
 0x31e   :  { %9028 = vmatpush.bf16.msra.mxu0 %v14352_v34  ;;  %v15229_v34 = vld [vmem:[#allocation8 + $0x1480] sm:$0xf0]  ;;  %v13516_v49 = vor.u32 %v16645_v23, %v13515_v35  ;;  %v16669_v23 = vld [vmem:[#allocation8 + $0x7dc] sm:$0xf] }
 0x31f   :  { %9039 = vmatpush.bf16.msra.mxu1 %v14752_v27  ;;  %v15272_v27 = vor.u32 %v17079_v7, %v15269_v14  ;;  %v15232_v0 = vor.u32 %v17069_v31, %v15229_v34  ;;  %v12876_v14 = vor.u32 %v16485_v39, %v12875_v56  ;;  %v13749_v31 = vld [vmem:[#allocation8 + $0x8f0] sm:$0xf0]  ;;  %v13475_v34 = vld [vmem:[#allocation8 + $0x6a0] sm:$0xf] }
 0x320   :  { %9064 = vmatpush.bf16.msrb.mxu2 %v15432_v25  ;;  %v16909_v25 = vld [vmem:[#allocation8 + $0xf5c] sm:$0xf]  ;;  %8939 = vmatpush.bf16.msra.mxu3 %v15228_v26  ;;  %v16475_v26 = vld [vmem:[#allocation8 + $0x1c4] sm:$0xf0]  ;;  %v13669_v39 = vld [vmem:[#allocation8 + $0x850] sm:$0xf0] }
 0x321   :  { %v14592_v36 = vor.u32 %v16909_v25, %v14589_v33  ;;  %v16725_v33 = vld [vmem:[#allocation8 + $0x994] sm:$0xf0] }
 0x322   :  { %9029 = vmatpush.bf16.msra.mxu0 %v14312_v59  ;;  %v17059_v59 = vld [vmem:[#allocation8 + $0x140c] sm:$0xf] }
 0x323   :  { %9040 = vmatpush.bf16.msra.mxu1 %v14712_v2  ;;  %v14549_v2 = vld [vmem:[#allocation8 + $0xf30] sm:$0xf0]  ;;  %v15192_v16 = vor.u32 %v17059_v59, %v15189_v46  ;;  %v16625_v59 = vld [vmem:[#allocation8 + $0x674] sm:$0xf0] }
 0x324   :  { %9065 = vmatpush.bf16.msrb.mxu2 %v15392_v44  ;;  %v15549_v44 = vld [vmem:[#allocation8 + $0x1700] sm:$0xf0]  ;;  %v14552_v1 = vor.u32 %v16899_v10, %v14549_v2  ;;  %8940 = vmatpush.bf16.msra.mxu3 %v15188_v32  ;;  %v16465_v10 = vld [vmem:[#allocation8 + $0x174] sm:$0xf0]  ;;  %v13752_v32 = vor.u32 %v16699_v41, %v13749_v31  ;;  %v13675_v41 = vld [vmem:[#allocation8 + $0x830] sm:$0xf] }
 0x325   :  { %v15552_v52 = vor.u32 %v17149_v62, %v15549_v44  ;;  %v16635_v62 = vld [vmem:[#allocation8 + $0x6c4] sm:$0xf0]  ;;  %v13795_v44 = vld [vmem:[#allocation8 + $0x920] sm:$0xf]  ;;  %v12796_v46 = vor.u32 %v16465_v10, %v12795_v42  ;;  %v13589_v42 = vld [vmem:[#allocation8 + $0x7b0] sm:$0xf0] }
 0x326   :  { %9030 = vmatpush.bf16.msra.mxu0 %v14272_v17  ;;  %v16735_v17 = vld [vmem:[#allocation8 + $0x9e4] sm:$0xf0]  ;;  %v13796_v48 = vor.u32 %v16715_v38, %v13795_v44  ;;  %v16659_v38 = vld [vmem:[#allocation8 + $0x78c] sm:$0xf] }
 0x327   :  { %9041 = vmatpush.bf16.msra.mxu1 %v14672_v61  ;;  %v13829_v61 = vld [vmem:[#allocation8 + $0x990] sm:$0xf0]  ;;  %v17811_v18 = vpop.f32.mrf.mxu1  ;;  %8941 = vmatmul.bf16.vlgmr.msra.gmra.mxu3 %v17757_v20  ;;  %v13876_v7 = vor.u32 %v16735_v17, %v13875_v45  ;;  %v16679_v17 = vld [vmem:[#allocation8 + $0x82c] sm:$0xf]  ;;  %v16435_v31 = vld [vmem:[#allocation8 + $0x84] sm:$0xf0] }
 0x328   :  { %9066 = vmatpush.bf16.msrb.mxu2 %v15352_v63  ;;  %v17139_v63 = vld [vmem:[#allocation8 + $0x168c] sm:$0xf]  ;;  %8998 = vmatpush.bf16.msrb.mxu3 %v13872_v58  ;;  %v13832_v30 = vor.u32 %v16719_v8, %v13829_v61  ;;  %v13435_v58 = vld [vmem:[#allocation8 + $0x650] sm:$0xf]  ;;  %v16705_v8 = vld [vmem:[#allocation8 + $0x8f4] sm:$0xf0]  ;;  %v17821_v15 = vpop.f32.mrf.mxu2 }
 0x32a   :  { %9031 = vmatpush.bf16.msra.mxu0 %v14232_v55  ;;  %v17814_v25 = vpop.f32.mrf.mxu0  ;;  %v12835_v55 = vld [vmem:[#allocation8 + $0x1a0] sm:$0xf] }
 0x32b   :  { %9042 = vmatpush.bf16.msra.mxu1 %v14632_v50  ;;  %v13789_v50 = vld [vmem:[#allocation8 + $0x940] sm:$0xf0] }
 0x32c   :  { %9067 = vmatpush.bf16.msrb.mxu2 %v15312_v22  ;;  %v15512_v22 = vor.u32 %v17139_v63, %v15509_v5  ;;  %8999 = vmatpush.bf16.msrb.mxu3 %v13832_v30  ;;  %v13755_v5 = vld [vmem:[#allocation8 + $0x8d0] sm:$0xf]  ;;  %v16615_v30 = vld [vmem:[#allocation8 + $0x624] sm:$0xf0] }
 0x32d   :  { %9032 = vmatmul.bf16.vlgmr.msra.gmra.mxu0 %v17723_v19  ;;  %v13756_v56 = vor.u32 %v16705_v8, %v13755_v5  ;;  %v14195_v5 = vld [vmem:[#allocation8 + $0xc40] sm:$0xf]  ;;  %v16815_v8 = vld [vmem:[#allocation8 + $0xc64] sm:$0xf0] }
 0x32e   :  { %9081 = vmatpush.bf16.msrb.mxu0 %v15592_v28  ;;  %v13836_v28 = vor.u32 %v16725_v33, %v13835_v54  ;;  %v13629_v33 = vld [vmem:[#allocation8 + $0x800] sm:$0xf0] }
 0x32f   :  { %9043 = vmatpush.bf16.msra.mxu1 %v14592_v36  ;;  %v12836_v36 = vor.u32 %v16475_v26, %v12835_v55  ;;  %v8801_v2 = vpop.f32.mrf.mxu1  ;;  %v13355_v55 = vld [vmem:[#allocation8 + $0x5b0] sm:$0xf]  ;;  %v16605_v26 = vld [vmem:[#allocation8 + $0x5d4] sm:$0xf0] }
 0x330   :  { %9068 = vmatpush.bf16.msrb.mxu2 %v15272_v27  ;;  %v13792_v27 = vor.u32 %v16709_v21, %v13789_v50  ;;  %v16695_v21 = vld [vmem:[#allocation8 + $0x8a4] sm:$0xf0]  ;;  %v12715_v50 = vld [vmem:[#allocation8 + $0xb0] sm:$0xf]  ;;  %v13356_v44 = vor.u32 %v16605_v26, %v13355_v55  ;;  %v13315_v2 = vld [vmem:[#allocation8 + $0x560] sm:$0xf] }
 0x331   :  { %v16805_v55 = vld [vmem:[#allocation8 + $0xc14] sm:$0xf0] }
 0x332   :  { %9082 = vmatpush.bf16.msrb.mxu0 %v15552_v52  ;;  %9000 = vmatpush.bf16.msrb.mxu3 %v13792_v27  ;;  %v13709_v52 = vld [vmem:[#allocation8 + $0x8a0] sm:$0xf0]  ;;  %v8814_v63 = vpop.f32.mrf.mxu0 }
 0x333   :  { %9044 = vmatpush.bf16.msra.mxu1 %v14552_v1  ;;  %v8695_v1 = vpop.f32.mrf.mxu3  ;;  %v13712_v45 = vor.u32 %v16689_v40, %v13709_v52  ;;  %v17049_v52 = vld [vmem:[#allocation8 + $0x13bc] sm:$0xf]  ;;  %v13592_v63 = vor.u32 %v16659_v38, %v13589_v42  ;;  %v15115_v38 = vld [vmem:[#allocation8 + $0x1370] sm:$0xf] }
 0x334   :  { %9069 = vmatpush.bf16.msrb.mxu2 %v15232_v0  ;;  %v13476_v0 = vor.u32 %v16635_v62, %v13475_v34  ;;  %v17819_v61 = vadd.f32 %v8695_v1, %v17798_v24  ;;  %v8827_v34 = vpop.f32.mrf.mxu2  ;;  %v13632_v62 = vor.u32 %v16669_v23, %v13629_v33  ;;  %v14155_v33 = vld [vmem:[#allocation8 + $0xbf0] sm:$0xf] }
 0x335   :  { %v14156_v34 = vor.u32 %v16805_v55, %v14155_v33  ;;  %v16999_v55 = vld [vmem:[#allocation8 + $0x122c] sm:$0xf] }
 0x336   :  { %9045 = vmatmul.bf16.vlgmr.msra.gmra.mxu1 %v17728_v51  ;;  %9083 = vmatpush.bf16.msrb.mxu0 %v15512_v22  ;;  %v13395_v22 = vld [vmem:[#allocation8 + $0x600] sm:$0xf] }
 0x337   :  { %9089 = vmatpush.bf16.msrb.mxu1 %v12916_v12  ;;  %v12755_v12 = vld [vmem:[#allocation8 + $0x100] sm:$0xf]  ;;  %9001 = vmatpush.bf16.msrb.mxu3 %v13752_v32  ;;  %v13396_v35 = vor.u32 %v16615_v30, %v13395_v22  ;;  %v16595_v32 = vld [vmem:[#allocation8 + $0x584] sm:$0xf0]  ;;  %v16665_v22 = vld [vmem:[#allocation8 + $0x7b4] sm:$0xf0] }
 0x338   :  { %9070 = vmatpush.bf16.msrb.mxu2 %v15192_v16  ;;  %v13436_v16 = vor.u32 %v16625_v59, %v13435_v58  ;;  %v12756_v24 = vor.u32 %v16455_v13, %v12755_v12  ;;  %v15149_v58 = vld [vmem:[#allocation8 + $0x13e0] sm:$0xf0]  ;;  %v12635_v59 = vld [vmem:[#allocation8 + $0x10] sm:$0xf]  ;;  %v13316_v1 = vor.u32 %v16595_v32, %v13315_v2  ;;  %v17039_v30 = vld [vmem:[#allocation8 + $0x136c] sm:$0xf] }
 0x339   :  { %v15152_v13 = vor.u32 %v17049_v52, %v15149_v58  ;;  %v14115_v2 = vld [vmem:[#allocation8 + $0xba0] sm:$0xf]  ;;  %v16795_v32 = vld [vmem:[#allocation8 + $0xbc4] sm:$0xf0]  ;;  %v17019_v58 = vld [vmem:[#allocation8 + $0x12cc] sm:$0xf] }
 0x33a   :  { %9115 = vmatpush.bf16.msra.mxu0 %v13556_v60  ;;  %v13715_v60 = vld [vmem:[#allocation8 + $0x880] sm:$0xf] }
 0x33b   :  { %9090 = vmatpush.bf16.msrb.mxu1 %v12876_v14  ;;  %9071 = vmatmul.bf16.vlgmr.msrb.gmra.mxu2 %v17757_v20  ;;  %v13672_v14 = vor.u32 %v16679_v17, %v13669_v39  ;;  %v13716_v54 = vor.u32 %v16695_v21, %v13715_v60  ;;  %v13595_v17 = vld [vmem:[#allocation8 + $0x790] sm:$0xf]  ;;  %v14196_v60 = vor.u32 %v16815_v8, %v14195_v5  ;;  %v15075_v5 = vld [vmem:[#allocation8 + $0x1320] sm:$0xf] }
 0x33c   :  { %9128 = vmatpush.bf16.msra.mxu2 %v13876_v7  ;;  %v16445_v7 = vld [vmem:[#allocation8 + $0xd4] sm:$0xf0]  ;;  %9002 = vmatpush.bf16.msrb.mxu3 %v13712_v45  ;;  %v13275_v45 = vld [vmem:[#allocation8 + $0x510] sm:$0xf] }
 0x33d   :  { %15620 = vmatmul.msk.bf16.vlgmr.msrb.gmra.mxu0 %vm8565_vm1, %v17767_v29  ;;  %v12716_v27 = vor.u32 %v16445_v7, %v12715_v50  ;;  %v14835_v50 = vld [vmem:[#allocation8 + $0x1140] sm:$0xf]  ;;  %v16975_v7 = vld [vmem:[#allocation8 + $0x1164] sm:$0xf0] }
 0x33e   :  { %9116 = vmatpush.bf16.msra.mxu0 %v13516_v49  ;;  %v8697_v49 = vpop.f32.mrf.mxu3 }
 0x33f   :  { %9091 = vmatpush.bf16.msrb.mxu1 %v12836_v36  ;;  %v12675_v36 = vld [vmem:[#allocation8 + $0x60] sm:$0xf]  ;;  %v13596_v49 = vor.u32 %v16665_v22, %v13595_v17 }
 0x340   :  { %9129 = vmatpush.bf16.msra.mxu2 %v13836_v28  ;;  %v16685_v28 = vld [vmem:[#allocation8 + $0x854] sm:$0xf0]  ;;  %9003 = vmatpush.bf16.msrb.mxu3 %v13672_v14  ;;  %v12676_v40 = vor.u32 %v16435_v31, %v12675_v36  ;;  %v15155_v14 = vld [vmem:[#allocation8 + $0x13c0] sm:$0xf]  ;;  %v15069_v36 = vld [vmem:[#allocation8 + $0x1340] sm:$0xf0] }
 0x341   :  { %v13676_v10 = vor.u32 %v16685_v28, %v13675_v41  ;;  %v14836_v41 = vor.u32 %v16975_v7, %v14835_v50  ;;  %v17029_v28 = vld [vmem:[#allocation8 + $0x131c] sm:$0xf]  ;;  %v17025_v7 = vld [vmem:[#allocation8 + $0x12f4] sm:$0xf0] }
 0x342   :  { %9117 = vmatpush.bf16.msra.mxu0 %v13476_v0  ;;  %v13635_v0 = vld [vmem:[#allocation8 + $0x7e0] sm:$0xf] }
 0x343   :  { %9092 = vmatpush.bf16.msrb.mxu1 %v12796_v46  ;;  %v16425_v46 = vld [vmem:[#allocation8 + $0x34] sm:$0xf0] }
 0x344   :  { %9130 = vmatpush.bf16.msra.mxu2 %v13796_v48  ;;  %v16675_v48 = vld [vmem:[#allocation8 + $0x804] sm:$0xf0]  ;;  %9004 = vmatpush.bf16.msrb.mxu3 %v13632_v62  ;;  %v14795_v62 = vld [vmem:[#allocation8 + $0x10f0] sm:$0xf] }
 0x345   :  { %v13636_v12 = vor.u32 %v16675_v48, %v13635_v0 }
 0x346   :  { %9118 = vmatpush.bf16.msra.mxu0 %v13436_v16  ;;  %v16585_v16 = vld [vmem:[#allocation8 + $0x534] sm:$0xf0]  ;;  %v8734_v39 = vpop.f32.mrf.mxu3 }
 0x347   :  { %9093 = vmatpush.bf16.msrb.mxu1 %v12756_v24  ;;  %v15109_v24 = vld [vmem:[#allocation8 + $0x1390] sm:$0xf0]  ;;  %v8735_v21 = vadd.f32 %v8734_v39, %v17795_v37  ;;  %v13276_v23 = vor.u32 %v16585_v16, %v13275_v45  ;;  %v14989_v39 = vld [vmem:[#allocation8 + $0x12a0] sm:$0xf0] }
 0x348   :  { %9131 = vmatpush.bf16.msra.mxu2 %v13756_v56  ;;  %v12636_v56 = vor.u32 %v16425_v46, %v12635_v59  ;;  %9005 = vmatpush.bf16.msrb.mxu3 %v13592_v63  ;;  %v15112_v37 = vor.u32 %v17039_v30, %v15109_v24  ;;  %v15029_v59 = vld [vmem:[#allocation8 + $0x12f0] sm:$0xf0]  ;;  %v14116_v46 = vor.u32 %v16795_v32, %v14115_v2  ;;  %v14755_v63 = vld [vmem:[#allocation8 + $0x10a0] sm:$0xf]  ;;  %v14715_v24 = vld [vmem:[#allocation8 + $0x1050] sm:$0xf] }
 0x349   :  { %v8748_v26 = vadd.f32 %v17808_v43, %v8735_v21  ;;  %v15032_v16 = vor.u32 %v17019_v58, %v15029_v59  ;;  %v15035_v21 = vld [vmem:[#allocation8 + $0x12d0] sm:$0xf]  ;;  %v16989_v32 = vld [vmem:[#allocation8 + $0x11dc] sm:$0xf]  ;;  %v16925_v59 = vld [vmem:[#allocation8 + $0xfd4] sm:$0xf0] }
 0x34a   :  { %9119 = vmatpush.bf16.msra.mxu0 %v13396_v35  ;;  %v17826_v35 = vpop.f32.mrf.mxu2  ;;  %v17833_v43 = vpop.f32.mrf.mxu0  ;;  %v14635_v58 = vld [vmem:[#allocation8 + $0xfb0] sm:$0xf] }
 0x34b   :  { %9094 = vmatpush.bf16.msrb.mxu1 %v12716_v27  ;;  %v17829_v27 = vpop.f32.mrf.mxu1  ;;  %9006 = vmatmul.bf16.vlgmr.msrb.gmra.mxu3 %v17706_v9  ;;  %v8761_v42 = vadd.f32 %v17803_v53, %v8748_v26  ;;  %v14949_v26 = vld [vmem:[#allocation8 + $0x1250] sm:$0xf0] }
 0x34c   :  { %9132 = vmatpush.bf16.msra.mxu2 %v13716_v54  ;;  %v17055_v54 = vld [vmem:[#allocation8 + $0x13e4] sm:$0xf0]  ;;  %9050 = vmatpush.bf16.msra.mxu3 %v15152_v13  ;;  %v16785_v13 = vld [vmem:[#allocation8 + $0xb74] sm:$0xf0] }
 0x34d   :  { %v15156_v31 = vor.u32 %v17055_v54, %v15155_v14  ;;  %v8774_v0 = vadd.f32 %v17806_v3, %v8761_v42  ;;  %v17035_v3 = vld [vmem:[#allocation8 + $0x1344] sm:$0xf0]  ;;  %v14035_v14 = vld [vmem:[#allocation8 + $0xb00] sm:$0xf] }
 0x34e   :  { %9120 = vmatpush.bf16.msra.mxu0 %v13356_v44  ;;  %v16965_v44 = vld [vmem:[#allocation8 + $0x1114] sm:$0xf0]  ;;  %v8736_v52 = vpop.f32.mrf.mxu3  ;;  %v15076_v22 = vor.u32 %v17035_v3, %v15075_v5  ;;  %v16755_v5 = vld [vmem:[#allocation8 + $0xa84] sm:$0xf0]  ;;  %v14636_v3 = vor.u32 %v16925_v59, %v14635_v58  ;;  %v13155_v58 = vld [vmem:[#allocation8 + $0x420] sm:$0xf] }
 0x34f   :  { %9095 = vmatpush.bf16.msrb.mxu1 %v12676_v40  ;;  %v15072_v40 = vor.u32 %v17029_v28, %v15069_v36  ;;  %v14796_v48 = vor.u32 %v16965_v44, %v14795_v62  ;;  %v14675_v28 = vld [vmem:[#allocation8 + $0x1000] sm:$0xf]  ;;  %v16935_v36 = vld [vmem:[#allocation8 + $0x1024] sm:$0xf0]  ;;  %v13995_v44 = vld [vmem:[#allocation8 + $0xab0] sm:$0xf] }
 0x350   :  { %9133 = vmatpush.bf16.msra.mxu2 %v13676_v10  ;;  %v17045_v10 = vld [vmem:[#allocation8 + $0x1394] sm:$0xf0]  ;;  %9051 = vmatpush.bf16.msra.mxu3 %v15112_v37  ;;  %v17015_v62 = vld [vmem:[#allocation8 + $0x12a4] sm:$0xf0]  ;;  %v14676_v2 = vor.u32 %v16935_v36, %v14675_v28  ;;  %v13195_v28 = vld [vmem:[#allocation8 + $0x470] sm:$0xf] }
 0x351   :  { %v15116_v53 = vor.u32 %v17045_v10, %v15115_v38  ;;  %v16765_v38 = vld [vmem:[#allocation8 + $0xad4] sm:$0xf0]  ;;  %v14952_v10 = vor.u32 %v16999_v55, %v14949_v26  ;;  %v14875_v26 = vld [vmem:[#allocation8 + $0x1190] sm:$0xf]  ;;  %v16555_v59 = vld [vmem:[#allocation8 + $0x444] sm:$0xf0] }
 0x352   :  { %9121 = vmatpush.bf16.msra.mxu0 %v13316_v1  ;;  %v16955_v1 = vld [vmem:[#allocation8 + $0x10c4] sm:$0xf0]  ;;  %v8866_v8 = vpop.f32.mrf.mxu2  ;;  %v8879_v50 = vpop.f32.mrf.mxu0  ;;  %v13996_v52 = vor.u32 %v16765_v38, %v13995_v44  ;;  %v16905_v55 = vld [vmem:[#allocation8 + $0xf34] sm:$0xf0]  ;;  %v16570_v44 = vld [vmem:[#allocation8 + $0x4c4] sm:$0xf] }
 0x353   :  { %9096 = vmatpush.bf16.msrb.mxu1 %v12636_v56  ;;  %v8853_v45 = vpop.f32.mrf.mxu1  ;;  %v14756_v17 = vor.u32 %v16955_v1, %v14755_v63  ;;  %v17009_v56 = vld [vmem:[#allocation8 + $0x127c] sm:$0xf]  ;;  %v17005_v63 = vld [vmem:[#allocation8 + $0x1254] sm:$0xf0]  ;;  %v13955_v1 = vld [vmem:[#allocation8 + $0xa60] sm:$0xf] }
 0x354   :  { %9134 = vmatpush.bf16.msra.mxu2 %v13636_v12  ;;  %v14075_v12 = vld [vmem:[#allocation8 + $0xb50] sm:$0xf]  ;;  %9052 = vmatpush.bf16.msra.mxu3 %v15072_v40  ;;  %v14992_v54 = vor.u32 %v17009_v56, %v14989_v39  ;;  %v14909_v40 = vld [vmem:[#allocation8 + $0x1200] sm:$0xf0]  ;;  %v16915_v56 = vld [vmem:[#allocation8 + $0xf84] sm:$0xf0] }
 0x355   :  { %v14076_v30 = vor.u32 %v16785_v13, %v14075_v12  ;;  %v14912_v8 = vor.u32 %v16989_v32, %v14909_v40  ;;  %v16979_v12 = vld [vmem:[#allocation8 + $0x118c] sm:$0xf]  ;;  %v14869_v13 = vld [vmem:[#allocation8 + $0x11b0] sm:$0xf0]  ;;  %v14915_v39 = vld [vmem:[#allocation8 + $0x11e0] sm:$0xf] }
 0x356   :  { %9122 = vmatpush.bf16.msra.mxu0 %v13276_v23  ;;  %9097 = vmatmul.bf16.vlgmr.msrb.gmra.mxu1 %v17696_v47  ;;  %v16775_v23 = vld [vmem:[#allocation8 + $0xb24] sm:$0xf0]  ;;  %v16565_v36 = vld [vmem:[#allocation8 + $0x494] sm:$0xf0] }
 0x357   :  { %9141 = vmatpush.bf16.msra.mxu1 %v14196_v60  ;;  %v16945_v60 = vld [vmem:[#allocation8 + $0x1074] sm:$0xf0]  ;;  %v14036_v37 = vor.u32 %v16775_v23, %v14035_v14  ;;  %v17135_v14 = vld [vmem:[#allocation8 + $0x1664] sm:$0xf0] }
 0x358   :  { %9135 = vmatpush.bf16.msra.mxu2 %v13596_v49  ;;  %9053 = vmatpush.bf16.msra.mxu3 %v15032_v16  ;;  %v14716_v33 = vor.u32 %v16945_v60, %v14715_v24  ;;  %v15036_v49 = vor.u32 %v17025_v7, %v15035_v21  ;;  %v13956_v16 = vor.u32 %v16755_v5, %v13955_v1  ;;  %v16575_v24 = vld [vmem:[#allocation8 + $0x4e4] sm:$0xf0]  ;;  %v13915_v60 = vld [vmem:[#allocation8 + $0xa10] sm:$0xf]  ;;  %v15475_v7 = vld [vmem:[#allocation8 + $0x1640] sm:$0xf] }
 0x359   :  { %9123 = vmatmul.bf16.vlgmr.msra.gmra.mxu0 %v17702_v4  ;;  %v14872_v21 = vor.u32 %v16979_v12, %v14869_v13  ;;  %v16480_v1 = vld [vmem:[#allocation8 + $0x1f4] sm:$0xf]  ;;  %v12877_v5 = vld [vmem:[#allocation8 + $0x218] sm:$0xf0]  ;;  %v15395_v12 = vld [vmem:[#allocation8 + $0x15a0] sm:$0xf] }
 0x35a   :  { %9167 = vmatpush.bf16.msrb.mxu0 %v14836_v41  ;;  %v8786_v41 = vpop.f32.mrf.mxu3  ;;  %v17115_v13 = vld [vmem:[#allocation8 + $0x15c4] sm:$0xf0] }
 0x35b   :  { %9142 = vmatpush.bf16.msra.mxu1 %v14156_v34  ;;  %9136 = vmatmul.bf16.vlgmr.msra.gmra.mxu2 %v17706_v9  ;;  %v8787_v34 = vadd.f32 %v8786_v41, %v8774_v0  ;;  %v16985_v41 = vld [vmem:[#allocation8 + $0x11b4] sm:$0xf0] }
 0x35c   :  { %9180 = vmatpush.bf16.msrb.mxu2 %v15156_v31  ;;  %v14995_v31 = vld [vmem:[#allocation8 + $0x1280] sm:$0xf]  ;;  %9054 = vmatpush.bf16.msra.mxu3 %v14992_v54  ;;  %v14876_v40 = vor.u32 %v16985_v41, %v14875_v26  ;;  %v16540_v41 = vld [vmem:[#allocation8 + $0x3d4] sm:$0xf] }
 0x35d   :  { %v8800_v42 = vadd.f32 %v17811_v18, %v8787_v34  ;;  %v16490_v34 = vld [vmem:[#allocation8 + $0x244] sm:$0xf] }
 0x35e   :  { %9168 = vmatpush.bf16.msrb.mxu0 %v14796_v48  ;;  %v14996_v48 = vor.u32 %v17015_v62, %v14995_v31  ;;  %v15476_v31 = vor.u32 %v17135_v14, %v15475_v7  ;;  %v12917_v62 = vld [vmem:[#allocation8 + $0x268] sm:$0xf0] }
 0x35f   :  { %9143 = vmatpush.bf16.msra.mxu1 %v14116_v46  ;;  %v8813_v0 = vadd.f32 %v17814_v25, %v8800_v42  ;;  %v17841_v46 = vpop.f32.mrf.mxu2  ;;  %v14595_v25 = vld [vmem:[#allocation8 + $0xf60] sm:$0xf]  ;;  %v13237_v42 = vld [vmem:[#allocation8 + $0x4e8] sm:$0xf0] }
 0x360   :  { %9181 = vmatpush.bf16.msrb.mxu2 %v15116_v53  ;;  %v14955_v53 = vld [vmem:[#allocation8 + $0x1230] sm:$0xf]  ;;  %9055 = vmatpush.bf16.msra.mxu3 %v14952_v10  ;;  %v14596_v50 = vor.u32 %v16915_v56, %v14595_v25  ;;  %v16545_v25 = vld [vmem:[#allocation8 + $0x3f4] sm:$0xf0] }
 0x361   :  { %v17844_v18 = vadd.f32 %v17821_v15, %v8813_v0  ;;  %v14956_v45 = vor.u32 %v17005_v63, %v14955_v53  ;;  %v16745_v15 = vld [vmem:[#allocation8 + $0xa34] sm:$0xf0]  ;;  %v15435_v10 = vld [vmem:[#allocation8 + $0x15f0] sm:$0xf]  ;;  %v13240_v53 = vor.u32 %v16570_v44, %v13237_v42 }
 0x362   :  { %9169 = vmatpush.bf16.msrb.mxu0 %v14756_v17  ;;  %v8788_v17 = vpop.f32.mrf.mxu3 }
 0x363   :  { %9144 = vmatpush.bf16.msra.mxu1 %v14076_v30  ;;  %v13235_v30 = vld [vmem:[#allocation8 + $0x4c0] sm:$0xf]  ;;  %v13115_v17 = vld [vmem:[#allocation8 + $0x3d0] sm:$0xf] }
 0x364   :  { %9182 = vmatpush.bf16.msrb.mxu2 %v15076_v22  ;;  %v16995_v22 = vld [vmem:[#allocation8 + $0x1204] sm:$0xf0]  ;;  %9056 = vmatpush.bf16.msra.mxu3 %v14912_v8  ;;  %v13236_v54 = vor.u32 %v16575_v24, %v13235_v30  ;;  %v16560_v8 = vld [vmem:[#allocation8 + $0x474] sm:$0xf]  ;;  %v12837_v30 = vld [vmem:[#allocation8 + $0x1c8] sm:$0xf0]  ;;  %v13116_v7 = vor.u32 %v16545_v25, %v13115_v17 }
 0x365   :  { %v14916_v23 = vor.u32 %v16995_v22, %v14915_v39  ;;  %v15396_v39 = vor.u32 %v17115_v13, %v15395_v12  ;;  %v16470_v22 = vld [vmem:[#allocation8 + $0x1a4] sm:$0xf] }
 0x366   :  { %9170 = vmatpush.bf16.msrb.mxu0 %v14716_v33  ;;  %v14555_v33 = vld [vmem:[#allocation8 + $0xf10] sm:$0xf]  ;;  %v16550_v24 = vld [vmem:[#allocation8 + $0x424] sm:$0xf]  ;;  %v12840_v14 = vor.u32 %v16470_v22, %v12837_v30  ;;  %v12717_v22 = vld [vmem:[#allocation8 + $0xd8] sm:$0xf0] }
 0x367   :  { %9145 = vmatpush.bf16.msra.mxu1 %v14036_v37  ;;  %v13916_v37 = vor.u32 %v16745_v15, %v13915_v60  ;;  %v14556_v38 = vor.u32 %v16905_v55, %v14555_v33  ;;  %v17846_v32 = vpop.f32.mrf.mxu1  ;;  %v13157_v60 = vld [vmem:[#allocation8 + $0x448] sm:$0xf0]  ;;  %v15355_v15 = vld [vmem:[#allocation8 + $0x1550] sm:$0xf]  ;;  %v16460_v33 = vld [vmem:[#allocation8 + $0x154] sm:$0xf] }
 0x368   :  { %9183 = vmatpush.bf16.msrb.mxu2 %v15036_v49  ;;  %v8918_v49 = vpop.f32.mrf.mxu2  ;;  %9057 = vmatpush.bf16.msra.mxu3 %v14872_v21  ;;  %v17105_v21 = vld [vmem:[#allocation8 + $0x1574] sm:$0xf0]  ;;  %v13160_v55 = vor.u32 %v16550_v24, %v13157_v60  ;;  %v16520_v30 = vld [vmem:[#allocation8 + $0x334] sm:$0xf]  ;;  %v13037_v60 = vld [vmem:[#allocation8 + $0x358] sm:$0xf0] }
 0x369   :  { %v15356_v26 = vor.u32 %v17105_v21, %v15355_v15  ;;  %v17075_v15 = vld [vmem:[#allocation8 + $0x1484] sm:$0xf0] }
 0x36a   :  { %9171 = vmatpush.bf16.msrb.mxu0 %v14676_v2  ;;  %v17125_v2 = vld [vmem:[#allocation8 + $0x1614] sm:$0xf0]  ;;  %v17849_v63 = vpop.f32.mrf.mxu0  ;;  %v8838_v42 = vpop.f32.mrf.mxu3 }
 0x36b   :  { %9146 = vmatpush.bf16.msra.mxu1 %v13996_v52  ;;  %v12920_v52 = vor.u32 %v16490_v34, %v12917_v62  ;;  %9058 = vmatmul.bf16.vlgmr.msra.gmra.mxu3 %v17725_v11  ;;  %v15436_v0 = vor.u32 %v17125_v2, %v15435_v10  ;;  %v15315_v34 = vld [vmem:[#allocation8 + $0x1500] sm:$0xf]  ;;  %v17095_v62 = vld [vmem:[#allocation8 + $0x1524] sm:$0xf0]  ;;  %v13035_v10 = vld [vmem:[#allocation8 + $0x330] sm:$0xf] }
 0x36c   :  { %9184 = vmatpush.bf16.msrb.mxu2 %v14996_v48  ;;  %9102 = vmatpush.bf16.msrb.mxu3 %v13236_v54  ;;  %v13196_v48 = vor.u32 %v16565_v36, %v13195_v28  ;;  %v16535_v54 = vld [vmem:[#allocation8 + $0x3a4] sm:$0xf0]  ;;  %v17854_v28 = vld [vmem:[#allocation10] sm:$0xff]  ;;  %v16525_v2 = vld [vmem:[#allocation8 + $0x354] sm:$0xf0] }
 0x36d   :  { %v4797_v36 = vperm.slane %v17854_v28, 2  ;;  %v13036_v12 = vor.u32 %v16525_v2, %v13035_v10  ;;  %v13877_v10 = vld [vmem:[#allocation8 + $0x9e8] sm:$0xf0] }
 0x36e   :  { %9172 = vmatpush.bf16.msrb.mxu0 %v14636_v3  ;;  %v13197_v3 = vld [vmem:[#allocation8 + $0x498] sm:$0xf0] }
 0x36f   :  { %9147 = vmatpush.bf16.msra.mxu1 %v13956_v16  ;;  %v12880_v16 = vor.u32 %v16480_v1, %v12877_v5  ;;  %v13200_v56 = vor.u32 %v16560_v8, %v13197_v3  ;;  %v15275_v1 = vld [vmem:[#allocation8 + $0x14b0] sm:$0xf]  ;;  %v17085_v5 = vld [vmem:[#allocation8 + $0x14d4] sm:$0xf0] }
 0x370   :  { %9185 = vmatpush.bf16.msrb.mxu2 %v14956_v45  ;;  %9103 = vmatpush.bf16.msrb.mxu3 %v13196_v48  ;;  %v13156_v45 = vor.u32 %v16555_v59, %v13155_v58  ;;  %v8839_v48 = vadd.f32 %v8838_v42, %v4797_v36  ;;  %v16450_v58 = vld [vmem:[#allocation8 + $0x104] sm:$0xf]  ;;  %v12757_v59 = vld [vmem:[#allocation8 + $0x128] sm:$0xf0]  ;;  %v16895_v36 = vld [vmem:[#allocation8 + $0xee4] sm:$0xf0] }
 0x371   :  { %v12760_v13 = vor.u32 %v16450_v58, %v12757_v59  ;;  %v16730_v42 = vld [vmem:[#allocation8 + $0x9c4] sm:$0xf]  ;;  %v12637_v58 = vld [vmem:[#allocation8 + $0x38] sm:$0xf0]  ;;  %v16500_v59 = vld [vmem:[#allocation8 + $0x294] sm:$0xf] }
 0x372   :  { %9173 = vmatpush.bf16.msrb.mxu0 %v14596_v50  ;;  %v8905_v50 = vpop.f32.mrf.mxu1  ;;  %v8931_v49 = vpop.f32.mrf.mxu0  ;;  %v8852_v8 = vadd.f32 %v17829_v27, %v8839_v48  ;;  %v15235_v27 = vld [vmem:[#allocation8 + $0x1460] sm:$0xf] }
 0x373   :  { %9148 = vmatpush.bf16.msra.mxu1 %v13916_v37  ;;  %v12797_v37 = vld [vmem:[#allocation8 + $0x178] sm:$0xf0]  ;;  %v12677_v49 = vld [vmem:[#allocation8 + $0x88] sm:$0xf0] }
 0x374   :  { %9186 = vmatpush.bf16.msrb.mxu2 %v14916_v23  ;;  %9104 = vmatpush.bf16.msrb.mxu3 %v13156_v45  ;;  %v13075_v23 = vld [vmem:[#allocation8 + $0x380] sm:$0xf]  ;;  %v8865_v24 = vadd.f32 %v17826_v35, %v8852_v8  ;;  %v16510_v35 = vld [vmem:[#allocation8 + $0x2e4] sm:$0xf]  ;;  %v13880_v8 = vor.u32 %v16730_v42, %v13877_v10  ;;  %v13757_v42 = vld [vmem:[#allocation8 + $0x8f8] sm:$0xf0] }
 0x375   :  { %v13076_v44 = vor.u32 %v16535_v54, %v13075_v23  ;;  %v12995_v45 = vld [vmem:[#allocation8 + $0x2e0] sm:$0xf]  ;;  %v12955_v23 = vld [vmem:[#allocation8 + $0x290] sm:$0xf]  ;;  %v16505_v54 = vld [vmem:[#allocation8 + $0x2b4] sm:$0xf0] }
 0x376   :  { %9174 = vmatpush.bf16.msrb.mxu0 %v14556_v38  ;;  %9149 = vmatmul.bf16.vlgmr.msra.gmra.mxu1 %v17721_v6  ;;  %v12800_v38 = vor.u32 %v16460_v33, %v12797_v37  ;;  %v17862_v21 = vadd.f32 %v17833_v43, %v8865_v24  ;;  %v13040_v33 = vor.u32 %v16520_v30, %v13037_v60  ;;  %v12997_v37 = vld [vmem:[#allocation8 + $0x308] sm:$0xf0]  ;;  %v15195_v43 = vld [vmem:[#allocation8 + $0x1410] sm:$0xf]  ;;  %v14435_v60 = vld [vmem:[#allocation8 + $0xe20] sm:$0xf] }
 0x377   :  { %9193 = vmatpush.bf16.msrb.mxu1 %v15476_v31  ;;  %v13117_v31 = vld [vmem:[#allocation8 + $0x3f8] sm:$0xf0]  ;;  %v13000_v2 = vor.u32 %v16510_v35, %v12997_v37  ;;  %v14395_v37 = vld [vmem:[#allocation8 + $0xdd0] sm:$0xf] }
 0x378   :  { %9187 = vmatpush.bf16.msrb.mxu2 %v14876_v40  ;;  %9105 = vmatpush.bf16.msrb.mxu3 %v13116_v7  ;;  %v13120_v40 = vor.u32 %v16540_v41, %v13117_v31  ;;  %v14515_v41 = vld [vmem:[#allocation8 + $0xec0] sm:$0xf] }
 0x379   :  { %9175 = vmatmul.bf16.vlgmr.msrb.gmra.mxu0 %v17728_v51  ;;  %v14516_v48 = vor.u32 %v16895_v36, %v14515_v41  ;;  %v16865_v41 = vld [vmem:[#allocation8 + $0xdf4] sm:$0xf0] }
 0x37a   :  { %9219 = vmatpush.bf16.msra.mxu0 %v12920_v52  ;;  %v15316_v52 = vor.u32 %v17095_v62, %v15315_v34  ;;  %v17858_v3 = vpop.f32.mrf.mxu1  ;;  %v17065_v34 = vld [vmem:[#allocation8 + $0x1434] sm:$0xf0]  ;;  %v4798_v62 = vperm.slane %v17854_v28, 3  ;;  %v16810_v28 = vld [vmem:[#allocation8 + $0xc44] sm:$0xf] }
 0x37b   :  { %9194 = vmatpush.bf16.msrb.mxu1 %v15436_v0  ;;  %9188 = vmatmul.bf16.vlgmr.msrb.gmra.mxu2 %v17725_v11  ;;  %v13077_v0 = vld [vmem:[#allocation8 + $0x3a8] sm:$0xf0] }
 0x37c   :  { %9232 = vmatpush.bf16.msra.mxu2 %v13240_v53  ;;  %v16530_v53 = vld [vmem:[#allocation8 + $0x384] sm:$0xf]  ;;  %9106 = vmatpush.bf16.msrb.mxu3 %v13076_v44  ;;  %v12956_v44 = vor.u32 %v16505_v54, %v12955_v23  ;;  %v14157_v23 = vld [vmem:[#allocation8 + $0xc18] sm:$0xf0]  ;;  %v16880_v54 = vld [vmem:[#allocation8 + $0xe74] sm:$0xf] }
 0x37d   :  { %v13080_v17 = vor.u32 %v16530_v53, %v13077_v0  ;;  %v15196_v53 = vor.u32 %v17065_v34, %v15195_v43  ;;  %v12957_v0 = vld [vmem:[#allocation8 + $0x2b8] sm:$0xf0]  ;;  %v16790_v43 = vld [vmem:[#allocation8 + $0xba4] sm:$0xf]  ;;  %v14117_v34 = vld [vmem:[#allocation8 + $0xbc8] sm:$0xf0] }
 0x37e   :  { %9220 = vmatpush.bf16.msra.mxu0 %v12880_v16  ;;  %v16515_v16 = vld [vmem:[#allocation8 + $0x304] sm:$0xf0]  ;;  %v8968_v25 = vpop.f32.mrf.mxu2 }
 0x37f   :  { %9195 = vmatpush.bf16.msrb.mxu1 %v15396_v39  ;;  %v16440_v39 = vld [vmem:[#allocation8 + $0xb4] sm:$0xf]  ;;  %v12996_v50 = vor.u32 %v16515_v16, %v12995_v45  ;;  %v14517_v16 = vld [vmem:[#allocation8 + $0xee8] sm:$0xf0] }
 0x380   :  { %9233 = vmatpush.bf16.msra.mxu2 %v13200_v56  ;;  %v15276_v56 = vor.u32 %v17085_v5, %v15275_v1  ;;  %9107 = vmatpush.bf16.msrb.mxu3 %v13036_v12  ;;  %v12720_v7 = vor.u32 %v16440_v39, %v12717_v22  ;;  %v14475_v1 = vld [vmem:[#allocation8 + $0xe70] sm:$0xf]  ;;  %v16885_v5 = vld [vmem:[#allocation8 + $0xe94] sm:$0xf0]  ;;  %v14197_v12 = vld [vmem:[#allocation8 + $0xc68] sm:$0xf0]  ;;  %v12960_v39 = vor.u32 %v16500_v59, %v12957_v0 }
 0x381   :  { %v8969_v22 = vadd.f32 %v8968_v25, %v4798_v62  ;;  %v14476_v30 = vor.u32 %v16885_v5, %v14475_v1  ;;  %v14200_v24 = vor.u32 %v16810_v28, %v14197_v12  ;;  %v16870_v62 = vld [vmem:[#allocation8 + $0xe24] sm:$0xf]  ;;  %v16780_v1 = vld [vmem:[#allocation8 + $0xb54] sm:$0xf]  ;;  %v14077_v5 = vld [vmem:[#allocation8 + $0xb78] sm:$0xf0] }
 0x382   :  { %9221 = vmatpush.bf16.msra.mxu0 %v12840_v14  ;;  %v8840_v14 = vpop.f32.mrf.mxu3  ;;  %v8957_v31 = vpop.f32.mrf.mxu1  ;;  %v14397_v28 = vld [vmem:[#allocation8 + $0xdf8] sm:$0xf0]  ;;  %v16690_v12 = vld [vmem:[#allocation8 + $0x884] sm:$0xf] }
 0x383   :  { %9196 = vmatpush.bf16.msrb.mxu1 %v15356_v26  ;;  %v16430_v26 = vld [vmem:[#allocation8 + $0x64] sm:$0xf]  ;;  %v16800_v14 = vld [vmem:[#allocation8 + $0xbf4] sm:$0xf] }
 0x384   :  { %9234 = vmatpush.bf16.msra.mxu2 %v13160_v55  ;;  %v15236_v55 = vor.u32 %v17075_v15, %v15235_v27  ;;  %9108 = vmatpush.bf16.msrb.mxu3 %v12996_v50  ;;  %v16875_v27 = vld [vmem:[#allocation8 + $0xe44] sm:$0xf0]  ;;  %v14160_v35 = vor.u32 %v16800_v14, %v14157_v23  ;;  %v13677_v14 = vld [vmem:[#allocation8 + $0x858] sm:$0xf0] }
 0x385   :  { %v14436_v25 = vor.u32 %v16875_v27, %v14435_v60  ;;  %v16770_v60 = vld [vmem:[#allocation8 + $0xb04] sm:$0xf]  ;;  %v14037_v27 = vld [vmem:[#allocation8 + $0xb28] sm:$0xf0] }
 0x386   :  { %9222 = vmatpush.bf16.msra.mxu0 %v12800_v38  ;;  %v12680_v38 = vor.u32 %v16430_v26, %v12677_v49  ;;  %v16710_v26 = vld [vmem:[#allocation8 + $0x924] sm:$0xf]  ;;  %v13797_v49 = vld [vmem:[#allocation8 + $0x948] sm:$0xf0] }
 0x387   :  { %9197 = vmatpush.bf16.msrb.mxu1 %v15316_v52  ;;  %v16420_v52 = vld [vmem:[#allocation8 + $0x14] sm:$0xf]  ;;  %v13800_v31 = vor.u32 %v16710_v26, %v13797_v49  ;;  %v14275_v49 = vld [vmem:[#allocation8 + $0xce0] sm:$0xf] }
 0x388   :  { %9235 = vmatpush.bf16.msra.mxu2 %v13120_v40  ;;  %v8970_v40 = vpop.f32.mrf.mxu2  ;;  %9109 = vmatpush.bf16.msrb.mxu3 %v12956_v44  ;;  %v12640_v45 = vor.u32 %v16420_v52, %v12637_v58  ;;  %v14437_v44 = vld [vmem:[#allocation8 + $0xe48] sm:$0xf0]  ;;  %v16855_v52 = vld [vmem:[#allocation8 + $0xda4] sm:$0xf0] }
 0x389   :  { %v14120_v40 = vor.u32 %v16790_v43, %v14117_v34  ;;  %v14440_v59 = vor.u32 %v16870_v62, %v14437_v44  ;;  %v14317_v43 = vld [vmem:[#allocation8 + $0xd58] sm:$0xf0]  ;;  %v13637_v34 = vld [vmem:[#allocation8 + $0x808] sm:$0xf0] }
 0x38a   :  { %9223 = vmatpush.bf16.msra.mxu0 %v12760_v13  ;;  %v16890_v13 = vld [vmem:[#allocation8 + $0xec4] sm:$0xf] }
 0x38b   :  { %9198 = vmatpush.bf16.msrb.mxu1 %v15276_v56  ;;  %v13837_v56 = vld [vmem:[#allocation8 + $0x998] sm:$0xf0]  ;;  %9110 = vmatmul.bf16.vlgmr.msrb.gmra.mxu3 %v17700_v57  ;;  %v14520_v15 = vor.u32 %v16890_v13, %v14517_v16  ;;  %v13717_v13 = vld [vmem:[#allocation8 + $0x8a8] sm:$0xf0]  ;;  %v14080_v16 = vor.u32 %v16780_v1, %v14077_v5  ;;  %v17165_v1 = vld [vmem:[#allocation8 + $0x1754] sm:$0xf0] }
 0x38c   :  { %9236 = vmatpush.bf16.msra.mxu2 %v13080_v17  ;;  %v16720_v17 = vld [vmem:[#allocation8 + $0x974] sm:$0xf]  ;;  %9154 = vmatpush.bf16.msra.mxu3 %v14516_v48  ;;  %v14355_v48 = vld [vmem:[#allocation8 + $0xd80] sm:$0xf] }
 0x38d   :  { %v13840_v50 = vor.u32 %v16720_v17, %v13837_v56  ;;  %v8890_v17 = vpop.f32.mrf.mxu3  ;;  %v14315_v56 = vld [vmem:[#allocation8 + $0xd30] sm:$0xf]  ;;  %v16660_v5 = vld [vmem:[#allocation8 + $0x794] sm:$0xf] }
 0x38e   :  { %9224 = vmatpush.bf16.msra.mxu0 %v12720_v7  ;;  %v8981_v7 = vpop.f32.mrf.mxu0 }
 0x38f   :  { %9199 = vmatpush.bf16.msrb.mxu1 %v15236_v55  ;;  %v14477_v55 = vld [vmem:[#allocation8 + $0xe98] sm:$0xf0] }
 0x390   :  { %9237 = vmatpush.bf16.msra.mxu2 %v13040_v33  ;;  %v8982_v33 = vadd.f32 %v8981_v7, %v8969_v22  ;;  %9155 = vmatpush.bf16.msra.mxu3 %v14476_v30  ;;  %v14480_v36 = vor.u32 %v16880_v54, %v14477_v55  ;;  %v8891_v30 = vadd.f32 %v8890_v17, %v17862_v21  ;;  %v16680_v7 = vld [vmem:[#allocation8 + $0x834] sm:$0xf] }
 0x391   :  { %v14040_v55 = vor.u32 %v16770_v60, %v14037_v27  ;;  %v15555_v60 = vld [vmem:[#allocation8 + $0x16e0] sm:$0xf]  ;;  %v17155_v27 = vld [vmem:[#allocation8 + $0x1704] sm:$0xf0] }
 0x392   :  { %9225 = vmatpush.bf16.msra.mxu0 %v12680_v38  ;;  %v16700_v38 = vld [vmem:[#allocation8 + $0x8d4] sm:$0xf]  ;;  %v8904_v23 = vadd.f32 %v17846_v32, %v8891_v30  ;;  %v16670_v32 = vld [vmem:[#allocation8 + $0x7e4] sm:$0xf] }
 0x393   :  { %9200 = vmatpush.bf16.msrb.mxu1 %v15196_v53  ;;  %v8994_v10 = vpop.f32.mrf.mxu1  ;;  %v13760_v53 = vor.u32 %v16700_v38, %v13757_v42 }
 0x394   :  { %9238 = vmatpush.bf16.msra.mxu2 %v13000_v2  ;;  %9156 = vmatpush.bf16.msra.mxu3 %v14436_v25  ;;  %v14396_v2 = vor.u32 %v16865_v41, %v14395_v37  ;;  %v17869_v58 = vadd.f32 %v8994_v10, %v8982_v33  ;;  %v16835_v25 = vld [vmem:[#allocation8 + $0xd04] sm:$0xf0]  ;;  %v16760_v37 = vld [vmem:[#allocation8 + $0xab4] sm:$0xf]  ;;  %v13997_v41 = vld [vmem:[#allocation8 + $0xad8] sm:$0xf0] }
 0x395   :  { %v14276_v44 = vor.u32 %v16835_v25, %v14275_v49  ;;  %v14000_v38 = vor.u32 %v16760_v37, %v13997_v41  ;;  %v8892_v42 = vpop.f32.mrf.mxu3  ;;  %v14235_v10 = vld [vmem:[#allocation8 + $0xc90] sm:$0xf]  ;;  %v15556_v25 = vor.u32 %v17155_v27, %v15555_v60  ;;  %v17145_v37 = vld [vmem:[#allocation8 + $0x16b4] sm:$0xf0] }
 0x396   :  { %9226 = vmatpush.bf16.msra.mxu0 %v12640_v45  ;;  %9201 = vmatmul.bf16.vlgmr.msrb.gmra.mxu1 %v17757_v20  ;;  %v8983_v0 = vpop.f32.mrf.mxu0  ;;  %v14356_v45 = vor.u32 %v16855_v52, %v14355_v48  ;;  %v13640_v48 = vor.u32 %v16670_v32, %v13637_v34  ;;  %v16750_v52 = vld [vmem:[#allocation8 + $0xa64] sm:$0xf]  ;;  %v15437_v32 = vld [vmem:[#allocation8 + $0x1618] sm:$0xf0]  ;;  %v13557_v42 = vld [vmem:[#allocation8 + $0x768] sm:$0xf0] }
 0x397   :  { %9258 = vmatpush.bf16.msra.mxu1 %v13880_v8  ;;  %v16860_v8 = vld [vmem:[#allocation8 + $0xdd4] sm:$0xf]  ;;  %v15595_v0 = vld [vmem:[#allocation8 + $0x1730] sm:$0xf]  ;;  %v17150_v34 = vld [vmem:[#allocation8 + $0x16e4] sm:$0xf] }
 0x398   :  { %9239 = vmatpush.bf16.msra.mxu2 %v12960_v39  ;;  %9157 = vmatpush.bf16.msra.mxu3 %v14396_v2  ;;  %v16845_v39 = vld [vmem:[#allocation8 + $0xd54] sm:$0xf0]  ;;  %v14400_v22 = vor.u32 %v16860_v8, %v14397_v28  ;;  %v15596_v17 = vor.u32 %v17165_v1, %v15595_v0  ;;  %v17140_v0 = vld [vmem:[#allocation8 + $0x1694] sm:$0xf]  ;;  %v15517_v1 = vld [vmem:[#allocation8 + $0x16b8] sm:$0xf0] }
 0x399   :  { %9227 = vmatmul.bf16.vlgmr.msra.gmra.mxu0 %v17696_v47  ;;  %v14316_v33 = vor.u32 %v16845_v39, %v14315_v56  ;;  %v16825_v2 = vld [vmem:[#allocation8 + $0xcb4] sm:$0xf0]  ;;  %v16740_v56 = vld [vmem:[#allocation8 + $0xa14] sm:$0xf]  ;;  %v13917_v39 = vld [vmem:[#allocation8 + $0xa38] sm:$0xf0] }
 0x39a   :  { %9271 = vmatpush.bf16.msrb.mxu0 %v14200_v24  ;;  %v13720_v24 = vor.u32 %v16690_v12, %v13717_v13  ;;  %v14236_v8 = vor.u32 %v16825_v2, %v14235_v10  ;;  %v17050_v13 = vld [vmem:[#allocation8 + $0x13c4] sm:$0xf]  ;;  %v15077_v2 = vld [vmem:[#allocation8 + $0x1348] sm:$0xf0] }
 0x39b   :  { %9259 = vmatpush.bf16.msra.mxu1 %v13840_v50  ;;  %9240 = vmatmul.bf16.vlgmr.msra.gmra.mxu2 %v17700_v57  ;;  %v14357_v50 = vld [vmem:[#allocation8 + $0xda8] sm:$0xf0]  ;;  %v8996_v54 = vpop.f32.mrf.mxu1  ;;  %v17030_v10 = vld [vmem:[#allocation8 + $0x1324] sm:$0xf] }
 0x39c   :  { %9284 = vmatpush.bf16.msrb.mxu2 %v14520_v15  ;;  %v16850_v15 = vld [vmem:[#allocation8 + $0xd84] sm:$0xf]  ;;  %9158 = vmatpush.bf16.msra.mxu3 %v14356_v45  ;;  %v15157_v45 = vld [vmem:[#allocation8 + $0x13e8] sm:$0xf0]  ;;  %v15597_v54 = vld [vmem:[#allocation8 + $0x1758] sm:$0xf0] }
 0x39d   :  { %v14360_v21 = vor.u32 %v16850_v15, %v14357_v50  ;;  %v15160_v15 = vor.u32 %v17050_v13, %v15157_v45  ;;  %v17130_v50 = vld [vmem:[#allocation8 + $0x1644] sm:$0xf]  ;;  %v13563_v13 = vld [vmem:[#allocation8 + $0x748] sm:$0xf]  ;;  %v16656_v45 = vld [vmem:[#allocation8 + $0x76c] sm:$0xf0] }
 0x39e   :  { %9272 = vmatpush.bf16.msrb.mxu0 %v14160_v35  ;;  %v17873_v26 = vpop.f32.mrf.mxu2  ;;  %v13680_v35 = vor.u32 %v16680_v7, %v13677_v14  ;;  %v15477_v7 = vld [vmem:[#allocation8 + $0x1668] sm:$0xf0]  ;;  %v17160_v14 = vld [vmem:[#allocation8 + $0x1734] sm:$0xf]  ;;  %v13564_v27 = vor.u32 %v16656_v45, %v13563_v13  ;;  %v17070_v45 = vld [vmem:[#allocation8 + $0x1464] sm:$0xf] }
 0x39f   :  { %9260 = vmatpush.bf16.msra.mxu1 %v13800_v31  ;;  %v8917_v31 = vadd.f32 %v17841_v46, %v8904_v23  ;;  %v16830_v46 = vld [vmem:[#allocation8 + $0xce4] sm:$0xf]  ;;  %v13920_v23 = vor.u32 %v16740_v56, %v13917_v39  ;;  %v15600_v41 = vor.u32 %v17160_v14, %v15597_v54  ;;  %v15520_v56 = vor.u32 %v17140_v0, %v15517_v1  ;;  %v14997_v14 = vld [vmem:[#allocation8 + $0x12a8] sm:$0xf0]  ;;  %v16646_v54 = vld [vmem:[#allocation8 + $0x71c] sm:$0xf0] }
 0x3a0   :  { %9285 = vmatpush.bf16.msrb.mxu2 %v14480_v36  ;;  %v16840_v36 = vld [vmem:[#allocation8 + $0xd34] sm:$0xf]  ;;  %9159 = vmatpush.bf16.msra.mxu3 %v14316_v33  ;;  %v13397_v0 = vld [vmem:[#allocation8 + $0x628] sm:$0xf0]  ;;  %v16990_v1 = vld [vmem:[#allocation8 + $0x11e4] sm:$0xf] }
 0x3a1   :  { %v17877_v62 = vadd.f32 %v17849_v63, %v8917_v31  ;;  %v13597_v63 = vld [vmem:[#allocation8 + $0x7b8] sm:$0xf0]  ;;  %v17040_v33 = vld [vmem:[#allocation8 + $0x1374] sm:$0xf] }
 0x3a2   :  { %9273 = vmatpush.bf16.msrb.mxu0 %v14120_v40  ;;  %v14320_v40 = vor.u32 %v16840_v36, %v14317_v43  ;;  %v13600_v30 = vor.u32 %v16660_v5, %v13597_v63  ;;  %v17120_v43 = vld [vmem:[#allocation8 + $0x15f4] sm:$0xf]  ;;  %v15080_v5 = vor.u32 %v17030_v10, %v15077_v2 }
 0x3a3   :  { %9261 = vmatpush.bf16.msra.mxu1 %v13760_v53  ;;  %v14277_v53 = vld [vmem:[#allocation8 + $0xd08] sm:$0xf0]  ;;  %v16640_v63 = vld [vmem:[#allocation8 + $0x6f4] sm:$0xf] }
 0x3a4   :  { %9286 = vmatpush.bf16.msrb.mxu2 %v14440_v59  ;;  %v13957_v59 = vld [vmem:[#allocation8 + $0xa88] sm:$0xf0]  ;;  %9160 = vmatpush.bf16.msra.mxu3 %v14276_v44 }
 0x3a5   :  { %v13960_v28 = vor.u32 %v16750_v52, %v13957_v59  ;;  %v15557_v44 = vld [vmem:[#allocation8 + $0x1708] sm:$0xf0]  ;;  %v17110_v52 = vld [vmem:[#allocation8 + $0x15a4] sm:$0xf] }
 0x3a6   :  { %9274 = vmatpush.bf16.msrb.mxu0 %v14080_v16  ;;  %v9022_v12 = vpop.f32.mrf.mxu2  ;;  %v14280_v16 = vor.u32 %v16830_v46, %v14277_v53  ;;  %v15560_v59 = vor.u32 %v17150_v34, %v15557_v44  ;;  %v15397_v53 = vld [vmem:[#allocation8 + $0x15c8] sm:$0xf0]  ;;  %v14957_v44 = vld [vmem:[#allocation8 + $0x1258] sm:$0xf0] }
 0x3a7   :  { %9262 = vmatpush.bf16.msra.mxu1 %v13720_v24  ;;  %v14237_v24 = vld [vmem:[#allocation8 + $0xcb8] sm:$0xf0] }
 0x3a8   :  { %9287 = vmatpush.bf16.msrb.mxu2 %v14400_v22  ;;  %v16820_v22 = vld [vmem:[#allocation8 + $0xc94] sm:$0xf]  ;;  %9161 = vmatpush.bf16.msra.mxu3 %v14236_v8  ;;  %v13517_v8 = vld [vmem:[#allocation8 + $0x718] sm:$0xf0] }
 0x3a9   :  { %v14240_v49 = vor.u32 %v16820_v22, %v14237_v24  ;;  %v15037_v12 = vld [vmem:[#allocation8 + $0x12f8] sm:$0xf0]  ;;  %v13520_v39 = vor.u32 %v16640_v63, %v13517_v8  ;;  %v13443_v63 = vld [vmem:[#allocation8 + $0x658] sm:$0xf]  ;;  %v16626_v8 = vld [vmem:[#allocation8 + $0x67c] sm:$0xf0] }
 0x3aa   :  { %9275 = vmatpush.bf16.msrb.mxu0 %v14040_v55  ;;  %v15117_v55 = vld [vmem:[#allocation8 + $0x1398] sm:$0xf0]  ;;  %v17880_v31 = vpop.f32.mrf.mxu0 }
 0x3ab   :  { %9263 = vmatpush.bf16.msra.mxu1 %v13680_v35  ;;  %v15515_v35 = vld [vmem:[#allocation8 + $0x1690] sm:$0xf]  ;;  %9162 = vmatmul.bf16.vlgmr.msra.gmra.mxu3 %v17723_v19  ;;  %v15120_v36 = vor.u32 %v17040_v33, %v15117_v55  ;;  %v15357_v24 = vld [vmem:[#allocation8 + $0x1578] sm:$0xf0]  ;;  %v8942_v55 = vpop.f32.mrf.mxu3 }
 0x3ac   :  { %9288 = vmatpush.bf16.msrb.mxu2 %v14360_v21  ;;  %9211 = vmatpush.bf16.msrb.mxu3 %v15596_v17  ;;  %v15480_v21 = vor.u32 %v17130_v50, %v15477_v7  ;;  %v15400_v17 = vor.u32 %v17110_v52, %v15397_v53  ;;  %v13477_v50 = vld [vmem:[#allocation8 + $0x6c8] sm:$0xf0]  ;;  %v17010_v7 = vld [vmem:[#allocation8 + $0x1284] sm:$0xf]  ;;  %v15277_v52 = vld [vmem:[#allocation8 + $0x14d8] sm:$0xf0] }
 0x3ae   :  { %9276 = vmatpush.bf16.msrb.mxu0 %v14000_v38  ;;  %v16650_v38 = vld [vmem:[#allocation8 + $0x744] sm:$0xf] }
 0x3af   :  { %9264 = vmatpush.bf16.msra.mxu1 %v13640_v48  ;;  %v15440_v48 = vor.u32 %v17120_v43, %v15437_v32  ;;  %v13560_v46 = vor.u32 %v16650_v38, %v13557_v42  ;;  %v13437_v43 = vld [vmem:[#allocation8 + $0x678] sm:$0xf0]  ;;  %v17000_v32 = vld [vmem:[#allocation8 + $0x1234] sm:$0xf]  ;;  %v13483_v38 = vld [vmem:[#allocation8 + $0x6a8] sm:$0xf] }
 0x3b0   :  { %9289 = vmatpush.bf16.msrb.mxu2 %v14320_v40  ;;  %9212 = vmatpush.bf16.msrb.mxu3 %v15556_v25  ;;  %v15516_v40 = vor.u32 %v17145_v37, %v15515_v35  ;;  %v15317_v35 = vld [vmem:[#allocation8 + $0x1528] sm:$0xf0]  ;;  %v15000_v37 = vor.u32 %v17010_v7, %v14997_v14  ;;  %v16636_v42 = vld [vmem:[#allocation8 + $0x6cc] sm:$0xf0]  ;;  %v13243_v7 = vld [vmem:[#allocation8 + $0x4c8] sm:$0xf] }
 0x3b1   :  { %v16576_v14 = vld [vmem:[#allocation8 + $0x4ec] sm:$0xf0] }
 0x3b2   :  { %9277 = vmatpush.bf16.msrb.mxu0 %v13960_v28  ;;  %v17020_v28 = vld [vmem:[#allocation8 + $0x12d4] sm:$0xf]  ;;  %v9035_v22 = vpop.f32.mrf.mxu0 }
 0x3b3   :  { %9265 = vmatpush.bf16.msra.mxu1 %v13600_v30  ;;  %v17100_v30 = vld [vmem:[#allocation8 + $0x1554] sm:$0xf]  ;;  %v15040_v60 = vor.u32 %v17020_v28, %v15037_v12  ;;  %v8944_v12 = vpop.f32.mrf.mxu3 }
 0x3b4   :  { %9290 = vmatpush.bf16.msrb.mxu2 %v14280_v16  ;;  %9213 = vmatpush.bf16.msrb.mxu3 %v15516_v40  ;;  %v17885_v16 = vpop.f32.mrf.mxu1  ;;  %v15360_v33 = vor.u32 %v17100_v30, %v15357_v24  ;;  %v16600_v22 = vld [vmem:[#allocation8 + $0x5b4] sm:$0xf]  ;;  %v13357_v30 = vld [vmem:[#allocation8 + $0x5d8] sm:$0xf0]  ;;  %v16556_v12 = vld [vmem:[#allocation8 + $0x44c] sm:$0xf0] }
 0x3b5   :  { %v16980_v24 = vld [vmem:[#allocation8 + $0x1194] sm:$0xf] }
 0x3b6   :  { %9278 = vmatpush.bf16.msrb.mxu0 %v13920_v23  ;;  %9266 = vmatmul.bf16.vlgmr.msra.gmra.mxu1 %v17706_v9  ;;  %v13523_v23 = vld [vmem:[#allocation8 + $0x6f8] sm:$0xf] }
 0x3b7   :  { %9310 = vmatpush.bf16.msrb.mxu1 %v15160_v15  ;;  %v16630_v15 = vld [vmem:[#allocation8 + $0x6a4] sm:$0xf] }
 0x3b8   :  { %9291 = vmatpush.bf16.msrb.mxu2 %v14240_v49  ;;  %9245 = vmatpush.bf16.msra.mxu3 %v13560_v46  ;;  %v8943_v49 = vadd.f32 %v8942_v55, %v17877_v62  ;;  %v13480_v25 = vor.u32 %v16630_v15, %v13477_v50  ;;  %v13484_v46 = vor.u32 %v16636_v42, %v13483_v38  ;;  %v16616_v15 = vld [vmem:[#allocation8 + $0x62c] sm:$0xf0]  ;;  %v15197_v55 = vld [vmem:[#allocation8 + $0x1438] sm:$0xf0]  ;;  %v13203_v42 = vld [vmem:[#allocation8 + $0x478] sm:$0xf] }
 0x3b9   :  { %9279 = vmatmul.bf16.vlgmr.msrb.gmra.mxu0 %v17721_v6 }
 0x3ba   :  { %9323 = vmatpush.bf16.msra.mxu0 %v15480_v21  ;;  %v17090_v21 = vld [vmem:[#allocation8 + $0x1504] sm:$0xf]  ;;  %v17889_v34 = vadd.f32 %v17858_v3, %v8943_v49  ;;  %v17893_v53 = vpop.f32.mrf.mxu0 }
 0x3bb   :  { %9311 = vmatpush.bf16.msrb.mxu1 %v15120_v36  ;;  %9292 = vmatmul.bf16.vlgmr.msrb.gmra.mxu2 %v17723_v19  ;;  %v16620_v36 = vld [vmem:[#allocation8 + $0x654] sm:$0xf]  ;;  %v15320_v2 = vor.u32 %v17090_v21, %v15317_v35  ;;  %v16610_v3 = vld [vmem:[#allocation8 + $0x604] sm:$0xf] }
 0x3bc   :  { %9341 = vmatpush.bf16.msra.mxu2 %v15600_v41  ;;  %9246 = vmatpush.bf16.msra.mxu3 %v13520_v39  ;;  %v13524_v41 = vor.u32 %v16646_v54, %v13523_v23  ;;  %v9048_v10 = vpop.f32.mrf.mxu1  ;;  %v13440_v40 = vor.u32 %v16620_v36, %v13437_v43  ;;  %v13400_v13 = vor.u32 %v16610_v3, %v13397_v0  ;;  %v16590_v35 = vld [vmem:[#allocation8 + $0x564] sm:$0xf]  ;;  %v16606_v43 = vld [vmem:[#allocation8 + $0x5dc] sm:$0xf0]  ;;  %v16596_v3 = vld [vmem:[#allocation8 + $0x58c] sm:$0xf0] }
 0x3bd   :  { %15621 = vmatmul.msk.bf16.vlgmr.msrb.gmra.mxu3 %vm8565_vm1, %v17767_v29  ;;  %v13444_v39 = vor.u32 %v16626_v8, %v13443_v63  ;;  %v13360_v54 = vor.u32 %v16600_v22, %v13357_v30  ;;  %v13244_v36 = vor.u32 %v16576_v14, %v13243_v7  ;;  %v16566_v10 = vld [vmem:[#allocation8 + $0x49c] sm:$0xf0]  ;;  %v16970_v63 = vld [vmem:[#allocation8 + $0x1144] sm:$0xf]  ;;  %v14837_v8 = vld [vmem:[#allocation8 + $0x1168] sm:$0xf0] }
 0x3be   :  { %9324 = vmatpush.bf16.msra.mxu0 %v15440_v48  ;;  %v17891_v62 = vpop.f32.mrf.mxu2  ;;  %v17080_v48 = vld [vmem:[#allocation8 + $0x14b4] sm:$0xf]  ;;  %v13204_v0 = vor.u32 %v16566_v10, %v13203_v42  ;;  %v14840_v22 = vor.u32 %v16970_v63, %v14837_v8  ;;  %v16546_v7 = vld [vmem:[#allocation8 + $0x3fc] sm:$0xf0]  ;;  %v14843_v14 = vld [vmem:[#allocation8 + $0x1148] sm:$0xf] }
 0x3bf   :  { %9312 = vmatpush.bf16.msrb.mxu1 %v15080_v5  ;;  %v14917_v5 = vld [vmem:[#allocation8 + $0x1208] sm:$0xf0]  ;;  %v15280_v28 = vor.u32 %v17080_v48, %v15277_v52  ;;  %v16966_v42 = vld [vmem:[#allocation8 + $0x111c] sm:$0xf0] }
 0x3c0   :  { %9342 = vmatpush.bf16.msra.mxu2 %v15560_v59  ;;  %9247 = vmatpush.bf16.msra.mxu3 %v13480_v25  ;;  %v14960_v59 = vor.u32 %v17000_v32, %v14957_v44  ;;  %v13883_v32 = vld [vmem:[#allocation8 + $0x9c8] sm:$0xf]  ;;  %v16736_v44 = vld [vmem:[#allocation8 + $0x9ec] sm:$0xf0]  ;;  %v16526_v63 = vld [vmem:[#allocation8 + $0x35c] sm:$0xf0] }
 0x3c1   :  { %v13884_v52 = vor.u32 %v16736_v44, %v13883_v32  ;;  %v16536_v32 = vld [vmem:[#allocation8 + $0x3ac] sm:$0xf0] }
 0x3c2   :  { %9325 = vmatpush.bf16.msra.mxu0 %v15400_v17  ;;  %v15237_v17 = vld [vmem:[#allocation8 + $0x1488] sm:$0xf0]  ;;  %v9087_v21 = vpop.f32.mrf.mxu0 }
 0x3c3   :  { %9313 = vmatpush.bf16.msrb.mxu1 %v15040_v60  ;;  %v14877_v60 = vld [vmem:[#allocation8 + $0x11b8] sm:$0xf0]  ;;  %v15240_v50 = vor.u32 %v17070_v45, %v15237_v17  ;;  %v13763_v21 = vld [vmem:[#allocation8 + $0x8d8] sm:$0xf] }
 0x3c4   :  { %9343 = vmatpush.bf16.msra.mxu2 %v15520_v56  ;;  %9248 = vmatpush.bf16.msra.mxu3 %v13440_v40  ;;  %v14920_v56 = vor.u32 %v16990_v1, %v14917_v5  ;;  %v14880_v49 = vor.u32 %v16980_v24, %v14877_v60  ;;  %v16580_v40 = vld [vmem:[#allocation8 + $0x514] sm:$0xf]  ;;  %v13843_v1 = vld [vmem:[#allocation8 + $0x978] sm:$0xf]  ;;  %v16726_v5 = vld [vmem:[#allocation8 + $0x99c] sm:$0xf0] }
 0x3c5   :  { %v13844_v17 = vor.u32 %v16726_v5, %v13843_v1  ;;  %v13803_v24 = vld [vmem:[#allocation8 + $0x928] sm:$0xf]  ;;  %v16716_v60 = vld [vmem:[#allocation8 + $0x94c] sm:$0xf0]  ;;  %v14717_v1 = vld [vmem:[#allocation8 + $0x1078] sm:$0xf0] }
 0x3c6   :  { %9326 = vmatpush.bf16.msra.mxu0 %v15360_v33  ;;  %v9074_v23 = vpop.f32.mrf.mxu2  ;;  %v17060_v33 = vld [vmem:[#allocation8 + $0x1414] sm:$0xf]  ;;  %v13043_v5 = vld [vmem:[#allocation8 + $0x338] sm:$0xf] }
 0x3c7   :  { %9314 = vmatpush.bf16.msrb.mxu1 %v15000_v37  ;;  %v13317_v37 = vld [vmem:[#allocation8 + $0x588] sm:$0xf0]  ;;  %v15200_v38 = vor.u32 %v17060_v33, %v15197_v55  ;;  %v16976_v23 = vld [vmem:[#allocation8 + $0x116c] sm:$0xf0]  ;;  %v13804_v55 = vor.u32 %v16716_v60, %v13803_v24 }
 0x3c8   :  { %9375 = vmatpush.bf16.msrb.mxu2 %v13564_v27  ;;  %v13403_v27 = vld [vmem:[#allocation8 + $0x608] sm:$0xf]  ;;  %9249 = vmatpush.bf16.msra.mxu3 %v13400_v13 }
 0x3c9   :  { %v13404_v25 = vor.u32 %v16616_v15, %v13403_v27  ;;  %v16960_v27 = vld [vmem:[#allocation8 + $0x10f4] sm:$0xf]  ;;  %v14797_v15 = vld [vmem:[#allocation8 + $0x1118] sm:$0xf0] }
 0x3ca   :  { %9327 = vmatpush.bf16.msra.mxu0 %v15320_v2  ;;  %v13320_v2 = vor.u32 %v16590_v35, %v13317_v37  ;;  %v16706_v35 = vld [vmem:[#allocation8 + $0x8fc] sm:$0xf0]  ;;  %v16950_v37 = vld [vmem:[#allocation8 + $0x10a4] sm:$0xf] }
 0x3cb   :  { %9315 = vmatpush.bf16.msrb.mxu1 %v14960_v59  ;;  %15622 = vmatmul.msk.bf16.vlgmr.msra.gmra.mxu2 %vm8565_vm1, %v17767_v29  ;;  %v13277_v59 = vld [vmem:[#allocation8 + $0x538] sm:$0xf0]  ;;  %v13764_v10 = vor.u32 %v16706_v35, %v13763_v21  ;;  %v16920_v35 = vld [vmem:[#allocation8 + $0xfb4] sm:$0xf] }
 0x3cc   :  { %9376 = vmatpush.bf16.msrb.mxu2 %v13524_v41  ;;  %v13363_v41 = vld [vmem:[#allocation8 + $0x5b8] sm:$0xf]  ;;  %9250 = vmatpush.bf16.msra.mxu3 %v13360_v54  ;;  %v13280_v13 = vor.u32 %v16580_v40, %v13277_v59  ;;  %v13723_v59 = vld [vmem:[#allocation8 + $0x888] sm:$0xf] }
 0x3cd   :  { %v13364_v48 = vor.u32 %v16606_v43, %v13363_v41  ;;  %v14844_v41 = vor.u32 %v16976_v23, %v14843_v14  ;;  %v13083_v43 = vld [vmem:[#allocation8 + $0x388] sm:$0xf]  ;;  %v16946_v14 = vld [vmem:[#allocation8 + $0x107c] sm:$0xf0] }
 0x3ce   :  { %9328 = vmatpush.bf16.msra.mxu0 %v15280_v28  ;;  %v13163_v28 = vld [vmem:[#allocation8 + $0x428] sm:$0xf] }
 0x3cf   :  { %9316 = vmatpush.bf16.msrb.mxu1 %v14920_v56  ;;  %v13283_v56 = vld [vmem:[#allocation8 + $0x518] sm:$0xf]  ;;  %v13164_v30 = vor.u32 %v16556_v12, %v13163_v28  ;;  %v14763_v28 = vld [vmem:[#allocation8 + $0x10a8] sm:$0xf]  ;;  %v16956_v12 = vld [vmem:[#allocation8 + $0x10cc] sm:$0xf0] }
 0x3d0   :  { %9377 = vmatpush.bf16.msrb.mxu2 %v13484_v46  ;;  %v13323_v46 = vld [vmem:[#allocation8 + $0x568] sm:$0xf]  ;;  %9251 = vmatpush.bf16.msra.mxu3 %v13320_v2  ;;  %v9007_v2 = vpop.f32.mrf.mxu3  ;;  %v14764_v60 = vor.u32 %v16956_v12, %v14763_v28  ;;  %v16926_v28 = vld [vmem:[#allocation8 + $0xfdc] sm:$0xf0]  ;;  %v14483_v12 = vld [vmem:[#allocation8 + $0xe78] sm:$0xf] }
 0x3d1   :  { %v13324_v45 = vor.u32 %v16596_v3, %v13323_v46  ;;  %v9008_v40 = vadd.f32 %v9007_v2, %v17869_v58  ;;  %v16696_v46 = vld [vmem:[#allocation8 + $0x8ac] sm:$0xf0]  ;;  %v16940_v3 = vld [vmem:[#allocation8 + $0x1054] sm:$0xf]  ;;  %v13603_v2 = vld [vmem:[#allocation8 + $0x798] sm:$0xf] }
 0x3d2   :  { %9329 = vmatpush.bf16.msra.mxu0 %v15240_v50  ;;  %v13123_v50 = vld [vmem:[#allocation8 + $0x3d8] sm:$0xf] }
 0x3d3   :  { %9317 = vmatpush.bf16.msrb.mxu1 %v14880_v49  ;;  %v17901_v54 = vpop.f32.mrf.mxu1  ;;  %v14800_v49 = vor.u32 %v16960_v27, %v14797_v15  ;;  %v9021_v8 = vadd.f32 %v17873_v26, %v9008_v40  ;;  %v14677_v27 = vld [vmem:[#allocation8 + $0x1028] sm:$0xf0]  ;;  %v13003_v26 = vld [vmem:[#allocation8 + $0x2e8] sm:$0xf]  ;;  %v16516_v15 = vld [vmem:[#allocation8 + $0x30c] sm:$0xf0] }
 0x3d4   :  { %9378 = vmatpush.bf16.msrb.mxu2 %v13444_v39  ;;  %v16586_v39 = vld [vmem:[#allocation8 + $0x53c] sm:$0xf0]  ;;  %9252 = vmatpush.bf16.msra.mxu3 %v13280_v13  ;;  %v13004_v21 = vor.u32 %v16516_v15, %v13003_v26  ;;  %v16916_v15 = vld [vmem:[#allocation8 + $0xf8c] sm:$0xf0] }
 0x3d5   :  { %v13284_v33 = vor.u32 %v16586_v39, %v13283_v56  ;;  %v13044_v56 = vor.u32 %v16526_v63, %v13043_v5  ;;  %v13683_v39 = vld [vmem:[#allocation8 + $0x838] sm:$0xf]  ;;  %v9034_v24 = vadd.f32 %v17880_v31, %v9021_v8  ;;  %v16676_v31 = vld [vmem:[#allocation8 + $0x80c] sm:$0xf0]  ;;  %v15163_v63 = vld [vmem:[#allocation8 + $0x13c8] sm:$0xf] }
 0x3d6   :  { %9330 = vmatpush.bf16.msra.mxu0 %v15200_v38  ;;  %9318 = vmatmul.bf16.vlgmr.msrb.gmra.mxu1 %v17725_v11  ;;  %v17904_v44 = vpop.f32.mrf.mxu0  ;;  %v14803_v38 = vld [vmem:[#allocation8 + $0x10f8] sm:$0xf]  ;;  %v17056_v8 = vld [vmem:[#allocation8 + $0x13ec] sm:$0xf0]  ;;  %v17046_v26 = vld [vmem:[#allocation8 + $0x139c] sm:$0xf0] }
 0x3d7   :  { %9362 = vmatpush.bf16.msra.mxu1 %v13244_v36  ;;  %9253 = vmatmul.bf16.vlgmr.msra.gmra.mxu3 %v17702_v4  ;;  %v14757_v36 = vld [vmem:[#allocation8 + $0x10c8] sm:$0xf0]  ;;  %v17913_v23 = vadd.f32 %v17885_v16, %v9034_v24  ;;  %v16896_v16 = vld [vmem:[#allocation8 + $0xeec] sm:$0xf0]  ;;  %v14643_v5 = vld [vmem:[#allocation8 + $0xfb8] sm:$0xf] }
 0x3d8   :  { %9379 = vmatpush.bf16.msrb.mxu2 %v13404_v25  ;;  %9297 = vmatpush.bf16.msrb.mxu3 %v14840_v22  ;;  %v13124_v25 = vor.u32 %v16546_v7, %v13123_v50  ;;  %v16686_v22 = vld [vmem:[#allocation8 + $0x85c] sm:$0xf0]  ;;  %v14723_v7 = vld [vmem:[#allocation8 + $0x1058] sm:$0xf] }
 0x3d9   :  { %9331 = vmatmul.bf16.vlgmr.msra.gmra.mxu0 %v17757_v20 }
 0x3da   :  { %9388 = vmatpush.bf16.msrb.mxu0 %v13884_v52  ;;  %v13084_v52 = vor.u32 %v16536_v32, %v13083_v43  ;;  %v16506_v43 = vld [vmem:[#allocation8 + $0x2bc] sm:$0xf0]  ;;  %v14683_v32 = vld [vmem:[#allocation8 + $0x1008] sm:$0xf] }
 0x3db   :  { %9363 = vmatpush.bf16.msra.mxu1 %v13204_v0  ;;  %v14804_v0 = vor.u32 %v16966_v42, %v14803_v38  ;;  %v9100_v13 = vpop.f32.mrf.mxu1  ;;  %v16936_v38 = vld [vmem:[#allocation8 + $0x102c] sm:$0xf0]  ;;  %v14523_v42 = vld [vmem:[#allocation8 + $0xec8] sm:$0xf] }
 0x3dc   :  { %9380 = vmatpush.bf16.msrb.mxu2 %v13364_v48  ;;  %9298 = vmatpush.bf16.msrb.mxu3 %v14800_v49  ;;  %v14760_v48 = vor.u32 %v16950_v37, %v14757_v36  ;;  %v13643_v49 = vld [vmem:[#allocation8 + $0x7e8] sm:$0xf]  ;;  %v14637_v37 = vld [vmem:[#allocation8 + $0xfd8] sm:$0xf0]  ;;  %v12963_v36 = vld [vmem:[#allocation8 + $0x298] sm:$0xf] }
 0x3dd   :  { %v16886_v13 = vld [vmem:[#allocation8 + $0xe9c] sm:$0xf0] }
 0x3de   :  { %9389 = vmatpush.bf16.msrb.mxu0 %v13844_v17  ;;  %v17909_v58 = vpop.f32.mrf.mxu2  ;;  %v14720_v17 = vor.u32 %v16940_v3, %v14717_v1  ;;  %v9126_v50 = vpop.f32.mrf.mxu0  ;;  %v14597_v3 = vld [vmem:[#allocation8 + $0xf88] sm:$0xf0]  ;;  %v14524_v1 = vor.u32 %v16896_v16, %v14523_v42  ;;  %v14484_v24 = vor.u32 %v16886_v13, %v14483_v12  ;;  %v16866_v42 = vld [vmem:[#allocation8 + $0xdfc] sm:$0xf0]  ;;  %v12885_v12 = vld [vmem:[#allocation8 + $0x220] sm:$0xf0] }
 0x3df   :  { %9364 = vmatpush.bf16.msra.mxu1 %v13164_v30  ;;  %v16930_v30 = vld [vmem:[#allocation8 + $0x1004] sm:$0xf]  ;;  %v12923_v50 = vld [vmem:[#allocation8 + $0x248] sm:$0xf]  ;;  %v16491_v16 = vld [vmem:[#allocation8 + $0x24c] sm:$0xf] }
 0x3e0   :  { %9381 = vmatpush.bf16.msrb.mxu2 %v13324_v45  ;;  %v13724_v45 = vor.u32 %v16696_v46, %v13723_v59  ;;  %9299 = vmatpush.bf16.msrb.mxu3 %v14760_v48  ;;  %v14640_v48 = vor.u32 %v16920_v35, %v14637_v37  ;;  %v16666_v59 = vld [vmem:[#allocation8 + $0x7bc] sm:$0xf0]  ;;  %v16910_v46 = vld [vmem:[#allocation8 + $0xf64] sm:$0xf]  ;;  %v15083_v37 = vld [vmem:[#allocation8 + $0x1328] sm:$0xf] }
 0x3e1   :  { %v16906_v35 = vld [vmem:[#allocation8 + $0xf3c] sm:$0xf0] }
 0x3e2   :  { %9390 = vmatpush.bf16.msrb.mxu0 %v13804_v55  ;;  %v9009_v55 = vpop.f32.mrf.mxu3 }
 0x3e3   :  { %9365 = vmatpush.bf16.msra.mxu1 %v13124_v25  ;;  %v14680_v25 = vor.u32 %v16930_v30, %v14677_v27  ;;  %v14644_v30 = vor.u32 %v16926_v28, %v14643_v5  ;;  %v15123_v27 = vld [vmem:[#allocation8 + $0x1378] sm:$0xf]  ;;  %v16476_v5 = vld [vmem:[#allocation8 + $0x1cc] sm:$0xf0]  ;;  %v16481_v28 = vld [vmem:[#allocation8 + $0x1fc] sm:$0xf] }
 0x3e4   :  { %9382 = vmatpush.bf16.msrb.mxu2 %v13284_v33  ;;  %v13684_v33 = vor.u32 %v16686_v22, %v13683_v39  ;;  %9300 = vmatpush.bf16.msrb.mxu3 %v14720_v17  ;;  %v14600_v17 = vor.u32 %v16910_v46, %v14597_v3  ;;  %v16900_v39 = vld [vmem:[#allocation8 + $0xf14] sm:$0xf]  ;;  %v14557_v22 = vld [vmem:[#allocation8 + $0xf38] sm:$0xf0]  ;;  %v17026_v46 = vld [vmem:[#allocation8 + $0x12fc] sm:$0xf0] }
 0x3e5   :  { %v14560_v55 = vor.u32 %v16900_v39, %v14557_v22  ;;  %v15003_v39 = vld [vmem:[#allocation8 + $0x1288] sm:$0xf]  ;;  %v17016_v22 = vld [vmem:[#allocation8 + $0x12ac] sm:$0xf0] }
 0x3e6   :  { %9391 = vmatpush.bf16.msrb.mxu0 %v13764_v10  ;;  %v13644_v10 = vor.u32 %v16676_v31, %v13643_v49  ;;  %v9139_v40 = vpop.f32.mrf.mxu2  ;;  %v15124_v49 = vor.u32 %v17046_v26, %v15123_v27  ;;  %v12803_v27 = vld [vmem:[#allocation8 + $0x158] sm:$0xf]  ;;  %v16466_v26 = vld [vmem:[#allocation8 + $0x17c] sm:$0xf0] }
 0x3e7   :  { %9383 = vmatmul.bf16.vlgmr.msrb.gmra.mxu2 %v17702_v4  ;;  %9366 = vmatpush.bf16.msra.mxu1 %v13084_v52  ;;  %v12964_v52 = vor.u32 %v16506_v43, %v12963_v36  ;;  %v12883_v43 = vld [vmem:[#allocation8 + $0x1f8] sm:$0xf] }
 0x3e8   :  { %9427 = vmatpush.bf16.msra.mxu2 %v14844_v41  ;;  %v14724_v41 = vor.u32 %v16946_v14, %v14723_v7  ;;  %9301 = vmatpush.bf16.msrb.mxu3 %v14680_v25  ;;  %v16496_v7 = vld [vmem:[#allocation8 + $0x26c] sm:$0xf0]  ;;  %v14443_v14 = vld [vmem:[#allocation8 + $0xe28] sm:$0xf]  ;;  %v14563_v25 = vld [vmem:[#allocation8 + $0xf18] sm:$0xf] }
 0x3e9   :  { %v12924_v31 = vor.u32 %v16496_v7, %v12923_v50  ;;  %v16846_v50 = vld [vmem:[#allocation8 + $0xd5c] sm:$0xf0]  ;;  %v16471_v7 = vld [vmem:[#allocation8 + $0x1ac] sm:$0xf] }
 0x3ea   :  { %9392 = vmatpush.bf16.msrb.mxu0 %v13724_v45  ;;  %v13604_v45 = vor.u32 %v16666_v59, %v13603_v2  ;;  %v15043_v59 = vld [vmem:[#allocation8 + $0x12d8] sm:$0xf] }
 0x3eb   :  { %9367 = vmatpush.bf16.msra.mxu1 %v13044_v56  ;;  %v15164_v56 = vor.u32 %v17056_v8, %v15163_v63  ;;  %v14363_v63 = vld [vmem:[#allocation8 + $0xd88] sm:$0xf]  ;;  %v16856_v8 = vld [vmem:[#allocation8 + $0xdac] sm:$0xf0] }
 0x3ec   :  { %9428 = vmatpush.bf16.msra.mxu2 %v14804_v0  ;;  %v14684_v0 = vor.u32 %v16936_v38, %v14683_v32  ;;  %9302 = vmatpush.bf16.msrb.mxu3 %v14640_v48  ;;  %v16486_v32 = vld [vmem:[#allocation8 + $0x21c] sm:$0xf0]  ;;  %v14403_v38 = vld [vmem:[#allocation8 + $0xdd8] sm:$0xf]  ;;  %v14564_v48 = vor.u32 %v16906_v35, %v14563_v25  ;;  %v12804_v25 = vor.u32 %v16466_v26, %v12803_v27  ;;  %v16436_v27 = vld [vmem:[#allocation8 + $0x8c] sm:$0xf0] }
 0x3ed   :  { %v14404_v3 = vor.u32 %v16866_v42, %v14403_v38  ;;  %v16836_v38 = vld [vmem:[#allocation8 + $0xd0c] sm:$0xf0]  ;;  %v12805_v42 = vld [vmem:[#allocation8 + $0x180] sm:$0xf0]  ;;  %v16441_v26 = vld [vmem:[#allocation8 + $0xbc] sm:$0xf] }
 0x3ee   :  { %9393 = vmatpush.bf16.msrb.mxu0 %v13684_v33  ;;  %v16876_v33 = vld [vmem:[#allocation8 + $0xe4c] sm:$0xf0] }
 0x3ef   :  { %9368 = vmatpush.bf16.msra.mxu1 %v13004_v21  ;;  %v14444_v36 = vor.u32 %v16876_v33, %v14443_v14  ;;  %v12845_v14 = vld [vmem:[#allocation8 + $0x1d0] sm:$0xf0] }
 0x3f0   :  { %9429 = vmatpush.bf16.msra.mxu2 %v14764_v60  ;;  %v14603_v60 = vld [vmem:[#allocation8 + $0xf68] sm:$0xf]  ;;  %9303 = vmatpush.bf16.msrb.mxu3 %v14600_v17  ;;  %v9059_v17 = vpop.f32.mrf.mxu3 }
 0x3f1   :  { %v14604_v21 = vor.u32 %v16916_v15, %v14603_v60  ;;  %v12888_v60 = vor.u32 %v16481_v28, %v12885_v12  ;;  %v14323_v15 = vld [vmem:[#allocation8 + $0xd38] sm:$0xf] }
 0x3f2   :  { %9394 = vmatpush.bf16.msrb.mxu0 %v13644_v10  ;;  %v12925_v10 = vld [vmem:[#allocation8 + $0x270] sm:$0xf0]  ;;  %v15603_v12 = vld [vmem:[#allocation8 + $0x1738] sm:$0xf] }
 0x3f3   :  { %9369 = vmatpush.bf16.msra.mxu1 %v12964_v52  ;;  %v17917_v40 = vpop.f32.mrf.mxu1  ;;  %v12884_v52 = vor.u32 %v16486_v32, %v12883_v43  ;;  %v16456_v43 = vld [vmem:[#allocation8 + $0x12c] sm:$0xf0]  ;;  %v14283_v32 = vld [vmem:[#allocation8 + $0xce8] sm:$0xf] }
 0x3f4   :  { %9430 = vmatpush.bf16.msra.mxu2 %v14724_v41  ;;  %v17036_v41 = vld [vmem:[#allocation8 + $0x134c] sm:$0xf0]  ;;  %9304 = vmatpush.bf16.msrb.mxu3 %v14560_v55  ;;  %v15004_v55 = vor.u32 %v17016_v22, %v15003_v39  ;;  %v16986_v39 = vld [vmem:[#allocation8 + $0x11bc] sm:$0xf0] }
 0x3f5   :  { %v15084_v2 = vor.u32 %v17036_v41, %v15083_v37  ;;  %v14324_v37 = vor.u32 %v16846_v50, %v14323_v15  ;;  %v12848_v41 = vor.u32 %v16471_v7, %v12845_v14  ;;  %v12725_v50 = vld [vmem:[#allocation8 + $0xe0] sm:$0xf0]  ;;  %v16571_v7 = vld [vmem:[#allocation8 + $0x4cc] sm:$0xf]  ;;  %v13245_v14 = vld [vmem:[#allocation8 + $0x4f0] sm:$0xf0] }
 0x3f6   :  { %9370 = vmatmul.bf16.vlgmr.msra.gmra.mxu1 %v17700_v57  ;;  %9395 = vmatpush.bf16.msrb.mxu0 %v13604_v45  ;;  %v17920_v13 = vpop.f32.mrf.mxu0  ;;  %v15044_v45 = vor.u32 %v17026_v46, %v15043_v59  ;;  %v14284_v59 = vor.u32 %v16836_v38, %v14283_v32  ;;  %v16561_v38 = vld [vmem:[#allocation8 + $0x47c] sm:$0xf] }
 0x3f7   :  { %9414 = vmatpush.bf16.msrb.mxu1 %v14524_v1  ;;  %v12843_v1 = vld [vmem:[#allocation8 + $0x1a8] sm:$0xf]  ;;  %9305 = vmatmul.bf16.vlgmr.msrb.gmra.mxu3 %v17728_v51 }
 0x3f8   :  { %9431 = vmatpush.bf16.msra.mxu2 %v14684_v0  ;;  %9349 = vmatpush.bf16.msra.mxu3 %v12924_v31  ;;  %v12928_v0 = vor.u32 %v16491_v16, %v12925_v10  ;;  %v17006_v31 = vld [vmem:[#allocation8 + $0x125c] sm:$0xf0] }
 0x3f9   :  { %9396 = vmatmul.bf16.vlgmr.msrb.gmra.mxu0 %v17706_v9 }
 0x3fa   :  { %9440 = vmatpush.bf16.msra.mxu0 %v15164_v56  ;;  %v12844_v56 = vor.u32 %v16476_v5, %v12843_v1  ;;  %v14243_v1 = vld [vmem:[#allocation8 + $0xc98] sm:$0xf]  ;;  %v16826_v5 = vld [vmem:[#allocation8 + $0xcbc] sm:$0xf0] }
 0x3fb   :  { %9415 = vmatpush.bf16.msrb.mxu1 %v14484_v24  ;;  %v14364_v24 = vor.u32 %v16856_v8, %v14363_v63  ;;  %v16451_v63 = vld [vmem:[#allocation8 + $0x10c] sm:$0xf]  ;;  %v12765_v8 = vld [vmem:[#allocation8 + $0x130] sm:$0xf0] }
 0x3fc   :  { %9432 = vmatpush.bf16.msra.mxu2 %v14644_v30  ;;  %9350 = vmatpush.bf16.msra.mxu3 %v12884_v52  ;;  %v9060_v30 = vadd.f32 %v9059_v17, %v17913_v23  ;;  %v16996_v52 = vld [vmem:[#allocation8 + $0x120c] sm:$0xf0] }
 0x3fe   :  { %9441 = vmatpush.bf16.msra.mxu0 %v15124_v49  ;;  %v9073_v33 = vadd.f32 %v17891_v62, %v9060_v30  ;;  %v9152_v49 = vpop.f32.mrf.mxu1  ;;  %v17928_v35 = vpop.f32.mrf.mxu2  ;;  %v16461_v62 = vld [vmem:[#allocation8 + $0x15c] sm:$0xf]  ;;  %v14244_v30 = vor.u32 %v16826_v5, %v14243_v1 }
 0x3ff   :  { %9416 = vmatpush.bf16.msrb.mxu1 %v14444_v36  ;;  %v12763_v36 = vld [vmem:[#allocation8 + $0x108] sm:$0xf]  ;;  %v9178_v16 = vpop.f32.mrf.mxu0  ;;  %v12808_v46 = vor.u32 %v16461_v62, %v12805_v42  ;;  %v17156_v49 = vld [vmem:[#allocation8 + $0x170c] sm:$0xf0]  ;;  %v13205_v62 = vld [vmem:[#allocation8 + $0x4a0] sm:$0xf0] }
 0x400   :  { %9433 = vmatpush.bf16.msra.mxu2 %v14604_v21  ;;  %9351 = vmatpush.bf16.msra.mxu3 %v12844_v56  ;;  %v14963_v21 = vld [vmem:[#allocation8 + $0x1238] sm:$0xf]  ;;  %v17926_v23 = vadd.f32 %v17893_v53, %v9073_v33  ;;  %v14923_v53 = vld [vmem:[#allocation8 + $0x11e8] sm:$0xf]  ;;  %v16816_v16 = vld [vmem:[#allocation8 + $0xc6c] sm:$0xf0] }
 0x401   :  { %v14964_v10 = vor.u32 %v17006_v31, %v14963_v21  ;;  %v14924_v28 = vor.u32 %v16996_v52, %v14923_v53  ;;  %v14883_v56 = vld [vmem:[#allocation8 + $0x1198] sm:$0xf]  ;;  %v12728_v31 = vor.u32 %v16441_v26, %v12725_v50  ;;  %v14203_v42 = vld [vmem:[#allocation8 + $0xc48] sm:$0xf]  ;;  %v16651_v53 = vld [vmem:[#allocation8 + $0x74c] sm:$0xf] }
 0x402   :  { %9442 = vmatpush.bf16.msra.mxu0 %v15084_v2  ;;  %v9061_v2 = vpop.f32.mrf.mxu3  ;;  %v14884_v33 = vor.u32 %v16986_v39, %v14883_v56  ;;  %v12643_v21 = vld [vmem:[#allocation8 + $0x18] sm:$0xf]  ;;  %v13565_v52 = vld [vmem:[#allocation8 + $0x770] sm:$0xf0]  ;;  %v14204_v1 = vor.u32 %v16816_v16, %v14203_v42  ;;  %v16641_v39 = vld [vmem:[#allocation8 + $0x6fc] sm:$0xf] }
 0x403   :  { %9417 = vmatpush.bf16.msrb.mxu1 %v14404_v3  ;;  %v12723_v3 = vld [vmem:[#allocation8 + $0xb8] sm:$0xf]  ;;  %v17146_v2 = vld [vmem:[#allocation8 + $0x16bc] sm:$0xf0]  ;;  %v14205_v56 = vld [vmem:[#allocation8 + $0xc70] sm:$0xf0] }
 0x404   :  { %9434 = vmatpush.bf16.msra.mxu2 %v14564_v48  ;;  %9352 = vmatpush.bf16.msra.mxu3 %v12804_v25  ;;  %v12764_v48 = vor.u32 %v16456_v43, %v12763_v36  ;;  %v16431_v36 = vld [vmem:[#allocation8 + $0x6c] sm:$0xf]  ;;  %v12685_v43 = vld [vmem:[#allocation8 + $0x90] sm:$0xf0] }
 0x405   :  { %v16531_v16 = vld [vmem:[#allocation8 + $0x38c] sm:$0xf] }
 0x406   :  { %9443 = vmatpush.bf16.msra.mxu0 %v15044_v45  ;;  %v17166_v45 = vld [vmem:[#allocation8 + $0x175c] sm:$0xf0]  ;;  %v9191_v22 = vpop.f32.mrf.mxu2 }
 0x407   :  { %9435 = vmatmul.bf16.vlgmr.msra.gmra.mxu2 %v17728_v51  ;;  %9418 = vmatpush.bf16.msrb.mxu1 %v14364_v24  ;;  %v12768_v24 = vor.u32 %v16451_v63, %v12765_v8  ;;  %v15604_v15 = vor.u32 %v17166_v45, %v15603_v12  ;;  %v16551_v63 = vld [vmem:[#allocation8 + $0x42c] sm:$0xf]  ;;  %v13165_v8 = vld [vmem:[#allocation8 + $0x450] sm:$0xf0]  ;;  %v13568_v12 = vor.u32 %v16651_v53, %v13565_v52  ;;  %v16806_v45 = vld [vmem:[#allocation8 + $0xc1c] sm:$0xf0] }
 0x408   :  { %9479 = vmatpush.bf16.msrb.mxu2 %v12928_v0  ;;  %v16446_v0 = vld [vmem:[#allocation8 + $0xdc] sm:$0xf0]  ;;  %9353 = vmatpush.bf16.msra.mxu3 %v12764_v48  ;;  %v13525_v22 = vld [vmem:[#allocation8 + $0x720] sm:$0xf0] }
 0x409   :  { %v12724_v17 = vor.u32 %v16446_v0, %v12723_v3  ;;  %v16421_v3 = vld [vmem:[#allocation8 + $0x1c] sm:$0xf]  ;;  %v12645_v0 = vld [vmem:[#allocation8 + $0x40] sm:$0xf0]  ;;  %v16786_v52 = vld [vmem:[#allocation8 + $0xb7c] sm:$0xf0] }
 0x40a   :  { %9444 = vmatpush.bf16.msra.mxu0 %v15004_v55  ;;  %v15563_v55 = vld [vmem:[#allocation8 + $0x16e8] sm:$0xf] }
 0x40b   :  { %9419 = vmatpush.bf16.msrb.mxu1 %v14324_v37  ;;  %v13248_v37 = vor.u32 %v16571_v7, %v13245_v14  ;;  %v15564_v32 = vor.u32 %v17156_v49, %v15563_v55  ;;  %v16541_v7 = vld [vmem:[#allocation8 + $0x3dc] sm:$0xf]  ;;  %v13125_v14 = vld [vmem:[#allocation8 + $0x400] sm:$0xf0]  ;;  %v13528_v55 = vor.u32 %v16641_v39, %v13525_v22  ;;  %v16796_v49 = vld [vmem:[#allocation8 + $0xbcc] sm:$0xf0] }
 0x40c   :  { %9480 = vmatpush.bf16.msrb.mxu2 %v12888_v60  ;;  %v12683_v60 = vld [vmem:[#allocation8 + $0x68] sm:$0xf]  ;;  %9354 = vmatpush.bf16.msra.mxu3 %v12724_v17  ;;  %v16811_v17 = vld [vmem:[#allocation8 + $0xc4c] sm:$0xf]  ;;  %v16776_v22 = vld [vmem:[#allocation8 + $0xb2c] sm:$0xf0] }
 0x40d   :  { %v12684_v25 = vor.u32 %v16436_v27, %v12683_v60  ;;  %v12648_v60 = vor.u32 %v16421_v3, %v12645_v0  ;;  %v13168_v27 = vor.u32 %v16551_v63, %v13165_v8  ;;  %v14208_v50 = vor.u32 %v16811_v17, %v14205_v56  ;;  %v13445_v3 = vld [vmem:[#allocation8 + $0x680] sm:$0xf0]  ;;  %v14043_v17 = vld [vmem:[#allocation8 + $0xb08] sm:$0xf] }
 0x40e   :  { %9445 = vmatpush.bf16.msra.mxu0 %v14964_v10  ;;  %v15523_v10 = vld [vmem:[#allocation8 + $0x1698] sm:$0xf] }
 0x40f   :  { %9420 = vmatpush.bf16.msrb.mxu1 %v14284_v59  ;;  %v12688_v59 = vor.u32 %v16431_v36, %v12685_v43  ;;  %v15524_v5 = vor.u32 %v17146_v2, %v15523_v10  ;;  %v13085_v10 = vld [vmem:[#allocation8 + $0x3b0] sm:$0xf0]  ;;  %v14083_v2 = vld [vmem:[#allocation8 + $0xb58] sm:$0xf] }
 0x410   :  { %9481 = vmatpush.bf16.msrb.mxu2 %v12848_v41  ;;  %v16426_v41 = vld [vmem:[#allocation8 + $0x3c] sm:$0xf0]  ;;  %9355 = vmatpush.bf16.msra.mxu3 %v12684_v25  ;;  %v16801_v25 = vld [vmem:[#allocation8 + $0xbfc] sm:$0xf]  ;;  %v14084_v8 = vor.u32 %v16786_v52, %v14083_v2  ;;  %v16756_v2 = vld [vmem:[#allocation8 + $0xa8c] sm:$0xf0] }
 0x411   :  { %v12644_v48 = vor.u32 %v16426_v41, %v12643_v21  ;;  %v14165_v21 = vld [vmem:[#allocation8 + $0xc20] sm:$0xf0]  ;;  %v16761_v52 = vld [vmem:[#allocation8 + $0xabc] sm:$0xf] }
 0x412   :  { %9446 = vmatpush.bf16.msra.mxu0 %v14924_v28  ;;  %v14163_v28 = vld [vmem:[#allocation8 + $0xbf8] sm:$0xf]  ;;  %v14168_v42 = vor.u32 %v16801_v25, %v14165_v21  ;;  %v16511_v25 = vld [vmem:[#allocation8 + $0x2ec] sm:$0xf] }
 0x413   :  { %9421 = vmatpush.bf16.msrb.mxu1 %v14244_v30  ;;  %v17259_v30 = vld [vmem:[#allocation10] sm:$0xff]  ;;  %v17932_v26 = vpop.f32.mrf.mxu1  ;;  %v14003_v21 = vld [vmem:[#allocation8 + $0xab8] sm:$0xf] }
 0x414   :  { %9482 = vmatpush.bf16.msrb.mxu2 %v12808_v46  ;;  %v13208_v46 = vor.u32 %v16561_v38, %v13205_v62  ;;  %9356 = vmatpush.bf16.msra.mxu3 %v12644_v48  ;;  %v4800_v36 = vperm.slane %v17259_v30, 5  ;;  %v9111_v38 = vpop.f32.mrf.mxu3 }
 0x416   :  { %9447 = vmatpush.bf16.msra.mxu0 %v14884_v33  ;;  %9422 = vmatmul.bf16.vlgmr.msrb.gmra.mxu1 %v17723_v19  ;;  %v14123_v33 = vld [vmem:[#allocation8 + $0xba8] sm:$0xf]  ;;  %v9228_v43 = vpop.f32.mrf.mxu0 }
 0x417   :  { %9471 = vmatpush.bf16.msra.mxu1 %v15604_v15  ;;  %v14164_v15 = vor.u32 %v16806_v45, %v14163_v28  ;;  %9357 = vmatmul.bf16.vlgmr.msra.gmra.mxu3 %v17696_v47  ;;  %v14124_v62 = vor.u32 %v16796_v49, %v14123_v33  ;;  %v13045_v45 = vld [vmem:[#allocation8 + $0x360] sm:$0xf0] }
 0x418   :  { %9483 = vmatpush.bf16.msrb.mxu2 %v12768_v24  ;;  %v4799_v24 = vperm.slane %v17259_v30, 4  ;;  %9401 = vmatpush.bf16.msrb.mxu3 %v14204_v1  ;;  %v13088_v1 = vor.u32 %v16531_v16, %v13085_v10  ;;  %v16781_v30 = vld [vmem:[#allocation8 + $0xb5c] sm:$0xf]  ;;  %v12965_v16 = vld [vmem:[#allocation8 + $0x2c0] sm:$0xf0] }
 0x419   :  { %9448 = vmatmul.bf16.vlgmr.msra.gmra.mxu0 %v17725_v11  ;;  %v13963_v10 = vld [vmem:[#allocation8 + $0xa68] sm:$0xf] }
 0x41a   :  { %9492 = vmatpush.bf16.msrb.mxu0 %v13248_v37  ;;  %v13485_v37 = vld [vmem:[#allocation8 + $0x6d0] sm:$0xf0]  ;;  %v9099_v41 = vadd.f32 %v17901_v54, %v4799_v24  ;;  %v16621_v54 = vld [vmem:[#allocation8 + $0x65c] sm:$0xf]  ;;  %v14085_v24 = vld [vmem:[#allocation8 + $0xb80] sm:$0xf0] }
 0x41b   :  { %9472 = vmatpush.bf16.msra.mxu1 %v15564_v32  ;;  %v13128_v32 = vor.u32 %v16541_v7, %v13125_v14  ;;  %v9204_v63 = vpop.f32.mrf.mxu1  ;;  %v13448_v39 = vor.u32 %v16621_v54, %v13445_v3  ;;  %v14088_v49 = vor.u32 %v16781_v30, %v14085_v24  ;;  %v14525_v54 = vld [vmem:[#allocation8 + $0xef0] sm:$0xf0]  ;;  %v16591_v3 = vld [vmem:[#allocation8 + $0x56c] sm:$0xf]  ;;  %v15483_v30 = vld [vmem:[#allocation8 + $0x1648] sm:$0xf] }
 0x41c   :  { %9484 = vmatpush.bf16.msrb.mxu2 %v12728_v31  ;;  %v16631_v31 = vld [vmem:[#allocation8 + $0x6ac] sm:$0xf]  ;;  %9402 = vmatpush.bf16.msrb.mxu3 %v14164_v15  ;;  %v9112_v48 = vadd.f32 %v9111_v38, %v9099_v41  ;;  %v13405_v15 = vld [vmem:[#allocation8 + $0x630] sm:$0xf0]  ;;  %v9113_v33 = vpop.f32.mrf.mxu3  ;;  %v17136_v24 = vld [vmem:[#allocation8 + $0x166c] sm:$0xf0] }
 0x41d   :  { %v13488_v53 = vor.u32 %v16631_v31, %v13485_v37  ;;  %v16766_v37 = vld [vmem:[#allocation8 + $0xadc] sm:$0xf0]  ;;  %v16771_v41 = vld [vmem:[#allocation8 + $0xb0c] sm:$0xf]  ;;  %v14845_v33 = vld [vmem:[#allocation8 + $0x1170] sm:$0xf0] }
 0x41e   :  { %9493 = vmatpush.bf16.msrb.mxu0 %v13208_v46  ;;  %v14125_v46 = vld [vmem:[#allocation8 + $0xbd0] sm:$0xf0]  ;;  %v9125_v0 = vadd.f32 %v17904_v44, %v9112_v48  ;;  %v9241_v56 = vpop.f32.mrf.mxu2 }
 0x41f   :  { %9473 = vmatpush.bf16.msra.mxu1 %v15524_v5  ;;  %v9229_v5 = vadd.f32 %v9228_v43, %v4800_v36  ;;  %v14045_v36 = vld [vmem:[#allocation8 + $0xb30] sm:$0xf0]  ;;  %v16601_v43 = vld [vmem:[#allocation8 + $0x5bc] sm:$0xf] }
 0x420   :  { %9485 = vmatpush.bf16.msrb.mxu2 %v12688_v59  ;;  %v16791_v59 = vld [vmem:[#allocation8 + $0xbac] sm:$0xf]  ;;  %9403 = vmatpush.bf16.msrb.mxu3 %v14124_v62  ;;  %v16501_v62 = vld [vmem:[#allocation8 + $0x29c] sm:$0xf] }
 0x421   :  { %v14128_v28 = vor.u32 %v16791_v59, %v14125_v46  ;;  %v17941_v44 = vadd.f32 %v9241_v56, %v9229_v5  ;;  %v14005_v59 = vld [vmem:[#allocation8 + $0xae0] sm:$0xf0]  ;;  %v16891_v46 = vld [vmem:[#allocation8 + $0xecc] sm:$0xf]  ;;  %v13964_v5 = vor.u32 %v16756_v2, %v13963_v10  ;;  %v13965_v56 = vld [vmem:[#allocation8 + $0xa90] sm:$0xf0] }
 0x422   :  { %9494 = vmatpush.bf16.msrb.mxu0 %v13168_v27  ;;  %v16611_v27 = vld [vmem:[#allocation8 + $0x60c] sm:$0xf]  ;;  %v14008_v63 = vor.u32 %v16761_v52, %v14005_v59  ;;  %v14405_v52 = vld [vmem:[#allocation8 + $0xe00] sm:$0xf0]  ;;  %v15403_v59 = vld [vmem:[#allocation8 + $0x15a8] sm:$0xf] }
 0x423   :  { %9505 = vmatpush.bf16.msrb.mxu1 %v13568_v12  ;;  %v16521_v12 = vld [vmem:[#allocation8 + $0x33c] sm:$0xf]  ;;  %v13408_v31 = vor.u32 %v16611_v27, %v13405_v15  ;;  %v13285_v27 = vld [vmem:[#allocation8 + $0x540] sm:$0xf0] }
 0x424   :  { %9486 = vmatpush.bf16.msrb.mxu2 %v12648_v60  ;;  %v9138_v60 = vadd.f32 %v17909_v58, %v9125_v0  ;;  %v13048_v7 = vor.u32 %v16521_v12, %v13045_v45  ;;  %9404 = vmatpush.bf16.msrb.mxu3 %v14084_v8  ;;  %v13005_v58 = vld [vmem:[#allocation8 + $0x310] sm:$0xf0]  ;;  %v13923_v8 = vld [vmem:[#allocation8 + $0xa18] sm:$0xf]  ;;  %v14528_v12 = vor.u32 %v16891_v46, %v14525_v54  ;;  %v17116_v54 = vld [vmem:[#allocation8 + $0x15cc] sm:$0xf0] }
 0x425   :  { %v13008_v38 = vor.u32 %v16511_v25, %v13005_v58  ;;  %v13325_v0 = vld [vmem:[#allocation8 + $0x590] sm:$0xf0]  ;;  %v16741_v25 = vld [vmem:[#allocation8 + $0xa1c] sm:$0xf]  ;;  %v13925_v58 = vld [vmem:[#allocation8 + $0xa40] sm:$0xf0] }
 0x426   :  { %9495 = vmatpush.bf16.msrb.mxu0 %v13128_v32  ;;  %15623 = vmatmul.msk.bf16.vlgmr.msra.gmra.mxu1 %vm8565_vm1, %v17767_v29  ;;  %v17944_v14 = vadd.f32 %v17917_v40, %v9138_v60  ;;  %v13365_v32 = vld [vmem:[#allocation8 + $0x5e0] sm:$0xf0]  ;;  %v14004_v40 = vor.u32 %v16766_v37, %v14003_v21  ;;  %v9243_v48 = vpop.f32.mrf.mxu2  ;;  %v13328_v45 = vor.u32 %v16591_v3, %v13325_v0  ;;  %v16581_v60 = vld [vmem:[#allocation8 + $0x51c] sm:$0xf]  ;;  %v14445_v37 = vld [vmem:[#allocation8 + $0xe50] sm:$0xf0] }
 0x427   :  { %9506 = vmatpush.bf16.msrb.mxu1 %v13528_v55  ;;  %9487 = vmatmul.bf16.vlgmr.msrb.gmra.mxu2 %v17696_v47  ;;  %v14044_v55 = vor.u32 %v16776_v22, %v14043_v17  ;;  %v16751_v17 = vld [vmem:[#allocation8 + $0xa6c] sm:$0xf]  ;;  %v14485_v22 = vld [vmem:[#allocation8 + $0xea0] sm:$0xf0]  ;;  %v13288_v21 = vor.u32 %v16581_v60, %v13285_v27  ;;  %v17121_v3 = vld [vmem:[#allocation8 + $0x15fc] sm:$0xf] }
 0x428   :  { %9531 = vmatpush.bf16.msra.mxu2 %v14208_v50  ;;  %v9230_v50 = vpop.f32.mrf.mxu0  ;;  %v15445_v0 = vld [vmem:[#allocation8 + $0x1620] sm:$0xf0]  ;;  %v17111_v60 = vld [vmem:[#allocation8 + $0x15ac] sm:$0xf]  ;;  %v15405_v27 = vld [vmem:[#allocation8 + $0x15d0] sm:$0xf0] }
 0x429   :  { %9405 = vmatpush.bf16.msrb.mxu3 %v14044_v55  ;;  %v13968_v50 = vor.u32 %v16751_v17, %v13965_v56  ;;  %v16851_v17 = vld [vmem:[#allocation8 + $0xd8c] sm:$0xf]  ;;  %v14365_v56 = vld [vmem:[#allocation8 + $0xdb0] sm:$0xf0] }
 0x42a   :  { %9496 = vmatpush.bf16.msrb.mxu0 %v13088_v1  ;;  %v12968_v1 = vor.u32 %v16501_v62, %v12965_v16  ;;  %v13928_v62 = vor.u32 %v16741_v25, %v13925_v58  ;;  %v15408_v25 = vor.u32 %v17111_v60, %v15405_v27  ;;  %v16841_v58 = vld [vmem:[#allocation8 + $0xd3c] sm:$0xf]  ;;  %v15605_v60 = vld [vmem:[#allocation8 + $0x1760] sm:$0xf0]  ;;  %v16911_v27 = vld [vmem:[#allocation8 + $0xf6c] sm:$0xf] }
 0x42b   :  { %9507 = vmatpush.bf16.msrb.mxu1 %v13488_v53  ;;  %v13368_v53 = vor.u32 %v16601_v43, %v13365_v32  ;;  %v17126_v43 = vld [vmem:[#allocation8 + $0x161c] sm:$0xf0]  ;;  %v17131_v32 = vld [vmem:[#allocation8 + $0x164c] sm:$0xf] }
 0x42c   :  { %9532 = vmatpush.bf16.msra.mxu2 %v14168_v42  ;;  %v14048_v42 = vor.u32 %v16771_v41, %v14045_v36  ;;  %v15443_v41 = vld [vmem:[#allocation8 + $0x15f8] sm:$0xf] }
 0x42d   :  { %9406 = vmatpush.bf16.msrb.mxu3 %v14004_v40  ;;  %v16961_v40 = vld [vmem:[#allocation8 + $0x10fc] sm:$0xf]  ;;  %v15444_v2 = vor.u32 %v17126_v43, %v15443_v41  ;;  %v17096_v41 = vld [vmem:[#allocation8 + $0x152c] sm:$0xf0]  ;;  %v15365_v43 = vld [vmem:[#allocation8 + $0x1580] sm:$0xf0] }
 0x42e   :  { %9497 = vmatpush.bf16.msrb.mxu0 %v13048_v7  ;;  %v16971_v7 = vld [vmem:[#allocation8 + $0x114c] sm:$0xf] }
 0x42f   :  { %9508 = vmatpush.bf16.msrb.mxu1 %v13448_v39  ;;  %v16881_v39 = vld [vmem:[#allocation8 + $0xe7c] sm:$0xf]  ;;  %v14848_v36 = vor.u32 %v16971_v7, %v14845_v33  ;;  %v14368_v33 = vor.u32 %v16851_v17, %v14365_v56  ;;  %v17076_v17 = vld [vmem:[#allocation8 + $0x148c] sm:$0xf0] }
 0x430   :  { %9533 = vmatpush.bf16.msra.mxu2 %v14128_v28  ;;  %v16746_v28 = vld [vmem:[#allocation8 + $0xa3c] sm:$0xf0]  ;;  %v14488_v55 = vor.u32 %v16881_v39, %v14485_v22  ;;  %v15363_v39 = vld [vmem:[#allocation8 + $0x1558] sm:$0xf] }
 0x431   :  { %9407 = vmatpush.bf16.msrb.mxu3 %v13964_v5  ;;  %v13924_v15 = vor.u32 %v16746_v28, %v13923_v8  ;;  %v14765_v5 = vld [vmem:[#allocation8 + $0x10d0] sm:$0xf0]  ;;  %v9163_v28 = vpop.f32.mrf.mxu3 }
 0x432   :  { %9498 = vmatpush.bf16.msrb.mxu0 %v13008_v38  ;;  %v15485_v38 = vld [vmem:[#allocation8 + $0x1670] sm:$0xf0]  ;;  %v9164_v22 = vadd.f32 %v9163_v28, %v17944_v14 }
 0x433   :  { %9509 = vmatpush.bf16.msrb.mxu1 %v13408_v31  ;;  %v16871_v31 = vld [vmem:[#allocation8 + $0xe2c] sm:$0xf]  ;;  %v17947_v10 = vpop.f32.mrf.mxu1  ;;  %v15488_v48 = vor.u32 %v17131_v32, %v15485_v38 }
 0x434   :  { %9534 = vmatpush.bf16.msra.mxu2 %v14088_v49  ;;  %v15484_v49 = vor.u32 %v17136_v24, %v15483_v30  ;;  %v14448_v16 = vor.u32 %v16871_v31, %v14445_v37  ;;  %v17106_v24 = vld [vmem:[#allocation8 + $0x157c] sm:$0xf0]  ;;  %v9177_v7 = vadd.f32 %v17920_v13, %v9164_v22  ;;  %v15323_v31 = vld [vmem:[#allocation8 + $0x1508] sm:$0xf]  ;;  %v16931_v38 = vld [vmem:[#allocation8 + $0x100c] sm:$0xf] }
 0x435   :  { %9408 = vmatpush.bf16.msrb.mxu3 %v13924_v15  ;;  %v16941_v15 = vld [vmem:[#allocation8 + $0x105c] sm:$0xf]  ;;  %v14685_v13 = vld [vmem:[#allocation8 + $0x1030] sm:$0xf0] }
 0x436   :  { %9499 = vmatpush.bf16.msrb.mxu0 %v12968_v1  ;;  %v16951_v1 = vld [vmem:[#allocation8 + $0x10ac] sm:$0xf]  ;;  %v9190_v32 = vadd.f32 %v17928_v35, %v9177_v7  ;;  %v15325_v35 = vld [vmem:[#allocation8 + $0x1530] sm:$0xf0]  ;;  %v17081_v22 = vld [vmem:[#allocation8 + $0x14bc] sm:$0xf] }
 0x437   :  { %9510 = vmatpush.bf16.msrb.mxu1 %v13368_v53  ;;  %v16861_v53 = vld [vmem:[#allocation8 + $0xddc] sm:$0xf]  ;;  %v14768_v30 = vor.u32 %v16951_v1, %v14765_v5  ;;  %v14645_v1 = vld [vmem:[#allocation8 + $0xfe0] sm:$0xf0] }
 0x438   :  { %9535 = vmatpush.bf16.msra.mxu2 %v14048_v42  ;;  %v14805_v42 = vld [vmem:[#allocation8 + $0x1120] sm:$0xf0]  ;;  %9409 = vmatmul.bf16.vlgmr.msrb.gmra.mxu3 %v17721_v6  ;;  %v14408_v8 = vor.u32 %v16861_v53, %v14405_v52  ;;  %v16831_v53 = vld [vmem:[#allocation8 + $0xcec] sm:$0xf]  ;;  %v14285_v52 = vld [vmem:[#allocation8 + $0xd10] sm:$0xf0] }
 0x439   :  { %9500 = vmatmul.bf16.vlgmr.msrb.gmra.mxu0 %v17700_v57  ;;  %9453 = vmatpush.bf16.msra.mxu3 %v15484_v49  ;;  %v14808_v46 = vor.u32 %v16961_v40, %v14805_v42  ;;  %v15364_v49 = vor.u32 %v17106_v24, %v15363_v39  ;;  %v9203_v42 = vadd.f32 %v17932_v26, %v9190_v32  ;;  %v17161_v24 = vld [vmem:[#allocation8 + $0x173c] sm:$0xf]  ;;  %v13885_v32 = vld [vmem:[#allocation8 + $0x9f0] sm:$0xf0] }
 0x43a   :  { %9544 = vmatpush.bf16.msra.mxu0 %v14528_v12  ;;  %v15404_v12 = vor.u32 %v17116_v54, %v15403_v59  ;;  %v15283_v59 = vld [vmem:[#allocation8 + $0x14b8] sm:$0xf]  ;;  %v17086_v54 = vld [vmem:[#allocation8 + $0x14dc] sm:$0xf0]  ;;  %v14288_v5 = vor.u32 %v16831_v53, %v14285_v52 }
 0x43b   :  { %9511 = vmatpush.bf16.msrb.mxu1 %v13328_v45  ;;  %v15448_v45 = vor.u32 %v17121_v3, %v15445_v0  ;;  %v17091_v3 = vld [vmem:[#allocation8 + $0x150c] sm:$0xf]  ;;  %v16921_v0 = vld [vmem:[#allocation8 + $0xfbc] sm:$0xf]  ;;  %v15284_v26 = vor.u32 %v17086_v54, %v15283_v59 }
 0x43c   :  { %9536 = vmatpush.bf16.msra.mxu2 %v14008_v63  ;;  %v17951_v63 = vpop.f32.mrf.mxu0  ;;  %v15328_v28 = vor.u32 %v17091_v3, %v15325_v35  ;;  %v14648_v39 = vor.u32 %v16921_v0, %v14645_v1  ;;  %v17061_v59 = vld [vmem:[#allocation8 + $0x141c] sm:$0xf]  ;;  %v15525_v35 = vld [vmem:[#allocation8 + $0x16c0] sm:$0xf0] }
 0x43d   :  { %9454 = vmatpush.bf16.msra.mxu3 %v15444_v2  ;;  %v15324_v2 = vor.u32 %v17096_v41, %v15323_v31  ;;  %v15245_v31 = vld [vmem:[#allocation8 + $0x1490] sm:$0xf0]  ;;  %v17141_v54 = vld [vmem:[#allocation8 + $0x169c] sm:$0xf]  ;;  %v13845_v1 = vld [vmem:[#allocation8 + $0x9a0] sm:$0xf0] }
 0x43e   :  { %9545 = vmatpush.bf16.msra.mxu0 %v14488_v55  ;;  %v9269_v55 = vpop.f32.mrf.mxu1  ;;  %v17956_v14 = vpop.f32.mrf.mxu2  ;;  %v16721_v0 = vld [vmem:[#allocation8 + $0x97c] sm:$0xf] }
 0x43f   :  { %9512 = vmatpush.bf16.msrb.mxu1 %v13288_v21  ;;  %v14325_v21 = vld [vmem:[#allocation8 + $0xd60] sm:$0xf0]  ;;  %v15203_v55 = vld [vmem:[#allocation8 + $0x1418] sm:$0xf] }
 0x440   :  { %9537 = vmatpush.bf16.msra.mxu2 %v13968_v50  ;;  %v14725_v50 = vld [vmem:[#allocation8 + $0x1080] sm:$0xf0]  ;;  %v14328_v40 = vor.u32 %v16841_v58, %v14325_v21  ;;  %v17071_v21 = vld [vmem:[#allocation8 + $0x146c] sm:$0xf] }
 0x441   :  { %9455 = vmatpush.bf16.msra.mxu3 %v15404_v12  ;;  %v14728_v37 = vor.u32 %v16941_v15, %v14725_v50  ;;  %v14245_v12 = vld [vmem:[#allocation8 + $0xcc0] sm:$0xf0]  ;;  %v14605_v15 = vld [vmem:[#allocation8 + $0xf90] sm:$0xf0] }
 0x442   :  { %9513 = vmatmul.bf16.vlgmr.msrb.gmra.mxu1 %v17702_v4  ;;  %9546 = vmatpush.bf16.msra.mxu0 %v14448_v16  ;;  %v9165_v16 = vpop.f32.mrf.mxu3  ;;  %v14608_v58 = vor.u32 %v16911_v27, %v14605_v15  ;;  %v16711_v27 = vld [vmem:[#allocation8 + $0x92c] sm:$0xf]  ;;  %v13805_v15 = vld [vmem:[#allocation8 + $0x950] sm:$0xf0] }
 0x443   :  { %9557 = vmatpush.bf16.msra.mxu1 %v14848_v36  ;;  %v17101_v36 = vld [vmem:[#allocation8 + $0x155c] sm:$0xf]  ;;  %v15248_v16 = vor.u32 %v17071_v21, %v15245_v31  ;;  %v12851_v21 = vld [vmem:[#allocation8 + $0x1b0] sm:$0xf]  ;;  %v16477_v31 = vld [vmem:[#allocation8 + $0x1d4] sm:$0xf0] }
 0x444   :  { %9538 = vmatpush.bf16.msra.mxu2 %v13928_v62  ;;  %v9282_v62 = vpop.f32.mrf.mxu0 }
 0x445   :  { %9456 = vmatpush.bf16.msra.mxu3 %v15364_v49  ;;  %v17066_v49 = vld [vmem:[#allocation8 + $0x143c] sm:$0xf0]  ;;  %v14565_v62 = vld [vmem:[#allocation8 + $0xf40] sm:$0xf0] }
 0x446   :  { %9547 = vmatpush.bf16.msra.mxu0 %v14408_v8  ;;  %v16821_v8 = vld [vmem:[#allocation8 + $0xc9c] sm:$0xf]  ;;  %v9295_v56 = vpop.f32.mrf.mxu2 }
 0x447   :  { %9558 = vmatpush.bf16.msra.mxu1 %v14808_v46  ;;  %9539 = vmatmul.bf16.vlgmr.msra.gmra.mxu2 %v17721_v6  ;;  %v14688_v46 = vor.u32 %v16931_v38, %v14685_v13  ;;  %v14248_v50 = vor.u32 %v16821_v8, %v14245_v12  ;;  %v16901_v13 = vld [vmem:[#allocation8 + $0xf1c] sm:$0xf]  ;;  %v13571_v8 = vld [vmem:[#allocation8 + $0x750] sm:$0xf]  ;;  %v16487_v56 = vld [vmem:[#allocation8 + $0x224] sm:$0xf0] }
 0x448   :  { %9583 = vmatpush.bf16.msrb.mxu2 %v15488_v48  ;;  %v15368_v48 = vor.u32 %v17101_v36, %v15365_v43  ;;  %v15565_v36 = vld [vmem:[#allocation8 + $0x1710] sm:$0xf0]  ;;  %v16731_v43 = vld [vmem:[#allocation8 + $0x9cc] sm:$0xf] }
 0x449   :  { %9457 = vmatpush.bf16.msra.mxu3 %v15324_v2  ;;  %v12931_v2 = vld [vmem:[#allocation8 + $0x250] sm:$0xf]  ;;  %v13888_v52 = vor.u32 %v16731_v43, %v13885_v32  ;;  %v16701_v43 = vld [vmem:[#allocation8 + $0x8dc] sm:$0xf] }
 0x44a   :  { %9548 = vmatpush.bf16.msra.mxu0 %v14368_v33  ;;  %v9215_v41 = vpop.f32.mrf.mxu3 }
 0x44b   :  { %9559 = vmatpush.bf16.msra.mxu1 %v14768_v30  ;;  %v15285_v30 = vld [vmem:[#allocation8 + $0x14e0] sm:$0xf0]  ;;  %v17960_v38 = vadd.f32 %v9215_v41, %v9203_v42  ;;  %v14568_v42 = vor.u32 %v16901_v13, %v14565_v62  ;;  %v13808_v41 = vor.u32 %v16711_v27, %v13805_v15  ;;  %v12852_v13 = vor.u32 %v16477_v31, %v12851_v21  ;;  %v13411_v15 = vld [vmem:[#allocation8 + $0x610] sm:$0xf]  ;;  %v16447_v21 = vld [vmem:[#allocation8 + $0xe4] sm:$0xf0] }
 0x44c   :  { %9584 = vmatpush.bf16.msrb.mxu2 %v15448_v45  ;;  %v15243_v45 = vld [vmem:[#allocation8 + $0x1468] sm:$0xf]  ;;  %v15288_v33 = vor.u32 %v17081_v22, %v15285_v30  ;;  %v13765_v62 = vld [vmem:[#allocation8 + $0x900] sm:$0xf0] }
 0x44d   :  { %9458 = vmatpush.bf16.msra.mxu3 %v15284_v26  ;;  %v15244_v7 = vor.u32 %v17076_v17, %v15243_v45  ;;  %v16657_v26 = vld [vmem:[#allocation8 + $0x774] sm:$0xf0]  ;;  %v12891_v17 = vld [vmem:[#allocation8 + $0x200] sm:$0xf]  ;;  %v13685_v27 = vld [vmem:[#allocation8 + $0x860] sm:$0xf0] }
 0x44e   :  { %9549 = vmatpush.bf16.msra.mxu0 %v14328_v40  ;;  %v15204_v40 = vor.u32 %v17066_v49, %v15203_v55  ;;  %v17963_v3 = vpop.f32.mrf.mxu2  ;;  %v16737_v45 = vld [vmem:[#allocation8 + $0x9f4] sm:$0xf0]  ;;  %v16647_v55 = vld [vmem:[#allocation8 + $0x724] sm:$0xf0]  ;;  %v13851_v49 = vld [vmem:[#allocation8 + $0x980] sm:$0xf] }
 0x44f   :  { %9560 = vmatpush.bf16.msra.mxu1 %v14728_v37  ;;  %v17151_v37 = vld [vmem:[#allocation8 + $0x16ec] sm:$0xf] }
 0x450   :  { %9585 = vmatpush.bf16.msrb.mxu2 %v15408_v25  ;;  %v15608_v25 = vor.u32 %v17161_v24, %v15605_v60  ;;  %v15568_v53 = vor.u32 %v17151_v37, %v15565_v36  ;;  %v13848_v24 = vor.u32 %v16721_v0, %v13845_v1  ;;  %v13572_v60 = vor.u32 %v16657_v26, %v13571_v8  ;;  %v13725_v0 = vld [vmem:[#allocation8 + $0x8b0] sm:$0xf0]  ;;  %v13451_v1 = vld [vmem:[#allocation8 + $0x660] sm:$0xf] }
 0x451   :  { %9459 = vmatpush.bf16.msra.mxu3 %v15244_v7  ;;  %v12892_v7 = vor.u32 %v16487_v56, %v12891_v17  ;;  %v16457_v17 = vld [vmem:[#allocation8 + $0x134] sm:$0xf0] }
 0x452   :  { %9550 = vmatpush.bf16.msra.mxu0 %v14288_v5  ;;  %v9217_v22 = vpop.f32.mrf.mxu3 }
 0x453   :  { %9561 = vmatpush.bf16.msra.mxu1 %v14688_v46  ;;  %v15205_v46 = vld [vmem:[#allocation8 + $0x1440] sm:$0xf0]  ;;  %v17965_v30 = vpop.f32.mrf.mxu1  ;;  %v16681_v22 = vld [vmem:[#allocation8 + $0x83c] sm:$0xf] }
 0x454   :  { %9586 = vmatpush.bf16.msrb.mxu2 %v15368_v48  ;;  %v16497_v48 = vld [vmem:[#allocation8 + $0x274] sm:$0xf0]  ;;  %v15208_v12 = vor.u32 %v17061_v59, %v15205_v46  ;;  %v13768_v46 = vor.u32 %v16701_v43, %v13765_v62  ;;  %v16607_v62 = vld [vmem:[#allocation8 + $0x5e4] sm:$0xf0] }
 0x455   :  { %v12932_v5 = vor.u32 %v16497_v48, %v12931_v2  ;;  %9460 = vmatpush.bf16.msra.mxu3 %v15204_v40  ;;  %v13491_v40 = vld [vmem:[#allocation8 + $0x6b0] sm:$0xf]  ;;  %v16717_v48 = vld [vmem:[#allocation8 + $0x954] sm:$0xf0] }
 0x456   :  { %9551 = vmatpush.bf16.msra.mxu0 %v14248_v50  ;;  %v9347_v37 = vpop.f32.mrf.mxu2  ;;  %v13811_v2 = vld [vmem:[#allocation8 + $0x930] sm:$0xf] }
 0x457   :  { %9562 = vmatpush.bf16.msra.mxu1 %v14648_v39  ;;  %v15528_v39 = vor.u32 %v17141_v54, %v15525_v35  ;;  %v13812_v35 = vor.u32 %v16717_v48, %v13811_v2  ;;  %v13688_v37 = vor.u32 %v16681_v22, %v13685_v27  ;;  %v16687_v2 = vld [vmem:[#allocation8 + $0x864] sm:$0xf0]  ;;  %v14211_v22 = vld [vmem:[#allocation8 + $0xc50] sm:$0xf]  ;;  %v13291_v27 = vld [vmem:[#allocation8 + $0x520] sm:$0xf] }
 0x458   :  { %9587 = vmatpush.bf16.msrb.mxu2 %v15328_v28  ;;  %v13891_v28 = vld [vmem:[#allocation8 + $0x9d0] sm:$0xf]  ;;  %9461 = vmatmul.bf16.vlgmr.msra.gmra.mxu3 %v17757_v20 }
 0x459   :  { %9552 = vmatmul.bf16.vlgmr.msra.gmra.mxu0 %v17723_v19  ;;  %9518 = vmatpush.bf16.msrb.mxu3 %v13888_v52  ;;  %v13892_v50 = vor.u32 %v16737_v45, %v13891_v28  ;;  %v16467_v52 = vld [vmem:[#allocation8 + $0x184] sm:$0xf0]  ;;  %v13771_v28 = vld [vmem:[#allocation8 + $0x8e0] sm:$0xf]  ;;  %v12771_v45 = vld [vmem:[#allocation8 + $0x110] sm:$0xf] }
 0x45a   :  { %9601 = vmatpush.bf16.msrb.mxu0 %v15608_v25  ;;  %v17968_v25 = vpop.f32.mrf.mxu0 }
 0x45b   :  { %9563 = vmatpush.bf16.msra.mxu1 %v14608_v58  ;;  %v16727_v58 = vld [vmem:[#allocation8 + $0x9a4] sm:$0xf0]  ;;  %v9321_v59 = vpop.f32.mrf.mxu1 }
 0x45c   :  { %9588 = vmatpush.bf16.msrb.mxu2 %v15288_v33  ;;  %v13531_v33 = vld [vmem:[#allocation8 + $0x700] sm:$0xf]  ;;  %v13852_v32 = vor.u32 %v16727_v58, %v13851_v49  ;;  %v16697_v49 = vld [vmem:[#allocation8 + $0x8b4] sm:$0xf0] }
 0x45d   :  { %9519 = vmatpush.bf16.msrb.mxu3 %v13848_v24  ;;  %v13532_v36 = vor.u32 %v16647_v55, %v13531_v33  ;;  %v12772_v33 = vor.u32 %v16457_v17, %v12771_v45  ;;  %v13731_v55 = vld [vmem:[#allocation8 + $0x890] sm:$0xf]  ;;  %v12731_v58 = vld [vmem:[#allocation8 + $0xc0] sm:$0xf]  ;;  %v16427_v17 = vld [vmem:[#allocation8 + $0x44] sm:$0xf0] }
 0x45e   :  { %9602 = vmatpush.bf16.msrb.mxu0 %v15568_v53  ;;  %v12811_v53 = vld [vmem:[#allocation8 + $0x160] sm:$0xf]  ;;  %v13732_v43 = vor.u32 %v16697_v49, %v13731_v55  ;;  %v16667_v55 = vld [vmem:[#allocation8 + $0x7c4] sm:$0xf0]  ;;  %v17041_v49 = vld [vmem:[#allocation8 + $0x137c] sm:$0xf] }
 0x45f   :  { %9564 = vmatpush.bf16.msra.mxu1 %v14568_v42  ;;  %v16691_v42 = vld [vmem:[#allocation8 + $0x88c] sm:$0xf]  ;;  %v12812_v8 = vor.u32 %v16467_v52, %v12811_v53  ;;  %v12691_v53 = vld [vmem:[#allocation8 + $0x70] sm:$0xf]  ;;  %v16437_v52 = vld [vmem:[#allocation8 + $0x94] sm:$0xf0] }
 0x460   :  { %9589 = vmatpush.bf16.msrb.mxu2 %v15248_v16  ;;  %v16637_v16 = vld [vmem:[#allocation8 + $0x6d4] sm:$0xf0]  ;;  %v13728_v56 = vor.u32 %v16691_v42, %v13725_v0  ;;  %v12651_v45 = vld [vmem:[#allocation8 + $0x20] sm:$0xf] }
 0x461   :  { %9520 = vmatpush.bf16.msrb.mxu3 %v13808_v41  ;;  %v13492_v54 = vor.u32 %v16637_v16, %v13491_v40  ;;  %v13691_v16 = vld [vmem:[#allocation8 + $0x840] sm:$0xf] }
 0x462   :  { %9565 = vmatmul.bf16.vlgmr.msra.gmra.mxu1 %v17728_v51  ;;  %9603 = vmatpush.bf16.msrb.mxu0 %v15528_v39  ;;  %v9334_v26 = vpop.f32.mrf.mxu0 }
 0x463   :  { %9609 = vmatpush.bf16.msrb.mxu1 %v12932_v5  ;;  %v16627_v5 = vld [vmem:[#allocation8 + $0x684] sm:$0xf0]  ;;  %v12692_v26 = vor.u32 %v16437_v52, %v12691_v53  ;;  %v15085_v53 = vld [vmem:[#allocation8 + $0x1350] sm:$0xf0] }
 0x464   :  { %9590 = vmatpush.bf16.msrb.mxu2 %v15208_v12  ;;  %v16707_v12 = vld [vmem:[#allocation8 + $0x904] sm:$0xf0]  ;;  %v13452_v39 = vor.u32 %v16627_v5, %v13451_v1  ;;  %v13331_v1 = vld [vmem:[#allocation8 + $0x570] sm:$0xf]  ;;  %v16597_v5 = vld [vmem:[#allocation8 + $0x594] sm:$0xf0] }
 0x465   :  { %9521 = vmatpush.bf16.msrb.mxu3 %v13768_v46  ;;  %v13772_v24 = vor.u32 %v16707_v12, %v13771_v28  ;;  %v16661_v46 = vld [vmem:[#allocation8 + $0x79c] sm:$0xf]  ;;  %v17051_v28 = vld [vmem:[#allocation8 + $0x13cc] sm:$0xf]  ;;  %v15165_v12 = vld [vmem:[#allocation8 + $0x13f0] sm:$0xf0] }
 0x466   :  { %9635 = vmatpush.bf16.msra.mxu0 %v13572_v60  ;;  %v9254_v60 = vpop.f32.mrf.mxu3 }
 0x467   :  { %9610 = vmatpush.bf16.msrb.mxu1 %v12892_v7  ;;  %9591 = vmatmul.bf16.vlgmr.msrb.gmra.mxu2 %v17757_v20  ;;  %v9255_v7 = vadd.f32 %v9254_v60, %v17941_v44  ;;  %v12732_v44 = vor.u32 %v16447_v21, %v12731_v58  ;;  %v15168_v60 = vor.u32 %v17051_v28, %v15165_v12  ;;  %v15125_v58 = vld [vmem:[#allocation8 + $0x13a0] sm:$0xf0] }
 0x468   :  { %9648 = vmatpush.bf16.msra.mxu2 %v13892_v50  ;;  %v16617_v50 = vld [vmem:[#allocation8 + $0x634] sm:$0xf0]  ;;  %v15045_v28 = vld [vmem:[#allocation8 + $0x1300] sm:$0xf0] }
 0x469   :  { %15624 = vmatmul.msk.bf16.vlgmr.msrb.gmra.mxu0 %vm8565_vm1, %v17767_v29  ;;  %9522 = vmatpush.bf16.msrb.mxu3 %v13728_v56  ;;  %v9268_v31 = vadd.f32 %v17947_v10, %v9255_v7  ;;  %v13412_v41 = vor.u32 %v16617_v50, %v13411_v15  ;;  %v16587_v15 = vld [vmem:[#allocation8 + $0x544] sm:$0xf0]  ;;  %v13611_v50 = vld [vmem:[#allocation8 + $0x7a0] sm:$0xf] }
 0x46a   :  { %9636 = vmatpush.bf16.msra.mxu0 %v13532_v36  ;;  %v16671_v36 = vld [vmem:[#allocation8 + $0x7ec] sm:$0xf]  ;;  %v17976_v40 = vpop.f32.mrf.mxu2 }
 0x46b   :  { %9611 = vmatpush.bf16.msrb.mxu1 %v12852_v13  ;;  %v13371_v13 = vld [vmem:[#allocation8 + $0x5c0] sm:$0xf]  ;;  %v9281_v48 = vadd.f32 %v17951_v63, %v9268_v31  ;;  %v16677_v63 = vld [vmem:[#allocation8 + $0x814] sm:$0xf0]  ;;  %v14851_v31 = vld [vmem:[#allocation8 + $0x1150] sm:$0xf] }
 0x46c   :  { %9649 = vmatpush.bf16.msra.mxu2 %v13852_v32  ;;  %v13645_v32 = vld [vmem:[#allocation8 + $0x810] sm:$0xf0]  ;;  %v13372_v59 = vor.u32 %v16607_v62, %v13371_v13  ;;  %v16807_v13 = vld [vmem:[#allocation8 + $0xc24] sm:$0xf0] }
 0x46d   :  { %9523 = vmatpush.bf16.msrb.mxu3 %v13688_v37  ;;  %v13648_v10 = vor.u32 %v16671_v36, %v13645_v32  ;;  %v17980_v42 = vadd.f32 %v17956_v14, %v9281_v48  ;;  %v16817_v14 = vld [vmem:[#allocation8 + $0xc74] sm:$0xf0]  ;;  %v13292_v36 = vor.u32 %v16587_v15, %v13291_v27  ;;  %v14171_v32 = vld [vmem:[#allocation8 + $0xc00] sm:$0xf]  ;;  %v17031_v48 = vld [vmem:[#allocation8 + $0x132c] sm:$0xf] }
 0x46e   :  { %9637 = vmatpush.bf16.msra.mxu0 %v13492_v54  ;;  %v13605_v54 = vld [vmem:[#allocation8 + $0x7c0] sm:$0xf0]  ;;  %v9256_v0 = vpop.f32.mrf.mxu3  ;;  %v14212_v21 = vor.u32 %v16817_v14, %v14211_v22  ;;  %v16977_v37 = vld [vmem:[#allocation8 + $0x1174] sm:$0xf0]  ;;  %v14091_v14 = vld [vmem:[#allocation8 + $0xb60] sm:$0xf] }
 0x46f   :  { %9612 = vmatpush.bf16.msrb.mxu1 %v12812_v8  ;;  %v13651_v8 = vld [vmem:[#allocation8 + $0x7f0] sm:$0xf]  ;;  %v13608_v56 = vor.u32 %v16661_v46, %v13605_v54  ;;  %v16967_v46 = vld [vmem:[#allocation8 + $0x1124] sm:$0xf0]  ;;  %v15131_v54 = vld [vmem:[#allocation8 + $0x1380] sm:$0xf] }
 0x470   :  { %9650 = vmatpush.bf16.msra.mxu2 %v13812_v35  ;;  %v13692_v35 = vor.u32 %v16687_v2, %v13691_v16  ;;  %v15128_v16 = vor.u32 %v17041_v49, %v15125_v58  ;;  %v14852_v2 = vor.u32 %v16977_v37, %v14851_v31  ;;  %v17047_v0 = vld [vmem:[#allocation8 + $0x13a4] sm:$0xf0]  ;;  %v17037_v22 = vld [vmem:[#allocation8 + $0x1354] sm:$0xf0]  ;;  %v14731_v49 = vld [vmem:[#allocation8 + $0x1060] sm:$0xf] }
 0x471   :  { %9524 = vmatpush.bf16.msrb.mxu3 %v13648_v10  ;;  %v14172_v10 = vor.u32 %v16807_v13, %v14171_v32  ;;  %v15132_v12 = vor.u32 %v17047_v0, %v15131_v54  ;;  %v16947_v58 = vld [vmem:[#allocation8 + $0x1084] sm:$0xf0]  ;;  %v17001_v13 = vld [vmem:[#allocation8 + $0x123c] sm:$0xf]  ;;  %v14011_v54 = vld [vmem:[#allocation8 + $0xac0] sm:$0xf] }
 0x472   :  { %9638 = vmatpush.bf16.msra.mxu0 %v13452_v39  ;;  %v13332_v39 = vor.u32 %v16597_v5, %v13331_v1  ;;  %v9386_v7 = vpop.f32.mrf.mxu2  ;;  %v14131_v1 = vld [vmem:[#allocation8 + $0xbb0] sm:$0xf]  ;;  %v16797_v5 = vld [vmem:[#allocation8 + $0xbd4] sm:$0xf0]  ;;  %v17027_v37 = vld [vmem:[#allocation8 + $0x1304] sm:$0xf0]  ;;  %v14732_v32 = vor.u32 %v16947_v58, %v14731_v49 }
 0x473   :  { %9613 = vmatpush.bf16.msrb.mxu1 %v12772_v33  ;;  %v12652_v33 = vor.u32 %v16427_v17, %v12651_v45  ;;  %v17982_v62 = vpop.f32.mrf.mxu1  ;;  %v14132_v45 = vor.u32 %v16797_v5, %v14131_v1  ;;  %v14771_v17 = vld [vmem:[#allocation8 + $0x10b0] sm:$0xf]  ;;  %v15005_v7 = vld [vmem:[#allocation8 + $0x12b0] sm:$0xf0]  ;;  %v16767_v0 = vld [vmem:[#allocation8 + $0xae4] sm:$0xf0] }
 0x474   :  { %9651 = vmatpush.bf16.msra.mxu2 %v13772_v24  ;;  %v13652_v24 = vor.u32 %v16677_v63, %v13651_v8  ;;  %v15088_v8 = vor.u32 %v17031_v48, %v15085_v53  ;;  %v17021_v63 = vld [vmem:[#allocation8 + $0x12dc] sm:$0xf]  ;;  %v14691_v53 = vld [vmem:[#allocation8 + $0x1010] sm:$0xf]  ;;  %v16917_v49 = vld [vmem:[#allocation8 + $0xf94] sm:$0xf0] }
 0x475   :  { %9525 = vmatpush.bf16.msrb.mxu3 %v13608_v56  ;;  %v16957_v56 = vld [vmem:[#allocation8 + $0x10d4] sm:$0xf0]  ;;  %v15048_v27 = vor.u32 %v17021_v63, %v15045_v28  ;;  %v14925_v63 = vld [vmem:[#allocation8 + $0x1210] sm:$0xf0]  ;;  %v14931_v58 = vld [vmem:[#allocation8 + $0x11f0] sm:$0xf] }
 0x476   :  { %9639 = vmatpush.bf16.msra.mxu0 %v13412_v41  ;;  %v15171_v41 = vld [vmem:[#allocation8 + $0x13d0] sm:$0xf]  ;;  %v14772_v15 = vor.u32 %v16957_v56, %v14771_v17  ;;  %v16927_v17 = vld [vmem:[#allocation8 + $0xfe4] sm:$0xf0]  ;;  %v14971_v56 = vld [vmem:[#allocation8 + $0x1240] sm:$0xf] }
 0x477   :  { %9614 = vmatpush.bf16.msrb.mxu1 %v12732_v44  ;;  %v13612_v44 = vor.u32 %v16667_v55, %v13611_v50  ;;  %v17011_v50 = vld [vmem:[#allocation8 + $0x128c] sm:$0xf] }
 0x478   :  { %9652 = vmatpush.bf16.msra.mxu2 %v13732_v43  ;;  %v17057_v43 = vld [vmem:[#allocation8 + $0x13f4] sm:$0xf0]  ;;  %9526 = vmatmul.bf16.vlgmr.msrb.gmra.mxu3 %v17706_v9 }
 0x479   :  { %9570 = vmatpush.bf16.msra.mxu3 %v15168_v60  ;;  %v15172_v52 = vor.u32 %v17057_v43, %v15171_v41  ;;  %v14051_v41 = vld [vmem:[#allocation8 + $0xb10] sm:$0xf]  ;;  %v15008_v43 = vor.u32 %v17011_v50, %v15005_v7  ;;  %v14885_v50 = vld [vmem:[#allocation8 + $0x11c0] sm:$0xf0] }
 0x47a   :  { %9640 = vmatpush.bf16.msra.mxu0 %v13372_v59  ;;  %v14811_v59 = vld [vmem:[#allocation8 + $0x1100] sm:$0xf] }
 0x47b   :  { %9615 = vmatpush.bf16.msrb.mxu1 %v12692_v26  ;;  %v14812_v26 = vor.u32 %v16967_v46, %v14811_v59  ;;  %v9373_v60 = vpop.f32.mrf.mxu1  ;;  %v17017_v46 = vld [vmem:[#allocation8 + $0x12b4] sm:$0xf0] }
 0x47c   :  { %9653 = vmatpush.bf16.msra.mxu2 %v13692_v35  ;;  %v17985_v35 = vpop.f32.mrf.mxu0 }
 0x47d   :  { %9571 = vmatpush.bf16.msra.mxu3 %v15128_v16 }
 0x47e   :  { %9641 = vmatpush.bf16.msra.mxu0 %v13332_v39  ;;  %v15091_v39 = vld [vmem:[#allocation8 + $0x1330] sm:$0xf] }
 0x47f   :  { %9616 = vmatpush.bf16.msrb.mxu1 %v12652_v33  ;;  %v15092_v33 = vor.u32 %v17037_v22, %v15091_v39  ;;  %v17007_v22 = vld [vmem:[#allocation8 + $0x1264] sm:$0xf0] }
 0x480   :  { %9654 = vmatpush.bf16.msra.mxu2 %v13652_v24  ;;  %v16787_v24 = vld [vmem:[#allocation8 + $0xb84] sm:$0xf0]  ;;  %v14972_v7 = vor.u32 %v17007_v22, %v14971_v56  ;;  %v13171_v22 = vld [vmem:[#allocation8 + $0x430] sm:$0xf] }
 0x481   :  { %9572 = vmatpush.bf16.msra.mxu3 %v15088_v8  ;;  %v14092_v55 = vor.u32 %v16787_v24, %v14091_v14  ;;  %v13971_v14 = vld [vmem:[#allocation8 + $0xa70] sm:$0xf]  ;;  %v16757_v24 = vld [vmem:[#allocation8 + $0xa94] sm:$0xf0] }
 0x482   :  { %9642 = vmatpush.bf16.msra.mxu0 %v13292_v36  ;;  %9617 = vmatmul.bf16.vlgmr.msrb.gmra.mxu1 %v17696_v47  ;;  %v16777_v36 = vld [vmem:[#allocation8 + $0xb34] sm:$0xf0] }
 0x483   :  { %9661 = vmatpush.bf16.msra.mxu1 %v14212_v21  ;;  %v15051_v21 = vld [vmem:[#allocation8 + $0x12e0] sm:$0xf]  ;;  %v14052_v48 = vor.u32 %v16777_v36, %v14051_v41 }
 0x484   :  { %9655 = vmatpush.bf16.msra.mxu2 %v13612_v44  ;;  %v9399_v31 = vpop.f32.mrf.mxu0  ;;  %v14965_v44 = vld [vmem:[#allocation8 + $0x1260] sm:$0xf0]  ;;  %v15052_v16 = vor.u32 %v17027_v37, %v15051_v21  ;;  %v16997_v21 = vld [vmem:[#allocation8 + $0x1214] sm:$0xf0]  ;;  %v13931_v41 = vld [vmem:[#allocation8 + $0xa20] sm:$0xf] }
 0x485   :  { %9643 = vmatmul.bf16.vlgmr.msra.gmra.mxu0 %v17702_v4  ;;  %9573 = vmatpush.bf16.msra.mxu3 %v15048_v27  ;;  %v14968_v5 = vor.u32 %v17001_v13, %v14965_v44  ;;  %v13251_v31 = vld [vmem:[#allocation8 + $0x4d0] sm:$0xf]  ;;  %v16577_v37 = vld [vmem:[#allocation8 + $0x4f4] sm:$0xf0]  ;;  %v14932_v44 = vor.u32 %v16997_v21, %v14931_v58  ;;  %v13131_v21 = vld [vmem:[#allocation8 + $0x3e0] sm:$0xf] }
 0x486   :  { %9687 = vmatpush.bf16.msrb.mxu0 %v14852_v2  ;;  %v9306_v2 = vpop.f32.mrf.mxu3  ;;  %v17137_v13 = vld [vmem:[#allocation8 + $0x1674] sm:$0xf0] }
 0x487   :  { %9662 = vmatpush.bf16.msra.mxu1 %v14172_v10  ;;  %9656 = vmatmul.bf16.vlgmr.msra.gmra.mxu2 %v17706_v9  ;;  %v15011_v10 = vld [vmem:[#allocation8 + $0x1290] sm:$0xf]  ;;  %v9307_v59 = vadd.f32 %v9306_v2, %v17980_v42  ;;  %v14571_v2 = vld [vmem:[#allocation8 + $0xf20] sm:$0xf] }
 0x488   :  { %9700 = vmatpush.bf16.msrb.mxu2 %v15172_v52  ;;  %v16937_v52 = vld [vmem:[#allocation8 + $0x1034] sm:$0xf0]  ;;  %v15012_v28 = vor.u32 %v17017_v46, %v15011_v10  ;;  %v13211_v46 = vld [vmem:[#allocation8 + $0x480] sm:$0xf] }
 0x489   :  { %9574 = vmatpush.bf16.msra.mxu3 %v15008_v43  ;;  %v9320_v1 = vadd.f32 %v17965_v30, %v9307_v59  ;;  %v14692_v8 = vor.u32 %v16937_v52, %v14691_v53  ;;  %v14891_v53 = vld [vmem:[#allocation8 + $0x11a0] sm:$0xf]  ;;  %v16987_v59 = vld [vmem:[#allocation8 + $0x11c4] sm:$0xf0] }
 0x48a   :  { %9688 = vmatpush.bf16.msrb.mxu0 %v14812_v26  ;;  %v16991_v26 = vld [vmem:[#allocation8 + $0x11ec] sm:$0xf]  ;;  %v17993_v39 = vpop.f32.mrf.mxu2 }
 0x48b   :  { %9663 = vmatpush.bf16.msra.mxu1 %v14132_v45  ;;  %v14651_v45 = vld [vmem:[#allocation8 + $0xfc0] sm:$0xf]  ;;  %v9333_v42 = vadd.f32 %v17968_v25, %v9320_v1  ;;  %v14928_v60 = vor.u32 %v16991_v26, %v14925_v63  ;;  %v14611_v25 = vld [vmem:[#allocation8 + $0xf70] sm:$0xf]  ;;  %v16492_v1 = vld [vmem:[#allocation8 + $0x254] sm:$0xf] }
 0x48c   :  { %9701 = vmatpush.bf16.msrb.mxu2 %v15132_v12  ;;  %v14012_v12 = vor.u32 %v16767_v0, %v14011_v54  ;;  %v14652_v27 = vor.u32 %v16927_v17, %v14651_v45  ;;  %v14612_v43 = vor.u32 %v16917_v49, %v14611_v25  ;;  %v16567_v54 = vld [vmem:[#allocation8 + $0x4a4] sm:$0xf0]  ;;  %v13253_v63 = vld [vmem:[#allocation8 + $0x4f8] sm:$0xf0]  ;;  %v14892_v17 = vor.u32 %v16987_v59, %v14891_v53  ;;  %v17117_v25 = vld [vmem:[#allocation8 + $0x15d4] sm:$0xf0] }
 0x48d   :  { %v17996_v30 = vadd.f32 %v17963_v3, %v9333_v42  ;;  %9575 = vmatpush.bf16.msra.mxu3 %v14968_v5  ;;  %v16747_v3 = vld [vmem:[#allocation8 + $0xa44] sm:$0xf0]  ;;  %v12933_v5 = vld [vmem:[#allocation8 + $0x278] sm:$0xf0]  ;;  %v13212_v56 = vor.u32 %v16567_v54, %v13211_v46  ;;  %v13091_v53 = vld [vmem:[#allocation8 + $0x390] sm:$0xf] }
 0x48e   :  { %9689 = vmatpush.bf16.msrb.mxu0 %v14772_v15  ;;  %v16981_v15 = vld [vmem:[#allocation8 + $0x119c] sm:$0xf]  ;;  %v13932_v10 = vor.u32 %v16747_v3, %v13931_v41  ;;  %v12936_v42 = vor.u32 %v16492_v1, %v12933_v5  ;;  %v16472_v3 = vld [vmem:[#allocation8 + $0x1b4] sm:$0xf]  ;;  %v16542_v1 = vld [vmem:[#allocation8 + $0x3e4] sm:$0xf] }
 0x48f   :  { %9664 = vmatpush.bf16.msra.mxu1 %v14092_v55  ;;  %v13972_v55 = vor.u32 %v16757_v24, %v13971_v14  ;;  %v14888_v36 = vor.u32 %v16981_v15, %v14885_v50  ;;  %v16557_v14 = vld [vmem:[#allocation8 + $0x454] sm:$0xf0]  ;;  %v16482_v15 = vld [vmem:[#allocation8 + $0x204] sm:$0xf]  ;;  %v12893_v50 = vld [vmem:[#allocation8 + $0x228] sm:$0xf0] }
 0x490   :  { %9702 = vmatpush.bf16.msrb.mxu2 %v15092_v33  ;;  %v9308_v33 = vpop.f32.mrf.mxu3  ;;  %v13172_v49 = vor.u32 %v16557_v14, %v13171_v22  ;;  %v12896_v58 = vor.u32 %v16482_v15, %v12893_v50  ;;  %v18006_v5 = vld [vmem:[#allocation10] sm:$0xff]  ;;  %v16527_v22 = vld [vmem:[#allocation8 + $0x364] sm:$0xf0]  ;;  %v12773_v50 = vld [vmem:[#allocation8 + $0x138] sm:$0xf0] }
 0x491   :  { %9576 = vmatpush.bf16.msra.mxu3 %v14928_v60  ;;  %v13213_v33 = vld [vmem:[#allocation8 + $0x4a8] sm:$0xf0]  ;;  %v16452_v15 = vld [vmem:[#allocation8 + $0x114] sm:$0xf] }
 0x492   :  { %9690 = vmatpush.bf16.msrb.mxu0 %v14732_v32  ;;  %v15491_v32 = vld [vmem:[#allocation8 + $0x1650] sm:$0xf]  ;;  %v9438_v52 = vpop.f32.mrf.mxu2 }
 0x493   :  { %9665 = vmatpush.bf16.msra.mxu1 %v14052_v48  ;;  %v16907_v48 = vld [vmem:[#allocation8 + $0xf44] sm:$0xf0]  ;;  %v15492_v0 = vor.u32 %v17137_v13, %v15491_v32  ;;  %v17998_v45 = vpop.f32.mrf.mxu1  ;;  %v13173_v32 = vld [vmem:[#allocation8 + $0x458] sm:$0xf0]  ;;  %v15371_v13 = vld [vmem:[#allocation8 + $0x1560] sm:$0xf] }
 0x494   :  { %9703 = vmatpush.bf16.msrb.mxu2 %v15052_v16  ;;  %v13252_v16 = vor.u32 %v16577_v37, %v13251_v31  ;;  %v14572_v26 = vor.u32 %v16907_v48, %v14571_v2  ;;  %v16547_v31 = vld [vmem:[#allocation8 + $0x404] sm:$0xf0]  ;;  %v16537_v52 = vld [vmem:[#allocation8 + $0x3b4] sm:$0xf0] }
 0x495   :  { %9577 = vmatpush.bf16.msra.mxu3 %v14888_v36  ;;  %v12853_v36 = vld [vmem:[#allocation8 + $0x1d8] sm:$0xf0]  ;;  %v13132_v2 = vor.u32 %v16547_v31, %v13131_v21  ;;  %v12776_v31 = vor.u32 %v16452_v15, %v12773_v50 }
 0x496   :  { %9691 = vmatpush.bf16.msrb.mxu0 %v14692_v8  ;;  %v16572_v8 = vld [vmem:[#allocation8 + $0x4d4] sm:$0xf]  ;;  %v12856_v48 = vor.u32 %v16472_v3, %v12853_v36 }
 0x497   :  { %9666 = vmatpush.bf16.msra.mxu1 %v14012_v12  ;;  %v17127_v12 = vld [vmem:[#allocation8 + $0x1624] sm:$0xf0]  ;;  %v13256_v24 = vor.u32 %v16572_v8, %v13253_v63  ;;  %v4801_v8 = vperm.slane %v18006_v5, 6  ;;  %v15331_v63 = vld [vmem:[#allocation8 + $0x1510] sm:$0xf] }
 0x498   :  { %9704 = vmatpush.bf16.msrb.mxu2 %v15012_v28  ;;  %v15451_v28 = vld [vmem:[#allocation8 + $0x1600] sm:$0xf]  ;;  %9578 = vmatmul.bf16.vlgmr.msra.gmra.mxu3 %v17725_v11 }
 0x499   :  { %9622 = vmatpush.bf16.msrb.mxu3 %v13252_v16  ;;  %v15452_v60 = vor.u32 %v17127_v12, %v15451_v28  ;;  %v17097_v28 = vld [vmem:[#allocation8 + $0x1534] sm:$0xf0]  ;;  %v13092_v12 = vor.u32 %v16537_v52, %v13091_v53 }
 0x49a   :  { %9692 = vmatpush.bf16.msrb.mxu0 %v14652_v27  ;;  %v18001_v27 = vpop.f32.mrf.mxu0 }
 0x49b   :  { %9667 = vmatpush.bf16.msra.mxu1 %v13972_v55  ;;  %v15411_v55 = vld [vmem:[#allocation8 + $0x15b0] sm:$0xf]  ;;  %v9425_v16 = vpop.f32.mrf.mxu1 }
 0x49c   :  { %9705 = vmatpush.bf16.msrb.mxu2 %v14972_v7  ;;  %v16562_v7 = vld [vmem:[#allocation8 + $0x484] sm:$0xf]  ;;  %v15412_v41 = vor.u32 %v17117_v25, %v15411_v55  ;;  %v15291_v55 = vld [vmem:[#allocation8 + $0x14c0] sm:$0xf]  ;;  %v17087_v25 = vld [vmem:[#allocation8 + $0x14e4] sm:$0xf0] }
 0x49d   :  { %9623 = vmatpush.bf16.msrb.mxu3 %v13212_v56  ;;  %v13216_v37 = vor.u32 %v16562_v7, %v13213_v33  ;;  %v9358_v56 = vpop.f32.mrf.mxu3  ;;  %v16532_v7 = vld [vmem:[#allocation8 + $0x394] sm:$0xf]  ;;  %v13093_v33 = vld [vmem:[#allocation8 + $0x3b8] sm:$0xf0] }
 0x49e   :  { %9693 = vmatpush.bf16.msrb.mxu0 %v14612_v43  ;;  %v16552_v43 = vld [vmem:[#allocation8 + $0x434] sm:$0xf]  ;;  %v13096_v3 = vor.u32 %v16532_v7, %v13093_v33  ;;  %v16422_v33 = vld [vmem:[#allocation8 + $0x24] sm:$0xf] }
 0x49f   :  { %9668 = vmatpush.bf16.msra.mxu1 %v13932_v10  ;;  %v16462_v10 = vld [vmem:[#allocation8 + $0x164] sm:$0xf]  ;;  %v13176_v59 = vor.u32 %v16552_v43, %v13173_v32  ;;  %v15292_v43 = vor.u32 %v17087_v25, %v15291_v55  ;;  %v12653_v55 = vld [vmem:[#allocation8 + $0x48] sm:$0xf0] }
 0x4a0   :  { %9706 = vmatpush.bf16.msrb.mxu2 %v14932_v44  ;;  %v17107_v44 = vld [vmem:[#allocation8 + $0x1584] sm:$0xf0]  ;;  %v16442_v32 = vld [vmem:[#allocation8 + $0xc4] sm:$0xf] }
 0x4a1   :  { %9624 = vmatpush.bf16.msrb.mxu3 %v13172_v49  ;;  %v15372_v46 = vor.u32 %v17107_v44, %v15371_v13  ;;  %v12733_v13 = vld [vmem:[#allocation8 + $0xe8] sm:$0xf0]  ;;  %v16522_v44 = vld [vmem:[#allocation8 + $0x344] sm:$0xf] }
 0x4a2   :  { %9694 = vmatpush.bf16.msrb.mxu0 %v14572_v26  ;;  %9669 = vmatmul.bf16.vlgmr.msra.gmra.mxu1 %v17721_v6  ;;  %v9451_v54 = vpop.f32.mrf.mxu0  ;;  %v13133_v26 = vld [vmem:[#allocation8 + $0x408] sm:$0xf0]  ;;  %v16502_v25 = vld [vmem:[#allocation8 + $0x2a4] sm:$0xf] }
 0x4a3   :  { %9713 = vmatpush.bf16.msrb.mxu1 %v15492_v0  ;;  %v12813_v0 = vld [vmem:[#allocation8 + $0x188] sm:$0xf0]  ;;  %v13136_v14 = vor.u32 %v16542_v1, %v13133_v26  ;;  %v16507_v54 = vld [vmem:[#allocation8 + $0x2c4] sm:$0xf0]  ;;  %v12693_v26 = vld [vmem:[#allocation8 + $0x98] sm:$0xf0] }
 0x4a4   :  { %9707 = vmatpush.bf16.msrb.mxu2 %v14892_v17  ;;  %v12816_v17 = vor.u32 %v16462_v10, %v12813_v0  ;;  %v12736_v10 = vor.u32 %v16442_v32, %v12733_v13  ;;  %v12656_v32 = vor.u32 %v16422_v33, %v12653_v55  ;;  %v14533_v13 = vld [vmem:[#allocation8 + $0xef8] sm:$0xf0] }
 0x4a5   :  { %9695 = vmatmul.bf16.vlgmr.msrb.gmra.mxu0 %v17728_v51  ;;  %9625 = vmatpush.bf16.msrb.mxu3 %v13132_v2  ;;  %v13053_v2 = vld [vmem:[#allocation8 + $0x368] sm:$0xf0] }
 0x4a6   :  { %9739 = vmatpush.bf16.msra.mxu0 %v12936_v42  ;;  %v13051_v42 = vld [vmem:[#allocation8 + $0x340] sm:$0xf]  ;;  %v13056_v0 = vor.u32 %v16522_v44, %v13053_v2  ;;  %v16722_v44 = vld [vmem:[#allocation8 + $0x984] sm:$0xf] }
 0x4a7   :  { %9714 = vmatpush.bf16.msrb.mxu1 %v15452_v60  ;;  %9708 = vmatmul.bf16.vlgmr.msrb.gmra.mxu2 %v17725_v11  ;;  %v15332_v60 = vor.u32 %v17097_v28, %v15331_v63  ;;  %v13052_v21 = vor.u32 %v16527_v22, %v13051_v42  ;;  %v13013_v63 = vld [vmem:[#allocation8 + $0x318] sm:$0xf0]  ;;  %v14531_v28 = vld [vmem:[#allocation8 + $0xed0] sm:$0xf]  ;;  %v4802_v42 = vperm.slane %v18006_v5, 7 }
 0x4a8   :  { %9752 = vmatpush.bf16.msra.mxu2 %v13256_v24  ;;  %v9359_v24 = vadd.f32 %v9358_v56, %v4801_v8  ;;  %v16432_v8 = vld [vmem:[#allocation8 + $0x74] sm:$0xf]  ;;  %v17067_v56 = vld [vmem:[#allocation8 + $0x1444] sm:$0xf0] }
 0x4a9   :  { %9626 = vmatpush.bf16.msrb.mxu3 %v13092_v12  ;;  %v16897_v12 = vld [vmem:[#allocation8 + $0xef4] sm:$0xf0]  ;;  %v16812_v5 = vld [vmem:[#allocation8 + $0xc54] sm:$0xf] }
 0x4aa   :  { %9740 = vmatpush.bf16.msra.mxu0 %v12896_v58  ;;  %v9372_v49 = vadd.f32 %v17982_v62, %v9359_v24  ;;  %v18010_v58 = vpop.f32.mrf.mxu1  ;;  %v9488_v36 = vpop.f32.mrf.mxu2  ;;  %v15251_v62 = vld [vmem:[#allocation8 + $0x1470] sm:$0xf]  ;;  %v16732_v24 = vld [vmem:[#allocation8 + $0x9d4] sm:$0xf]  ;;  %v14532_v7 = vor.u32 %v16897_v12, %v14531_v28  ;;  %v13813_v12 = vld [vmem:[#allocation8 + $0x958] sm:$0xf0] }
 0x4ab   :  { %9715 = vmatpush.bf16.msrb.mxu1 %v15412_v41  ;;  %v16517_v41 = vld [vmem:[#allocation8 + $0x314] sm:$0xf0]  ;;  %v16712_v28 = vld [vmem:[#allocation8 + $0x934] sm:$0xf] }
 0x4ac   :  { %9753 = vmatpush.bf16.msra.mxu2 %v13216_v37  ;;  %v13011_v37 = vld [vmem:[#allocation8 + $0x2f0] sm:$0xf]  ;;  %v9385_v16 = vadd.f32 %v17976_v40, %v9372_v49  ;;  %v16512_v40 = vld [vmem:[#allocation8 + $0x2f4] sm:$0xf] }
 0x4ad   :  { %9627 = vmatpush.bf16.msrb.mxu3 %v13052_v21  ;;  %v13012_v52 = vor.u32 %v16517_v41, %v13011_v37  ;;  %v13016_v15 = vor.u32 %v16512_v40, %v13013_v63  ;;  %v12973_v21 = vld [vmem:[#allocation8 + $0x2c8] sm:$0xf0]  ;;  %v16887_v37 = vld [vmem:[#allocation8 + $0xea4] sm:$0xf0] }
 0x4ae   :  { %9741 = vmatpush.bf16.msra.mxu0 %v12856_v48  ;;  %v17077_v48 = vld [vmem:[#allocation8 + $0x1494] sm:$0xf0]  ;;  %v18014_v53 = vadd.f32 %v17985_v35, %v9385_v16  ;;  %v15211_v35 = vld [vmem:[#allocation8 + $0x1420] sm:$0xf]  ;;  %v13853_v16 = vld [vmem:[#allocation8 + $0x9a8] sm:$0xf0]  ;;  %v12976_v2 = vor.u32 %v16502_v25, %v12973_v21 }
 0x4af   :  { %9716 = vmatpush.bf16.msrb.mxu1 %v15372_v46  ;;  %v12971_v46 = vld [vmem:[#allocation8 + $0x2a0] sm:$0xf]  ;;  %v15252_v1 = vor.u32 %v17077_v48, %v15251_v62  ;;  %v15212_v49 = vor.u32 %v17067_v56, %v15211_v35  ;;  %v9489_v62 = vadd.f32 %v9488_v36, %v4802_v42  ;;  %v14493_v63 = vld [vmem:[#allocation8 + $0xea8] sm:$0xf0]  ;;  %v16867_v56 = vld [vmem:[#allocation8 + $0xe04] sm:$0xf0] }
 0x4b0   :  { %9754 = vmatpush.bf16.msra.mxu2 %v13176_v59  ;;  %v9360_v59 = vpop.f32.mrf.mxu3  ;;  %v12972_v22 = vor.u32 %v16507_v54, %v12971_v46  ;;  %v13856_v54 = vor.u32 %v16722_v44, %v13853_v16  ;;  %v14411_v35 = vld [vmem:[#allocation8 + $0xde0] sm:$0xf]  ;;  %v16857_v21 = vld [vmem:[#allocation8 + $0xdb4] sm:$0xf0] }
 0x4b1   :  { %9628 = vmatpush.bf16.msrb.mxu3 %v13012_v52  ;;  %v16877_v59 = vld [vmem:[#allocation8 + $0xe54] sm:$0xf0]  ;;  %v14412_v55 = vor.u32 %v16867_v56, %v14411_v35 }
 0x4b2   :  { %9742 = vmatpush.bf16.msra.mxu0 %v12816_v17  ;;  %v9477_v17 = vpop.f32.mrf.mxu1  ;;  %v9490_v50 = vpop.f32.mrf.mxu2  ;;  %v16837_v35 = vld [vmem:[#allocation8 + $0xd14] sm:$0xf0] }
 0x4b3   :  { %9717 = vmatpush.bf16.msrb.mxu1 %v15332_v60  ;;  %v13893_v60 = vld [vmem:[#allocation8 + $0x9f8] sm:$0xf0]  ;;  %v16702_v50 = vld [vmem:[#allocation8 + $0x8e4] sm:$0xf] }
 0x4b4   :  { %9755 = vmatpush.bf16.msra.mxu2 %v13136_v14  ;;  %v12696_v14 = vor.u32 %v16432_v8, %v12693_v26  ;;  %v13896_v41 = vor.u32 %v16732_v24, %v13893_v60  ;;  %v14173_v8 = vld [vmem:[#allocation8 + $0xc28] sm:$0xf0]  ;;  %v16882_v26 = vld [vmem:[#allocation8 + $0xe84] sm:$0xf]  ;;  %v14133_v24 = vld [vmem:[#allocation8 + $0xbd8] sm:$0xf0] }
 0x4b5   :  { %9629 = vmatpush.bf16.msrb.mxu3 %v12972_v22  ;;  %v14496_v42 = vor.u32 %v16882_v26, %v14493_v63  ;;  %v13816_v22 = vor.u32 %v16712_v28, %v13813_v12  ;;  %v16872_v60 = vld [vmem:[#allocation8 + $0xe34] sm:$0xf]  ;;  %v13693_v26 = vld [vmem:[#allocation8 + $0x868] sm:$0xf0] }
 0x4b6   :  { %9743 = vmatpush.bf16.msra.mxu0 %v12776_v31  ;;  %v14491_v31 = vld [vmem:[#allocation8 + $0xe80] sm:$0xf] }
 0x4b7   :  { %9718 = vmatpush.bf16.msrb.mxu1 %v15292_v43  ;;  %v16892_v43 = vld [vmem:[#allocation8 + $0xed4] sm:$0xf]  ;;  %v14492_v48 = vor.u32 %v16887_v37, %v14491_v31 }
 0x4b8   :  { %9756 = vmatpush.bf16.msra.mxu2 %v13096_v3  ;;  %v14213_v3 = vld [vmem:[#allocation8 + $0xc78] sm:$0xf0]  ;;  %9630 = vmatmul.bf16.vlgmr.msrb.gmra.mxu3 %v17700_v57  ;;  %v14536_v46 = vor.u32 %v16892_v43, %v14533_v13  ;;  %v14413_v43 = vld [vmem:[#allocation8 + $0xe08] sm:$0xf0] }
 0x4b9   :  { %9674 = vmatpush.bf16.msra.mxu3 %v14532_v7  ;;  %v14216_v52 = vor.u32 %v16812_v5, %v14213_v3  ;;  %v13773_v7 = vld [vmem:[#allocation8 + $0x908] sm:$0xf0]  ;;  %v13733_v13 = vld [vmem:[#allocation8 + $0x8b8] sm:$0xf0] }
 0x4ba   :  { %9744 = vmatpush.bf16.msra.mxu0 %v12736_v10  ;;  %v14451_v10 = vld [vmem:[#allocation8 + $0xe30] sm:$0xf]  ;;  %v14093_v3 = vld [vmem:[#allocation8 + $0xb88] sm:$0xf0] }
 0x4bb   :  { %9719 = vmatpush.bf16.msrb.mxu1 %v15252_v1  ;;  %v16802_v1 = vld [vmem:[#allocation8 + $0xc04] sm:$0xf]  ;;  %v14452_v36 = vor.u32 %v16877_v59, %v14451_v10 }
 0x4bc   :  { %9757 = vmatpush.bf16.msra.mxu2 %v13056_v0  ;;  %v9501_v0 = vpop.f32.mrf.mxu0  ;;  %v14176_v17 = vor.u32 %v16802_v1, %v14173_v8  ;;  %v14373_v1 = vld [vmem:[#allocation8 + $0xdb8] sm:$0xf0]  ;;  %v16682_v8 = vld [vmem:[#allocation8 + $0x844] sm:$0xf] }
 0x4bd   :  { %v9502_v40 = vadd.f32 %v9501_v0, %v9489_v62  ;;  %9675 = vmatpush.bf16.msra.mxu3 %v14492_v48  ;;  %v14331_v62 = vld [vmem:[#allocation8 + $0xd40] sm:$0xf]  ;;  %v16847_v48 = vld [vmem:[#allocation8 + $0xd64] sm:$0xf0]  ;;  %v16852_v0 = vld [vmem:[#allocation8 + $0xd94] sm:$0xf]  ;;  %v13696_v56 = vor.u32 %v16682_v8, %v13693_v26 }
 0x4be   :  { %9745 = vmatpush.bf16.msra.mxu0 %v12696_v14  ;;  %v16792_v14 = vld [vmem:[#allocation8 + $0xbb4] sm:$0xf]  ;;  %v14332_v28 = vor.u32 %v16847_v48, %v14331_v62 }
 0x4bf   :  { %9720 = vmatpush.bf16.msrb.mxu1 %v15212_v49  ;;  %v9514_v33 = vpop.f32.mrf.mxu1  ;;  %v14136_v25 = vor.u32 %v16792_v14, %v14133_v24  ;;  %v14371_v49 = vld [vmem:[#allocation8 + $0xd90] sm:$0xf]  ;;  %v16842_v14 = vld [vmem:[#allocation8 + $0xd44] sm:$0xf]  ;;  %v17132_v26 = vld [vmem:[#allocation8 + $0x1654] sm:$0xf] }
 0x4c0   :  { %9758 = vmatpush.bf16.msra.mxu2 %v13016_v15  ;;  %v14453_v15 = vld [vmem:[#allocation8 + $0xe58] sm:$0xf0]  ;;  %v18021_v31 = vadd.f32 %v9514_v33, %v9502_v40  ;;  %v14372_v44 = vor.u32 %v16857_v21, %v14371_v49  ;;  %v16827_v49 = vld [vmem:[#allocation8 + $0xcc4] sm:$0xf0] }
 0x4c1   :  { %9676 = vmatpush.bf16.msra.mxu3 %v14452_v36  ;;  %v14456_v37 = vor.u32 %v16872_v60, %v14453_v15  ;;  %v14333_v60 = vld [vmem:[#allocation8 + $0xd68] sm:$0xf0]  ;;  %v13653_v15 = vld [vmem:[#allocation8 + $0x818] sm:$0xf0] }
 0x4c2   :  { %9746 = vmatpush.bf16.msra.mxu0 %v12656_v32  ;;  %9721 = vmatmul.bf16.vlgmr.msrb.gmra.mxu1 %v17757_v20  ;;  %v16692_v32 = vld [vmem:[#allocation8 + $0x894] sm:$0xf]  ;;  %v14336_v21 = vor.u32 %v16842_v14, %v14333_v60  ;;  %v17147_v14 = vld [vmem:[#allocation8 + $0x16c4] sm:$0xf0] }
 0x4c3   :  { %9778 = vmatpush.bf16.msra.mxu1 %v13896_v41  ;;  %v13776_v41 = vor.u32 %v16702_v50, %v13773_v7  ;;  %v13736_v59 = vor.u32 %v16692_v32, %v13733_v13 }
 0x4c4   :  { %9759 = vmatpush.bf16.msra.mxu2 %v12976_v2  ;;  %v9503_v5 = vpop.f32.mrf.mxu0  ;;  %v9410_v2 = vpop.f32.mrf.mxu3 }
 0x4c5   :  { %9747 = vmatmul.bf16.vlgmr.msra.gmra.mxu0 %v17696_v47  ;;  %v16782_v47 = vld [vmem:[#allocation8 + $0xb64] sm:$0xf]  ;;  %9677 = vmatpush.bf16.msra.mxu3 %v14412_v55  ;;  %v9411_v10 = vadd.f32 %v9410_v2, %v18014_v53  ;;  %v14376_v53 = vor.u32 %v16852_v0, %v14373_v1  ;;  %v13973_v5 = vld [vmem:[#allocation8 + $0xa98] sm:$0xf0]  ;;  %v15571_v0 = vld [vmem:[#allocation8 + $0x16f0] sm:$0xf] }
 0x4c6   :  { %9791 = vmatpush.bf16.msrb.mxu0 %v14216_v52  ;;  %v14096_v16 = vor.u32 %v16782_v47, %v14093_v3  ;;  %v14293_v47 = vld [vmem:[#allocation8 + $0xd18] sm:$0xf0]  ;;  %v15611_v3 = vld [vmem:[#allocation8 + $0x1740] sm:$0xf]  ;;  %v17157_v1 = vld [vmem:[#allocation8 + $0x1714] sm:$0xf0] }
 0x4c7   :  { %9779 = vmatpush.bf16.msra.mxu1 %v13856_v54  ;;  %9760 = vmatmul.bf16.vlgmr.msra.gmra.mxu2 %v17700_v57  ;;  %v16862_v57 = vld [vmem:[#allocation8 + $0xde4] sm:$0xf]  ;;  %v14053_v54 = vld [vmem:[#allocation8 + $0xb38] sm:$0xf0]  ;;  %v9424_v40 = vadd.f32 %v17998_v45, %v9411_v10  ;;  %v9516_v63 = vpop.f32.mrf.mxu1  ;;  %v16672_v45 = vld [vmem:[#allocation8 + $0x7f4] sm:$0xf] }
 0x4c8   :  { %9804 = vmatpush.bf16.msrb.mxu2 %v14536_v46  ;;  %v14416_v52 = vor.u32 %v16862_v57, %v14413_v43  ;;  %v16772_v46 = vld [vmem:[#allocation8 + $0xb14] sm:$0xf]  ;;  %v17167_v57 = vld [vmem:[#allocation8 + $0x1764] sm:$0xf0]  ;;  %v16662_v43 = vld [vmem:[#allocation8 + $0x7a4] sm:$0xf] }
 0x4c9   :  { %9678 = vmatpush.bf16.msra.mxu3 %v14372_v44  ;;  %v14056_v12 = vor.u32 %v16772_v46, %v14053_v54  ;;  %v9437_v24 = vadd.f32 %v17993_v39, %v9424_v40  ;;  %v16832_v39 = vld [vmem:[#allocation8 + $0xcf4] sm:$0xf]  ;;  %v15173_v2 = vld [vmem:[#allocation8 + $0x13f8] sm:$0xf0]  ;;  %v15612_v48 = vor.u32 %v17167_v57, %v15611_v3  ;;  %v13933_v10 = vld [vmem:[#allocation8 + $0xa48] sm:$0xf0] }
 0x4ca   :  { %9792 = vmatpush.bf16.msrb.mxu0 %v14176_v17  ;;  %v18025_v36 = vpop.f32.mrf.mxu2  ;;  %v14291_v17 = vld [vmem:[#allocation8 + $0xcf0] sm:$0xf]  ;;  %v14296_v62 = vor.u32 %v16832_v39, %v14293_v47  ;;  %v14253_v54 = vld [vmem:[#allocation8 + $0xcc8] sm:$0xf0]  ;;  %v15493_v40 = vld [vmem:[#allocation8 + $0x1678] sm:$0xf0] }
 0x4cb   :  { %9780 = vmatpush.bf16.msra.mxu1 %v13816_v22  ;;  %v14013_v22 = vld [vmem:[#allocation8 + $0xae8] sm:$0xf0]  ;;  %v18029_v50 = vadd.f32 %v18001_v27, %v9437_v24  ;;  %v14292_v7 = vor.u32 %v16837_v35, %v14291_v17  ;;  %v17162_v63 = vld [vmem:[#allocation8 + $0x1744] sm:$0xf]  ;;  %v17112_v3 = vld [vmem:[#allocation8 + $0x15b4] sm:$0xf] }
 0x4cc   :  { %9805 = vmatpush.bf16.msrb.mxu2 %v14496_v42  ;;  %v16762_v42 = vld [vmem:[#allocation8 + $0xac4] sm:$0xf]  ;;  %v9412_v55 = vpop.f32.mrf.mxu3  ;;  %v13613_v27 = vld [vmem:[#allocation8 + $0x7c8] sm:$0xf0]  ;;  %v15413_v57 = vld [vmem:[#allocation8 + $0x15d8] sm:$0xf0] }
 0x4cd   :  { %9679 = vmatpush.bf16.msra.mxu3 %v14332_v28  ;;  %v14016_v33 = vor.u32 %v16762_v42, %v14013_v22  ;;  %v13616_v46 = vor.u32 %v16662_v43, %v13613_v27  ;;  %v17042_v17 = vld [vmem:[#allocation8 + $0x1384] sm:$0xf]  ;;  %v15133_v35 = vld [vmem:[#allocation8 + $0x13a8] sm:$0xf0]  ;;  %v15496_v42 = vor.u32 %v17132_v26, %v15493_v40  ;;  %v15531_v22 = vld [vmem:[#allocation8 + $0x16a0] sm:$0xf] }
 0x4ce   :  { %9793 = vmatpush.bf16.msrb.mxu0 %v14136_v25  ;;  %v14251_v25 = vld [vmem:[#allocation8 + $0xca0] sm:$0xf]  ;;  %v15136_v60 = vor.u32 %v17042_v17, %v15133_v35  ;;  %v15573_v55 = vld [vmem:[#allocation8 + $0x1718] sm:$0xf0]  ;;  %v17142_v43 = vld [vmem:[#allocation8 + $0x16a4] sm:$0xf] }
 0x4cf   :  { %9781 = vmatpush.bf16.msra.mxu1 %v13776_v41  ;;  %v16752_v41 = vld [vmem:[#allocation8 + $0xa74] sm:$0xf]  ;;  %v14252_v32 = vor.u32 %v16827_v49, %v14251_v25  ;;  %v13573_v49 = vld [vmem:[#allocation8 + $0x778] sm:$0xf0] }
 0x4d0   :  { %9806 = vmatpush.bf16.msrb.mxu2 %v14456_v37  ;;  %v13656_v37 = vor.u32 %v16672_v45, %v13653_v15  ;;  %v13976_v13 = vor.u32 %v16752_v41, %v13973_v5  ;;  %v17122_v15 = vld [vmem:[#allocation8 + $0x1604] sm:$0xf]  ;;  %v16652_v25 = vld [vmem:[#allocation8 + $0x754] sm:$0xf]  ;;  %v15532_v41 = vor.u32 %v17147_v14, %v15531_v22  ;;  %v15333_v17 = vld [vmem:[#allocation8 + $0x1538] sm:$0xf0] }
 0x4d1   :  { %9680 = vmatpush.bf16.msra.mxu3 %v14292_v7  ;;  %v15453_v7 = vld [vmem:[#allocation8 + $0x1628] sm:$0xf0]  ;;  %v13576_v47 = vor.u32 %v16652_v25, %v13573_v49  ;;  %v17002_v14 = vld [vmem:[#allocation8 + $0x1244] sm:$0xf] }
 0x4d2   :  { %9794 = vmatpush.bf16.msrb.mxu0 %v14096_v16  ;;  %v9542_v44 = vpop.f32.mrf.mxu2  ;;  %v17052_v16 = vld [vmem:[#allocation8 + $0x13d4] sm:$0xf]  ;;  %v15456_v5 = vor.u32 %v17122_v15, %v15453_v7  ;;  %v17189_v49 = vld [vmem:[#allocation11 + $0xa8] sm:$0xff] }
 0x4d3   :  { %9782 = vmatpush.bf16.msra.mxu1 %v13736_v59  ;;  %v16822_v59 = vld [vmem:[#allocation8 + $0xca4] sm:$0xf]  ;;  %v15176_v8 = vor.u32 %v17052_v16, %v15173_v2  ;;  %v15053_v16 = vld [vmem:[#allocation8 + $0x1308] sm:$0xf0] }
 0x4d4   :  { %9807 = vmatpush.bf16.msrb.mxu2 %v14416_v52  ;;  %v16742_v52 = vld [vmem:[#allocation8 + $0xa24] sm:$0xf] }
 0x4d5   :  { %9681 = vmatpush.bf16.msra.mxu3 %v14252_v32  ;;  %v13936_v28 = vor.u32 %v16742_v52, %v13933_v10  ;;  %v16642_v32 = vld [vmem:[#allocation8 + $0x704] sm:$0xf] }
 0x4d6   :  { %9795 = vmatpush.bf16.msrb.mxu0 %v14056_v12  ;;  %v15613_v12 = vld [vmem:[#allocation8 + $0x1768] sm:$0xf0]  ;;  %v18032_v45 = vpop.f32.mrf.mxu0  ;;  %v17022_v44 = vld [vmem:[#allocation8 + $0x12e4] sm:$0xf] }
 0x4d7   :  { %9783 = vmatpush.bf16.msra.mxu1 %v13696_v56  ;;  %v15572_v56 = vor.u32 %v17157_v1, %v15571_v0  ;;  %v15616_v24 = vor.u32 %v17162_v63, %v15613_v12  ;;  %v13493_v0 = vld [vmem:[#allocation8 + $0x6d8] sm:$0xf0]  ;;  %v17012_v1 = vld [vmem:[#allocation8 + $0x1294] sm:$0xf] }
 0x4d8   :  { %9808 = vmatpush.bf16.msrb.mxu2 %v14376_v53  ;;  %v14256_v53 = vor.u32 %v16822_v59, %v14253_v54  ;;  %9682 = vmatmul.bf16.vlgmr.msra.gmra.mxu3 %v17723_v19  ;;  %v17102_v59 = vld [vmem:[#allocation8 + $0x1564] sm:$0xf]  ;;  %v16632_v54 = vld [vmem:[#allocation8 + $0x6b4] sm:$0xf] }
 0x4d9   :  { %9731 = vmatpush.bf16.msrb.mxu3 %v15612_v48  ;;  %v17092_v12 = vld [vmem:[#allocation8 + $0x1514] sm:$0xf] }
 0x4da   :  { %9796 = vmatpush.bf16.msrb.mxu0 %v14016_v33  ;;  %v17152_v33 = vld [vmem:[#allocation8 + $0x16f4] sm:$0xf]  ;;  %v15336_v15 = vor.u32 %v17092_v12, %v15333_v17  ;;  %v17182_v12 = vld [vmem:[#allocation11 + $0x70] sm:$0xff] }
 0x4db   :  { %9784 = vmatpush.bf16.msra.mxu1 %v13656_v37  ;;  %v15093_v37 = vld [vmem:[#allocation8 + $0x1358] sm:$0xf0]  ;;  %v15576_v39 = vor.u32 %v17152_v33, %v15573_v55  ;;  %v9462_v40 = vpop.f32.mrf.mxu3  ;;  %v17082_v33 = vld [vmem:[#allocation8 + $0x14c4] sm:$0xf]  ;;  %v15293_v55 = vld [vmem:[#allocation8 + $0x14e8] sm:$0xf0] }
 0x4dc   :  { %9809 = vmatpush.bf16.msrb.mxu2 %v14336_v21  ;;  %v17032_v21 = vld [vmem:[#allocation8 + $0x1334] sm:$0xf]  ;;  %v9463_v63 = vadd.f32 %v9462_v40, %v18029_v50 }
 0x4dd   :  { %9732 = vmatpush.bf16.msrb.mxu3 %v15572_v56  ;;  %v15096_v27 = vor.u32 %v17032_v21, %v15093_v37  ;;  %v16622_v56 = vld [vmem:[#allocation8 + $0x664] sm:$0xf]  ;;  %v16612_v37 = vld [vmem:[#allocation8 + $0x614] sm:$0xf] }
 0x4de   :  { %9797 = vmatpush.bf16.msrb.mxu0 %v13976_v13  ;;  %v13533_v13 = vld [vmem:[#allocation8 + $0x728] sm:$0xf0]  ;;  %v9555_v10 = vpop.f32.mrf.mxu0  ;;  %v18041_v22 = vadd.f32 %v18010_v58, %v9463_v63  ;;  %v13413_v58 = vld [vmem:[#allocation8 + $0x638] sm:$0xf0]  ;;  %v17199_v40 = vld [vmem:[#allocation11 + $0xf8] sm:$0xff] }
 0x4df   :  { %9785 = vmatpush.bf16.msra.mxu1 %v13616_v46  ;;  %v18037_v2 = vpop.f32.mrf.mxu1  ;;  %v13536_v52 = vor.u32 %v16642_v32, %v13533_v13  ;;  %v17191_v46 = vld [vmem:[#allocation11 + $0xb8] sm:$0xff]  ;;  %v16602_v32 = vld [vmem:[#allocation8 + $0x5c4] sm:$0xf]  ;;  %v13373_v13 = vld [vmem:[#allocation8 + $0x5e8] sm:$0xf0] }
 0x4e0   :  { %9810 = vmatpush.bf16.msrb.mxu2 %v14296_v62  ;;  %v15416_v62 = vor.u32 %v17112_v3, %v15413_v57  ;;  %v13416_v3 = vor.u32 %v16612_v37, %v13413_v58  ;;  %v17072_v57 = vld [vmem:[#allocation8 + $0x1474] sm:$0xf]  ;;  %v17062_v10 = vld [vmem:[#allocation8 + $0x1424] sm:$0xf]  ;;  %v14773_v58 = vld [vmem:[#allocation8 + $0x10d8] sm:$0xf0] }
 0x4e1   :  { %9733 = vmatpush.bf16.msrb.mxu3 %v15532_v41  ;;  %v16992_v41 = vld [vmem:[#allocation8 + $0x11f4] sm:$0xf]  ;;  %v16582_v63 = vld [vmem:[#allocation8 + $0x524] sm:$0xf] }
 0x4e2   :  { %9798 = vmatpush.bf16.msrb.mxu0 %v13936_v28  ;;  %9786 = vmatmul.bf16.vlgmr.msra.gmra.mxu1 %v17706_v9  ;;  %v15533_v9 = vld [vmem:[#allocation8 + $0x16c8] sm:$0xf0]  ;;  %v13496_v28 = vor.u32 %v16632_v54, %v13493_v0  ;;  %v16592_v54 = vld [vmem:[#allocation8 + $0x574] sm:$0xf]  ;;  %v13333_v0 = vld [vmem:[#allocation8 + $0x598] sm:$0xf0] }
 0x4e3   :  { %9830 = vmatpush.bf16.msrb.mxu1 %v15176_v8  ;;  %v15536_v48 = vor.u32 %v17142_v43, %v15533_v9  ;;  %v15013_v8 = vld [vmem:[#allocation8 + $0x12b8] sm:$0xf0]  ;;  %v16972_v17 = vld [vmem:[#allocation8 + $0x1154] sm:$0xf] }
 0x4e4   :  { %9811 = vmatpush.bf16.msrb.mxu2 %v14256_v53  ;;  %v15016_v35 = vor.u32 %v17012_v1, %v15013_v8  ;;  %v17190_v53 = vld [vmem:[#allocation11 + $0xb0] sm:$0xff]  ;;  %v15253_v43 = vld [vmem:[#allocation8 + $0x1498] sm:$0xf0]  ;;  %v17183_v1 = vld [vmem:[#allocation11 + $0x78] sm:$0xff] }
 0x4e5   :  { %9799 = vmatmul.bf16.vlgmr.msrb.gmra.mxu0 %v17721_v6  ;;  %9765 = vmatpush.bf16.msra.mxu3 %v13576_v47  ;;  %v15373_v6 = vld [vmem:[#allocation8 + $0x1588] sm:$0xf0]  ;;  %v9464_v47 = vpop.f32.mrf.mxu3  ;;  %v17188_v9 = vld [vmem:[#allocation11 + $0xa0] sm:$0xff]  ;;  %v16952_v37 = vld [vmem:[#allocation8 + $0x10b4] sm:$0xf] }
 0x4e6   :  { %9843 = vmatpush.bf16.msra.mxu0 %v15496_v42  ;;  %v15376_v26 = vor.u32 %v17102_v59, %v15373_v6  ;;  %v13453_v42 = vld [vmem:[#allocation8 + $0x688] sm:$0xf0]  ;;  %v18045_v21 = vpop.f32.mrf.mxu0 }
 0x4e7   :  { %9831 = vmatpush.bf16.msrb.mxu1 %v15136_v60  ;;  %9812 = vmatmul.bf16.vlgmr.msrb.gmra.mxu2 %v17723_v19  ;;  %v15056_v19 = vor.u32 %v17022_v44, %v15053_v16  ;;  %v9568_v60 = vpop.f32.mrf.mxu1  ;;  %v13456_v50 = vor.u32 %v16622_v56, %v13453_v42  ;;  %v16982_v44 = vld [vmem:[#allocation8 + $0x11a4] sm:$0xf]  ;;  %v14893_v16 = vld [vmem:[#allocation8 + $0x11c8] sm:$0xf0] }
 0x4e8   :  { %9861 = vmatpush.bf16.msra.mxu2 %v15616_v24  ;;  %v14973_v24 = vld [vmem:[#allocation8 + $0x1268] sm:$0xf0]  ;;  %15625 = vmatmul.msk.bf16.vlgmr.msrb.gmra.mxu3 %vm8565_vm1, %v17767_v29  ;;  %v14896_v6 = vor.u32 %v16982_v44, %v14893_v16  ;;  %v17185_v56 = vld [vmem:[#allocation11 + $0x88] sm:$0xff] }
 0x4e9   :  { %9766 = vmatpush.bf16.msra.mxu3 %v13536_v52  ;;  %v14976_v25 = vor.u32 %v17002_v14, %v14973_v24  ;;  %v13376_v52 = vor.u32 %v16602_v32, %v13373_v13  ;;  %v15213_v59 = vld [vmem:[#allocation8 + $0x1448] sm:$0xf0]  ;;  %v17181_v24 = vld [vmem:[#allocation11 + $0x68] sm:$0xff]  ;;  %v17195_v13 = vld [vmem:[#allocation11 + $0xd8] sm:$0xff] }
 0x4ea   :  { %9844 = vmatpush.bf16.msra.mxu0 %v15456_v5  ;;  %v18043_v7 = vpop.f32.mrf.mxu2  ;;  %v14933_v5 = vld [vmem:[#allocation8 + $0x1218] sm:$0xf0]  ;;  %v15216_v8 = vor.u32 %v17062_v10, %v15213_v59  ;;  %v17198_v42 = vld [vmem:[#allocation11 + $0xf0] sm:$0xff]  ;;  %v16962_v60 = vld [vmem:[#allocation8 + $0x1104] sm:$0xf] }
 0x4eb   :  { %9832 = vmatpush.bf16.msrb.mxu1 %v15096_v27  ;;  %v14936_v27 = vor.u32 %v16992_v41, %v14933_v5  ;;  %v17196_v5 = vld [vmem:[#allocation11 + $0xe0] sm:$0xff] }
 0x4ec   :  { %9862 = vmatpush.bf16.msra.mxu2 %v15576_v39  ;;  %v15296_v39 = vor.u32 %v17082_v33, %v15293_v55  ;;  %v17184_v33 = vld [vmem:[#allocation11 + $0x80] sm:$0xff]  ;;  %v9871_v55 = vmax.f32 %v17889_v34, 0.0 }
 0x4ed   :  { %9767 = vmatpush.bf16.msra.mxu3 %v13496_v28  ;;  %v13293_v28 = vld [vmem:[#allocation8 + $0x548] sm:$0xf0]  ;;  %v14693_v10 = vld [vmem:[#allocation8 + $0x1038] sm:$0xf0] }
 0x4ee   :  { %9845 = vmatpush.bf16.msra.mxu0 %v15416_v62  ;;  %v15256_v62 = vor.u32 %v17072_v57, %v15253_v43  ;;  %v9881_v47 = vpack.c.bf16 %v9871_v55, %v9871_v55  ;;  %v17179_v57 = vld [vmem:[#allocation11 + $0x58] sm:$0xff]  ;;  %v17222_v43 = vld [vmem:[#allocation11 + $0x1b0] sm:$0xff] }
 0x4ef   :  { %9833 = vmatpush.bf16.msrb.mxu1 %v15056_v19  ;;  %v17187_v19 = vld [vmem:[#allocation11 + $0x98] sm:$0xff]  ;;  %v17230_v55 = vld [vmem:[#allocation11 + $0x1f0] sm:$0xff] }
 0x4f0   :  { %9863 = vmatpush.bf16.msra.mxu2 %v15536_v48 }
 0x4f1   :  { %9768 = vmatpush.bf16.msra.mxu3 %v13456_v50 }
 0x4f2   :  { %9846 = vmatpush.bf16.msra.mxu0 %v15376_v26  ;;  %v9594_v48 = vpop.f32.mrf.mxu2  ;;  %v17186_v26 = vld [vmem:[#allocation11 + $0x90] sm:$0xff] }
 0x4f3   :  { %9834 = vmatpush.bf16.msrb.mxu1 %v15016_v35  ;;  %v14853_v35 = vld [vmem:[#allocation8 + $0x1178] sm:$0xf0]  ;;  %v17221_v48 = vld [vmem:[#allocation11 + $0x1a8] sm:$0xff] }
 0x4f4   :  { %10522 = vmatpush.bf16.msrb.mxu2 %v17191_v46  ;;  %v9607_v46 = vpop.f32.mrf.mxu0  ;;  %v14856_v14 = vor.u32 %v16972_v17, %v14853_v35  ;;  %v14613_v17 = vld [vmem:[#allocation8 + $0xf98] sm:$0xf0] }
 0x4f5   :  { %9769 = vmatpush.bf16.msra.mxu3 %v13416_v3  ;;  %v14776_v3 = vor.u32 %v16952_v37, %v14773_v58  ;;  %v17192_v35 = vld [vmem:[#allocation11 + $0xc0] sm:$0xff] }
 0x4f6   :  { %9847 = vmatpush.bf16.msra.mxu0 %v15336_v15  ;;  %v14813_v15 = vld [vmem:[#allocation8 + $0x1128] sm:$0xf0]  ;;  %v17216_v58 = vld [vmem:[#allocation11 + $0x180] sm:$0xff] }
 0x4f7   :  { %9835 = vmatpush.bf16.msrb.mxu1 %v14976_v25  ;;  %15626 = vmatmul.msk.bf16.vlgmr.msra.gmra.mxu2 %vm8565_vm1, %v17767_v29  ;;  %v13336_v29 = vor.u32 %v16592_v54, %v13333_v0  ;;  %v14816_v25 = vor.u32 %v16962_v60, %v14813_v15  ;;  %v17177_v54 = vld [vmem:[#allocation11 + $0x48] sm:$0xff]  ;;  %v17220_v0 = vld [vmem:[#allocation11 + $0x1a0] sm:$0xff]  ;;  %v17214_v60 = vld [vmem:[#allocation11 + $0x170] sm:$0xff] }
 0x4f8   :  { %10523 = vmatpush.bf16.msrb.mxu2 %v17190_v53  ;;  %v13296_v53 = vor.u32 %v16582_v63, %v13293_v28  ;;  %v9870_v63 = vmax.f32 %v17844_v18, 0.0  ;;  %v17215_v28 = vld [vmem:[#allocation11 + $0x178] sm:$0xff]  ;;  %v16902_v15 = vld [vmem:[#allocation8 + $0xf24] sm:$0xf] }
 0x4f9   :  { %9770 = vmatpush.bf16.msra.mxu3 %v13376_v52  ;;  %v16932_v52 = vld [vmem:[#allocation8 + $0x1014] sm:$0xf] }
 0x4fa   :  { %9848 = vmatpush.bf16.msra.mxu0 %v15296_v39  ;;  %v14696_v46 = vor.u32 %v16932_v52, %v14693_v10  ;;  %v17226_v52 = vld [vmem:[#allocation11 + $0x1d0] sm:$0xff] }
 0x4fb   :  { %9836 = vmatpush.bf16.msrb.mxu1 %v14936_v27  ;;  %v9527_v39 = vpop.f32.mrf.mxu3  ;;  %v16942_v27 = vld [vmem:[#allocation8 + $0x1064] sm:$0xf] }
 0x4fc   :  { %10524 = vmatpush.bf16.msrb.mxu2 %v17189_v49  ;;  %v17180_v49 = vld [vmem:[#allocation11 + $0x60] sm:$0xff]  ;;  %v9528_v34 = vadd.f32 %v9527_v39, %v18021_v31  ;;  %v9875_v39 = vmax.f32 %v18041_v22, 0.0 }
 0x4fd   :  { %9771 = vmatpush.bf16.msra.mxu3 %v13336_v29 }
 0x4fe   :  { %9849 = vmatpush.bf16.msra.mxu0 %v15256_v62  ;;  %v17178_v62 = vld [vmem:[#allocation11 + $0x50] sm:$0xff] }
 0x4ff   :  { %9837 = vmatpush.bf16.msrb.mxu1 %v14896_v6  ;;  %v18053_v50 = vpop.f32.mrf.mxu1 }
 0x500   :  { %10525 = vmatpush.bf16.msrb.mxu2 %v17188_v9  ;;  %v9541_v9 = vadd.f32 %v18025_v36, %v9528_v34  ;;  %v17194_v36 = vld [vmem:[#allocation11 + $0xd0] sm:$0xff] }
 0x501   :  { %9772 = vmatpush.bf16.msra.mxu3 %v13296_v53  ;;  %v9872_v53 = vmax.f32 %v17926_v23, 0.0  ;;  %v17217_v23 = vld [vmem:[#allocation11 + $0x188] sm:$0xff] }
 0x502   :  { %9850 = vmatpush.bf16.msra.mxu0 %v15216_v8  ;;  %9838 = vmatmul.bf16.vlgmr.msrb.gmra.mxu1 %v17725_v11  ;;  %v17197_v11 = vld [vmem:[#allocation11 + $0xe8] sm:$0xff]  ;;  %v18057_v41 = vpop.f32.mrf.mxu0  ;;  %v9554_v31 = vadd.f32 %v18032_v45, %v9541_v9  ;;  %v14653_v8 = vld [vmem:[#allocation8 + $0xfe8] sm:$0xf0]  ;;  %v17211_v9 = vld [vmem:[#allocation11 + $0x158] sm:$0xff] }
 0x503   :  { %10509 = vmatpush.bf16.msra.mxu1 %v17183_v1  ;;  %v16922_v1 = vld [vmem:[#allocation8 + $0xfc4] sm:$0xf]  ;;  %v9882_v18 = vpack.c.bf16 %v9872_v53, %v9872_v53 }
 0x504   :  { %10526 = vmatpush.bf16.msrb.mxu2 %v17187_v19  ;;  %9773 = vmatmul.bf16.vlgmr.msra.gmra.mxu3 %v17702_v4  ;;  %v14733_v4 = vld [vmem:[#allocation8 + $0x1088] sm:$0xf0]  ;;  %v18065_v6 = vadd.f32 %v18037_v2, %v9554_v31  ;;  %v9529_v19 = vpop.f32.mrf.mxu3  ;;  %v17193_v45 = vld [vmem:[#allocation11 + $0xc8] sm:$0xff]  ;;  %v17219_v2 = vld [vmem:[#allocation11 + $0x198] sm:$0xff] }
 0x505   :  { %9851 = vmatmul.bf16.vlgmr.msra.gmra.mxu0 %v17757_v20  ;;  %9817 = vmatpush.bf16.msrb.mxu3 %v14856_v14  ;;  %v17223_v20 = vld [vmem:[#allocation11 + $0x1b8] sm:$0xff]  ;;  %v14736_v16 = vor.u32 %v16942_v27, %v14733_v4  ;;  %v9885_v27 = vpack.c.bf16 %v9875_v39, %v9875_v39  ;;  %v17210_v31 = vld [vmem:[#allocation11 + $0x150] sm:$0xff]  ;;  %v17205_v53 = vld [vmem:[#allocation11 + $0x128] sm:$0xff] }
 0x506   :  { %10535 = vmatpush.bf16.msrb.mxu0 %v17199_v40  ;;  %v17176_v40 = vld [vmem:[#allocation11 + $0x40] sm:$0xff]  ;;  %v17231_v14 = vld [vmem:[#allocation11 + $0x1f8] sm:$0xff] }
 0x507   :  { %10510 = vmatpush.bf16.msra.mxu1 %v17182_v12  ;;  %v9620_v32 = vpop.f32.mrf.mxu1  ;;  %v16912_v12 = vld [vmem:[#allocation8 + $0xf74] sm:$0xf] }
 0x508   :  { %10527 = vmatpush.bf16.msrb.mxu2 %v17186_v26  ;;  %v14656_v26 = vor.u32 %v16922_v1, %v14653_v8  ;;  %v17227_v32 = vld [vmem:[#allocation11 + $0x1d8] sm:$0xff]  ;;  %v17169_v1 = vld [vmem:[#allocation11 + $0x8] sm:$0xff] }
 0x509   :  { %9818 = vmatpush.bf16.msrb.mxu3 %v14816_v25  ;;  %v17175_v25 = vld [vmem:[#allocation11 + $0x38] sm:$0xff] }
 0x50a   :  { %10536 = vmatpush.bf16.msrb.mxu0 %v17198_v42  ;;  %v18061_v44 = vpop.f32.mrf.mxu2  ;;  %v9646_v59 = vpop.f32.mrf.mxu0  ;;  %v17218_v42 = vld [vmem:[#allocation11 + $0x190] sm:$0xff]  ;;  %v17239_v39 = vld [vmem:[#allocation11 + $0x238] sm:$0xff] }
 0x50b   :  { %10511 = vmatpush.bf16.msra.mxu1 %v17181_v24  ;;  %v9880_v24 = vpack.c.bf16 %v9870_v63, %v9870_v63  ;;  %v17171_v59 = vld [vmem:[#allocation11 + $0x18] sm:$0xff] }
 0x50c   :  { %10528 = vmatpush.bf16.msrb.mxu2 %v17185_v56  ;;  %v14616_v56 = vor.u32 %v16912_v12, %v14613_v17 }
 0x50d   :  { %9819 = vmatpush.bf16.msrb.mxu3 %v14776_v3  ;;  %v17228_v3 = vld [vmem:[#allocation11 + $0x1e0] sm:$0xff] }
 0x50e   :  { %10537 = vmatpush.bf16.msrb.mxu0 %v17197_v11 }
 0x50f   :  { %10512 = vmatpush.bf16.msra.mxu1 %v17180_v49  ;;  %v17213_v49 = vld [vmem:[#allocation11 + $0x168] sm:$0xff] }
 0x510   :  { %10529 = vmatpush.bf16.msrb.mxu2 %v17184_v33  ;;  %v14573_v33 = vld [vmem:[#allocation8 + $0xf48] sm:$0xf0] }
 0x511   :  { %9820 = vmatpush.bf16.msrb.mxu3 %v14736_v16  ;;  %v14576_v11 = vor.u32 %v16902_v15, %v14573_v33 }
 0x512   :  { %10538 = vmatpush.bf16.msrb.mxu0 %v17196_v5  ;;  %v9659_v29 = vpop.f32.mrf.mxu2  ;;  %v17174_v5 = vld [vmem:[#allocation11 + $0x30] sm:$0xff] }
 0x513   :  { %10530 = vmatmul.bf16.vlgmr.msrb.gmra.mxu2 %v9881_v47  ;;  %10513 = vmatpush.bf16.msra.mxu1 %v17179_v57  ;;  %v17212_v47 = vld [vmem:[#allocation11 + $0x160] sm:$0xff] }
 0x514   :  { %10574 = vmatpush.bf16.msra.mxu2 %v17223_v20  ;;  %v17229_v20 = vld [vmem:[#allocation11 + $0x1e8] sm:$0xff]  ;;  %v17168_v29 = vld [vmem:[#allocation11] sm:$0xff] }
 0x515   :  { %9821 = vmatpush.bf16.msrb.mxu3 %v14696_v46  ;;  %v17208_v46 = vld [vmem:[#allocation11 + $0x140] sm:$0xff] }
 0x516   :  { %10539 = vmatpush.bf16.msrb.mxu0 %v17195_v13  ;;  %v17172_v13 = vld [vmem:[#allocation11 + $0x20] sm:$0xff] }
 0x517   :  { %10514 = vmatpush.bf16.msra.mxu1 %v17178_v62 }
 0x518   :  { %10575 = vmatpush.bf16.msra.mxu2 %v17222_v43  ;;  %v17173_v43 = vld [vmem:[#allocation11 + $0x28] sm:$0xff] }
 0x519   :  { %9822 = vmatpush.bf16.msrb.mxu3 %v14656_v26  ;;  %v9869_v26 = vmax.f32 %v17819_v61, 0.0 }
 0x51a   :  { %10540 = vmatpush.bf16.msrb.mxu0 %v17194_v36  ;;  %v17170_v36 = vld [vmem:[#allocation11 + $0x10] sm:$0xff] }
 0x51b   :  { %10515 = vmatpush.bf16.msra.mxu1 %v17177_v54  ;;  %v9579_v57 = vpop.f32.mrf.mxu3  ;;  %v17224_v54 = vld [vmem:[#allocation11 + $0x1c0] sm:$0xff]  ;;  %v9879_v63 = vpack.c.bf16 %v9869_v26, %v9869_v26 }
 0x51c   :  { %10576 = vmatpush.bf16.msra.mxu2 %v17221_v48  ;;  %v9580_v4 = vadd.f32 %v9579_v57, %v18065_v6  ;;  %v17209_v6 = vld [vmem:[#allocation11 + $0x148] sm:$0xff] }
 0x51d   :  { %9823 = vmatpush.bf16.msrb.mxu3 %v14616_v56  ;;  %v17237_v57 = vld [vmem:[#allocation11 + $0x228] sm:$0xff] }
 0x51e   :  { %10541 = vmatpush.bf16.msrb.mxu0 %v17193_v45  ;;  %v9593_v22 = vadd.f32 %v18043_v7, %v9580_v4  ;;  %v17225_v7 = vld [vmem:[#allocation11 + $0x1c8] sm:$0xff]  ;;  %v17236_v4 = vld [vmem:[#allocation11 + $0x220] sm:$0xff] }
 0x51f   :  { %10516 = vmatpush.bf16.msra.mxu1 %v17176_v40  ;;  %v18069_v37 = vpop.f32.mrf.mxu1  ;;  %v17207_v40 = vld [vmem:[#allocation11 + $0x138] sm:$0xff] }
 0x520   :  { %10577 = vmatpush.bf16.msra.mxu2 %v17220_v0  ;;  %v9606_v16 = vadd.f32 %v18045_v21, %v9593_v22  ;;  %v9874_v21 = vmax.f32 %v17996_v30, 0.0 }
 0x521   :  { %9824 = vmatpush.bf16.msrb.mxu3 %v14576_v11 }
 0x522   :  { %10517 = vmatmul.bf16.vlgmr.msra.gmra.mxu1 %v9880_v24  ;;  %10542 = vmatpush.bf16.msrb.mxu0 %v17192_v35  ;;  %v18073_v34 = vpop.f32.mrf.mxu0  ;;  %v9876_v0 = vmax.f32 %v9606_v16, 0.0  ;;  %v9884_v8 = vpack.c.bf16 %v9874_v21, %v9874_v21  ;;  %v17204_v24 = vld [vmem:[#allocation11 + $0x120] sm:$0xff] }
 0x523   :  { %10561 = vmatpush.bf16.msrb.mxu1 %v17215_v28  ;;  %v9581_v10 = vpop.f32.mrf.mxu3  ;;  %v17206_v28 = vld [vmem:[#allocation11 + $0x130] sm:$0xff] }
 0x524   :  { %10578 = vmatpush.bf16.msra.mxu2 %v17219_v2  ;;  %9825 = vmatmul.bf16.vlgmr.msrb.gmra.mxu3 %v17728_v51  ;;  %v9886_v45 = vpack.c.bf16 %v9876_v0, %v9876_v0  ;;  %v4792_v2 = vld [vmem:[#allocation10 + $0x8] sm:$0x3] }
 0x525   :  { %10543 = vmatmul.bf16.vlgmr.msrb.gmra.mxu0 %v9882_v18  ;;  %10496 = vmatpush.bf16.msra.mxu3 %v17175_v25  ;;  %v4803_v30 = vperm.slane %v4792_v2, 0  ;;  %v4804_v56 = vperm.slane %v4792_v2, 1 }
 0x526   :  { %10587 = vmatpush.bf16.msra.mxu0 %v17231_v14 }
 0x527   :  { %10562 = vmatpush.bf16.msrb.mxu1 %v17214_v60  ;;  %v9672_v51 = vpop.f32.mrf.mxu1  ;;  %v9619_v17 = vadd.f32 %v18053_v50, %v4803_v30  ;;  %v17240_v30 = vld [vmem:[#allocation11 + $0x240] sm:$0xff] }
 0x528   :  { %10579 = vmatpush.bf16.msra.mxu2 %v17218_v42  ;;  %v17235_v51 = vld [vmem:[#allocation11 + $0x218] sm:$0xff] }
 0x529   :  { %10497 = vmatpush.bf16.msra.mxu3 %v17174_v5  ;;  %v9873_v5 = vmax.f32 %v17960_v38, 0.0 }
 0x52a   :  { %10588 = vmatpush.bf16.msra.mxu0 %v17230_v55  ;;  %v18078_v62 = vpop.f32.mrf.mxu2  ;;  %v9698_v48 = vpop.f32.mrf.mxu0 }
 0x52b   :  { %10563 = vmatpush.bf16.msrb.mxu1 %v17213_v49  ;;  %v17202_v49 = vld [vmem:[#allocation11 + $0x110] sm:$0xff] }
 0x52c   :  { %10580 = vmatpush.bf16.msra.mxu2 %v17217_v23  ;;  %v17203_v23 = vld [vmem:[#allocation11 + $0x118] sm:$0xff] }
 0x52d   :  { %10498 = vmatpush.bf16.msra.mxu3 %v17173_v43 }
 0x52e   :  { %10589 = vmatpush.bf16.msra.mxu0 %v17229_v20 }
 0x52f   :  { %10564 = vmatpush.bf16.msrb.mxu1 %v17212_v47  ;;  %v9883_v47 = vpack.c.bf16 %v9873_v5, %v9873_v5 }
 0x530   :  { %10581 = vmatpush.bf16.msra.mxu2 %v17216_v58  ;;  %v17201_v58 = vld [vmem:[#allocation11 + $0x108] sm:$0xff] }
 0x531   :  { %10499 = vmatpush.bf16.msra.mxu3 %v17172_v13 }
 0x532   :  { %10590 = vmatpush.bf16.msra.mxu0 %v17228_v3  ;;  %v9711_v19 = vpop.f32.mrf.mxu2 }
 0x533   :  { %10582 = vmatmul.bf16.vlgmr.msra.gmra.mxu2 %v9885_v27  ;;  %10565 = vmatpush.bf16.msrb.mxu1 %v17211_v9 }
 0x535   :  { %10500 = vmatpush.bf16.msra.mxu3 %v17171_v59 }
 0x536   :  { %10591 = vmatpush.bf16.msra.mxu0 %v17227_v32 }
 0x537   :  { %10566 = vmatpush.bf16.msrb.mxu1 %v17210_v31  ;;  %v17234_v31 = vld [vmem:[#allocation11 + $0x210] sm:$0xff] }
 0x539   :  { %10501 = vmatpush.bf16.msra.mxu3 %v17170_v36 }
 0x53a   :  { %10592 = vmatpush.bf16.msra.mxu0 %v17226_v52  ;;  %v17233_v52 = vld [vmem:[#allocation11 + $0x208] sm:$0xff] }
 0x53b   :  { %10567 = vmatpush.bf16.msrb.mxu1 %v17209_v6  ;;  %v9631_v42 = vpop.f32.mrf.mxu3  ;;  %v17232_v6 = vld [vmem:[#allocation11 + $0x200] sm:$0xff] }
 0x53c   :  { %v9632_v14 = vadd.f32 %v9631_v42, %v9619_v17 }
 0x53d   :  { %10502 = vmatpush.bf16.msra.mxu3 %v17169_v1  ;;  %v17242_v1 = vld [vmem:[#allocation11 + $0x250] sm:$0xff] }
 0x53e   :  { %10593 = vmatpush.bf16.msra.mxu0 %v17225_v7  ;;  %v9645_v61 = vadd.f32 %v18057_v41, %v9632_v14  ;;  %v17200_v41 = vld [vmem:[#allocation11 + $0x100] sm:$0xff] }
 0x53f   :  { %10568 = vmatpush.bf16.msrb.mxu1 %v17208_v46  ;;  %v9722_v12 = vpop.f32.mrf.mxu1 }
 0x540   :  { %v9658_v18 = vadd.f32 %v18061_v44, %v9645_v61  ;;  %v17238_v44 = vld [vmem:[#allocation11 + $0x230] sm:$0xff] }
 0x541   :  { %10503 = vmatpush.bf16.msra.mxu3 %v17168_v29 }
 0x542   :  { %10594 = vmatpush.bf16.msra.mxu0 %v17224_v54  ;;  %10569 = vmatmul.bf16.vlgmr.msrb.gmra.mxu1 %v9884_v8  ;;  %v9748_v35 = vpop.f32.mrf.mxu0  ;;  %v9671_v50 = vadd.f32 %v18069_v37, %v9658_v18 }
 0x543   :  { %v9749_v60 = vadd.f32 %v9748_v35, %v4804_v56  ;;  %v9633_v25 = vpop.f32.mrf.mxu3  ;;  %10618 = vmatpush.bf16.msra.mxu1 %v17242_v1 }
 0x544   :  { %10504 = vmatmul.bf16.vlgmr.msra.gmra.mxu3 %v9879_v63 }
 0x545   :  { %10595 = vmatmul.bf16.vlgmr.msra.gmra.mxu0 %v9886_v45  ;;  %10548 = vmatpush.bf16.msrb.mxu3 %v17207_v40  ;;  %v17241_v40 = vld [vmem:[#allocation11 + $0x248] sm:$0xff] }
 0x547   :  { %v9724_v15 = vpop.f32.mrf.mxu1  ;;  %10619 = vmatpush.bf16.msra.mxu1 %v17241_v40 }
 0x549   :  { %10549 = vmatpush.bf16.msrb.mxu3 %v17206_v28 }
 0x54a   :  { %v9761_v33 = vpop.f32.mrf.mxu2  ;;  %v9750_v55 = vpop.f32.mrf.mxu0 }
 0x54b   :  { %v9762_v11 = vadd.f32 %v9761_v33, %v9749_v60  ;;  %10620 = vmatpush.bf16.msra.mxu1 %v17240_v30 }
 0x54d   :  { %10550 = vmatpush.bf16.msrb.mxu3 %v17205_v53 }
 0x551   :  { %10551 = vmatpush.bf16.msrb.mxu3 %v17204_v24 }
 0x552   :  { %v9763_v20 = vpop.f32.mrf.mxu2 }
 0x555   :  { %10552 = vmatpush.bf16.msrb.mxu3 %v17203_v23 }
 0x559   :  { %10553 = vmatpush.bf16.msrb.mxu3 %v17202_v49 }
 0x55b   :  { %v9683_v43 = vpop.f32.mrf.mxu3 }
 0x55c   :  { %v9684_v27 = vadd.f32 %v9683_v43, %v9671_v50 }
 0x55d   :  { %10554 = vmatpush.bf16.msrb.mxu3 %v17201_v58  ;;  %v17255_v58 = vld [vmem:[#allocation13] ss:$0 sm:$0xff] }
 0x55e   :  { %v9697_v9 = vadd.f32 %v18073_v34, %v9684_v27 }
 0x55f   :  { %v9787_v3 = vpop.f32.mrf.mxu1 }
 0x560   :  { %v9710_v38 = vadd.f32 %v18078_v62, %v9697_v9 }
 0x561   :  { %10555 = vmatpush.bf16.msrb.mxu3 %v17200_v41 }
 0x562   :  { %v9800_v37 = vpop.f32.mrf.mxu0  ;;  %v9723_v10 = vadd.f32 %v9722_v12, %v9710_v38 }
 0x563   :  { %v9685_v16 = vpop.f32.mrf.mxu3 }
 0x564   :  { %10556 = vmatmul.bf16.vlgmr.msrb.gmra.mxu3 %v9883_v47 }
 0x565   :  { %10600 = vmatpush.bf16.msra.mxu3 %v17239_v39 }
 0x567   :  { %v9789_v22 = vpop.f32.mrf.mxu1 }
 0x569   :  { %10601 = vmatpush.bf16.msra.mxu3 %v17238_v44 }
 0x56a   :  { %v9813_v32 = vpop.f32.mrf.mxu2  ;;  %v9802_v13 = vpop.f32.mrf.mxu0 }
 0x56b   :  { %v9735_v59 = vpop.f32.mrf.mxu3 }
 0x56c   :  { %v9736_v7 = vadd.f32 %v9735_v59, %v9723_v10 }
 0x56d   :  { %10602 = vmatpush.bf16.msra.mxu3 %v17237_v57 }
 0x56e   :  { %v9877_v36 = vmax.f32 %v9736_v7, 0.0 }
 0x570   :  { %v9887_v19 = vpack.c.bf16 %v9877_v36, %v9877_v36 }
 0x571   :  { %10603 = vmatpush.bf16.msra.mxu3 %v17236_v4 }
 0x572   :  { %v9815_v48 = vpop.f32.mrf.mxu2 }
 0x573   :  { %v9737_v62 = vpop.f32.mrf.mxu3 }
 0x575   :  { %10604 = vmatpush.bf16.msra.mxu3 %v17235_v51 }
 0x579   :  { %10605 = vmatpush.bf16.msra.mxu3 %v17234_v31 }
 0x57a   :  { %v9865_v34 = vpop.f32.mrf.mxu2 }
 0x57d   :  { %10606 = vmatpush.bf16.msra.mxu3 %v17233_v52 }
 0x57f   :  { %v9839_v46 = vpop.f32.mrf.mxu1 }
 0x581   :  { %10607 = vmatpush.bf16.msra.mxu3 %v17232_v6 }
 0x582   :  { %v9852_v21 = vpop.f32.mrf.mxu0  ;;  %v9867_v54 = vpop.f32.mrf.mxu2 }
 0x584   :  { %10608 = vmatmul.bf16.vlgmr.msra.gmra.mxu3 %v9887_v19 }
 0x587   :  { %v9841_v0 = vpop.f32.mrf.mxu1  ;;  %v9774_v45 = vpop.f32.mrf.mxu3 }
 0x588   :  { %v9775_v29 = vadd.f32 %v9774_v45, %v9762_v11 }
 0x58a   :  { %v9854_v8 = vpop.f32.mrf.mxu0  ;;  %v9788_v26 = vadd.f32 %v9787_v3, %v9775_v29 }
 0x58c   :  { %v9801_v63 = vadd.f32 %v9800_v37, %v9788_v26 }
 0x58e   :  { %v9814_v42 = vadd.f32 %v9813_v32, %v9801_v63 }
 0x58f   :  { %v9776_v28 = vpop.f32.mrf.mxu3 }
 0x596   :  { %v10531_v2 = vpop.f32.mrf.mxu2 }
 0x59e   :  { %v10533_v12 = vpop.f32.mrf.mxu2 }
 0x59f   :  { %v10518_v17 = vpop.f32.mrf.mxu1 }
 0x5a2   :  { %v10544_v35 = vpop.f32.mrf.mxu0 }
 0x5a7   :  { %v10520_v53 = vpop.f32.mrf.mxu1  ;;  %v9826_v14 = vpop.f32.mrf.mxu3 }
 0x5a8   :  { %v9827_v61 = vadd.f32 %v9826_v14, %v9814_v42 }
 0x5aa   :  { %v10546_v56 = vpop.f32.mrf.mxu0  ;;  %v9840_v24 = vadd.f32 %v9839_v46, %v9827_v61 }
 0x5ac   :  { %v9853_v60 = vadd.f32 %v9852_v21, %v9840_v24 }
 0x5ae   :  { %v9866_v33 = vadd.f32 %v9865_v34, %v9853_v60 }
 0x5af   :  { %v9828_v18 = vpop.f32.mrf.mxu3 }
 0x5b0   :  { %v9878_v11 = vmax.f32 %v9866_v33, 0.0 }
 0x5b2   :  { %v9888_v55 = vpack.c.bf16 %v9878_v11, %v9878_v11 }
 0x5b4   :  { %15927 = vmatmul.msk.bf16.vlgmr.msra.gmra.mxu1 %vm8565_vm1, %v9888_v55 }
 0x5b6   :  { %v10583_v15 = vpop.f32.mrf.mxu2 }
 0x5be   :  { %v10585_v23 = vpop.f32.mrf.mxu2 }
 0x5bf   :  { %v10570_v50 = vpop.f32.mrf.mxu1 }
 0x5c2   :  { %v10596_v25 = vpop.f32.mrf.mxu0 }
 0x5c7   :  { %v10572_v49 = vpop.f32.mrf.mxu1  ;;  %v10505_v41 = vpop.f32.mrf.mxu3 }
 0x5c8   :  { %v10506_v5 = vadd.f32 %v17255_v58, %v10505_v41 }
 0x5ca   :  { %v10598_v20 = vpop.f32.mrf.mxu0  ;;  %v10519_v39 = vadd.f32 %v10518_v17, %v10506_v5 }
 0x5cc   :  { %v10532_v47 = vadd.f32 %v10531_v2, %v10519_v39 }
 0x5ce   :  { %v10545_v44 = vadd.f32 %v10544_v35, %v10532_v47 }
 0x5cf   :  { %v10507_v3 = vpop.f32.mrf.mxu3 }
 0x5e7   :  { %v10557_v57 = vpop.f32.mrf.mxu3 }
 0x5e8   :  { %v10558_v37 = vadd.f32 %v10557_v57, %v10545_v44 }
 0x5ea   :  { %v10571_v43 = vadd.f32 %v10570_v50, %v10558_v37 }
 0x5ec   :  { %v10584_v27 = vadd.f32 %v10583_v15, %v10571_v43 }
 0x5ee   :  { %v10597_v4 = vadd.f32 %v10596_v25, %v10584_v27 }
 0x5ef   :  { %v10559_v9 = vpop.f32.mrf.mxu3 }
 0x607   :  { %v10609_v22 = vpop.f32.mrf.mxu3 }
 0x608   :  { %v10610_v38 = vadd.f32 %v10609_v22, %v10597_v4 }
 0x60f   :  { %v10611_v32 = vpop.f32.mrf.mxu3 }
 0x631   :  { %v10622_v51 = vpop.f32.mrf.mxu1 }
 0x632   :  { %v10623_v13 = vadd.f32 %v10622_v51, %v10610_v38 }
 0x634   :  { %10626 = vst [vmem:[#allocation14] sm:$0xff] %v10623_v13 }
 0x635   :  { %10637 = dma.vmem_to_hbm [thread:$0]  %s10633_s6, 128, %s10635_s14, [#allocation4]  }
 0x639   :  { %v10624_v16 = vpop.f32.mrf.mxu1 }
 0x63a   :  { %17461 = dma.done.wait [#allocation4], 128  }
 0x63b   :  { %17462 = vsyncadd [#allocation4], 4294967168 }
 0x63c   :  { %10642 = vsyncpa [#allocation3], 1 }
 0x63d   :  { %10643 = vsyncpa [#allocation6], 1 }
 0x63e   :  { %10644 = vsyncpa [#allocation9], 1 }
 0x63f   :  { %10645 = vsyncpa [#allocation12], 1 }
 0x640   :  { %10646 = vsyncpa [#allocation4], 1 }

</bundles_post_ra>
